<compile_context>
chip_gen: v5e
topology: v5e:2x2
jax: 0.10.0
libtpu: 0.0.40
codegen_flags: <defaults>
</compile_context>

<pallas_src>
import jax
import jax.numpy as jnp
from jax import lax
from jax.experimental import pallas as pl
from jax.experimental.pallas import tpu as pltpu

LANES = 128        # batch tile granularity (batch lives on the lane dim)
NCLS = 10
NCLS_PAD = 16      # classes padded to a sublane-friendly 16 (pad bias = -1e30)


# ----------------------------- Pallas kernel ------------------------------ #
def convnet_kernel(x_ref, wconv_ref, conv_b_ref, fc_w_ref, fc_b_ref,
                   out_w_ref, out_b_ref, o_ref):
    # x_ref: (5, 5, 64, TB) bf16 with [dr, dc, i*8+j, b] = img[3i+dr, 3j+dc, b]
    TB = x_ref.shape[-1]
    F = wconv_ref.shape[0]          # 192 = 3 channels * 64 pooled pixels

    # conv1(3x3) + max_pool2d(3): running max over the 9 pool positions.
    # For pool position (pi, pj) the conv output at all 64 pooled pixels and
    # 3 channels is ONE MXU matmul; the 576-long contraction index is
    # tap*64 + pixel, assembled from nine major-dim (64, TB) slabs.
    acc = jnp.full((F, TB), -jnp.inf, dtype=jnp.float32)
    for pi in range(3):
        for pj in range(3):
            xp = jnp.concatenate(
                [x_ref[pi + ki, pj + kj] for ki in range(3) for kj in range(3)],
                axis=0)                                           # (576, TB) bf16
            conv_p = jnp.dot(wconv_ref[...], xp,
                             preferred_element_type=jnp.float32)  # (192, TB) f32
            acc = jnp.maximum(acc, conv_p)

    # bias + ReLU (per-channel bias is constant over the pool window, so
    # adding it after the max is exact).
    feat = jnp.maximum(acc + conv_b_ref[...], 0.0)                # (192, TB) f32

    # fc -> out, batch stays on lanes: (L,192)@(192,TB) then (16,L)@(L,TB).
    h = jnp.dot(fc_w_ref[...], feat.astype(fc_w_ref.dtype),
                preferred_element_type=jnp.float32) + fc_b_ref[...]      # (L, TB)
    logits = jnp.dot(out_w_ref[...], h.astype(out_w_ref.dtype),
                     preferred_element_type=jnp.float32) + out_b_ref[...]  # (16, TB)

    # log_softmax over the (padded) class sublanes; -1e30 pad bias -> exp()==0.
    m = jnp.max(logits, axis=0, keepdims=True)
    z = logits - m
    lse = jnp.log(jnp.sum(jnp.exp(z), axis=0, keepdims=True))
    o_ref[...] = (z - lse).astype(o_ref.dtype)


# ------------------------------- JAX glue --------------------------------- #
def _round_up(n, m):
    return ((n + m - 1) // m) * m


def _build_input_slabs(x, b_pad):
    """x: (B,1,28,28) f32 -> (5, 5, 64, b_pad) bf16 where
       [dr, dc, i*8+j, b] = x[b, 0, 3*i+dr, 3*j+dc]   (dr, dc in 0..4)."""
    B = x.shape[0]
    img = x[:, 0].astype(jnp.bfloat16)                     # cast BEFORE gathering
    if b_pad != B:
        img = jnp.pad(img, ((0, b_pad - B), (0, 0), (0, 0)))
    img = jnp.transpose(img, (1, 2, 0))                    # (28, 28, b_pad)
    rows = []
    for dr in range(5):
        cols = []
        for dc in range(5):
            sub = img[dr:dr + 22:3, dc:dc + 22:3, :]       # (8, 8, b_pad)
            cols.append(sub.reshape(64, b_pad))
        rows.append(jnp.stack(cols, axis=0))               # (5, 64, b_pad)
    return jnp.stack(rows, axis=0)                         # (5, 5, 64, b_pad)


def _build_wconv(conv_w):
    """conv_w (3,1,3,3) OIHW -> (192, 576) conv-as-matmul weight.
       Row f = c*64 + pix (PyTorch flatten order); col k = tap*64 + pix';
       value = w[c, tap] * (pix == pix')."""
    w = conv_w.reshape(3, 9).astype(jnp.float32)           # (channel, tap)
    eye64 = jnp.eye(64, dtype=jnp.float32)
    blocks = [jnp.kron(w[:, t:t + 1], eye64) for t in range(9)]   # each (192, 64)
    return jnp.concatenate(blocks, axis=1)                 # (192, 576)


def convnet_forward(x, params, tile_b=1024):
    B = x.shape[0]
    L = params["fc_w"].shape[0]                            # layer_size
    cdt = jnp.bfloat16                                     # stream / weight dtype

    # Batch tiling: batch is the lane dim -> multiples of 128.  Aim for >=2
    # grid steps when the batch allows it (v7x has 2 TensorCores), capped at
    # tile_b for VMEM headroom.
    TB = min(tile_b, max(LANES, _round_up((B + 1) // 2, LANES)))
    B_pad = _round_up(B, TB)

    x_slabs = _build_input_slabs(x, B_pad)                 # (5,5,64,B_pad) bf16
    wconv = _build_wconv(params["conv_w"]).astype(cdt)     # (192, 576) bf16

    conv_b_col = jnp.repeat(params["conv_b"].astype(jnp.float32), 64).reshape(192, 1)
    fc_w = params["fc_w"].astype(cdt)                      # (L, 192) bf16, as-is
    fc_b_col = params["fc_b"].astype(jnp.float32).reshape(L, 1)
    out_w = jnp.zeros((NCLS_PAD, L), jnp.float32).at[:NCLS].set(
        params["out_w"]).astype(cdt)                       # (16, L) bf16
    out_b_col = jnp.full((NCLS_PAD, 1), -1e30, jnp.float32).at[:NCLS, 0].set(
        params["out_b"].astype(jnp.float32))

    grid = (B_pad // TB,)
    out = pl.pallas_call(
        convnet_kernel,
        out_shape=jax.ShapeDtypeStruct((NCLS_PAD, B_pad), jnp.float32),
        grid=grid,
        in_specs=[
            pl.BlockSpec((5, 5, 64, TB), lambda i: (0, 0, 0, i)),   # streamed
            pl.BlockSpec((192, 576), lambda i: (0, 0)),             # resident
            pl.BlockSpec((192, 1), lambda i: (0, 0)),
            pl.BlockSpec((L, 192), lambda i: (0, 0)),
            pl.BlockSpec((L, 1), lambda i: (0, 0)),
            pl.BlockSpec((NCLS_PAD, L), lambda i: (0, 0)),
            pl.BlockSpec((NCLS_PAD, 1), lambda i: (0, 0)),
        ],
        out_specs=pl.BlockSpec((NCLS_PAD, TB), lambda i: (0, i)),
        compiler_params=pltpu.CompilerParams(
            dimension_semantics=("parallel",),
            vmem_limit_bytes=48 * 1024 * 1024),
    )(x_slabs, wconv, conv_b_col, fc_w, fc_b_col, out_w, out_b_col)

    return out[:NCLS, :B].T                                # (B, 10)


# --------------------------- params & reference ---------------------------- #
def init_params(key, layer_size=192):
    ks = jax.random.split(key, 6)

    def u(k, shape, fan_in):
        bound = 1.0 / jnp.sqrt(jnp.float32(fan_in))
        return jax.random.uniform(k, shape, jnp.float32, -bound, bound)

    return {
        "conv_w": u(ks[0], (3, 1, 3, 3), 9),
        "conv_b": u(ks[1], (3,), 9),
        "fc_w":  u(ks[2], (layer_size, 192), 192),
        "fc_b":  u(ks[3], (layer_size,), 192),
        "out_w": u(ks[4], (10, layer_size), layer_size),
        "out_b": u(ks[5], (10,), layer_size),
    }


def reference_forward(x, params):
    conv = lax.conv_general_dilated(
        x, params["conv_w"], window_strides=(1, 1), padding="VALID",
        dimension_numbers=("NCHW", "OIHW", "NCHW"))
    conv = conv + params["conv_b"].reshape(1, 3, 1, 1)
    pooled = lax.reduce_window(conv, -jnp.inf, lax.max,
                               (1, 1, 3, 3), (1, 1, 3, 3), "VALID")
    feat = jnp.maximum(pooled, 0.0).reshape(x.shape[0], -1)   # (B, 192)
    h = feat @ params["fc_w"].T + params["fc_b"]
    logits = h @ params["out_w"].T + params["out_b"]
    return jax.nn.log_softmax(logits, axis=1)


if __name__ == "__main__":
    key = jax.random.PRNGKey(0)
    pkey, xkey = jax.random.split(key)
    params = init_params(pkey, layer_size=192)
    x = jax.random.normal(xkey, (2, 1, 28, 28), jnp.float32)

    out = convnet_forward(x, params)
    out = jax.block_until_ready(out)
    assert out.shape == (2, 10)

    ref = reference_forward(x, params)
    # bf16 streams / weights (f32 accumulation) -> allow bf16-level error.
    if not jnp.allclose(out, ref, atol=2e-2, rtol=2e-2):
        raise AssertionError("Pallas kernel output mismatch vs JAX reference")

    print("KERNEL_OK")
</pallas_src>

<mosaic_0001>
module attributes {stable_mosaic.version = 11 : i64} {
  func.func @convnet_kernel(%arg0: i32, %arg1: memref<5x5x64x128xbf16, #tpu.memory_space<vmem>>, %arg2: memref<192x576xbf16, #tpu.memory_space<vmem>>, %arg3: memref<192x1xf32, #tpu.memory_space<vmem>>, %arg4: memref<192x192xbf16, #tpu.memory_space<vmem>>, %arg5: memref<192x1xf32, #tpu.memory_space<vmem>>, %arg6: memref<16x192xbf16, #tpu.memory_space<vmem>>, %arg7: memref<16x1xf32, #tpu.memory_space<vmem>>, %arg8: memref<16x128xf32, #tpu.memory_space<vmem>>) attributes {dimension_semantics = [#tpu.dimension_semantics<parallel>], iteration_bounds = array<i64: 1>, scalar_prefetch = 0 : i64, scratch_operands = 0 : i64, tpu.core_type = #tpu.core_type<tc>, window_params = [{transform_indices = @transform_0, window_bounds = array<i64: 5, 5, 64, 128>}, {pipeline_mode = #tpu.pipeline_mode<synchronous>, transform_indices = @transform_1, window_bounds = array<i64: 192, 576>}, {pipeline_mode = #tpu.pipeline_mode<synchronous>, transform_indices = @transform_2, window_bounds = array<i64: 192, 1>}, {pipeline_mode = #tpu.pipeline_mode<synchronous>, transform_indices = @transform_3, window_bounds = array<i64: 192, 192>}, {pipeline_mode = #tpu.pipeline_mode<synchronous>, transform_indices = @transform_4, window_bounds = array<i64: 192, 1>}, {pipeline_mode = #tpu.pipeline_mode<synchronous>, transform_indices = @transform_5, window_bounds = array<i64: 16, 192>}, {pipeline_mode = #tpu.pipeline_mode<synchronous>, transform_indices = @transform_6, window_bounds = array<i64: 16, 1>}, {transform_indices = @transform_7, window_bounds = array<i64: 16, 128>}]} {
    %cst = arith.constant 0xFF800000 : f32
    %0 = vector.broadcast %cst : f32 to vector<192x128xf32>
    %c0 = arith.constant 0 : index
    %c0_0 = arith.constant 0 : index
    %c0_1 = arith.constant 0 : index
    %c0_2 = arith.constant 0 : index
    %1 = vector.load %arg1[%c0, %c0_0, %c0_1, %c0_2] : memref<5x5x64x128xbf16, #tpu.memory_space<vmem>>, vector<1x1x64x128xbf16>
    %2 = vector.shape_cast %1 : vector<1x1x64x128xbf16> to vector<64x128xbf16>
    %c0_3 = arith.constant 0 : index
    %c1 = arith.constant 1 : index
    %c0_4 = arith.constant 0 : index
    %c0_5 = arith.constant 0 : index
    %3 = vector.load %arg1[%c0_3, %c1, %c0_4, %c0_5] : memref<5x5x64x128xbf16, #tpu.memory_space<vmem>>, vector<1x1x64x128xbf16>
    %4 = vector.shape_cast %3 : vector<1x1x64x128xbf16> to vector<64x128xbf16>
    %c0_6 = arith.constant 0 : index
    %c2 = arith.constant 2 : index
    %c0_7 = arith.constant 0 : index
    %c0_8 = arith.constant 0 : index
    %5 = vector.load %arg1[%c0_6, %c2, %c0_7, %c0_8] : memref<5x5x64x128xbf16, #tpu.memory_space<vmem>>, vector<1x1x64x128xbf16>
    %6 = vector.shape_cast %5 : vector<1x1x64x128xbf16> to vector<64x128xbf16>
    %c1_9 = arith.constant 1 : index
    %c0_10 = arith.constant 0 : index
    %c0_11 = arith.constant 0 : index
    %c0_12 = arith.constant 0 : index
    %7 = vector.load %arg1[%c1_9, %c0_10, %c0_11, %c0_12] : memref<5x5x64x128xbf16, #tpu.memory_space<vmem>>, vector<1x1x64x128xbf16>
    %8 = vector.shape_cast %7 : vector<1x1x64x128xbf16> to vector<64x128xbf16>
    %c1_13 = arith.constant 1 : index
    %c1_14 = arith.constant 1 : index
    %c0_15 = arith.constant 0 : index
    %c0_16 = arith.constant 0 : index
    %9 = vector.load %arg1[%c1_13, %c1_14, %c0_15, %c0_16] : memref<5x5x64x128xbf16, #tpu.memory_space<vmem>>, vector<1x1x64x128xbf16>
    %10 = vector.shape_cast %9 : vector<1x1x64x128xbf16> to vector<64x128xbf16>
    %c1_17 = arith.constant 1 : index
    %c2_18 = arith.constant 2 : index
    %c0_19 = arith.constant 0 : index
    %c0_20 = arith.constant 0 : index
    %11 = vector.load %arg1[%c1_17, %c2_18, %c0_19, %c0_20] : memref<5x5x64x128xbf16, #tpu.memory_space<vmem>>, vector<1x1x64x128xbf16>
    %12 = vector.shape_cast %11 : vector<1x1x64x128xbf16> to vector<64x128xbf16>
    %c2_21 = arith.constant 2 : index
    %c0_22 = arith.constant 0 : index
    %c0_23 = arith.constant 0 : index
    %c0_24 = arith.constant 0 : index
    %13 = vector.load %arg1[%c2_21, %c0_22, %c0_23, %c0_24] : memref<5x5x64x128xbf16, #tpu.memory_space<vmem>>, vector<1x1x64x128xbf16>
    %14 = vector.shape_cast %13 : vector<1x1x64x128xbf16> to vector<64x128xbf16>
    %c2_25 = arith.constant 2 : index
    %c1_26 = arith.constant 1 : index
    %c0_27 = arith.constant 0 : index
    %c0_28 = arith.constant 0 : index
    %15 = vector.load %arg1[%c2_25, %c1_26, %c0_27, %c0_28] : memref<5x5x64x128xbf16, #tpu.memory_space<vmem>>, vector<1x1x64x128xbf16>
    %16 = vector.shape_cast %15 : vector<1x1x64x128xbf16> to vector<64x128xbf16>
    %c2_29 = arith.constant 2 : index
    %c2_30 = arith.constant 2 : index
    %c0_31 = arith.constant 0 : index
    %c0_32 = arith.constant 0 : index
    %17 = vector.load %arg1[%c2_29, %c2_30, %c0_31, %c0_32] : memref<5x5x64x128xbf16, #tpu.memory_space<vmem>>, vector<1x1x64x128xbf16>
    %18 = vector.shape_cast %17 : vector<1x1x64x128xbf16> to vector<64x128xbf16>
    %19 = tpu.concatenate %2, %4, %6, %8, %10, %12, %14, %16, %18 in 0 : vector<64x128xbf16>, vector<64x128xbf16>, vector<64x128xbf16>, vector<64x128xbf16>, vector<64x128xbf16>, vector<64x128xbf16>, vector<64x128xbf16>, vector<64x128xbf16>, vector<64x128xbf16> -> vector<576x128xbf16>
    %c0_33 = arith.constant 0 : index
    %c0_34 = arith.constant 0 : index
    %20 = vector.load %arg2[%c0_33, %c0_34] : memref<192x576xbf16, #tpu.memory_space<vmem>>, vector<192x576xbf16>
    %cst_35 = arith.constant dense<0.000000e+00> : vector<192x128xf32>
    %21 = tpu.matmul %20, %19, %cst_35 {dimension_numbers = #tpu.dot_dimension_numbers<[1], [0], [0], [1], [0, 0, 1, 1], [], []>} : vector<192x576xbf16>, vector<576x128xbf16>, vector<192x128xf32> -> vector<192x128xf32>
    %22 = arith.maximumf %0, %21 : vector<192x128xf32>
    %c0_36 = arith.constant 0 : index
    %c1_37 = arith.constant 1 : index
    %c0_38 = arith.constant 0 : index
    %c0_39 = arith.constant 0 : index
    %23 = vector.load %arg1[%c0_36, %c1_37, %c0_38, %c0_39] : memref<5x5x64x128xbf16, #tpu.memory_space<vmem>>, vector<1x1x64x128xbf16>
    %24 = vector.shape_cast %23 : vector<1x1x64x128xbf16> to vector<64x128xbf16>
    %c0_40 = arith.constant 0 : index
    %c2_41 = arith.constant 2 : index
    %c0_42 = arith.constant 0 : index
    %c0_43 = arith.constant 0 : index
    %25 = vector.load %arg1[%c0_40, %c2_41, %c0_42, %c0_43] : memref<5x5x64x128xbf16, #tpu.memory_space<vmem>>, vector<1x1x64x128xbf16>
    %26 = vector.shape_cast %25 : vector<1x1x64x128xbf16> to vector<64x128xbf16>
    %c0_44 = arith.constant 0 : index
    %c3 = arith.constant 3 : index
    %c0_45 = arith.constant 0 : index
    %c0_46 = arith.constant 0 : index
    %27 = vector.load %arg1[%c0_44, %c3, %c0_45, %c0_46] : memref<5x5x64x128xbf16, #tpu.memory_space<vmem>>, vector<1x1x64x128xbf16>
    %28 = vector.shape_cast %27 : vector<1x1x64x128xbf16> to vector<64x128xbf16>
    %c1_47 = arith.constant 1 : index
    %c1_48 = arith.constant 1 : index
    %c0_49 = arith.constant 0 : index
    %c0_50 = arith.constant 0 : index
    %29 = vector.load %arg1[%c1_47, %c1_48, %c0_49, %c0_50] : memref<5x5x64x128xbf16, #tpu.memory_space<vmem>>, vector<1x1x64x128xbf16>
    %30 = vector.shape_cast %29 : vector<1x1x64x128xbf16> to vector<64x128xbf16>
    %c1_51 = arith.constant 1 : index
    %c2_52 = arith.constant 2 : index
    %c0_53 = arith.constant 0 : index
    %c0_54 = arith.constant 0 : index
    %31 = vector.load %arg1[%c1_51, %c2_52, %c0_53, %c0_54] : memref<5x5x64x128xbf16, #tpu.memory_space<vmem>>, vector<1x1x64x128xbf16>
    %32 = vector.shape_cast %31 : vector<1x1x64x128xbf16> to vector<64x128xbf16>
    %c1_55 = arith.constant 1 : index
    %c3_56 = arith.constant 3 : index
    %c0_57 = arith.constant 0 : index
    %c0_58 = arith.constant 0 : index
    %33 = vector.load %arg1[%c1_55, %c3_56, %c0_57, %c0_58] : memref<5x5x64x128xbf16, #tpu.memory_space<vmem>>, vector<1x1x64x128xbf16>
    %34 = vector.shape_cast %33 : vector<1x1x64x128xbf16> to vector<64x128xbf16>
    %c2_59 = arith.constant 2 : index
    %c1_60 = arith.constant 1 : index
    %c0_61 = arith.constant 0 : index
    %c0_62 = arith.constant 0 : index
    %35 = vector.load %arg1[%c2_59, %c1_60, %c0_61, %c0_62] : memref<5x5x64x128xbf16, #tpu.memory_space<vmem>>, vector<1x1x64x128xbf16>
    %36 = vector.shape_cast %35 : vector<1x1x64x128xbf16> to vector<64x128xbf16>
    %c2_63 = arith.constant 2 : index
    %c2_64 = arith.constant 2 : index
    %c0_65 = arith.constant 0 : index
    %c0_66 = arith.constant 0 : index
    %37 = vector.load %arg1[%c2_63, %c2_64, %c0_65, %c0_66] : memref<5x5x64x128xbf16, #tpu.memory_space<vmem>>, vector<1x1x64x128xbf16>
    %38 = vector.shape_cast %37 : vector<1x1x64x128xbf16> to vector<64x128xbf16>
    %c2_67 = arith.constant 2 : index
    %c3_68 = arith.constant 3 : index
    %c0_69 = arith.constant 0 : index
    %c0_70 = arith.constant 0 : index
    %39 = vector.load %arg1[%c2_67, %c3_68, %c0_69, %c0_70] : memref<5x5x64x128xbf16, #tpu.memory_space<vmem>>, vector<1x1x64x128xbf16>
    %40 = vector.shape_cast %39 : vector<1x1x64x128xbf16> to vector<64x128xbf16>
    %41 = tpu.concatenate %24, %26, %28, %30, %32, %34, %36, %38, %40 in 0 : vector<64x128xbf16>, vector<64x128xbf16>, vector<64x128xbf16>, vector<64x128xbf16>, vector<64x128xbf16>, vector<64x128xbf16>, vector<64x128xbf16>, vector<64x128xbf16>, vector<64x128xbf16> -> vector<576x128xbf16>
    %c0_71 = arith.constant 0 : index
    %c0_72 = arith.constant 0 : index
    %42 = vector.load %arg2[%c0_71, %c0_72] : memref<192x576xbf16, #tpu.memory_space<vmem>>, vector<192x576xbf16>
    %cst_73 = arith.constant dense<0.000000e+00> : vector<192x128xf32>
    %43 = tpu.matmul %42, %41, %cst_73 {dimension_numbers = #tpu.dot_dimension_numbers<[1], [0], [0], [1], [0, 0, 1, 1], [], []>} : vector<192x576xbf16>, vector<576x128xbf16>, vector<192x128xf32> -> vector<192x128xf32>
    %44 = arith.maximumf %22, %43 : vector<192x128xf32>
    %c0_74 = arith.constant 0 : index
    %c2_75 = arith.constant 2 : index
    %c0_76 = arith.constant 0 : index
    %c0_77 = arith.constant 0 : index
    %45 = vector.load %arg1[%c0_74, %c2_75, %c0_76, %c0_77] : memref<5x5x64x128xbf16, #tpu.memory_space<vmem>>, vector<1x1x64x128xbf16>
    %46 = vector.shape_cast %45 : vector<1x1x64x128xbf16> to vector<64x128xbf16>
    %c0_78 = arith.constant 0 : index
    %c3_79 = arith.constant 3 : index
    %c0_80 = arith.constant 0 : index
    %c0_81 = arith.constant 0 : index
    %47 = vector.load %arg1[%c0_78, %c3_79, %c0_80, %c0_81] : memref<5x5x64x128xbf16, #tpu.memory_space<vmem>>, vector<1x1x64x128xbf16>
    %48 = vector.shape_cast %47 : vector<1x1x64x128xbf16> to vector<64x128xbf16>
    %c0_82 = arith.constant 0 : index
    %c4 = arith.constant 4 : index
    %c0_83 = arith.constant 0 : index
    %c0_84 = arith.constant 0 : index
    %49 = vector.load %arg1[%c0_82, %c4, %c0_83, %c0_84] : memref<5x5x64x128xbf16, #tpu.memory_space<vmem>>, vector<1x1x64x128xbf16>
    %50 = vector.shape_cast %49 : vector<1x1x64x128xbf16> to vector<64x128xbf16>
    %c1_85 = arith.constant 1 : index
    %c2_86 = arith.constant 2 : index
    %c0_87 = arith.constant 0 : index
    %c0_88 = arith.constant 0 : index
    %51 = vector.load %arg1[%c1_85, %c2_86, %c0_87, %c0_88] : memref<5x5x64x128xbf16, #tpu.memory_space<vmem>>, vector<1x1x64x128xbf16>
    %52 = vector.shape_cast %51 : vector<1x1x64x128xbf16> to vector<64x128xbf16>
    %c1_89 = arith.constant 1 : index
    %c3_90 = arith.constant 3 : index
    %c0_91 = arith.constant 0 : index
    %c0_92 = arith.constant 0 : index
    %53 = vector.load %arg1[%c1_89, %c3_90, %c0_91, %c0_92] : memref<5x5x64x128xbf16, #tpu.memory_space<vmem>>, vector<1x1x64x128xbf16>
    %54 = vector.shape_cast %53 : vector<1x1x64x128xbf16> to vector<64x128xbf16>
    %c1_93 = arith.constant 1 : index
    %c4_94 = arith.constant 4 : index
    %c0_95 = arith.constant 0 : index
    %c0_96 = arith.constant 0 : index
    %55 = vector.load %arg1[%c1_93, %c4_94, %c0_95, %c0_96] : memref<5x5x64x128xbf16, #tpu.memory_space<vmem>>, vector<1x1x64x128xbf16>
    %56 = vector.shape_cast %55 : vector<1x1x64x128xbf16> to vector<64x128xbf16>
    %c2_97 = arith.constant 2 : index
    %c2_98 = arith.constant 2 : index
    %c0_99 = arith.constant 0 : index
    %c0_100 = arith.constant 0 : index
    %57 = vector.load %arg1[%c2_97, %c2_98, %c0_99, %c0_100] : memref<5x5x64x128xbf16, #tpu.memory_space<vmem>>, vector<1x1x64x128xbf16>
    %58 = vector.shape_cast %57 : vector<1x1x64x128xbf16> to vector<64x128xbf16>
    %c2_101 = arith.constant 2 : index
    %c3_102 = arith.constant 3 : index
    %c0_103 = arith.constant 0 : index
    %c0_104 = arith.constant 0 : index
    %59 = vector.load %arg1[%c2_101, %c3_102, %c0_103, %c0_104] : memref<5x5x64x128xbf16, #tpu.memory_space<vmem>>, vector<1x1x64x128xbf16>
    %60 = vector.shape_cast %59 : vector<1x1x64x128xbf16> to vector<64x128xbf16>
    %c2_105 = arith.constant 2 : index
    %c4_106 = arith.constant 4 : index
    %c0_107 = arith.constant 0 : index
    %c0_108 = arith.constant 0 : index
    %61 = vector.load %arg1[%c2_105, %c4_106, %c0_107, %c0_108] : memref<5x5x64x128xbf16, #tpu.memory_space<vmem>>, vector<1x1x64x128xbf16>
    %62 = vector.shape_cast %61 : vector<1x1x64x128xbf16> to vector<64x128xbf16>
    %63 = tpu.concatenate %46, %48, %50, %52, %54, %56, %58, %60, %62 in 0 : vector<64x128xbf16>, vector<64x128xbf16>, vector<64x128xbf16>, vector<64x128xbf16>, vector<64x128xbf16>, vector<64x128xbf16>, vector<64x128xbf16>, vector<64x128xbf16>, vector<64x128xbf16> -> vector<576x128xbf16>
    %c0_109 = arith.constant 0 : index
    %c0_110 = arith.constant 0 : index
    %64 = vector.load %arg2[%c0_109, %c0_110] : memref<192x576xbf16, #tpu.memory_space<vmem>>, vector<192x576xbf16>
    %cst_111 = arith.constant dense<0.000000e+00> : vector<192x128xf32>
    %65 = tpu.matmul %64, %63, %cst_111 {dimension_numbers = #tpu.dot_dimension_numbers<[1], [0], [0], [1], [0, 0, 1, 1], [], []>} : vector<192x576xbf16>, vector<576x128xbf16>, vector<192x128xf32> -> vector<192x128xf32>
    %66 = arith.maximumf %44, %65 : vector<192x128xf32>
    %c1_112 = arith.constant 1 : index
    %c0_113 = arith.constant 0 : index
    %c0_114 = arith.constant 0 : index
    %c0_115 = arith.constant 0 : index
    %67 = vector.load %arg1[%c1_112, %c0_113, %c0_114, %c0_115] : memref<5x5x64x128xbf16, #tpu.memory_space<vmem>>, vector<1x1x64x128xbf16>
    %68 = vector.shape_cast %67 : vector<1x1x64x128xbf16> to vector<64x128xbf16>
    %c1_116 = arith.constant 1 : index
    %c1_117 = arith.constant 1 : index
    %c0_118 = arith.constant 0 : index
    %c0_119 = arith.constant 0 : index
    %69 = vector.load %arg1[%c1_116, %c1_117, %c0_118, %c0_119] : memref<5x5x64x128xbf16, #tpu.memory_space<vmem>>, vector<1x1x64x128xbf16>
    %70 = vector.shape_cast %69 : vector<1x1x64x128xbf16> to vector<64x128xbf16>
    %c1_120 = arith.constant 1 : index
    %c2_121 = arith.constant 2 : index
    %c0_122 = arith.constant 0 : index
    %c0_123 = arith.constant 0 : index
    %71 = vector.load %arg1[%c1_120, %c2_121, %c0_122, %c0_123] : memref<5x5x64x128xbf16, #tpu.memory_space<vmem>>, vector<1x1x64x128xbf16>
    %72 = vector.shape_cast %71 : vector<1x1x64x128xbf16> to vector<64x128xbf16>
    %c2_124 = arith.constant 2 : index
    %c0_125 = arith.constant 0 : index
    %c0_126 = arith.constant 0 : index
    %c0_127 = arith.constant 0 : index
    %73 = vector.load %arg1[%c2_124, %c0_125, %c0_126, %c0_127] : memref<5x5x64x128xbf16, #tpu.memory_space<vmem>>, vector<1x1x64x128xbf16>
    %74 = vector.shape_cast %73 : vector<1x1x64x128xbf16> to vector<64x128xbf16>
    %c2_128 = arith.constant 2 : index
    %c1_129 = arith.constant 1 : index
    %c0_130 = arith.constant 0 : index
    %c0_131 = arith.constant 0 : index
    %75 = vector.load %arg1[%c2_128, %c1_129, %c0_130, %c0_131] : memref<5x5x64x128xbf16, #tpu.memory_space<vmem>>, vector<1x1x64x128xbf16>
    %76 = vector.shape_cast %75 : vector<1x1x64x128xbf16> to vector<64x128xbf16>
    %c2_132 = arith.constant 2 : index
    %c2_133 = arith.constant 2 : index
    %c0_134 = arith.constant 0 : index
    %c0_135 = arith.constant 0 : index
    %77 = vector.load %arg1[%c2_132, %c2_133, %c0_134, %c0_135] : memref<5x5x64x128xbf16, #tpu.memory_space<vmem>>, vector<1x1x64x128xbf16>
    %78 = vector.shape_cast %77 : vector<1x1x64x128xbf16> to vector<64x128xbf16>
    %c3_136 = arith.constant 3 : index
    %c0_137 = arith.constant 0 : index
    %c0_138 = arith.constant 0 : index
    %c0_139 = arith.constant 0 : index
    %79 = vector.load %arg1[%c3_136, %c0_137, %c0_138, %c0_139] : memref<5x5x64x128xbf16, #tpu.memory_space<vmem>>, vector<1x1x64x128xbf16>
    %80 = vector.shape_cast %79 : vector<1x1x64x128xbf16> to vector<64x128xbf16>
    %c3_140 = arith.constant 3 : index
    %c1_141 = arith.constant 1 : index
    %c0_142 = arith.constant 0 : index
    %c0_143 = arith.constant 0 : index
    %81 = vector.load %arg1[%c3_140, %c1_141, %c0_142, %c0_143] : memref<5x5x64x128xbf16, #tpu.memory_space<vmem>>, vector<1x1x64x128xbf16>
    %82 = vector.shape_cast %81 : vector<1x1x64x128xbf16> to vector<64x128xbf16>
    %c3_144 = arith.constant 3 : index
    %c2_145 = arith.constant 2 : index
    %c0_146 = arith.constant 0 : index
    %c0_147 = arith.constant 0 : index
    %83 = vector.load %arg1[%c3_144, %c2_145, %c0_146, %c0_147] : memref<5x5x64x128xbf16, #tpu.memory_space<vmem>>, vector<1x1x64x128xbf16>
    %84 = vector.shape_cast %83 : vector<1x1x64x128xbf16> to vector<64x128xbf16>
    %85 = tpu.concatenate %68, %70, %72, %74, %76, %78, %80, %82, %84 in 0 : vector<64x128xbf16>, vector<64x128xbf16>, vector<64x128xbf16>, vector<64x128xbf16>, vector<64x128xbf16>, vector<64x128xbf16>, vector<64x128xbf16>, vector<64x128xbf16>, vector<64x128xbf16> -> vector<576x128xbf16>
    %c0_148 = arith.constant 0 : index
    %c0_149 = arith.constant 0 : index
    %86 = vector.load %arg2[%c0_148, %c0_149] : memref<192x576xbf16, #tpu.memory_space<vmem>>, vector<192x576xbf16>
    %cst_150 = arith.constant dense<0.000000e+00> : vector<192x128xf32>
    %87 = tpu.matmul %86, %85, %cst_150 {dimension_numbers = #tpu.dot_dimension_numbers<[1], [0], [0], [1], [0, 0, 1, 1], [], []>} : vector<192x576xbf16>, vector<576x128xbf16>, vector<192x128xf32> -> vector<192x128xf32>
    %88 = arith.maximumf %66, %87 : vector<192x128xf32>
    %c1_151 = arith.constant 1 : index
    %c1_152 = arith.constant 1 : index
    %c0_153 = arith.constant 0 : index
    %c0_154 = arith.constant 0 : index
    %89 = vector.load %arg1[%c1_151, %c1_152, %c0_153, %c0_154] : memref<5x5x64x128xbf16, #tpu.memory_space<vmem>>, vector<1x1x64x128xbf16>
    %90 = vector.shape_cast %89 : vector<1x1x64x128xbf16> to vector<64x128xbf16>
    %c1_155 = arith.constant 1 : index
    %c2_156 = arith.constant 2 : index
    %c0_157 = arith.constant 0 : index
    %c0_158 = arith.constant 0 : index
    %91 = vector.load %arg1[%c1_155, %c2_156, %c0_157, %c0_158] : memref<5x5x64x128xbf16, #tpu.memory_space<vmem>>, vector<1x1x64x128xbf16>
    %92 = vector.shape_cast %91 : vector<1x1x64x128xbf16> to vector<64x128xbf16>
    %c1_159 = arith.constant 1 : index
    %c3_160 = arith.constant 3 : index
    %c0_161 = arith.constant 0 : index
    %c0_162 = arith.constant 0 : index
    %93 = vector.load %arg1[%c1_159, %c3_160, %c0_161, %c0_162] : memref<5x5x64x128xbf16, #tpu.memory_space<vmem>>, vector<1x1x64x128xbf16>
    %94 = vector.shape_cast %93 : vector<1x1x64x128xbf16> to vector<64x128xbf16>
    %c2_163 = arith.constant 2 : index
    %c1_164 = arith.constant 1 : index
    %c0_165 = arith.constant 0 : index
    %c0_166 = arith.constant 0 : index
    %95 = vector.load %arg1[%c2_163, %c1_164, %c0_165, %c0_166] : memref<5x5x64x128xbf16, #tpu.memory_space<vmem>>, vector<1x1x64x128xbf16>
    %96 = vector.shape_cast %95 : vector<1x1x64x128xbf16> to vector<64x128xbf16>
    %c2_167 = arith.constant 2 : index
    %c2_168 = arith.constant 2 : index
    %c0_169 = arith.constant 0 : index
    %c0_170 = arith.constant 0 : index
    %97 = vector.load %arg1[%c2_167, %c2_168, %c0_169, %c0_170] : memref<5x5x64x128xbf16, #tpu.memory_space<vmem>>, vector<1x1x64x128xbf16>
    %98 = vector.shape_cast %97 : vector<1x1x64x128xbf16> to vector<64x128xbf16>
    %c2_171 = arith.constant 2 : index
    %c3_172 = arith.constant 3 : index
    %c0_173 = arith.constant 0 : index
    %c0_174 = arith.constant 0 : index
    %99 = vector.load %arg1[%c2_171, %c3_172, %c0_173, %c0_174] : memref<5x5x64x128xbf16, #tpu.memory_space<vmem>>, vector<1x1x64x128xbf16>
    %100 = vector.shape_cast %99 : vector<1x1x64x128xbf16> to vector<64x128xbf16>
    %c3_175 = arith.constant 3 : index
    %c1_176 = arith.constant 1 : index
    %c0_177 = arith.constant 0 : index
    %c0_178 = arith.constant 0 : index
    %101 = vector.load %arg1[%c3_175, %c1_176, %c0_177, %c0_178] : memref<5x5x64x128xbf16, #tpu.memory_space<vmem>>, vector<1x1x64x128xbf16>
    %102 = vector.shape_cast %101 : vector<1x1x64x128xbf16> to vector<64x128xbf16>
    %c3_179 = arith.constant 3 : index
    %c2_180 = arith.constant 2 : index
    %c0_181 = arith.constant 0 : index
    %c0_182 = arith.constant 0 : index
    %103 = vector.load %arg1[%c3_179, %c2_180, %c0_181, %c0_182] : memref<5x5x64x128xbf16, #tpu.memory_space<vmem>>, vector<1x1x64x128xbf16>
    %104 = vector.shape_cast %103 : vector<1x1x64x128xbf16> to vector<64x128xbf16>
    %c3_183 = arith.constant 3 : index
    %c3_184 = arith.constant 3 : index
    %c0_185 = arith.constant 0 : index
    %c0_186 = arith.constant 0 : index
    %105 = vector.load %arg1[%c3_183, %c3_184, %c0_185, %c0_186] : memref<5x5x64x128xbf16, #tpu.memory_space<vmem>>, vector<1x1x64x128xbf16>
    %106 = vector.shape_cast %105 : vector<1x1x64x128xbf16> to vector<64x128xbf16>
    %107 = tpu.concatenate %90, %92, %94, %96, %98, %100, %102, %104, %106 in 0 : vector<64x128xbf16>, vector<64x128xbf16>, vector<64x128xbf16>, vector<64x128xbf16>, vector<64x128xbf16>, vector<64x128xbf16>, vector<64x128xbf16>, vector<64x128xbf16>, vector<64x128xbf16> -> vector<576x128xbf16>
    %c0_187 = arith.constant 0 : index
    %c0_188 = arith.constant 0 : index
    %108 = vector.load %arg2[%c0_187, %c0_188] : memref<192x576xbf16, #tpu.memory_space<vmem>>, vector<192x576xbf16>
    %cst_189 = arith.constant dense<0.000000e+00> : vector<192x128xf32>
    %109 = tpu.matmul %108, %107, %cst_189 {dimension_numbers = #tpu.dot_dimension_numbers<[1], [0], [0], [1], [0, 0, 1, 1], [], []>} : vector<192x576xbf16>, vector<576x128xbf16>, vector<192x128xf32> -> vector<192x128xf32>
    %110 = arith.maximumf %88, %109 : vector<192x128xf32>
    %c1_190 = arith.constant 1 : index
    %c2_191 = arith.constant 2 : index
    %c0_192 = arith.constant 0 : index
    %c0_193 = arith.constant 0 : index
    %111 = vector.load %arg1[%c1_190, %c2_191, %c0_192, %c0_193] : memref<5x5x64x128xbf16, #tpu.memory_space<vmem>>, vector<1x1x64x128xbf16>
    %112 = vector.shape_cast %111 : vector<1x1x64x128xbf16> to vector<64x128xbf16>
    %c1_194 = arith.constant 1 : index
    %c3_195 = arith.constant 3 : index
    %c0_196 = arith.constant 0 : index
    %c0_197 = arith.constant 0 : index
    %113 = vector.load %arg1[%c1_194, %c3_195, %c0_196, %c0_197] : memref<5x5x64x128xbf16, #tpu.memory_space<vmem>>, vector<1x1x64x128xbf16>
    %114 = vector.shape_cast %113 : vector<1x1x64x128xbf16> to vector<64x128xbf16>
    %c1_198 = arith.constant 1 : index
    %c4_199 = arith.constant 4 : index
    %c0_200 = arith.constant 0 : index
    %c0_201 = arith.constant 0 : index
    %115 = vector.load %arg1[%c1_198, %c4_199, %c0_200, %c0_201] : memref<5x5x64x128xbf16, #tpu.memory_space<vmem>>, vector<1x1x64x128xbf16>
    %116 = vector.shape_cast %115 : vector<1x1x64x128xbf16> to vector<64x128xbf16>
    %c2_202 = arith.constant 2 : index
    %c2_203 = arith.constant 2 : index
    %c0_204 = arith.constant 0 : index
    %c0_205 = arith.constant 0 : index
    %117 = vector.load %arg1[%c2_202, %c2_203, %c0_204, %c0_205] : memref<5x5x64x128xbf16, #tpu.memory_space<vmem>>, vector<1x1x64x128xbf16>
    %118 = vector.shape_cast %117 : vector<1x1x64x128xbf16> to vector<64x128xbf16>
    %c2_206 = arith.constant 2 : index
    %c3_207 = arith.constant 3 : index
    %c0_208 = arith.constant 0 : index
    %c0_209 = arith.constant 0 : index
    %119 = vector.load %arg1[%c2_206, %c3_207, %c0_208, %c0_209] : memref<5x5x64x128xbf16, #tpu.memory_space<vmem>>, vector<1x1x64x128xbf16>
    %120 = vector.shape_cast %119 : vector<1x1x64x128xbf16> to vector<64x128xbf16>
    %c2_210 = arith.constant 2 : index
    %c4_211 = arith.constant 4 : index
    %c0_212 = arith.constant 0 : index
    %c0_213 = arith.constant 0 : index
    %121 = vector.load %arg1[%c2_210, %c4_211, %c0_212, %c0_213] : memref<5x5x64x128xbf16, #tpu.memory_space<vmem>>, vector<1x1x64x128xbf16>
    %122 = vector.shape_cast %121 : vector<1x1x64x128xbf16> to vector<64x128xbf16>
    %c3_214 = arith.constant 3 : index
    %c2_215 = arith.constant 2 : index
    %c0_216 = arith.constant 0 : index
    %c0_217 = arith.constant 0 : index
    %123 = vector.load %arg1[%c3_214, %c2_215, %c0_216, %c0_217] : memref<5x5x64x128xbf16, #tpu.memory_space<vmem>>, vector<1x1x64x128xbf16>
    %124 = vector.shape_cast %123 : vector<1x1x64x128xbf16> to vector<64x128xbf16>
    %c3_218 = arith.constant 3 : index
    %c3_219 = arith.constant 3 : index
    %c0_220 = arith.constant 0 : index
    %c0_221 = arith.constant 0 : index
    %125 = vector.load %arg1[%c3_218, %c3_219, %c0_220, %c0_221] : memref<5x5x64x128xbf16, #tpu.memory_space<vmem>>, vector<1x1x64x128xbf16>
    %126 = vector.shape_cast %125 : vector<1x1x64x128xbf16> to vector<64x128xbf16>
    %c3_222 = arith.constant 3 : index
    %c4_223 = arith.constant 4 : index
    %c0_224 = arith.constant 0 : index
    %c0_225 = arith.constant 0 : index
    %127 = vector.load %arg1[%c3_222, %c4_223, %c0_224, %c0_225] : memref<5x5x64x128xbf16, #tpu.memory_space<vmem>>, vector<1x1x64x128xbf16>
    %128 = vector.shape_cast %127 : vector<1x1x64x128xbf16> to vector<64x128xbf16>
    %129 = tpu.concatenate %112, %114, %116, %118, %120, %122, %124, %126, %128 in 0 : vector<64x128xbf16>, vector<64x128xbf16>, vector<64x128xbf16>, vector<64x128xbf16>, vector<64x128xbf16>, vector<64x128xbf16>, vector<64x128xbf16>, vector<64x128xbf16>, vector<64x128xbf16> -> vector<576x128xbf16>
    %c0_226 = arith.constant 0 : index
    %c0_227 = arith.constant 0 : index
    %130 = vector.load %arg2[%c0_226, %c0_227] : memref<192x576xbf16, #tpu.memory_space<vmem>>, vector<192x576xbf16>
    %cst_228 = arith.constant dense<0.000000e+00> : vector<192x128xf32>
    %131 = tpu.matmul %130, %129, %cst_228 {dimension_numbers = #tpu.dot_dimension_numbers<[1], [0], [0], [1], [0, 0, 1, 1], [], []>} : vector<192x576xbf16>, vector<576x128xbf16>, vector<192x128xf32> -> vector<192x128xf32>
    %132 = arith.maximumf %110, %131 : vector<192x128xf32>
    %c2_229 = arith.constant 2 : index
    %c0_230 = arith.constant 0 : index
    %c0_231 = arith.constant 0 : index
    %c0_232 = arith.constant 0 : index
    %133 = vector.load %arg1[%c2_229, %c0_230, %c0_231, %c0_232] : memref<5x5x64x128xbf16, #tpu.memory_space<vmem>>, vector<1x1x64x128xbf16>
    %134 = vector.shape_cast %133 : vector<1x1x64x128xbf16> to vector<64x128xbf16>
    %c2_233 = arith.constant 2 : index
    %c1_234 = arith.constant 1 : index
    %c0_235 = arith.constant 0 : index
    %c0_236 = arith.constant 0 : index
    %135 = vector.load %arg1[%c2_233, %c1_234, %c0_235, %c0_236] : memref<5x5x64x128xbf16, #tpu.memory_space<vmem>>, vector<1x1x64x128xbf16>
    %136 = vector.shape_cast %135 : vector<1x1x64x128xbf16> to vector<64x128xbf16>
    %c2_237 = arith.constant 2 : index
    %c2_238 = arith.constant 2 : index
    %c0_239 = arith.constant 0 : index
    %c0_240 = arith.constant 0 : index
    %137 = vector.load %arg1[%c2_237, %c2_238, %c0_239, %c0_240] : memref<5x5x64x128xbf16, #tpu.memory_space<vmem>>, vector<1x1x64x128xbf16>
    %138 = vector.shape_cast %137 : vector<1x1x64x128xbf16> to vector<64x128xbf16>
    %c3_241 = arith.constant 3 : index
    %c0_242 = arith.constant 0 : index
    %c0_243 = arith.constant 0 : index
    %c0_244 = arith.constant 0 : index
    %139 = vector.load %arg1[%c3_241, %c0_242, %c0_243, %c0_244] : memref<5x5x64x128xbf16, #tpu.memory_space<vmem>>, vector<1x1x64x128xbf16>
    %140 = vector.shape_cast %139 : vector<1x1x64x128xbf16> to vector<64x128xbf16>
    %c3_245 = arith.constant 3 : index
    %c1_246 = arith.constant 1 : index
    %c0_247 = arith.constant 0 : index
    %c0_248 = arith.constant 0 : index
    %141 = vector.load %arg1[%c3_245, %c1_246, %c0_247, %c0_248] : memref<5x5x64x128xbf16, #tpu.memory_space<vmem>>, vector<1x1x64x128xbf16>
    %142 = vector.shape_cast %141 : vector<1x1x64x128xbf16> to vector<64x128xbf16>
    %c3_249 = arith.constant 3 : index
    %c2_250 = arith.constant 2 : index
    %c0_251 = arith.constant 0 : index
    %c0_252 = arith.constant 0 : index
    %143 = vector.load %arg1[%c3_249, %c2_250, %c0_251, %c0_252] : memref<5x5x64x128xbf16, #tpu.memory_space<vmem>>, vector<1x1x64x128xbf16>
    %144 = vector.shape_cast %143 : vector<1x1x64x128xbf16> to vector<64x128xbf16>
    %c4_253 = arith.constant 4 : index
    %c0_254 = arith.constant 0 : index
    %c0_255 = arith.constant 0 : index
    %c0_256 = arith.constant 0 : index
    %145 = vector.load %arg1[%c4_253, %c0_254, %c0_255, %c0_256] : memref<5x5x64x128xbf16, #tpu.memory_space<vmem>>, vector<1x1x64x128xbf16>
    %146 = vector.shape_cast %145 : vector<1x1x64x128xbf16> to vector<64x128xbf16>
    %c4_257 = arith.constant 4 : index
    %c1_258 = arith.constant 1 : index
    %c0_259 = arith.constant 0 : index
    %c0_260 = arith.constant 0 : index
    %147 = vector.load %arg1[%c4_257, %c1_258, %c0_259, %c0_260] : memref<5x5x64x128xbf16, #tpu.memory_space<vmem>>, vector<1x1x64x128xbf16>
    %148 = vector.shape_cast %147 : vector<1x1x64x128xbf16> to vector<64x128xbf16>
    %c4_261 = arith.constant 4 : index
    %c2_262 = arith.constant 2 : index
    %c0_263 = arith.constant 0 : index
    %c0_264 = arith.constant 0 : index
    %149 = vector.load %arg1[%c4_261, %c2_262, %c0_263, %c0_264] : memref<5x5x64x128xbf16, #tpu.memory_space<vmem>>, vector<1x1x64x128xbf16>
    %150 = vector.shape_cast %149 : vector<1x1x64x128xbf16> to vector<64x128xbf16>
    %151 = tpu.concatenate %134, %136, %138, %140, %142, %144, %146, %148, %150 in 0 : vector<64x128xbf16>, vector<64x128xbf16>, vector<64x128xbf16>, vector<64x128xbf16>, vector<64x128xbf16>, vector<64x128xbf16>, vector<64x128xbf16>, vector<64x128xbf16>, vector<64x128xbf16> -> vector<576x128xbf16>
    %c0_265 = arith.constant 0 : index
    %c0_266 = arith.constant 0 : index
    %152 = vector.load %arg2[%c0_265, %c0_266] : memref<192x576xbf16, #tpu.memory_space<vmem>>, vector<192x576xbf16>
    %cst_267 = arith.constant dense<0.000000e+00> : vector<192x128xf32>
    %153 = tpu.matmul %152, %151, %cst_267 {dimension_numbers = #tpu.dot_dimension_numbers<[1], [0], [0], [1], [0, 0, 1, 1], [], []>} : vector<192x576xbf16>, vector<576x128xbf16>, vector<192x128xf32> -> vector<192x128xf32>
    %154 = arith.maximumf %132, %153 : vector<192x128xf32>
    %c2_268 = arith.constant 2 : index
    %c1_269 = arith.constant 1 : index
    %c0_270 = arith.constant 0 : index
    %c0_271 = arith.constant 0 : index
    %155 = vector.load %arg1[%c2_268, %c1_269, %c0_270, %c0_271] : memref<5x5x64x128xbf16, #tpu.memory_space<vmem>>, vector<1x1x64x128xbf16>
    %156 = vector.shape_cast %155 : vector<1x1x64x128xbf16> to vector<64x128xbf16>
    %c2_272 = arith.constant 2 : index
    %c2_273 = arith.constant 2 : index
    %c0_274 = arith.constant 0 : index
    %c0_275 = arith.constant 0 : index
    %157 = vector.load %arg1[%c2_272, %c2_273, %c0_274, %c0_275] : memref<5x5x64x128xbf16, #tpu.memory_space<vmem>>, vector<1x1x64x128xbf16>
    %158 = vector.shape_cast %157 : vector<1x1x64x128xbf16> to vector<64x128xbf16>
    %c2_276 = arith.constant 2 : index
    %c3_277 = arith.constant 3 : index
    %c0_278 = arith.constant 0 : index
    %c0_279 = arith.constant 0 : index
    %159 = vector.load %arg1[%c2_276, %c3_277, %c0_278, %c0_279] : memref<5x5x64x128xbf16, #tpu.memory_space<vmem>>, vector<1x1x64x128xbf16>
    %160 = vector.shape_cast %159 : vector<1x1x64x128xbf16> to vector<64x128xbf16>
    %c3_280 = arith.constant 3 : index
    %c1_281 = arith.constant 1 : index
    %c0_282 = arith.constant 0 : index
    %c0_283 = arith.constant 0 : index
    %161 = vector.load %arg1[%c3_280, %c1_281, %c0_282, %c0_283] : memref<5x5x64x128xbf16, #tpu.memory_space<vmem>>, vector<1x1x64x128xbf16>
    %162 = vector.shape_cast %161 : vector<1x1x64x128xbf16> to vector<64x128xbf16>
    %c3_284 = arith.constant 3 : index
    %c2_285 = arith.constant 2 : index
    %c0_286 = arith.constant 0 : index
    %c0_287 = arith.constant 0 : index
    %163 = vector.load %arg1[%c3_284, %c2_285, %c0_286, %c0_287] : memref<5x5x64x128xbf16, #tpu.memory_space<vmem>>, vector<1x1x64x128xbf16>
    %164 = vector.shape_cast %163 : vector<1x1x64x128xbf16> to vector<64x128xbf16>
    %c3_288 = arith.constant 3 : index
    %c3_289 = arith.constant 3 : index
    %c0_290 = arith.constant 0 : index
    %c0_291 = arith.constant 0 : index
    %165 = vector.load %arg1[%c3_288, %c3_289, %c0_290, %c0_291] : memref<5x5x64x128xbf16, #tpu.memory_space<vmem>>, vector<1x1x64x128xbf16>
    %166 = vector.shape_cast %165 : vector<1x1x64x128xbf16> to vector<64x128xbf16>
    %c4_292 = arith.constant 4 : index
    %c1_293 = arith.constant 1 : index
    %c0_294 = arith.constant 0 : index
    %c0_295 = arith.constant 0 : index
    %167 = vector.load %arg1[%c4_292, %c1_293, %c0_294, %c0_295] : memref<5x5x64x128xbf16, #tpu.memory_space<vmem>>, vector<1x1x64x128xbf16>
    %168 = vector.shape_cast %167 : vector<1x1x64x128xbf16> to vector<64x128xbf16>
    %c4_296 = arith.constant 4 : index
    %c2_297 = arith.constant 2 : index
    %c0_298 = arith.constant 0 : index
    %c0_299 = arith.constant 0 : index
    %169 = vector.load %arg1[%c4_296, %c2_297, %c0_298, %c0_299] : memref<5x5x64x128xbf16, #tpu.memory_space<vmem>>, vector<1x1x64x128xbf16>
    %170 = vector.shape_cast %169 : vector<1x1x64x128xbf16> to vector<64x128xbf16>
    %c4_300 = arith.constant 4 : index
    %c3_301 = arith.constant 3 : index
    %c0_302 = arith.constant 0 : index
    %c0_303 = arith.constant 0 : index
    %171 = vector.load %arg1[%c4_300, %c3_301, %c0_302, %c0_303] : memref<5x5x64x128xbf16, #tpu.memory_space<vmem>>, vector<1x1x64x128xbf16>
    %172 = vector.shape_cast %171 : vector<1x1x64x128xbf16> to vector<64x128xbf16>
    %173 = tpu.concatenate %156, %158, %160, %162, %164, %166, %168, %170, %172 in 0 : vector<64x128xbf16>, vector<64x128xbf16>, vector<64x128xbf16>, vector<64x128xbf16>, vector<64x128xbf16>, vector<64x128xbf16>, vector<64x128xbf16>, vector<64x128xbf16>, vector<64x128xbf16> -> vector<576x128xbf16>
    %c0_304 = arith.constant 0 : index
    %c0_305 = arith.constant 0 : index
    %174 = vector.load %arg2[%c0_304, %c0_305] : memref<192x576xbf16, #tpu.memory_space<vmem>>, vector<192x576xbf16>
    %cst_306 = arith.constant dense<0.000000e+00> : vector<192x128xf32>
    %175 = tpu.matmul %174, %173, %cst_306 {dimension_numbers = #tpu.dot_dimension_numbers<[1], [0], [0], [1], [0, 0, 1, 1], [], []>} : vector<192x576xbf16>, vector<576x128xbf16>, vector<192x128xf32> -> vector<192x128xf32>
    %176 = arith.maximumf %154, %175 : vector<192x128xf32>
    %c2_307 = arith.constant 2 : index
    %c2_308 = arith.constant 2 : index
    %c0_309 = arith.constant 0 : index
    %c0_310 = arith.constant 0 : index
    %177 = vector.load %arg1[%c2_307, %c2_308, %c0_309, %c0_310] : memref<5x5x64x128xbf16, #tpu.memory_space<vmem>>, vector<1x1x64x128xbf16>
    %178 = vector.shape_cast %177 : vector<1x1x64x128xbf16> to vector<64x128xbf16>
    %c2_311 = arith.constant 2 : index
    %c3_312 = arith.constant 3 : index
    %c0_313 = arith.constant 0 : index
    %c0_314 = arith.constant 0 : index
    %179 = vector.load %arg1[%c2_311, %c3_312, %c0_313, %c0_314] : memref<5x5x64x128xbf16, #tpu.memory_space<vmem>>, vector<1x1x64x128xbf16>
    %180 = vector.shape_cast %179 : vector<1x1x64x128xbf16> to vector<64x128xbf16>
    %c2_315 = arith.constant 2 : index
    %c4_316 = arith.constant 4 : index
    %c0_317 = arith.constant 0 : index
    %c0_318 = arith.constant 0 : index
    %181 = vector.load %arg1[%c2_315, %c4_316, %c0_317, %c0_318] : memref<5x5x64x128xbf16, #tpu.memory_space<vmem>>, vector<1x1x64x128xbf16>
    %182 = vector.shape_cast %181 : vector<1x1x64x128xbf16> to vector<64x128xbf16>
    %c3_319 = arith.constant 3 : index
    %c2_320 = arith.constant 2 : index
    %c0_321 = arith.constant 0 : index
    %c0_322 = arith.constant 0 : index
    %183 = vector.load %arg1[%c3_319, %c2_320, %c0_321, %c0_322] : memref<5x5x64x128xbf16, #tpu.memory_space<vmem>>, vector<1x1x64x128xbf16>
    %184 = vector.shape_cast %183 : vector<1x1x64x128xbf16> to vector<64x128xbf16>
    %c3_323 = arith.constant 3 : index
    %c3_324 = arith.constant 3 : index
    %c0_325 = arith.constant 0 : index
    %c0_326 = arith.constant 0 : index
    %185 = vector.load %arg1[%c3_323, %c3_324, %c0_325, %c0_326] : memref<5x5x64x128xbf16, #tpu.memory_space<vmem>>, vector<1x1x64x128xbf16>
    %186 = vector.shape_cast %185 : vector<1x1x64x128xbf16> to vector<64x128xbf16>
    %c3_327 = arith.constant 3 : index
    %c4_328 = arith.constant 4 : index
    %c0_329 = arith.constant 0 : index
    %c0_330 = arith.constant 0 : index
    %187 = vector.load %arg1[%c3_327, %c4_328, %c0_329, %c0_330] : memref<5x5x64x128xbf16, #tpu.memory_space<vmem>>, vector<1x1x64x128xbf16>
    %188 = vector.shape_cast %187 : vector<1x1x64x128xbf16> to vector<64x128xbf16>
    %c4_331 = arith.constant 4 : index
    %c2_332 = arith.constant 2 : index
    %c0_333 = arith.constant 0 : index
    %c0_334 = arith.constant 0 : index
    %189 = vector.load %arg1[%c4_331, %c2_332, %c0_333, %c0_334] : memref<5x5x64x128xbf16, #tpu.memory_space<vmem>>, vector<1x1x64x128xbf16>
    %190 = vector.shape_cast %189 : vector<1x1x64x128xbf16> to vector<64x128xbf16>
    %c4_335 = arith.constant 4 : index
    %c3_336 = arith.constant 3 : index
    %c0_337 = arith.constant 0 : index
    %c0_338 = arith.constant 0 : index
    %191 = vector.load %arg1[%c4_335, %c3_336, %c0_337, %c0_338] : memref<5x5x64x128xbf16, #tpu.memory_space<vmem>>, vector<1x1x64x128xbf16>
    %192 = vector.shape_cast %191 : vector<1x1x64x128xbf16> to vector<64x128xbf16>
    %c4_339 = arith.constant 4 : index
    %c4_340 = arith.constant 4 : index
    %c0_341 = arith.constant 0 : index
    %c0_342 = arith.constant 0 : index
    %193 = vector.load %arg1[%c4_339, %c4_340, %c0_341, %c0_342] : memref<5x5x64x128xbf16, #tpu.memory_space<vmem>>, vector<1x1x64x128xbf16>
    %194 = vector.shape_cast %193 : vector<1x1x64x128xbf16> to vector<64x128xbf16>
    %195 = tpu.concatenate %178, %180, %182, %184, %186, %188, %190, %192, %194 in 0 : vector<64x128xbf16>, vector<64x128xbf16>, vector<64x128xbf16>, vector<64x128xbf16>, vector<64x128xbf16>, vector<64x128xbf16>, vector<64x128xbf16>, vector<64x128xbf16>, vector<64x128xbf16> -> vector<576x128xbf16>
    %c0_343 = arith.constant 0 : index
    %c0_344 = arith.constant 0 : index
    %196 = vector.load %arg2[%c0_343, %c0_344] : memref<192x576xbf16, #tpu.memory_space<vmem>>, vector<192x576xbf16>
    %cst_345 = arith.constant dense<0.000000e+00> : vector<192x128xf32>
    %197 = tpu.matmul %196, %195, %cst_345 {dimension_numbers = #tpu.dot_dimension_numbers<[1], [0], [0], [1], [0, 0, 1, 1], [], []>} : vector<192x576xbf16>, vector<576x128xbf16>, vector<192x128xf32> -> vector<192x128xf32>
    %198 = arith.maximumf %176, %197 : vector<192x128xf32>
    %c0_346 = arith.constant 0 : index
    %c0_347 = arith.constant 0 : index
    %199 = vector.load %arg3[%c0_346, %c0_347] : memref<192x1xf32, #tpu.memory_space<vmem>>, vector<192x1xf32>
    %200 = vector.broadcast %199 : vector<192x1xf32> to vector<192x128xf32>
    %201 = arith.addf %198, %200 : vector<192x128xf32>
    %cst_348 = arith.constant 0.000000e+00 : f32
    %202 = vector.broadcast %cst_348 : f32 to vector<192x128xf32>
    %203 = arith.maximumf %201, %202 : vector<192x128xf32>
    %c0_349 = arith.constant 0 : index
    %c0_350 = arith.constant 0 : index
    %204 = vector.load %arg4[%c0_349, %c0_350] : memref<192x192xbf16, #tpu.memory_space<vmem>>, vector<192x192xbf16>
    %205 = arith.truncf %203 : vector<192x128xf32> to vector<192x128xbf16>
    %cst_351 = arith.constant dense<0.000000e+00> : vector<192x128xf32>
    %206 = tpu.matmul %204, %205, %cst_351 {dimension_numbers = #tpu.dot_dimension_numbers<[1], [0], [0], [1], [0, 0, 1, 1], [], []>} : vector<192x192xbf16>, vector<192x128xbf16>, vector<192x128xf32> -> vector<192x128xf32>
    %c0_352 = arith.constant 0 : index
    %c0_353 = arith.constant 0 : index
    %207 = vector.load %arg5[%c0_352, %c0_353] : memref<192x1xf32, #tpu.memory_space<vmem>>, vector<192x1xf32>
    %208 = vector.broadcast %207 : vector<192x1xf32> to vector<192x128xf32>
    %209 = arith.addf %206, %208 : vector<192x128xf32>
    %c0_354 = arith.constant 0 : index
    %c0_355 = arith.constant 0 : index
    %210 = vector.load %arg6[%c0_354, %c0_355] : memref<16x192xbf16, #tpu.memory_space<vmem>>, vector<16x192xbf16>
    %211 = arith.truncf %209 : vector<192x128xf32> to vector<192x128xbf16>
    %cst_356 = arith.constant dense<0.000000e+00> : vector<16x128xf32>
    %212 = tpu.matmul %210, %211, %cst_356 {dimension_numbers = #tpu.dot_dimension_numbers<[1], [0], [0], [1], [0, 0, 1, 1], [], []>} : vector<16x192xbf16>, vector<192x128xbf16>, vector<16x128xf32> -> vector<16x128xf32>
    %c0_357 = arith.constant 0 : index
    %c0_358 = arith.constant 0 : index
    %213 = vector.load %arg7[%c0_357, %c0_358] : memref<16x1xf32, #tpu.memory_space<vmem>>, vector<16x1xf32>
    %214 = vector.broadcast %213 : vector<16x1xf32> to vector<16x128xf32>
    %215 = arith.addf %212, %214 : vector<16x128xf32>
    %cst_359 = arith.constant dense<0xFF800000> : vector<128xf32>
    %216 = vector.multi_reduction <maximumf>, %215, %cst_359 [0] : vector<16x128xf32> to vector<128xf32>
    %217 = vector.shape_cast %216 : vector<128xf32> to vector<1x128xf32>
    %218 = vector.broadcast %217 : vector<1x128xf32> to vector<16x128xf32>
    %219 = arith.subf %215, %218 : vector<16x128xf32>
    %220 = math.exp %219 : vector<16x128xf32>
    %cst_360 = arith.constant dense<0.000000e+00> : vector<128xf32>
    %221 = vector.multi_reduction <add>, %220, %cst_360 [0] : vector<16x128xf32> to vector<128xf32>
    %222 = vector.shape_cast %221 : vector<128xf32> to vector<1x128xf32>
    %223 = math.log %222 : vector<1x128xf32>
    %224 = vector.broadcast %223 : vector<1x128xf32> to vector<16x128xf32>
    %225 = arith.subf %219, %224 : vector<16x128xf32>
    %c0_361 = arith.constant 0 : index
    %c0_362 = arith.constant 0 : index
    %226 = vector.load %arg8[%c0_361, %c0_362] : memref<16x128xf32, #tpu.memory_space<vmem>>, vector<16x128xf32>
    tpu.vector_store %arg8[%c0_361, %c0_362], %225 {strides = array<i32>} : memref<16x128xf32, #tpu.memory_space<vmem>>, vector<16x128xf32>,
    return
  }
  func.func @transform_0(%arg0: i32) -> (i32, i32, i32, i32) {
    %c0_i32 = arith.constant 0 : i32
    %c0_i32_0 = arith.constant 0 : i32
    %c0_i32_1 = arith.constant 0 : i32
    %c0_i32_2 = arith.constant 0 : i32
    return %c0_i32, %c0_i32_0, %c0_i32_1, %arg0 : i32, i32, i32, i32
  }
  func.func @transform_1(%arg0: i32) -> (i32, i32) {
    %c0_i32 = arith.constant 0 : i32
    %c0_i32_0 = arith.constant 0 : i32
    %c0_i32_1 = arith.constant 0 : i32
    return %c0_i32, %c0_i32_0 : i32, i32
  }
  func.func @transform_2(%arg0: i32) -> (i32, i32) {
    %c0_i32 = arith.constant 0 : i32
    %c0_i32_0 = arith.constant 0 : i32
    %c0_i32_1 = arith.constant 0 : i32
    return %c0_i32, %c0_i32_0 : i32, i32
  }
  func.func @transform_3(%arg0: i32) -> (i32, i32) {
    %c0_i32 = arith.constant 0 : i32
    %c0_i32_0 = arith.constant 0 : i32
    %c0_i32_1 = arith.constant 0 : i32
    return %c0_i32, %c0_i32_0 : i32, i32
  }
  func.func @transform_4(%arg0: i32) -> (i32, i32) {
    %c0_i32 = arith.constant 0 : i32
    %c0_i32_0 = arith.constant 0 : i32
    %c0_i32_1 = arith.constant 0 : i32
    return %c0_i32, %c0_i32_0 : i32, i32
  }
  func.func @transform_5(%arg0: i32) -> (i32, i32) {
    %c0_i32 = arith.constant 0 : i32
    %c0_i32_0 = arith.constant 0 : i32
    %c0_i32_1 = arith.constant 0 : i32
    return %c0_i32, %c0_i32_0 : i32, i32
  }
  func.func @transform_6(%arg0: i32) -> (i32, i32) {
    %c0_i32 = arith.constant 0 : i32
    %c0_i32_0 = arith.constant 0 : i32
    %c0_i32_1 = arith.constant 0 : i32
    return %c0_i32, %c0_i32_0 : i32, i32
  }
  func.func @transform_7(%arg0: i32) -> (i32, i32) {
    %c0_i32 = arith.constant 0 : i32
    %c0_i32_0 = arith.constant 0 : i32
    return %c0_i32, %arg0 : i32, i32
  }
}

</mosaic_0001>

<bundles_post_ra>
// kernel: tpu_custom_call.1
= control target key start
LH: loop header
LB: loop body
LE: loop exit
PB: predicated region body
PF: predicated region fallthrough
CT: control target
= control target key end

     0   :  { %12 = vsyncpa [#allocation3], 0  ;;  %s10463_s0 = inlined_call_operand.hbm [shape: bf16[5,5,64,128], index: 0, kind: input, shape index: {}]   ;;  %s10464_s1 = inlined_call_operand.hbm [shape: bf16[192,576], index: 1, kind: input, shape index: {}]   ;;  %s10465_s2 = inlined_call_operand.vmem [shape: f32[192,1], index: 2, kind: input, shape index: {}]   ;;  %s10466_s3 = inlined_call_operand.vmem [shape: bf16[192,192], index: 3, kind: input, shape index: {}]   ;;  %s10467_s4 = inlined_call_operand.vmem [shape: f32[192,1], index: 4, kind: input, shape index: {}]   ;;  %s10468_s5 = inlined_call_operand.vmem [shape: bf16[16,192], index: 5, kind: input, shape index: {}]   ;;  %s10469_s6 = inlined_call_operand.vmem [shape: f32[16,1], index: 6, kind: input, shape index: {}]   ;;  %s10470_s7 = inlined_call_operand.hbm [shape: f32[16,128], index: 7, kind: output, shape index: {}]  }
   0x1   :  { %13 = vsyncpa [#allocation6], 0 }
   0x2   :  { %14 = vsyncpa [#allocation4], 0  ;;  %s19_s26 = sshll.u32 %s10463_s0, 4  ;;  %s6605_s27 = smov [#allocation2]   ;;  %s20_s26 = int_to_ptr.hbm [resolvable:$true] %s19_s26 }
   0x3   :  { %s21_s28 = sshll.u32 %s6605_s27, 4  ;;  %s32_s8 = sshll.u32 %s10464_s1, 4  ;;  %s22_s28 = int_to_ptr.vmem [resolvable:$true] %s21_s28  ;;  %s33_s8 = int_to_ptr.hbm [resolvable:$true] %s32_s8 }
   0x4   :  { %s6606_s9 = smov 64   ;;  %s6607_s10 = smov 4  }
   0x5   :  { %27 = dma.hbm_to_vmem [thread:$0]  %s20_s26, 12800, %s22_s28, [#allocation3], %s6606_s9, %s6606_s9, %s6607_s10  }
   0x6   :  { %s6608_s11 = smov [#allocation5]   ;;  %s6609_s13 = smov 320  }
   0x7   :  { %s34_s12 = sshll.u32 %s6608_s11, 4  ;;  %s6610_s14 = smov 20   ;;  %s35_s12 = int_to_ptr.vmem [resolvable:$true] %s34_s12 }
   0x8   :  { %40 = dma.hbm_to_vmem [thread:$0]  %s33_s8, 7680, %s35_s12, [#allocation6], %s6609_s13, %s6609_s13, %s6610_s14  }
   0x9   :  { %6599 = dma.done.wait [#allocation3], 12800  }
   0xa   :  { %6600 = vsyncadd [#allocation3], 4294954496 }
   0xb   :  { %6601 = dma.done.wait [#allocation6], 7680  }
   0xc   :  { %6602 = vsyncadd [#allocation6], 4294959616  ;;  %v6661_v0 = vld [vmem:[#allocation2 + $0x38] sm:$0xff]  ;;  %v6669_v3 = vld [vmem:[#allocation2 + $0x30] sm:$0xff]  ;;  %vm728_vm0 = vcmask 523264   ;;  %s6613_s30 = smov 128  }
   0xd   :  { %v6663_v1 = vld [vmem:[#allocation2 + $0xb8] sm:$0xff]  ;;  %765 = vmatpush.bf16.msra.mxu0 %v6661_v0  ;;  %6407 = vmatpush.bf16.msra.mxu3 %v6661_v0  ;;  %v6673_v4 = vld [vmem:[#allocation2 + $0xb0] sm:$0xff]  ;;  %v6679_v6 = vld [vmem:[#allocation2 + $0x28] sm:$0xff]  ;;  %s6614_s8 = smov 8  }
   0xe   :  { %v6665_v2 = vld [vmem:[#allocation2 + $0xf8] sm:$0xff]  ;;  %834 = vmatpush.bf16.msra.mxu1 %v6663_v1  ;;  %v6675_v5 = vld [vmem:[#allocation2 + $0xf0] sm:$0xff]  ;;  %v6234_v7 = vld [vmem:[#allocation2 + $0xa8] sm:$0xff] }
   0xf   :  { %903 = vmatpush.bf16.msra.mxu2 %v6665_v2  ;;  %v6683_v8 = vld [vmem:[#allocation2 + $0xe8] sm:$0xff]  ;;  %v6687_v9 = vld [vmem:[#allocation2 + $0x20] sm:$0xff]  ;;  %v6224_v12 = vld [vmem:[#allocation2 + $0x18] sm:$0xff] }
  0x10   :  { %v6690_v10 = vld [vmem:[#allocation2 + $0xa0] sm:$0xff]  ;;  %v6698_v13 = vld [vmem:[#allocation2 + $0x58] sm:$0xff]  ;;  %v6223_v15 = vld [vmem:[#allocation2 + $0x10] sm:$0xff] }
  0x11   :  { %766 = vmatpush.bf16.msra.mxu0 %v6669_v3  ;;  %6408 = vmatpush.bf16.msra.mxu3 %v6669_v3  ;;  %v6692_v11 = vld [vmem:[#allocation2 + $0xe0] sm:$0xff]  ;;  %v6700_v14 = vld [vmem:[#allocation2 + $0xd8] sm:$0xff]  ;;  %v6704_v16 = vld [vmem:[#allocation2 + $0x50] sm:$0xff] }
  0x12   :  { %835 = vmatpush.bf16.msra.mxu1 %v6673_v4  ;;  %v6706_v17 = vld [vmem:[#allocation2 + $0xd0] sm:$0xff]  ;;  %v6222_v18 = vld [vmem:[#allocation2 + $0x8] sm:$0xff]  ;;  %v6221_v21 = vld [vmem:[#allocation2] sm:$0xff] }
  0x13   :  { %904 = vmatpush.bf16.msra.mxu2 %v6675_v5  ;;  %v6710_v19 = vld [vmem:[#allocation2 + $0x48] sm:$0xff]  ;;  %v6714_v22 = vld [vmem:[#allocation2 + $0x40] sm:$0xff]  ;;  %v6259_v25 = vld [vmem:[#allocation5 + $0x10] sm:$0xf0] }
  0x14   :  { %v6712_v20 = vld [vmem:[#allocation2 + $0xc8] sm:$0xff]  ;;  %v6716_v23 = vld [vmem:[#allocation2 + $0xc0] sm:$0xff]  ;;  %v5702_v26 = vld [vmem:[#allocation5 + $0x190] sm:$0xf] }
  0x15   :  { %767 = vmatpush.bf16.msra.mxu0 %v6679_v6  ;;  %6409 = vmatpush.bf16.msra.mxu3 %v6679_v6  ;;  %v5502_v24 = vld [vmem:[#allocation5] sm:$0xf]  ;;  %v6309_v27 = vld [vmem:[#allocation5 + $0x1a0] sm:$0xf0]  ;;  %v5504_v29 = vld [vmem:[#allocation5 + $0x14] sm:$0xf0] }
  0x16   :  { %836 = vmatpush.bf16.msra.mxu1 %v6234_v7  ;;  %v6257_v28 = vld [vmem:[#allocation5 + $0x4] sm:$0xf]  ;;  %v5510_v30 = vld [vmem:[#allocation5 + $0x8] sm:$0xf]  ;;  %v6260_v31 = vld [vmem:[#allocation5 + $0x18] sm:$0xf0]  ;;  %v6720_v32 = vor.u32 %v6259_v25, %v5502_v24  ;;  %v6722_v33 = vor.u32 %v6309_v27, %v5702_v26 }
  0x17   :  { %905 = vmatpush.bf16.msra.mxu2 %v6683_v8  ;;  %v6724_v34 = vor.u32 %v6257_v28, %v5504_v29  ;;  %v6726_v35 = vor.u32 %v6260_v31, %v5510_v30  ;;  %v5522_v36 = vld [vmem:[#allocation5 + $0x28] sm:$0xf]  ;;  %v6264_v37 = vld [vmem:[#allocation5 + $0x38] sm:$0xf0]  ;;  %v5722_v38 = vld [vmem:[#allocation5 + $0x1b8] sm:$0xf] }
  0x18   :  { %10833 = vst [vmem:[#allocation11_spill] sm:$0xff] %v6720_v32  ;;  %v6314_v39 = vld [vmem:[#allocation5 + $0x1c8] sm:$0xf0]  ;;  %v5524_v41 = vld [vmem:[#allocation5 + $0x3c] sm:$0xf0]  ;;  %v6744_v44 = vor.u32 %v6264_v37, %v5522_v36  ;;  %v6800_v28 = vld [vmem:[#allocation2 + $0x170] sm:$0xff] }
  0x19   :  { %768 = vmatpush.bf16.msra.mxu0 %v6687_v9  ;;  %6410 = vmatpush.bf16.msra.mxu3 %v6687_v9  ;;  %10834 = vst [vmem:[#allocation12_spill] sm:$0xff] %v6722_v33  ;;  %v6262_v40 = vld [vmem:[#allocation5 + $0x2c] sm:$0xf]  ;;  %v5530_v42 = vld [vmem:[#allocation5 + $0x30] sm:$0xf]  ;;  %v6746_v45 = vor.u32 %v6314_v39, %v5722_v38  ;;  %v6248_v36 = vld [vmem:[#allocation2 + $0x158] sm:$0xff] }
  0x1a   :  { %837 = vmatpush.bf16.msra.mxu1 %v6690_v10  ;;  %10835 = vst [vmem:[#allocation13_spill] sm:$0xff] %v6724_v34  ;;  %v6265_v43 = vld [vmem:[#allocation5 + $0x40] sm:$0xf0]  ;;  %v6748_v46 = vor.u32 %v6262_v40, %v5524_v41  ;;  %v5542_v48 = vld [vmem:[#allocation5 + $0x50] sm:$0xf]  ;;  %v6811_v31 = vld [vmem:[#allocation2 + $0x168] sm:$0xff] }
  0x1b   :  { %906 = vmatpush.bf16.msra.mxu2 %v6692_v11  ;;  %10836 = vst [vmem:[#allocation14_spill] sm:$0xff] %v6726_v35  ;;  %v6750_v47 = vor.u32 %v6265_v43, %v5530_v42  ;;  %v6269_v49 = vld [vmem:[#allocation5 + $0x60] sm:$0xf0]  ;;  %v6267_v50 = vld [vmem:[#allocation5 + $0x54] sm:$0xf] }
  0x1c   :  { %10837 = vst [vmem:[#allocation15_spill] sm:$0xff] %v6744_v44  ;;  %v6307_v51 = vld [vmem:[#allocation5 + $0x194] sm:$0xf]  ;;  %v5704_v52 = vld [vmem:[#allocation5 + $0x1a4] sm:$0xf0]  ;;  %v6765_v56 = vor.u32 %v6269_v49, %v5542_v48 }
  0x1d   :  { %769 = vmatpush.bf16.msra.mxu0 %v6224_v12  ;;  %6411 = vmatpush.bf16.msra.mxu3 %v6224_v12  ;;  %10838 = vst [vmem:[#allocation16_spill] sm:$0xff] %v6746_v45  ;;  %v5544_v53 = vld [vmem:[#allocation5 + $0x64] sm:$0xf0]  ;;  %v5550_v54 = vld [vmem:[#allocation5 + $0x58] sm:$0xf]  ;;  %v6767_v57 = vor.u32 %v6307_v51, %v5704_v52  ;;  %v6247_v49 = vld [vmem:[#allocation2 + $0x150] sm:$0xff] }
  0x1e   :  { %838 = vmatpush.bf16.msra.mxu1 %v6698_v13  ;;  %10839 = vst [vmem:[#allocation17_spill] sm:$0xff] %v6748_v46  ;;  %v6270_v55 = vld [vmem:[#allocation5 + $0x68] sm:$0xf0]  ;;  %v6770_v58 = vor.u32 %v6267_v50, %v5544_v53  ;;  %v5562_v60 = vld [vmem:[#allocation5 + $0x78] sm:$0xf] }
  0x1f   :  { %907 = vmatpush.bf16.msra.mxu2 %v6700_v14  ;;  %10840 = vst [vmem:[#allocation18_spill] sm:$0xff] %v6750_v47  ;;  %v6772_v59 = vor.u32 %v6270_v55, %v5550_v54  ;;  %v6274_v61 = vld [vmem:[#allocation5 + $0x88] sm:$0xf0]  ;;  %v6272_v62 = vld [vmem:[#allocation5 + $0x7c] sm:$0xf]  ;;  %v6245_v55 = vld [vmem:[#allocation2 + $0x140] sm:$0xff] }
  0x20   :  { %10841 = vst [vmem:[#allocation19_spill] sm:$0xff] %v6765_v56  ;;  %v6312_v63 = vld [vmem:[#allocation5 + $0x1bc] sm:$0xf]  ;;  %v5710_v24 = vld [vmem:[#allocation5 + $0x198] sm:$0xf]  ;;  %v6246_v54 = vld [vmem:[#allocation2 + $0x148] sm:$0xff] }
  0x21   :  { %770 = vmatpush.bf16.msra.mxu0 %v6223_v15  ;;  %6412 = vmatpush.bf16.msra.mxu3 %v6223_v15  ;;  %10842 = vst [vmem:[#allocation20_spill] sm:$0xff] %v6767_v57  ;;  %v6796_v12 = vld [vmem:[#allocation2 + $0x178] sm:$0xff]  ;;  %v5582_v15 = vld [vmem:[#allocation5 + $0xa0] sm:$0xf]  ;;  %v6310_v25 = vld [vmem:[#allocation5 + $0x1a8] sm:$0xf0] }
  0x22   :  { %839 = vmatpush.bf16.msra.mxu1 %v6704_v16  ;;  %10843 = vst [vmem:[#allocation21_spill] sm:$0xff] %v6770_v58  ;;  %v5590_v26 = vld [vmem:[#allocation5 + $0xa8] sm:$0xf]  ;;  %v6280_v27 = vld [vmem:[#allocation5 + $0xb8] sm:$0xf0] }
  0x23   :  { %908 = vmatpush.bf16.msra.mxu2 %v6706_v17  ;;  %10844 = vst [vmem:[#allocation22_spill] sm:$0xff] %v6772_v59  ;;  %v6808_v30 = vor.u32 %v6280_v27, %v5590_v26  ;;  %v5602_v37 = vld [vmem:[#allocation5 + $0xc8] sm:$0xf]  ;;  %v6284_v38 = vld [vmem:[#allocation5 + $0xd8] sm:$0xf0] }
  0x24   :  { %10849 = vst [vmem:[#allocation27_spill] sm:$0xff] %v6800_v28  ;;  %v6282_v39 = vld [vmem:[#allocation5 + $0xcc] sm:$0xf]  ;;  %v5730_v40 = vld [vmem:[#allocation5 + $0x1c0] sm:$0xf]  ;;  %v6821_v50 = vor.u32 %v6284_v38, %v5602_v37 }
  0x25   :  { %771 = vmatpush.bf16.msra.mxu0 %v6222_v18  ;;  %6413 = vmatpush.bf16.msra.mxu3 %v6222_v18  ;;  %v6279_v18 = vld [vmem:[#allocation5 + $0xb0] sm:$0xf0]  ;;  %10853 = vst [vmem:[#allocation31_spill] sm:$0xff] %v6808_v30  ;;  %v5604_v42 = vld [vmem:[#allocation5 + $0xdc] sm:$0xf0] }
  0x26   :  { %840 = vmatpush.bf16.msra.mxu1 %v6710_v19  ;;  %v6802_v29 = vor.u32 %v6279_v18, %v5582_v15  ;;  %10854 = vst [vmem:[#allocation32_spill] sm:$0xff] %v6811_v31  ;;  %v6315_v41 = vld [vmem:[#allocation5 + $0x1d0] sm:$0xf0]  ;;  %v5610_v43 = vld [vmem:[#allocation5 + $0xd0] sm:$0xf]  ;;  %v6825_v52 = vor.u32 %v6282_v39, %v5604_v42 }
  0x27   :  { %909 = vmatpush.bf16.msra.mxu2 %v6712_v20  ;;  %v6285_v48 = vld [vmem:[#allocation5 + $0xe0] sm:$0xf0]  ;;  %10856 = vst [vmem:[#allocation34_spill] sm:$0xff] %v6821_v50  ;;  %v6823_v51 = vor.u32 %v6315_v41, %v5730_v40  ;;  %v6292_v26 = vld [vmem:[#allocation5 + $0x11c] sm:$0xf] }
  0x28   :  { %10850 = vst [vmem:[#allocation28_spill] sm:$0xff] %v6802_v29  ;;  %v6827_v53 = vor.u32 %v6285_v48, %v5610_v43  ;;  %v6263_v27 = vld [vmem:[#allocation5 + $0x34] sm:$0xf]  ;;  %v5644_v37 = vld [vmem:[#allocation5 + $0x12c] sm:$0xf0]  ;;  %v6855_v48 = vld [vmem:[#allocation2 + $0x198] sm:$0xff] }
  0x29   :  { %772 = vmatpush.bf16.msra.mxu0 %v6221_v21  ;;  %6414 = vmatpush.bf16.msra.mxu3 %v6221_v21  ;;  %v6277_v21 = vld [vmem:[#allocation5 + $0xa4] sm:$0xf]  ;;  %10857 = vst [vmem:[#allocation35_spill] sm:$0xff] %v6823_v51  ;;  %v5650_v38 = vld [vmem:[#allocation5 + $0x120] sm:$0xf]  ;;  %v6849_v42 = vor.u32 %v6292_v26, %v5644_v37 }
  0x2a   :  { %841 = vmatpush.bf16.msra.mxu1 %v6714_v22  ;;  %10858 = vst [vmem:[#allocation36_spill] sm:$0xff] %v6825_v52  ;;  %v6295_v39 = vld [vmem:[#allocation5 + $0x130] sm:$0xf0]  ;;  %v6317_v37 = vld [vmem:[#allocation2 + $0x60] sm:$0xff] }
  0x2b   :  { %910 = vmatpush.bf16.msra.mxu2 %v6716_v23  ;;  %10859 = vst [vmem:[#allocation37_spill] sm:$0xff] %v6827_v53  ;;  %v6851_v43 = vor.u32 %v6295_v39, %v5650_v38 }
  0x2c   :  { %773 = vmatmul.bf16.vlgmr.msra.gmra.mxu0 %v6720_v32  ;;  %823 = vmatmul.bf16.vlgmr.msra.gmra.mxu3 %v6722_v33  ;;  %10866 = vst [vmem:[#allocation44_spill] sm:$0xff] %v6849_v42 }
  0x2d   :  { %6415 = vmatpush.bf16.msrb.mxu3 %v6663_v1  ;;  %842 = vmatmul.bf16.vlgmr.msra.gmra.mxu1 %v6724_v34  ;;  %v5564_v1 = vld [vmem:[#allocation5 + $0x8c] sm:$0xf0]  ;;  %10867 = vst [vmem:[#allocation45_spill] sm:$0xff] %v6851_v43 }
  0x2e   :  { %1209 = vmatpush.bf16.msrb.mxu1 %v6698_v13  ;;  %911 = vmatmul.bf16.vlgmr.msra.gmra.mxu2 %v6726_v35 }
  0x2f   :  { %1278 = vmatpush.bf16.msrb.mxu2 %v6700_v14  ;;  %1045 = vmatpush.bf16.msrb.mxu0 %v6855_v48 }
  0x31   :  { %6416 = vmatpush.bf16.msrb.mxu3 %v6673_v4  ;;  %v6275_v4 = vld [vmem:[#allocation5 + $0x90] sm:$0xf0] }
  0x32   :  { %1210 = vmatpush.bf16.msrb.mxu1 %v6704_v16 }
  0x33   :  { %1279 = vmatpush.bf16.msrb.mxu2 %v6706_v17 }
  0x35   :  { %6417 = vmatpush.bf16.msrb.mxu3 %v6234_v7 }
  0x36   :  { %1211 = vmatpush.bf16.msrb.mxu1 %v6710_v19 }
  0x37   :  { %1280 = vmatpush.bf16.msrb.mxu2 %v6712_v20 }
  0x39   :  { %6418 = vmatpush.bf16.msrb.mxu3 %v6690_v10 }
  0x3a   :  { %1212 = vmatpush.bf16.msrb.mxu1 %v6714_v22 }
  0x3b   :  { %1281 = vmatpush.bf16.msrb.mxu2 %v6716_v23 }
  0x3c   :  { %778 = vmatmul.bf16.gmra.mxu0 %v6744_v44  ;;  %828 = vmatmul.bf16.gmra.mxu3 %v6746_v45 }
  0x3d   :  { %6419 = vmatpush.bf16.msrb.mxu3 %v6698_v13  ;;  %847 = vmatmul.bf16.gmra.mxu1 %v6748_v46 }
  0x3e   :  { %1213 = vmatpush.bf16.msrb.mxu1 %v6661_v0  ;;  %916 = vmatmul.bf16.gmra.mxu2 %v6750_v47  ;;  %v5724_v0 = vld [vmem:[#allocation5 + $0x1cc] sm:$0xf0] }
  0x3f   :  { %v6783_v7 = vor.u32 %v6312_v63, %v5724_v0  ;;  %v6258_v63 = vld [vmem:[#allocation5 + $0xc] sm:$0xf]  ;;  %v5512_v0 = vld [vmem:[#allocation5 + $0x1c] sm:$0xf0] }
  0x40   :  { %v6835_v18 = vor.u32 %v6258_v63, %v5512_v0  ;;  %v6299_v63 = vld [vmem:[#allocation5 + $0x150] sm:$0xf0]  ;;  %v6297_v0 = vld [vmem:[#allocation5 + $0x144] sm:$0xf] }
  0x41   :  { %6420 = vmatpush.bf16.msrb.mxu3 %v6704_v16  ;;  %10846 = vst [vmem:[#allocation24_spill] sm:$0xff] %v6783_v7 }
  0x42   :  { %1214 = vmatpush.bf16.msrb.mxu1 %v6669_v3  ;;  %v5570_v3 = vld [vmem:[#allocation5 + $0x80] sm:$0xf]  ;;  %10861 = vst [vmem:[#allocation39_spill] sm:$0xff] %v6835_v18 }
  0x43   :  { %v6787_v10 = vor.u32 %v6275_v4, %v5570_v3  ;;  %v5630_v3 = vld [vmem:[#allocation5 + $0xf8] sm:$0xf]  ;;  %v6290_v4 = vld [vmem:[#allocation5 + $0x108] sm:$0xf0] }
  0x45   :  { %6421 = vmatpush.bf16.msrb.mxu3 %v6710_v19  ;;  %10848 = vst [vmem:[#allocation26_spill] sm:$0xff] %v6787_v10 }
  0x46   :  { %1215 = vmatpush.bf16.msrb.mxu1 %v6679_v6  ;;  %v6781_v6 = vor.u32 %v6274_v61, %v5562_v60  ;;  %v5622_v60 = vld [vmem:[#allocation5 + $0xf0] sm:$0xf]  ;;  %v6289_v61 = vld [vmem:[#allocation5 + $0x100] sm:$0xf0] }
  0x47   :  { %v6833_v15 = vor.u32 %v6289_v61, %v5622_v60  ;;  %v6863_v60 = vld [vmem:[#allocation2 + $0x188] sm:$0xff] }
  0x48   :  { %10845 = vst [vmem:[#allocation23_spill] sm:$0xff] %v6781_v6  ;;  %v6318_v61 = vld [vmem:[#allocation2 + $0x68] sm:$0xff] }
  0x49   :  { %6422 = vmatpush.bf16.msrb.mxu3 %v6714_v22  ;;  %10860 = vst [vmem:[#allocation38_spill] sm:$0xff] %v6833_v15 }
  0x4a   :  { %1216 = vmatpush.bf16.msrb.mxu1 %v6687_v9  ;;  %v6785_v9 = vor.u32 %v6272_v62, %v5564_v1  ;;  %v6287_v62 = vld [vmem:[#allocation5 + $0xf4] sm:$0xf]  ;;  %v5624_v1 = vld [vmem:[#allocation5 + $0x104] sm:$0xf0]  ;;  %10868 = vst [vmem:[#allocation46_spill] sm:$0xff] %v6863_v60 }
  0x4c   :  { %783 = vmatmul.bf16.gmra.mxu0 %v6765_v56  ;;  %892 = vmatmul.bf16.vlgmr.msrb.gmra.mxu3 %v6767_v57  ;;  %10847 = vst [vmem:[#allocation25_spill] sm:$0xff] %v6785_v9 }
  0x4d   :  { %6423 = vmatpush.bf16.msra.mxu3 %v6665_v2  ;;  %852 = vmatmul.bf16.gmra.mxu1 %v6770_v58 }
  0x4e   :  { %921 = vmatmul.bf16.gmra.mxu2 %v6772_v59 }
  0x51   :  { %6424 = vmatpush.bf16.msra.mxu3 %v6675_v5 }
  0x55   :  { %6425 = vmatpush.bf16.msra.mxu3 %v6683_v8 }
  0x59   :  { %6426 = vmatpush.bf16.msra.mxu3 %v6692_v11 }
  0x5c   :  { %788 = vmatmul.bf16.gmra.mxu0 %v6781_v6  ;;  %897 = vmatmul.bf16.gmra.mxu3 %v6783_v7 }
  0x5d   :  { %6427 = vmatpush.bf16.msra.mxu3 %v6700_v14  ;;  %857 = vmatmul.bf16.gmra.mxu1 %v6785_v9  ;;  %v5584_v14 = vld [vmem:[#allocation5 + $0xb4] sm:$0xf0] }
  0x5e   :  { %926 = vmatmul.bf16.gmra.mxu2 %v6787_v10 }
  0x61   :  { %6428 = vmatpush.bf16.msra.mxu3 %v6706_v17  ;;  %v6804_v17 = vor.u32 %v6310_v25, %v5710_v24  ;;  %v6839_v24 = vor.u32 %v6290_v4, %v5630_v3  ;;  %v5642_v25 = vld [vmem:[#allocation5 + $0x118] sm:$0xf]  ;;  %v5552_v3 = vld [vmem:[#allocation5 + $0x6c] sm:$0xf0] }
  0x62   :  { %v5664_v4 = vld [vmem:[#allocation5 + $0x154] sm:$0xf0] }
  0x63   :  { %10851 = vst [vmem:[#allocation29_spill] sm:$0xff] %v6804_v17  ;;  %v6872_v39 = vor.u32 %v6297_v0, %v5664_v4  ;;  %v5682_v4 = vld [vmem:[#allocation5 + $0x168] sm:$0xf] }
  0x64   :  { %10863 = vst [vmem:[#allocation41_spill] sm:$0xff] %v6839_v24 }
  0x65   :  { %6429 = vmatpush.bf16.msra.mxu3 %v6712_v20  ;;  %v6806_v20 = vor.u32 %v6277_v21, %v5584_v14  ;;  %v6837_v21 = vor.u32 %v6287_v62, %v5624_v1  ;;  %v6294_v14 = vld [vmem:[#allocation5 + $0x128] sm:$0xf0]  ;;  %v5662_v62 = vld [vmem:[#allocation5 + $0x140] sm:$0xf]  ;;  %v6268_v1 = vld [vmem:[#allocation5 + $0x5c] sm:$0xf] }
  0x66   :  { %v6845_v40 = vor.u32 %v6294_v14, %v5642_v25  ;;  %v5670_v25 = vld [vmem:[#allocation5 + $0x148] sm:$0xf]  ;;  %v6300_v14 = vld [vmem:[#allocation5 + $0x158] sm:$0xf0]  ;;  %v6866_v26 = vor.u32 %v6299_v63, %v5662_v62  ;;  %10871 = vst [vmem:[#allocation49_spill] sm:$0xff] %v6872_v39 }
  0x67   :  { %10852 = vst [vmem:[#allocation30_spill] sm:$0xff] %v6806_v20 }
  0x68   :  { %10862 = vst [vmem:[#allocation40_spill] sm:$0xff] %v6837_v21 }
  0x69   :  { %6430 = vmatpush.bf16.msra.mxu3 %v6716_v23  ;;  %v6818_v23 = vld [vmem:[#allocation2 + $0x160] sm:$0xff]  ;;  %10864 = vst [vmem:[#allocation42_spill] sm:$0xff] %v6845_v40 }
  0x6a   :  { %10855 = vst [vmem:[#allocation33_spill] sm:$0xff] %v6818_v23 }
  0x6b   :  { %10869 = vst [vmem:[#allocation47_spill] sm:$0xff] %v6866_v26 }
  0x6c   :  { %793 = vmatmul.bf16.gmra.mxu0 %v6802_v29  ;;  %961 = vmatmul.bf16.vlgmr.msra.gmra.mxu3 %v6804_v17 }
  0x6d   :  { %972 = vmatpush.bf16.msrb.mxu3 %v6796_v12  ;;  %862 = vmatmul.bf16.gmra.mxu1 %v6806_v20 }
  0x6e   :  { %931 = vmatmul.bf16.gmra.mxu2 %v6808_v30 }
  0x71   :  { %973 = vmatpush.bf16.msrb.mxu3 %v6800_v28 }
  0x75   :  { %974 = vmatpush.bf16.msrb.mxu3 %v6811_v31 }
  0x79   :  { %975 = vmatpush.bf16.msrb.mxu3 %v6818_v23 }
  0x7c   :  { %798 = vmatmul.bf16.gmra.mxu0 %v6821_v50  ;;  %966 = vmatmul.bf16.gmra.mxu3 %v6823_v51  ;;  %v6874_v51 = vor.u32 %v6300_v14, %v5670_v25  ;;  %v6304_v25 = vld [vmem:[#allocation5 + $0x178] sm:$0xf0]  ;;  %v6302_v14 = vld [vmem:[#allocation5 + $0x16c] sm:$0xf] }
  0x7d   :  { %976 = vmatpush.bf16.msrb.mxu3 %v6248_v36  ;;  %867 = vmatmul.bf16.gmra.mxu1 %v6825_v52  ;;  %v5532_v36 = vld [vmem:[#allocation5 + $0x44] sm:$0xf0] }
  0x7e   :  { %936 = vmatmul.bf16.gmra.mxu2 %v6827_v53  ;;  %v6847_v41 = vor.u32 %v6263_v27, %v5532_v36  ;;  %v6868_v27 = vor.u32 %v6268_v1, %v5552_v3  ;;  %v6870_v36 = vld [vmem:[#allocation2 + $0x180] sm:$0xff]  ;;  %10872 = vst [vmem:[#allocation50_spill] sm:$0xff] %v6874_v51 }
  0x80   :  { %10865 = vst [vmem:[#allocation43_spill] sm:$0xff] %v6847_v41 }
  0x81   :  { %977 = vmatpush.bf16.msrb.mxu3 %v6247_v49  ;;  %v6320_v49 = vld [vmem:[#allocation2 + $0x78] sm:$0xff]  ;;  %10870 = vst [vmem:[#allocation48_spill] sm:$0xff] %v6868_v27 }
  0x82   :  { %1282 = vmatpush.bf16.msrb.mxu2 %v6320_v49 }
  0x85   :  { %978 = vmatpush.bf16.msrb.mxu3 %v6246_v54  ;;  %v6860_v54 = vld [vmem:[#allocation2 + $0x190] sm:$0xff] }
  0x86   :  { %1046 = vmatpush.bf16.msrb.mxu0 %v6860_v54 }
  0x89   :  { %979 = vmatpush.bf16.msrb.mxu3 %v6245_v55  ;;  %v6319_v55 = vld [vmem:[#allocation2 + $0x70] sm:$0xff] }
  0x8a   :  { %1283 = vmatpush.bf16.msrb.mxu2 %v6319_v55  ;;  %1047 = vmatpush.bf16.msrb.mxu0 %v6863_v60 }
  0x8c   :  { %803 = vmatmul.bf16.gmra.mxu0 %v6833_v15  ;;  %980 = vmatmul.bf16.vlgmr.msrb.gmra.mxu3 %v6835_v18 }
  0x8d   :  { %872 = vmatmul.bf16.gmra.mxu1 %v6837_v21 }
  0x8e   :  { %941 = vmatmul.bf16.gmra.mxu2 %v6839_v24  ;;  %1048 = vmatpush.bf16.msrb.mxu0 %v6870_v36  ;;  %v6305_v24 = vld [vmem:[#allocation5 + $0x180] sm:$0xf0] }
  0x8f   :  { %1284 = vmatpush.bf16.msrb.mxu2 %v6318_v61 }
  0x92   :  { %1416 = vmatpush.bf16.msra.mxu0 %v6855_v48 }
  0x93   :  { %1285 = vmatpush.bf16.msrb.mxu2 %v6317_v37 }
  0x96   :  { %1417 = vmatpush.bf16.msra.mxu0 %v6860_v54 }
  0x97   :  { %1677 = vmatpush.bf16.msra.mxu2 %v6320_v49  ;;  %v5690_v49 = vld [vmem:[#allocation5 + $0x170] sm:$0xf] }
  0x98   :  { %v6897_v18 = vor.u32 %v6305_v24, %v5690_v49 }
  0x9a   :  { %1418 = vmatpush.bf16.msra.mxu0 %v6863_v60  ;;  %10876 = vst [vmem:[#allocation54_spill] sm:$0xff] %v6897_v18 }
  0x9b   :  { %1678 = vmatpush.bf16.msra.mxu2 %v6319_v55 }
  0x9c   :  { %808 = vmatmul.bf16.gmra.mxu0 %v6845_v40  ;;  %985 = vmatmul.bf16.gmra.mxu3 %v6847_v41 }
  0x9d   :  { %877 = vmatmul.bf16.gmra.mxu1 %v6849_v42 }
  0x9e   :  { %946 = vmatmul.bf16.gmra.mxu2 %v6851_v43  ;;  %1419 = vmatpush.bf16.msra.mxu0 %v6870_v36 }
  0x9f   :  { %1679 = vmatpush.bf16.msra.mxu2 %v6318_v61 }
  0xa2   :  { %1420 = vmatpush.bf16.msra.mxu0 %v6796_v12 }
  0xa3   :  { %1680 = vmatpush.bf16.msra.mxu2 %v6317_v37 }
  0xa6   :  { %1421 = vmatpush.bf16.msra.mxu0 %v6800_v28 }
  0xa7   :  { %1681 = vmatpush.bf16.msra.mxu2 %v6698_v13 }
  0xa9   :  { %v774_v38 = vpop.f32.mrf.mxu0 }
  0xaa   :  { %v843_v17 = vpop.f32.mrf.mxu1  ;;  %1422 = vmatpush.bf16.msra.mxu0 %v6811_v31 }
  0xab   :  { %v844_v43 = vadd.f32 %v843_v17, %v774_v38  ;;  %v6273_v38 = vld [vmem:[#allocation5 + $0x84] sm:$0xf]  ;;  %1682 = vmatpush.bf16.msra.mxu2 %v6704_v16 }
  0xac   :  { %813 = vmatmul.bf16.gmra.mxu0 %v6866_v26  ;;  %990 = vmatmul.bf16.gmra.mxu3 %v6868_v27  ;;  %v5572_v27 = vld [vmem:[#allocation5 + $0x94] sm:$0xf0] }
  0xad   :  { %882 = vmatmul.bf16.gmra.mxu1 %v6872_v39  ;;  %v6891_v53 = vor.u32 %v6273_v38, %v5572_v27 }
  0xae   :  { %951 = vmatmul.bf16.gmra.mxu2 %v6874_v51  ;;  %v5684_v51 = vld [vmem:[#allocation5 + $0x17c] sm:$0xf0]  ;;  %1423 = vmatpush.bf16.msra.mxu0 %v6818_v23 }
  0xaf   :  { %v6882_v62 = vpop.f32.mrf.mxu3  ;;  %10874 = vst [vmem:[#allocation52_spill] sm:$0xff] %v6891_v53  ;;  %1683 = vmatpush.bf16.msra.mxu2 %v6710_v19 }
  0xb1   :  { %v912_v63 = vpop.f32.mrf.mxu2  ;;  %v776_v17 = vpop.f32.mrf.mxu0 }
  0xb2   :  { %v6885_v0 = vadd.f32 %v912_v63, %v844_v43  ;;  %v845_v1 = vpop.f32.mrf.mxu1  ;;  %v6889_v63 = vor.u32 %v6304_v25, %v5682_v4  ;;  %v5592_v4 = vld [vmem:[#allocation5 + $0xbc] sm:$0xf0]  ;;  %v5518_v25 = vld [vmem:[#allocation5 + $0x10] sm:$0xf] }
  0xb3   :  { %v846_v3 = vadd.f32 %v845_v1, %v776_v17  ;;  %v6895_v1 = vor.u32 %v6302_v14, %v5684_v51  ;;  %v6261_v14 = vld [vmem:[#allocation5 + $0x20] sm:$0xf0]  ;;  %1684 = vmatpush.bf16.msra.mxu2 %v6714_v22  ;;  %v6283_v22 = vld [vmem:[#allocation5 + $0xd4] sm:$0xf] }
  0xb4   :  { %10873 = vst [vmem:[#allocation51_spill] sm:$0xff] %v6889_v63 }
  0xb5   :  { %10875 = vst [vmem:[#allocation53_spill] sm:$0xff] %v6895_v1 }
  0xb7   :  { %v826_v41 = vpop.f32.mrf.mxu3 }
  0xb9   :  { %v914_v43 = vpop.f32.mrf.mxu2  ;;  %v779_v17 = vpop.f32.mrf.mxu0 }
  0xba   :  { %v6893_v55 = vadd.f32 %v914_v43, %v846_v3  ;;  %v848_v30 = vpop.f32.mrf.mxu1  ;;  %v6278_v3 = vld [vmem:[#allocation5 + $0xac] sm:$0xf] }
  0xbb   :  { %v849_v60 = vadd.f32 %v848_v30, %v779_v17  ;;  %v6912_v49 = vor.u32 %v6278_v3, %v5592_v4 }
  0xbc   :  { %818 = vmatmul.bf16.gmra.mxu0 %v6889_v63  ;;  %995 = vmatmul.bf16.gmra.mxu3 %v6891_v53 }
  0xbd   :  { %887 = vmatmul.bf16.gmra.mxu1 %v6895_v1  ;;  %10877 = vst [vmem:[#allocation55_spill] sm:$0xff] %v6912_v49 }
  0xbe   :  { %956 = vmatmul.bf16.gmra.mxu2 %v6897_v18 }
  0xbf   :  { %v829_v61 = vpop.f32.mrf.mxu3 }
  0xc1   :  { %v917_v51 = vpop.f32.mrf.mxu2  ;;  %v781_v27 = vpop.f32.mrf.mxu0 }
  0xc2   :  { %v6906_v24 = vadd.f32 %v917_v51, %v849_v60  ;;  %v850_v30 = vpop.f32.mrf.mxu1  ;;  %v6914_v60 = vor.u32 %v6261_v14, %v5518_v25  ;;  %v5612_v14 = vld [vmem:[#allocation5 + $0xe4] sm:$0xf0] }
  0xc3   :  { %v851_v37 = vadd.f32 %v850_v30, %v781_v27  ;;  %v6927_v53 = vor.u32 %v6283_v22, %v5612_v14  ;;  %v6288_v14 = vld [vmem:[#allocation5 + $0xfc] sm:$0xf] }
  0xc4   :  { %10878 = vst [vmem:[#allocation56_spill] sm:$0xff] %v6914_v60 }
  0xc5   :  { %10879 = vst [vmem:[#allocation57_spill] sm:$0xff] %v6927_v53 }
  0xc7   :  { %v831_v13 = vpop.f32.mrf.mxu3 }
  0xc9   :  { %v919_v38 = vpop.f32.mrf.mxu2  ;;  %v784_v16 = vpop.f32.mrf.mxu0 }
  0xca   :  { %v6916_v43 = vadd.f32 %v919_v38, %v851_v37  ;;  %v853_v17 = vpop.f32.mrf.mxu1  ;;  %v5538_v38 = vld [vmem:[#allocation5 + $0x38] sm:$0xf] }
  0xcb   :  { %v854_v51 = vadd.f32 %v853_v17, %v784_v16  ;;  %v6266_v16 = vld [vmem:[#allocation5 + $0x48] sm:$0xf0] }
  0xcc   :  { %1000 = vmatmul.bf16.gmra.mxu3 %v6912_v49  ;;  %5740 = vmatmul.msk.bf16.vlgmr.msrb.gmra.mxu0 %vm728_vm0, %v6914_v60  ;;  %v6929_v23 = vor.u32 %v6266_v16, %v5538_v38  ;;  %v5632_v38 = vld [vmem:[#allocation5 + $0x10c] sm:$0xf0]  ;;  %v5558_v16 = vld [vmem:[#allocation5 + $0x60] sm:$0xf] }
  0xcd   :  { %1217 = vmatmul.bf16.vlgmr.msrb.gmra.mxu1 %v6720_v32  ;;  %v6940_v31 = vor.u32 %v6288_v14, %v5632_v38  ;;  %v6293_v38 = vld [vmem:[#allocation5 + $0x124] sm:$0xf] }
  0xce   :  { %1286 = vmatmul.bf16.vlgmr.msrb.gmra.mxu2 %v6724_v34  ;;  %10880 = vst [vmem:[#allocation58_spill] sm:$0xff] %v6929_v23 }
  0xcf   :  { %v893_v19 = vpop.f32.mrf.mxu3  ;;  %10881 = vst [vmem:[#allocation59_spill] sm:$0xff] %v6940_v31 }
  0xd0   :  { %v894_v27 = vadd.f32 %v893_v19, %v6882_v62 }
  0xd1   :  { %v922_v30 = vpop.f32.mrf.mxu2  ;;  %v786_v3 = vpop.f32.mrf.mxu0 }
  0xd2   :  { %v6925_v37 = vadd.f32 %v922_v30, %v854_v51  ;;  %v855_v4 = vpop.f32.mrf.mxu1 }
  0xd3   :  { %v856_v25 = vadd.f32 %v855_v4, %v786_v3 }
  0xd7   :  { %v895_v17 = vpop.f32.mrf.mxu3 }
  0xd8   :  { %v896_v18 = vadd.f32 %v895_v17, %v826_v41  ;;  %v6271_v17 = vld [vmem:[#allocation5 + $0x70] sm:$0xf0] }
  0xd9   :  { %v924_v49 = vpop.f32.mrf.mxu2  ;;  %v789_v62 = vpop.f32.mrf.mxu0  ;;  %v6942_v28 = vor.u32 %v6271_v17, %v5558_v16  ;;  %v5652_v16 = vld [vmem:[#allocation5 + $0x134] sm:$0xf0]  ;;  %v5578_v17 = vld [vmem:[#allocation5 + $0x88] sm:$0xf] }
  0xda   :  { %v6931_v34 = vadd.f32 %v924_v49, %v856_v25  ;;  %v858_v19 = vpop.f32.mrf.mxu1 }
  0xdb   :  { %v859_v51 = vadd.f32 %v858_v19, %v789_v62  ;;  %10882 = vst [vmem:[#allocation60_spill] sm:$0xff] %v6942_v28 }
  0xdc   :  { %1005 = vmatmul.bf16.gmra.mxu3 %v6927_v53  ;;  %5741 = vmatmul.msk.bf16.gmra.mxu0 %vm728_vm0, %v6929_v23 }
  0xdd   :  { %1222 = vmatmul.bf16.gmra.mxu1 %v6744_v44 }
  0xde   :  { %1291 = vmatmul.bf16.gmra.mxu2 %v6748_v46 }
  0xdf   :  { %v898_v41 = vpop.f32.mrf.mxu3 }
  0xe0   :  { %v899_v30 = vadd.f32 %v898_v41, %v829_v61 }
  0xe1   :  { %v927_v3 = vpop.f32.mrf.mxu2  ;;  %v791_v22 = vpop.f32.mrf.mxu0 }
  0xe2   :  { %v6938_v4 = vadd.f32 %v927_v3, %v859_v51  ;;  %v860_v49 = vpop.f32.mrf.mxu1 }
  0xe3   :  { %v861_v25 = vadd.f32 %v860_v49, %v791_v22 }
  0xe7   :  { %v900_v62 = vpop.f32.mrf.mxu3 }
  0xe8   :  { %v901_v19 = vadd.f32 %v900_v62, %v831_v13  ;;  %v6276_v62 = vld [vmem:[#allocation5 + $0x98] sm:$0xf0] }
  0xe9   :  { %v929_v53 = vpop.f32.mrf.mxu2  ;;  %v794_v61 = vpop.f32.mrf.mxu0 }
  0xea   :  { %v6944_v46 = vadd.f32 %v929_v53, %v861_v25  ;;  %v863_v41 = vpop.f32.mrf.mxu1 }
  0xeb   :  { %v864_v51 = vadd.f32 %v863_v41, %v794_v61 }
  0xec   :  { %1010 = vmatmul.bf16.gmra.mxu3 %v6940_v31  ;;  %5742 = vmatmul.msk.bf16.gmra.mxu0 %vm728_vm0, %v6942_v28 }
  0xed   :  { %1227 = vmatmul.bf16.gmra.mxu1 %v6765_v56  ;;  %v6957_v56 = vor.u32 %v6293_v38, %v5652_v16 }
  0xee   :  { %1296 = vmatmul.bf16.gmra.mxu2 %v6770_v58  ;;  %v6959_v58 = vor.u32 %v6276_v62, %v5578_v17  ;;  %v6298_v17 = vld [vmem:[#allocation5 + $0x14c] sm:$0xf]  ;;  %v5672_v62 = vld [vmem:[#allocation5 + $0x15c] sm:$0xf0] }
  0xef   :  { %v962_v13 = vpop.f32.mrf.mxu3  ;;  %10883 = vst [vmem:[#allocation61_spill] sm:$0xff] %v6957_v56 }
  0xf0   :  { %v6951_v22 = vadd.f32 %v962_v13, %v894_v27  ;;  %10884 = vst [vmem:[#allocation62_spill] sm:$0xff] %v6959_v58 }
  0xf1   :  { %v932_v3 = vpop.f32.mrf.mxu2  ;;  %v796_v53 = vpop.f32.mrf.mxu0 }
  0xf2   :  { %v6953_v49 = vadd.f32 %v932_v3, %v864_v51  ;;  %v865_v25 = vpop.f32.mrf.mxu1 }
  0xf3   :  { %v866_v14 = vadd.f32 %v865_v25, %v796_v53 }
  0xf7   :  { %v964_v61 = vpop.f32.mrf.mxu3 }
  0xf8   :  { %v6955_v31 = vadd.f32 %v964_v61, %v896_v18  ;;  %v5598_v61 = vld [vmem:[#allocation5 + $0xb0] sm:$0xf] }
  0xf9   :  { %v934_v41 = vpop.f32.mrf.mxu2  ;;  %v799_v27 = vpop.f32.mrf.mxu0 }
  0xfa   :  { %v6961_v28 = vadd.f32 %v934_v41, %v866_v14  ;;  %v868_v51 = vpop.f32.mrf.mxu1  ;;  %v6281_v41 = vld [vmem:[#allocation5 + $0xc0] sm:$0xf0] }
  0xfb   :  { %v869_v13 = vadd.f32 %v868_v51, %v799_v27 }
  0xfc   :  { %1015 = vmatmul.bf16.gmra.mxu3 %v6957_v56  ;;  %5743 = vmatmul.msk.bf16.gmra.mxu0 %vm728_vm0, %v6959_v58 }
  0xfd   :  { %1232 = vmatmul.bf16.gmra.mxu1 %v6781_v6  ;;  %v6974_v6 = vor.u32 %v6298_v17, %v5672_v62 }
  0xfe   :  { %1301 = vmatmul.bf16.gmra.mxu2 %v6785_v9  ;;  %v6976_v9 = vor.u32 %v6281_v41, %v5598_v61 }
  0xff   :  { %v967_v18 = vpop.f32.mrf.mxu3  ;;  %10885 = vst [vmem:[#allocation63_spill] sm:$0xff] %v6974_v6 }
 0x100   :  { %v6968_v53 = vadd.f32 %v967_v18, %v899_v30  ;;  %10886 = vst [vmem:[#allocation64_spill] sm:$0xff] %v6976_v9 }
 0x101   :  { %v937_v3 = vpop.f32.mrf.mxu2  ;;  %v801_v14 = vpop.f32.mrf.mxu0 }
 0x102   :  { %v6970_v25 = vadd.f32 %v937_v3, %v869_v13  ;;  %v870_v38 = vpop.f32.mrf.mxu1  ;;  %v6983_v3 = vld [vmem:[#allocation2 + $0x118] sm:$0xff] }
 0x103   :  { %v871_v16 = vadd.f32 %v870_v38, %v801_v14  ;;  %10887 = vst [vmem:[#allocation65_spill] sm:$0xff] %v6983_v3  ;;  %1347 = vmatpush.bf16.msra.mxu3 %v6983_v3 }
 0x107   :  { %v969_v27 = vpop.f32.mrf.mxu3 }
 0x108   :  { %v6972_v56 = vadd.f32 %v969_v27, %v901_v19  ;;  %v6996_v27 = vld [vmem:[#allocation2 + $0x108] sm:$0xff] }
 0x109   :  { %v939_v51 = vpop.f32.mrf.mxu2  ;;  %v804_v30 = vpop.f32.mrf.mxu0  ;;  %10889 = vst [vmem:[#allocation67_spill] sm:$0xff] %v6996_v27 }
 0x10a   :  { %v6978_v58 = vadd.f32 %v939_v51, %v871_v16  ;;  %v873_v13 = vpop.f32.mrf.mxu1  ;;  %v6991_v16 = vld [vmem:[#allocation2 + $0x110] sm:$0xff] }
 0x10b   :  { %v874_v18 = vadd.f32 %v873_v13, %v804_v30  ;;  %10888 = vst [vmem:[#allocation66_spill] sm:$0xff] %v6991_v16  ;;  %1348 = vmatpush.bf16.msra.mxu3 %v6991_v16  ;;  %v6303_v51 = vld [vmem:[#allocation5 + $0x174] sm:$0xf]  ;;  %v5692_v30 = vld [vmem:[#allocation5 + $0x184] sm:$0xf0] }
 0x10c   :  { %1020 = vmatmul.bf16.gmra.mxu3 %v6974_v6  ;;  %5744 = vmatmul.msk.bf16.gmra.mxu0 %vm728_vm0, %v6976_v9  ;;  %v5618_v13 = vld [vmem:[#allocation5 + $0xd8] sm:$0xf]  ;;  %v7006_v6 = vld [vmem:[#allocation2 + $0x100] sm:$0xff] }
 0x10d   :  { %1237 = vmatmul.bf16.gmra.mxu1 %v6802_v29  ;;  %10892 = vst [vmem:[#allocation70_spill] sm:$0xff] %v7006_v6 }
 0x10e   :  { %1306 = vmatmul.bf16.gmra.mxu2 %v6806_v20  ;;  %v6286_v20 = vld [vmem:[#allocation5 + $0xe8] sm:$0xf0] }
 0x10f   :  { %v981_v19 = vpop.f32.mrf.mxu3  ;;  %1349 = vmatpush.bf16.msra.mxu3 %v6996_v27 }
 0x110   :  { %v6989_v38 = vadd.f32 %v981_v19, %v6885_v0 }
 0x111   :  { %v942_v14 = vpop.f32.mrf.mxu2  ;;  %v806_v62 = vpop.f32.mrf.mxu0 }
 0x112   :  { %v6993_v17 = vadd.f32 %v942_v14, %v874_v18  ;;  %v875_v61 = vpop.f32.mrf.mxu1  ;;  %v7002_v18 = vor.u32 %v6303_v51, %v5692_v30  ;;  %v7004_v14 = vor.u32 %v6286_v20, %v5618_v13  ;;  %v6308_v13 = vld [vmem:[#allocation5 + $0x19c] sm:$0xf] }
 0x113   :  { %v876_v41 = vadd.f32 %v875_v61, %v806_v62  ;;  %1350 = vmatpush.bf16.msra.mxu3 %v7006_v6  ;;  %v6291_v6 = vld [vmem:[#allocation5 + $0x110] sm:$0xf0] }
 0x114   :  { %10890 = vst [vmem:[#allocation68_spill] sm:$0xff] %v7002_v18 }
 0x115   :  { %10891 = vst [vmem:[#allocation69_spill] sm:$0xff] %v7004_v14 }
 0x117   :  { %v983_v3 = vpop.f32.mrf.mxu3  ;;  %1351 = vmatpush.bf16.msra.mxu3 %v6665_v2 }
 0x118   :  { %v7000_v19 = vadd.f32 %v983_v3, %v6893_v55 }
 0x119   :  { %v944_v0 = vpop.f32.mrf.mxu2  ;;  %v809_v61 = vpop.f32.mrf.mxu0 }
 0x11a   :  { %v7008_v62 = vadd.f32 %v944_v0, %v876_v41  ;;  %v878_v16 = vpop.f32.mrf.mxu1  ;;  %v5712_v0 = vld [vmem:[#allocation5 + $0x1ac] sm:$0xf0] }
 0x11b   :  { %v879_v29 = vadd.f32 %v878_v16, %v809_v61  ;;  %1352 = vmatpush.bf16.msra.mxu3 %v6675_v5  ;;  %v5638_v61 = vld [vmem:[#allocation5 + $0x100] sm:$0xf] }
 0x11c   :  { %1025 = vmatmul.bf16.gmra.mxu3 %v7002_v18  ;;  %5745 = vmatmul.msk.bf16.gmra.mxu0 %vm728_vm0, %v7004_v14 }
 0x11d   :  { %1242 = vmatmul.bf16.gmra.mxu1 %v6821_v50 }
 0x11e   :  { %1311 = vmatmul.bf16.gmra.mxu2 %v6825_v52 }
 0x11f   :  { %v986_v20 = vpop.f32.mrf.mxu3  ;;  %1353 = vmatpush.bf16.msra.mxu3 %v6683_v8 }
 0x120   :  { %v7018_v3 = vadd.f32 %v986_v20, %v6906_v24  ;;  %v7027_v24 = vor.u32 %v6308_v13, %v5712_v0  ;;  %v5732_v13 = vld [vmem:[#allocation5 + $0x1d4] sm:$0xf0]  ;;  %v5658_v0 = vld [vmem:[#allocation5 + $0x128] sm:$0xf] }
 0x121   :  { %v947_v55 = vpop.f32.mrf.mxu2  ;;  %v811_v51 = vpop.f32.mrf.mxu0 }
 0x122   :  { %v7020_v41 = vadd.f32 %v947_v55, %v879_v29  ;;  %v880_v16 = vpop.f32.mrf.mxu1  ;;  %10893 = vst [vmem:[#allocation71_spill] sm:$0xff] %v7027_v24  ;;  %v7029_v29 = vor.u32 %v6291_v6, %v5638_v61  ;;  %v6296_v61 = vld [vmem:[#allocation5 + $0x138] sm:$0xf0] }
 0x123   :  { %v881_v30 = vadd.f32 %v880_v16, %v811_v51  ;;  %1354 = vmatpush.bf16.msra.mxu3 %v6692_v11 }
 0x124   :  { %10894 = vst [vmem:[#allocation72_spill] sm:$0xff] %v7029_v29 }
 0x127   :  { %v988_v52 = vpop.f32.mrf.mxu3  ;;  %1746 = vmatpush.bf16.msrb.mxu3 %v6665_v2 }
 0x128   :  { %v7025_v18 = vadd.f32 %v988_v52, %v6916_v43 }
 0x129   :  { %v949_v27 = vpop.f32.mrf.mxu2  ;;  %v814_v55 = vpop.f32.mrf.mxu0 }
 0x12a   :  { %v7031_v20 = vadd.f32 %v949_v27, %v881_v30  ;;  %v883_v50 = vpop.f32.mrf.mxu1  ;;  %v6313_v30 = vld [vmem:[#allocation5 + $0x1c4] sm:$0xf] }
 0x12b   :  { %v884_v51 = vadd.f32 %v883_v50, %v814_v55  ;;  %1747 = vmatpush.bf16.msrb.mxu3 %v6675_v5 }
 0x12c   :  { %1030 = vmatmul.bf16.gmra.mxu3 %v7027_v24  ;;  %5746 = vmatmul.msk.bf16.gmra.mxu0 %vm728_vm0, %v7029_v29 }
 0x12d   :  { %1247 = vmatmul.bf16.gmra.mxu1 %v6833_v15 }
 0x12e   :  { %1316 = vmatmul.bf16.gmra.mxu2 %v6837_v21 }
 0x12f   :  { %v991_v6 = vpop.f32.mrf.mxu3  ;;  %1748 = vmatpush.bf16.msrb.mxu3 %v6683_v8 }
 0x130   :  { %v7042_v43 = vadd.f32 %v991_v6, %v6925_v37  ;;  %v7051_v37 = vor.u32 %v6313_v30, %v5732_v13 }
 0x131   :  { %v952_v52 = vpop.f32.mrf.mxu2  ;;  %v816_v50 = vpop.f32.mrf.mxu0 }
 0x132   :  { %v7044_v27 = vadd.f32 %v952_v52, %v884_v51  ;;  %v885_v2 = vpop.f32.mrf.mxu1  ;;  %10895 = vst [vmem:[#allocation73_spill] sm:$0xff] %v7051_v37  ;;  %v7053_v51 = vor.u32 %v6296_v61, %v5658_v0  ;;  %v5678_v0 = vld [vmem:[#allocation5 + $0x150] sm:$0xf]  ;;  %v6301_v61 = vld [vmem:[#allocation5 + $0x160] sm:$0xf0] }
 0x133   :  { %v886_v16 = vadd.f32 %v885_v2, %v816_v50  ;;  %1749 = vmatpush.bf16.msrb.mxu3 %v6692_v11 }
 0x134   :  { %10896 = vst [vmem:[#allocation74_spill] sm:$0xff] %v7053_v51 }
 0x137   :  { %v993_v55 = vpop.f32.mrf.mxu3 }
 0x138   :  { %v7049_v5 = vadd.f32 %v993_v55, %v6931_v34 }
 0x139   :  { %v954_v21 = vpop.f32.mrf.mxu2  ;;  %v819_v52 = vpop.f32.mrf.mxu0 }
 0x13a   :  { %v7055_v6 = vadd.f32 %v954_v21, %v886_v16  ;;  %v888_v50 = vpop.f32.mrf.mxu1 }
 0x13b   :  { %v889_v8 = vadd.f32 %v888_v50, %v819_v52 }
 0x13c   :  { %1035 = vmatmul.bf16.gmra.mxu3 %v7051_v37  ;;  %5747 = vmatmul.msk.bf16.gmra.mxu0 %vm728_vm0, %v7053_v51  ;;  %v7070_v37 = vor.u32 %v6301_v61, %v5678_v0  ;;  %v6306_v0 = vld [vmem:[#allocation5 + $0x188] sm:$0xf0] }
 0x13d   :  { %1252 = vmatmul.bf16.gmra.mxu1 %v6845_v40 }
 0x13e   :  { %1321 = vmatmul.bf16.gmra.mxu2 %v6849_v42  ;;  %10897 = vst [vmem:[#allocation75_spill] sm:$0xff] %v7070_v37 }
 0x13f   :  { %v996_v11 = vpop.f32.mrf.mxu3 }
 0x140   :  { %v7063_v2 = vadd.f32 %v996_v11, %v6938_v4 }
 0x141   :  { %v957_v34 = vpop.f32.mrf.mxu2  ;;  %v821_v21 = vpop.f32.mrf.mxu0 }
 0x142   :  { %v7065_v30 = vadd.f32 %v957_v34, %v889_v8  ;;  %v890_v16 = vpop.f32.mrf.mxu1 }
 0x143   :  { %v891_v13 = vadd.f32 %v890_v16, %v821_v21 }
 0x147   :  { %v998_v55 = vpop.f32.mrf.mxu3 }
 0x148   :  { %v7068_v50 = vadd.f32 %v998_v55, %v6944_v46 }
 0x149   :  { %v959_v52 = vpop.f32.mrf.mxu2  ;;  %v1050_v24 = vpop.f32.mrf.mxu0 }
 0x14a   :  { %v7072_v42 = vadd.f32 %v959_v52, %v891_v13  ;;  %v7075_v4 = vadd.f32 %v1050_v24, %v6989_v38  ;;  %v1218_v8 = vpop.f32.mrf.mxu1  ;;  %v5698_v13 = vld [vmem:[#allocation5 + $0x178] sm:$0xf] }
 0x14c   :  { %5748 = vmatmul.msk.bf16.gmra.mxu0 %vm728_vm0, %v7070_v37  ;;  %1355 = vmatmul.bf16.vlgmr.msra.gmra.mxu3 %v6726_v35 }
 0x14d   :  { %1257 = vmatmul.bf16.gmra.mxu1 %v6866_v26 }
 0x14e   :  { %1326 = vmatmul.bf16.gmra.mxu2 %v6872_v39  ;;  %v7093_v39 = vor.u32 %v6306_v0, %v5698_v13 }
 0x14f   :  { %v1001_v46 = vpop.f32.mrf.mxu3 }
 0x150   :  { %v7083_v11 = vadd.f32 %v1001_v46, %v6953_v49  ;;  %10899 = vst [vmem:[#allocation77_spill] sm:$0xff] %v7093_v39 }
 0x151   :  { %v1287_v34 = vpop.f32.mrf.mxu2  ;;  %v1052_v16 = vpop.f32.mrf.mxu0 }
 0x152   :  { %v7085_v21 = vadd.f32 %v1287_v34, %v1218_v8  ;;  %v7088_v38 = vadd.f32 %v1052_v16, %v7000_v19  ;;  %v1220_v24 = vpop.f32.mrf.mxu1  ;;  %v6328_v19 = vld [vmem:[#allocation2 + $0x1b8] sm:$0xff] }
 0x153   :  { %1489 = vmatpush.bf16.msra.mxu1 %v6328_v19 }
 0x154   :  { %10898 = vst [vmem:[#allocation76_spill] sm:$0xff] %v7088_v38  ;;  %v10955_v38 = vld [vmem:[#allocation65_spill] sm:$0xff] }
 0x157   :  { %v1003_v61 = vpop.f32.mrf.mxu3 }
 0x158   :  { %v7091_v55 = vadd.f32 %v1003_v61, %v6961_v28 }
 0x159   :  { %v1289_v52 = vpop.f32.mrf.mxu2  ;;  %v1055_v49 = vpop.f32.mrf.mxu0 }
 0x15a   :  { %v7095_v35 = vadd.f32 %v1289_v52, %v1220_v24  ;;  %v7098_v8 = vadd.f32 %v1055_v49, %v7018_v3  ;;  %v1223_v46 = vpop.f32.mrf.mxu1  ;;  %v6327_v24 = vld [vmem:[#allocation2 + $0x1b0] sm:$0xff]  ;;  %v6326_v52 = vld [vmem:[#allocation2 + $0x1a8] sm:$0xff]  ;;  %v5718_v49 = vld [vmem:[#allocation5 + $0x1a0] sm:$0xf] }
 0x15b   :  { %1490 = vmatpush.bf16.msra.mxu1 %v6327_v24 }
 0x15c   :  { %10900 = vst [vmem:[#allocation78_spill] sm:$0xff] %v7098_v8  ;;  %5749 = vmatmul.msk.bf16.gmra.mxu0 %vm728_vm0, %v7093_v39  ;;  %1360 = vmatmul.bf16.gmra.mxu3 %v6750_v47  ;;  %v6311_v47 = vld [vmem:[#allocation5 + $0x1b0] sm:$0xf0] }
 0x15d   :  { %1262 = vmatmul.bf16.gmra.mxu1 %v6889_v63  ;;  %v6325_v63 = vld [vmem:[#allocation2 + $0x1a0] sm:$0xff] }
 0x15e   :  { %1331 = vmatmul.bf16.gmra.mxu2 %v6895_v1 }
 0x15f   :  { %v1006_v28 = vpop.f32.mrf.mxu3  ;;  %1491 = vmatpush.bf16.msra.mxu1 %v6326_v52 }
 0x160   :  { %v7106_v34 = vadd.f32 %v1006_v28, %v6970_v25  ;;  %v7116_v28 = vor.u32 %v6311_v47, %v5718_v49 }
 0x161   :  { %v1292_v16 = vpop.f32.mrf.mxu2  ;;  %v1057_v13 = vpop.f32.mrf.mxu0 }
 0x162   :  { %v7108_v3 = vadd.f32 %v1292_v16, %v1223_v46  ;;  %v7111_v0 = vadd.f32 %v1057_v13, %v7025_v18  ;;  %v1225_v61 = vpop.f32.mrf.mxu1  ;;  %10901 = vst [vmem:[#allocation79_spill] sm:$0xff] %v7116_v28 }
 0x163   :  { %1492 = vmatpush.bf16.msra.mxu1 %v6325_v63 }
 0x167   :  { %v1008_v1 = vpop.f32.mrf.mxu3  ;;  %1884 = vmatpush.bf16.msrb.mxu1 %v6328_v19 }
 0x168   :  { %v7114_v8 = vadd.f32 %v1008_v1, %v6978_v58 }
 0x169   :  { %v1294_v25 = vpop.f32.mrf.mxu2  ;;  %v1060_v16 = vpop.f32.mrf.mxu0 }
 0x16a   :  { %v7118_v46 = vadd.f32 %v1294_v25, %v1225_v61  ;;  %v7121_v18 = vadd.f32 %v1060_v16, %v7042_v43  ;;  %v1228_v13 = vpop.f32.mrf.mxu1  ;;  %v5738_v25 = vld [vmem:[#allocation5 + $0x1c8] sm:$0xf]  ;;  %v6316_v16 = vld [vmem:[#allocation5 + $0x1d8] sm:$0xf0] }
 0x16b   :  { %1885 = vmatpush.bf16.msrb.mxu1 %v6327_v24 }
 0x16c   :  { %10902 = vst [vmem:[#allocation80_spill] sm:$0xff] %v7121_v18  ;;  %5750 = vmatmul.msk.bf16.gmra.mxu0 %vm728_vm0, %v7116_v28  ;;  %1365 = vmatmul.bf16.gmra.mxu3 %v6772_v59  ;;  %v7139_v18 = vor.u32 %v6316_v16, %v5738_v25 }
 0x16d   :  { %1267 = vmatmul.bf16.gmra.mxu1 %v6722_v33 }
 0x16e   :  { %1336 = vmatmul.bf16.gmra.mxu2 %v6767_v57  ;;  %10903 = vst [vmem:[#allocation81_spill] sm:$0xff] %v7139_v18 }
 0x16f   :  { %v1011_v47 = vpop.f32.mrf.mxu3  ;;  %1886 = vmatpush.bf16.msrb.mxu1 %v6326_v52 }
 0x170   :  { %v7129_v58 = vadd.f32 %v1011_v47, %v6993_v17 }
 0x171   :  { %v1297_v1 = vpop.f32.mrf.mxu2  ;;  %v1062_v61 = vpop.f32.mrf.mxu0 }
 0x172   :  { %v7131_v43 = vadd.f32 %v1297_v1, %v1228_v13  ;;  %v7134_v19 = vadd.f32 %v1062_v61, %v7049_v5  ;;  %v1230_v49 = vpop.f32.mrf.mxu1 }
 0x173   :  { %1887 = vmatpush.bf16.msrb.mxu1 %v6325_v63 }
 0x177   :  { %v1013_v59 = vpop.f32.mrf.mxu3  ;;  %1888 = vmatpush.bf16.msrb.mxu1 %v6855_v48 }
 0x178   :  { %v7137_v57 = vadd.f32 %v1013_v59, %v7008_v62 }
 0x179   :  { %v1299_v24 = vpop.f32.mrf.mxu2  ;;  %v1065_v13 = vpop.f32.mrf.mxu0 }
 0x17a   :  { %v7141_v17 = vadd.f32 %v1299_v24, %v1230_v49  ;;  %v7144_v47 = vadd.f32 %v1065_v13, %v7063_v2  ;;  %v1233_v5 = vpop.f32.mrf.mxu1  ;;  %v10905_v49 = vld [vmem:[#allocation46_spill] sm:$0xff] }
 0x17b   :  { %1889 = vmatpush.bf16.msrb.mxu1 %v6860_v54 }
 0x17c   :  { %10904 = vst [vmem:[#allocation82_spill] sm:$0xff] %v7144_v47  ;;  %5751 = vmatmul.msk.bf16.gmra.mxu0 %vm728_vm0, %v7139_v18  ;;  %1370 = vmatmul.bf16.gmra.mxu3 %v6787_v10  ;;  %v7476_v47 = vld [vmem:[#allocation2 + $0xe0] sm:$0xff] }
 0x17d   :  { %1272 = vmatmul.bf16.gmra.mxu1 %v6746_v45 }
 0x17e   :  { %1341 = vmatmul.bf16.gmra.mxu2 %v6783_v7 }
 0x17f   :  { %v1016_v59 = vpop.f32.mrf.mxu3  ;;  %1890 = vmatpush.bf16.msrb.mxu1 %v10905_v49 }
 0x180   :  { %v7154_v63 = vadd.f32 %v1016_v59, %v7020_v41 }
 0x181   :  { %v1302_v62 = vpop.f32.mrf.mxu2  ;;  %v1067_v52 = vpop.f32.mrf.mxu0 }
 0x182   :  { %v7156_v2 = vadd.f32 %v1302_v62, %v1233_v5  ;;  %v7159_v1 = vadd.f32 %v1067_v52, %v7068_v50  ;;  %v1235_v61 = vpop.f32.mrf.mxu1  ;;  %v10906_v62 = vld [vmem:[#allocation31_spill] sm:$0xff] }
 0x183   :  { %1891 = vmatpush.bf16.msrb.mxu1 %v6870_v36  ;;  %v10907_v50 = vld [vmem:[#allocation39_spill] sm:$0xff] }
 0x187   :  { %v1018_v25 = vpop.f32.mrf.mxu3 }
 0x188   :  { %v7164_v16 = vadd.f32 %v1018_v25, %v7031_v20 }
 0x189   :  { %v1304_v24 = vpop.f32.mrf.mxu2  ;;  %v1070_v41 = vpop.f32.mrf.mxu0 }
 0x18a   :  { %v7166_v13 = vadd.f32 %v1304_v24, %v1235_v61  ;;  %v7169_v5 = vadd.f32 %v1070_v41, %v7083_v11  ;;  %v1238_v59 = vpop.f32.mrf.mxu1 }
 0x18c   :  { %1375 = vmatmul.bf16.gmra.mxu3 %v10906_v62  ;;  %1424 = vmatmul.bf16.vlgmr.msra.gmra.mxu0 %v10907_v50 }
 0x18d   :  { %5800 = vmatmul.msk.bf16.vlgmr.msra.gmra.mxu1 %vm728_vm0, %v6914_v60 }
 0x18e   :  { %1685 = vmatmul.bf16.vlgmr.msra.gmra.mxu2 %v6720_v32  ;;  %2283 = vmatpush.bf16.msra.mxu1 %v6855_v48 }
 0x18f   :  { %v1021_v20 = vpop.f32.mrf.mxu3 }
 0x190   :  { %v7178_v52 = vadd.f32 %v1021_v20, %v7044_v27 }
 0x191   :  { %v1307_v61 = vpop.f32.mrf.mxu2  ;;  %v1072_v11 = vpop.f32.mrf.mxu0 }
 0x192   :  { %v7180_v25 = vadd.f32 %v1307_v61, %v1238_v59  ;;  %v7183_v24 = vadd.f32 %v1072_v11, %v7091_v55  ;;  %v1240_v41 = vpop.f32.mrf.mxu1  ;;  %2284 = vmatpush.bf16.msra.mxu1 %v6860_v54  ;;  %v10908_v55 = vld [vmem:[#allocation37_spill] sm:$0xff]  ;;  %v10909_v61 = vld [vmem:[#allocation43_spill] sm:$0xff] }
 0x196   :  { %2285 = vmatpush.bf16.msra.mxu1 %v10905_v49 }
 0x197   :  { %v1023_v7 = vpop.f32.mrf.mxu3 }
 0x198   :  { %v7188_v32 = vadd.f32 %v1023_v7, %v7055_v6 }
 0x199   :  { %v1309_v48 = vpop.f32.mrf.mxu2  ;;  %v1075_v27 = vpop.f32.mrf.mxu0 }
 0x19a   :  { %v7190_v62 = vadd.f32 %v1309_v48, %v1240_v41  ;;  %v7193_v59 = vadd.f32 %v1075_v27, %v7106_v34  ;;  %v1243_v20 = vpop.f32.mrf.mxu1  ;;  %2286 = vmatpush.bf16.msra.mxu1 %v6870_v36  ;;  %v10911_v41 = vld [vmem:[#allocation27_spill] sm:$0xff]  ;;  %v10912_v48 = vld [vmem:[#allocation32_spill] sm:$0xff] }
 0x19c   :  { %1380 = vmatmul.bf16.gmra.mxu3 %v10908_v55  ;;  %1429 = vmatmul.bf16.gmra.mxu0 %v10909_v61 }
 0x19d   :  { %5801 = vmatmul.msk.bf16.gmra.mxu1 %vm728_vm0, %v6929_v23 }
 0x19e   :  { %1690 = vmatmul.bf16.gmra.mxu2 %v6744_v44  ;;  %2287 = vmatpush.bf16.msra.mxu1 %v6796_v12 }
 0x19f   :  { %v1026_v7 = vpop.f32.mrf.mxu3 }
 0x1a0   :  { %v7203_v54 = vadd.f32 %v1026_v7, %v7065_v30 }
 0x1a1   :  { %v1312_v6 = vpop.f32.mrf.mxu2  ;;  %v1077_v49 = vpop.f32.mrf.mxu0 }
 0x1a2   :  { %v7205_v34 = vadd.f32 %v1312_v6, %v1243_v20  ;;  %v7208_v36 = vadd.f32 %v1077_v49, %v7114_v8  ;;  %v1245_v11 = vpop.f32.mrf.mxu1  ;;  %2288 = vmatpush.bf16.msra.mxu1 %v10911_v41  ;;  %v10914_v6 = vld [vmem:[#allocation33_spill] sm:$0xff]  ;;  %v10916_v49 = vld [vmem:[#allocation48_spill] sm:$0xff] }
 0x1a3   :  { %v10915_v8 = vld [vmem:[#allocation41_spill] sm:$0xff]  ;;  %v10917_v41 = vld [vmem:[#allocation60_spill] sm:$0xff] }
 0x1a4   :  { %10910 = vst [vmem:[#allocation46_spill] sm:$0xff] %v7208_v36 }
 0x1a6   :  { %2289 = vmatpush.bf16.msra.mxu1 %v10912_v48  ;;  %v10918_v48 = vld [vmem:[#allocation19_spill] sm:$0xff] }
 0x1a7   :  { %v1028_v27 = vpop.f32.mrf.mxu3 }
 0x1a8   :  { %v7213_v44 = vadd.f32 %v1028_v27, %v7072_v42 }
 0x1a9   :  { %v1314_v12 = vpop.f32.mrf.mxu2  ;;  %v1080_v30 = vpop.f32.mrf.mxu0 }
 0x1aa   :  { %v7215_v55 = vadd.f32 %v1314_v12, %v1245_v11  ;;  %v7218_v20 = vadd.f32 %v1080_v30, %v7129_v58  ;;  %v1248_v7 = vpop.f32.mrf.mxu1  ;;  %2290 = vmatpush.bf16.msra.mxu1 %v10914_v6 }
 0x1ac   :  { %10913 = vst [vmem:[#allocation27_spill] sm:$0xff] %v7218_v20  ;;  %1385 = vmatmul.bf16.gmra.mxu3 %v10915_v8  ;;  %1434 = vmatmul.bf16.gmra.mxu0 %v10916_v49 }
 0x1ad   :  { %5802 = vmatmul.msk.bf16.gmra.mxu1 %vm728_vm0, %v10917_v41 }
 0x1ae   :  { %1695 = vmatmul.bf16.gmra.mxu2 %v10918_v48 }
 0x1af   :  { %v1031_v42 = vpop.f32.mrf.mxu3 }
 0x1b0   :  { %v7227_v11 = vadd.f32 %v1031_v42, %v6951_v22  ;;  %v10921_v42 = vld [vmem:[#allocation45_spill] sm:$0xff] }
 0x1b1   :  { %v1317_v27 = vpop.f32.mrf.mxu2  ;;  %v1082_v58 = vpop.f32.mrf.mxu0 }
 0x1b2   :  { %v7229_v12 = vadd.f32 %v1317_v27, %v1248_v7  ;;  %v7232_v30 = vadd.f32 %v1082_v58, %v7137_v57  ;;  %v1250_v6 = vpop.f32.mrf.mxu1  ;;  %v10922_v7 = vld [vmem:[#allocation52_spill] sm:$0xff]  ;;  %v10923_v27 = vld [vmem:[#allocation62_spill] sm:$0xff]  ;;  %v10924_v57 = vld [vmem:[#allocation23_spill] sm:$0xff] }
 0x1b4   :  { %10919 = vst [vmem:[#allocation32_spill] sm:$0xff] %v7232_v30 }
 0x1b7   :  { %v1033_v8 = vpop.f32.mrf.mxu3 }
 0x1b8   :  { %v7235_v10 = vadd.f32 %v1033_v8, %v6955_v31 }
 0x1b9   :  { %v1319_v20 = vpop.f32.mrf.mxu2  ;;  %v1085_v48 = vpop.f32.mrf.mxu0 }
 0x1ba   :  { %v7237_v41 = vadd.f32 %v1319_v20, %v1250_v6  ;;  %v7240_v49 = vadd.f32 %v1085_v48, %v7154_v63  ;;  %v1253_v22 = vpop.f32.mrf.mxu1 }
 0x1bc   :  { %10920 = vst [vmem:[#allocation33_spill] sm:$0xff] %v7240_v49  ;;  %1390 = vmatmul.bf16.gmra.mxu3 %v10921_v42  ;;  %1439 = vmatmul.bf16.gmra.mxu0 %v10922_v7 }
 0x1bd   :  { %5803 = vmatmul.msk.bf16.gmra.mxu1 %vm728_vm0, %v10923_v27 }
 0x1be   :  { %1700 = vmatmul.bf16.gmra.mxu2 %v10924_v57 }
 0x1bf   :  { %v1036_v58 = vpop.f32.mrf.mxu3 }
 0x1c0   :  { %v7248_v31 = vadd.f32 %v1036_v58, %v6968_v53  ;;  %v10927_v58 = vld [vmem:[#allocation50_spill] sm:$0xff] }
 0x1c1   :  { %v1322_v20 = vpop.f32.mrf.mxu2  ;;  %v1087_v6 = vpop.f32.mrf.mxu0 }
 0x1c2   :  { %v7250_v8 = vadd.f32 %v1322_v20, %v1253_v22  ;;  %v7253_v63 = vadd.f32 %v1087_v6, %v7164_v16  ;;  %v1255_v48 = vpop.f32.mrf.mxu1  ;;  %v10928_v22 = vld [vmem:[#allocation55_spill] sm:$0xff]  ;;  %v10929_v16 = vld [vmem:[#allocation28_spill] sm:$0xff] }
 0x1c4   :  { %10925 = vst [vmem:[#allocation83_spill] sm:$0xff] %v7253_v63 }
 0x1c7   :  { %v1038_v42 = vpop.f32.mrf.mxu3 }
 0x1c8   :  { %v7256_v49 = vadd.f32 %v1038_v42, %v6972_v56 }
 0x1c9   :  { %v1324_v7 = vpop.f32.mrf.mxu2  ;;  %v1090_v57 = vpop.f32.mrf.mxu0 }
 0x1ca   :  { %v7258_v27 = vadd.f32 %v1324_v7, %v1255_v48  ;;  %v7261_v30 = vadd.f32 %v1090_v57, %v7178_v52  ;;  %v1258_v53 = vpop.f32.mrf.mxu1 }
 0x1cc   :  { %10926 = vst [vmem:[#allocation84_spill] sm:$0xff] %v7261_v30  ;;  %1395 = vmatmul.bf16.gmra.mxu3 %v10927_v58  ;;  %1444 = vmatmul.bf16.gmra.mxu0 %v10928_v22 }
 0x1cd   :  { %5804 = vmatmul.msk.bf16.gmra.mxu1 %vm728_vm0, %v6976_v9 }
 0x1ce   :  { %1705 = vmatmul.bf16.gmra.mxu2 %v10929_v16 }
 0x1cf   :  { %v1356_v20 = vpop.f32.mrf.mxu3 }
 0x1d0   :  { %v7269_v42 = vadd.f32 %v1356_v20, %v7085_v21  ;;  %v10932_v20 = vld [vmem:[#allocation54_spill] sm:$0xff] }
 0x1d1   :  { %v1327_v56 = vpop.f32.mrf.mxu2  ;;  %v1092_v6 = vpop.f32.mrf.mxu0 }
 0x1d2   :  { %v7271_v7 = vadd.f32 %v1327_v56, %v1258_v53  ;;  %v7274_v52 = vadd.f32 %v1092_v6, %v7188_v32  ;;  %v1260_v57 = vpop.f32.mrf.mxu1  ;;  %v10933_v53 = vld [vmem:[#allocation57_spill] sm:$0xff]  ;;  %v6332_v56 = vld [vmem:[#allocation2 + $0x98] sm:$0xff]  ;;  %v10934_v32 = vld [vmem:[#allocation34_spill] sm:$0xff] }
 0x1d3   :  { %1750 = vmatpush.bf16.msrb.mxu3 %v6332_v56 }
 0x1d4   :  { %10930 = vst [vmem:[#allocation85_spill] sm:$0xff] %v7274_v52 }
 0x1d7   :  { %v1358_v48 = vpop.f32.mrf.mxu3 }
 0x1d8   :  { %v7277_v30 = vadd.f32 %v1358_v48, %v7095_v35 }
 0x1d9   :  { %v1329_v58 = vpop.f32.mrf.mxu2  ;;  %v1095_v16 = vpop.f32.mrf.mxu0 }
 0x1da   :  { %v7279_v9 = vadd.f32 %v1329_v58, %v1260_v57  ;;  %v7282_v22 = vadd.f32 %v1095_v16, %v7203_v54  ;;  %v1263_v21 = vpop.f32.mrf.mxu1  ;;  %v6331_v57 = vld [vmem:[#allocation2 + $0x90] sm:$0xff] }
 0x1db   :  { %1751 = vmatpush.bf16.msrb.mxu3 %v6331_v57 }
 0x1dc   :  { %10931 = vst [vmem:[#allocation86_spill] sm:$0xff] %v7282_v22  ;;  %1400 = vmatmul.bf16.gmra.mxu3 %v10932_v20  ;;  %1449 = vmatmul.bf16.gmra.mxu0 %v10933_v53  ;;  %v6330_v22 = vld [vmem:[#allocation2 + $0x88] sm:$0xff] }
 0x1dd   :  { %5805 = vmatmul.msk.bf16.gmra.mxu1 %vm728_vm0, %v7004_v14 }
 0x1de   :  { %1710 = vmatmul.bf16.gmra.mxu2 %v10934_v32  ;;  %v6329_v32 = vld [vmem:[#allocation2 + $0x80] sm:$0xff] }
 0x1df   :  { %v1361_v35 = vpop.f32.mrf.mxu3  ;;  %1752 = vmatpush.bf16.msrb.mxu3 %v6330_v22  ;;  %v10938_v22 = vld [vmem:[#allocation59_spill] sm:$0xff] }
 0x1e0   :  { %v7290_v58 = vadd.f32 %v1361_v35, %v7108_v3 }
 0x1e1   :  { %v1332_v6 = vpop.f32.mrf.mxu2  ;;  %v1097_v16 = vpop.f32.mrf.mxu0 }
 0x1e2   :  { %v7292_v54 = vadd.f32 %v1332_v6, %v1263_v21  ;;  %v7295_v48 = vadd.f32 %v1097_v16, %v7213_v44  ;;  %v1265_v20 = vpop.f32.mrf.mxu1  ;;  %v7305_v44 = vld [vmem:[#allocation2 + $0xd8] sm:$0xff]  ;;  %v10937_v6 = vld [vmem:[#allocation29_spill] sm:$0xff] }
 0x1e3   :  { %1753 = vmatpush.bf16.msrb.mxu3 %v6329_v32 }
 0x1e4   :  { %10935 = vst [vmem:[#allocation87_spill] sm:$0xff] %v7295_v48 }
 0x1e7   :  { %v1363_v14 = vpop.f32.mrf.mxu3  ;;  %2145 = vmatpush.bf16.msra.mxu3 %v7305_v44 }
 0x1e8   :  { %v7298_v56 = vadd.f32 %v1363_v14, %v7118_v46  ;;  %v7313_v46 = vld [vmem:[#allocation2 + $0xd0] sm:$0xff] }
 0x1e9   :  { %v1334_v53 = vpop.f32.mrf.mxu2  ;;  %v1100_v3 = vpop.f32.mrf.mxu0 }
 0x1ea   :  { %v7300_v52 = vadd.f32 %v1334_v53, %v1265_v20  ;;  %v7303_v21 = vadd.f32 %v1100_v3, %v7227_v11  ;;  %v1268_v35 = vpop.f32.mrf.mxu1  ;;  %v7324_v3 = vld [vmem:[#allocation2 + $0xc8] sm:$0xff] }
 0x1eb   :  { %2146 = vmatpush.bf16.msra.mxu3 %v7313_v46 }
 0x1ec   :  { %10936 = vst [vmem:[#allocation88_spill] sm:$0xff] %v7303_v21  ;;  %1405 = vmatmul.bf16.gmra.mxu3 %v10937_v6  ;;  %1454 = vmatmul.bf16.gmra.mxu0 %v10938_v22  ;;  %v7327_v6 = vld [vmem:[#allocation2 + $0xc0] sm:$0xff] }
 0x1ed   :  { %5806 = vmatmul.msk.bf16.gmra.mxu1 %vm728_vm0, %v7029_v29  ;;  %v10942_v29 = vld [vmem:[#allocation61_spill] sm:$0xff] }
 0x1ee   :  { %1715 = vmatmul.bf16.gmra.mxu2 %v6833_v15 }
 0x1ef   :  { %v1366_v14 = vpop.f32.mrf.mxu3  ;;  %2147 = vmatpush.bf16.msra.mxu3 %v7324_v3 }
 0x1f0   :  { %v7317_v20 = vadd.f32 %v1366_v14, %v7131_v43 }
 0x1f1   :  { %v1337_v11 = vpop.f32.mrf.mxu2  ;;  %v1102_v32 = vpop.f32.mrf.mxu0 }
 0x1f2   :  { %v7319_v53 = vadd.f32 %v1337_v11, %v1268_v35  ;;  %v7322_v57 = vadd.f32 %v1102_v32, %v7235_v10  ;;  %v1270_v16 = vpop.f32.mrf.mxu1  ;;  %v6454_v32 = vld [vmem:[#allocation2 + $0xb8] sm:$0xff] }
 0x1f3   :  { %2148 = vmatpush.bf16.msra.mxu3 %v7327_v6 }
 0x1f4   :  { %10939 = vst [vmem:[#allocation89_spill] sm:$0xff] %v7322_v57  ;;  %v10941_v57 = vld [vmem:[#allocation35_spill] sm:$0xff] }
 0x1f7   :  { %v1368_v15 = vpop.f32.mrf.mxu3  ;;  %2149 = vmatpush.bf16.msra.mxu3 %v6454_v32 }
 0x1f8   :  { %v7331_v43 = vadd.f32 %v1368_v15, %v7141_v17  ;;  %v6455_v17 = vld [vmem:[#allocation2 + $0xb0] sm:$0xff] }
 0x1f9   :  { %v1339_v21 = vpop.f32.mrf.mxu2  ;;  %v1105_v14 = vpop.f32.mrf.mxu0 }
 0x1fa   :  { %v7333_v35 = vadd.f32 %v1339_v21, %v1270_v16  ;;  %v7336_v10 = vadd.f32 %v1105_v14, %v7248_v31  ;;  %v1273_v11 = vpop.f32.mrf.mxu1 }
 0x1fb   :  { %2150 = vmatpush.bf16.msra.mxu3 %v6455_v17 }
 0x1fc   :  { %10940 = vst [vmem:[#allocation90_spill] sm:$0xff] %v7336_v10  ;;  %1410 = vmatmul.bf16.gmra.mxu3 %v10941_v57  ;;  %1459 = vmatmul.bf16.gmra.mxu0 %v10942_v29  ;;  %v6456_v10 = vld [vmem:[#allocation2 + $0xa8] sm:$0xff] }
 0x1fd   :  { %5807 = vmatmul.msk.bf16.gmra.mxu1 %vm728_vm0, %v7053_v51  ;;  %v6457_v51 = vld [vmem:[#allocation2 + $0xa0] sm:$0xff] }
 0x1fe   :  { %1720 = vmatmul.bf16.gmra.mxu2 %v6845_v40 }
 0x1ff   :  { %v1371_v15 = vpop.f32.mrf.mxu3  ;;  %2151 = vmatpush.bf16.msra.mxu3 %v6456_v10  ;;  %v7361_v10 = vld [vmem:[#allocation2 + $0x138] sm:$0xff] }
 0x200   :  { %v7344_v16 = vadd.f32 %v1371_v15, %v7156_v2  ;;  %10945 = vst [vmem:[#allocation91_spill] sm:$0xff] %v7361_v10  ;;  %1815 = vmatpush.bf16.msrb.mxu0 %v7361_v10 }
 0x201   :  { %v1342_v21 = vpop.f32.mrf.mxu2  ;;  %v1107_v14 = vpop.f32.mrf.mxu0 }
 0x202   :  { %v7346_v31 = vadd.f32 %v1342_v21, %v1273_v11  ;;  %v7349_v32 = vadd.f32 %v1107_v14, %v7256_v49  ;;  %v1275_v57 = vpop.f32.mrf.mxu1  ;;  %v10943_v49 = vld [vmem:[#allocation63_spill] sm:$0xff]  ;;  %v10944_v14 = vld [vmem:[#allocation13_spill] sm:$0xff] }
 0x203   :  { %2152 = vmatpush.bf16.msra.mxu3 %v6457_v51 }
 0x207   :  { %v1373_v29 = vpop.f32.mrf.mxu3 }
 0x208   :  { %v7352_v22 = vadd.f32 %v1373_v29, %v7166_v13 }
 0x209   :  { %v1344_v40 = vpop.f32.mrf.mxu2  ;;  %v1425_v2 = vpop.f32.mrf.mxu0 }
 0x20a   :  { %v7354_v17 = vadd.f32 %v1344_v40, %v1275_v57  ;;  %v1426_v11 = vadd.f32 %v1425_v2, %v7269_v42  ;;  %v1494_v15 = vpop.f32.mrf.mxu1  ;;  %v7374_v42 = vld [vmem:[#allocation2 + $0x130] sm:$0xff]  ;;  %v10952_v40 = vld [vmem:[#allocation17_spill] sm:$0xff] }
 0x20b   :  { %10946 = vst [vmem:[#allocation92_spill] sm:$0xff] %v7374_v42  ;;  %1816 = vmatpush.bf16.msrb.mxu0 %v7374_v42  ;;  %v10951_v42 = vld [vmem:[#allocation68_spill] sm:$0xff] }
 0x20c   :  { %v7357_v21 = vadd.f32 %v1494_v15, %v1426_v11  ;;  %1464 = vmatmul.bf16.gmra.mxu0 %v10943_v49  ;;  %1754 = vmatmul.bf16.vlgmr.msrb.gmra.mxu3 %v10944_v14  ;;  %v7390_v14 = vld [vmem:[#allocation2 + $0x120] sm:$0xff] }
 0x20d   :  { %5808 = vmatmul.msk.bf16.gmra.mxu1 %vm728_vm0, %v7070_v37  ;;  %10949 = vst [vmem:[#allocation95_spill] sm:$0xff] %v7390_v14 }
 0x20e   :  { %1725 = vmatmul.bf16.gmra.mxu2 %v6866_v26  ;;  %v7380_v26 = vld [vmem:[#allocation2 + $0x128] sm:$0xff] }
 0x20f   :  { %v1376_v29 = vpop.f32.mrf.mxu3  ;;  %10948 = vst [vmem:[#allocation94_spill] sm:$0xff] %v7380_v26  ;;  %1817 = vmatpush.bf16.msrb.mxu0 %v7380_v26  ;;  %v6340_v26 = vld [vmem:[#allocation2 + $0x1d8] sm:$0xff] }
 0x210   :  { %v7370_v51 = vadd.f32 %v1376_v29, %v7180_v25  ;;  %1957 = vmatpush.bf16.msrb.mxu2 %v6340_v26 }
 0x211   :  { %v7372_v13 = vpop.f32.mrf.mxu2  ;;  %v1427_v57 = vpop.f32.mrf.mxu0 }
 0x212   :  { %v1428_v2 = vadd.f32 %v1427_v57, %v7277_v30  ;;  %v1496_v11 = vpop.f32.mrf.mxu1 }
 0x213   :  { %1818 = vmatpush.bf16.msrb.mxu0 %v7390_v14 }
 0x214   :  { %v7378_v15 = vadd.f32 %v1496_v11, %v1428_v2 }
 0x216   :  { %10947 = vst [vmem:[#allocation93_spill] sm:$0xff] %v7378_v15  ;;  %v6338_v15 = vld [vmem:[#allocation2 + $0x1c8] sm:$0xff] }
 0x217   :  { %v1378_v25 = vpop.f32.mrf.mxu3  ;;  %1819 = vmatpush.bf16.msrb.mxu0 %v10955_v38  ;;  %v10957_v38 = vld [vmem:[#allocation67_spill] sm:$0xff] }
 0x218   :  { %v7386_v29 = vadd.f32 %v1378_v25, %v7190_v62  ;;  %v10953_v62 = vld [vmem:[#allocation51_spill] sm:$0xff]  ;;  %v10954_v25 = vld [vmem:[#allocation78_spill] sm:$0xff] }
 0x219   :  { %v7388_v10 = vpop.f32.mrf.mxu2  ;;  %v1430_v30 = vpop.f32.mrf.mxu0 }
 0x21a   :  { %v1431_v57 = vadd.f32 %v1430_v30, %v7290_v58  ;;  %v1499_v2 = vpop.f32.mrf.mxu1 }
 0x21c   :  { %v7394_v11 = vadd.f32 %v1499_v2, %v1431_v57  ;;  %1469 = vmatmul.bf16.gmra.mxu0 %v10951_v42  ;;  %1759 = vmatmul.bf16.gmra.mxu3 %v10952_v40  ;;  %v6339_v2 = vld [vmem:[#allocation2 + $0x1d0] sm:$0xff] }
 0x21d   :  { %5809 = vmatmul.msk.bf16.gmra.mxu1 %vm728_vm0, %v7093_v39  ;;  %v10956_v39 = vld [vmem:[#allocation66_spill] sm:$0xff]  ;;  %1958 = vmatpush.bf16.msrb.mxu2 %v6339_v2 }
 0x21e   :  { %10950 = vst [vmem:[#allocation96_spill] sm:$0xff] %v7394_v11  ;;  %1730 = vmatmul.bf16.gmra.mxu2 %v10953_v62  ;;  %1820 = vmatpush.bf16.msrb.mxu0 %v10956_v39 }
 0x21f   :  { %v1381_v58 = vpop.f32.mrf.mxu3 }
 0x220   :  { %v7405_v30 = vadd.f32 %v1381_v58, %v7205_v34 }
 0x221   :  { %v7407_v57 = vpop.f32.mrf.mxu2  ;;  %v1432_v14 = vpop.f32.mrf.mxu0  ;;  %1959 = vmatpush.bf16.msrb.mxu2 %v6338_v15  ;;  %v10961_v15 = vld [vmem:[#allocation21_spill] sm:$0xff] }
 0x222   :  { %v1433_v40 = vadd.f32 %v1432_v14, %v7298_v56  ;;  %v1501_v42 = vpop.f32.mrf.mxu1  ;;  %1821 = vmatpush.bf16.msrb.mxu0 %v10957_v38  ;;  %v6337_v56 = vld [vmem:[#allocation2 + $0x1c0] sm:$0xff]  ;;  %v10960_v38 = vld [vmem:[#allocation71_spill] sm:$0xff] }
 0x224   :  { %v7411_v62 = vadd.f32 %v1501_v42, %v1433_v40  ;;  %v10958_v40 = vld [vmem:[#allocation70_spill] sm:$0xff]  ;;  %v6458_v42 = vld [vmem:[#allocation2 + $0x158] sm:$0xff] }
 0x225   :  { %1960 = vmatpush.bf16.msrb.mxu2 %v6337_v56  ;;  %10968 = vst [vmem:[#allocation70_spill] sm:$0xff] %v7476_v47 }
 0x226   :  { %1822 = vmatpush.bf16.msrb.mxu0 %v10958_v40 }
 0x227   :  { %v1383_v34 = vpop.f32.mrf.mxu3 }
 0x228   :  { %v7417_v58 = vadd.f32 %v1383_v34, %v7215_v55 }
 0x229   :  { %v7419_v11 = vpop.f32.mrf.mxu2  ;;  %v1435_v14 = vpop.f32.mrf.mxu0 }
 0x22a   :  { %v1436_v39 = vadd.f32 %v1435_v14, %v7317_v20  ;;  %v1504_v2 = vpop.f32.mrf.mxu1  ;;  %2214 = vmatpush.bf16.msra.mxu0 %v6458_v42  ;;  %v6459_v14 = vld [vmem:[#allocation2 + $0x150] sm:$0xff] }
 0x22c   :  { %v7423_v26 = vadd.f32 %v1504_v2, %v1436_v39  ;;  %1474 = vmatmul.bf16.gmra.mxu0 %v10960_v38  ;;  %1764 = vmatmul.bf16.gmra.mxu3 %v10961_v15  ;;  %v6460_v38 = vld [vmem:[#allocation2 + $0x148] sm:$0xff] }
 0x22d   :  { %5810 = vmatmul.msk.bf16.gmra.mxu1 %vm728_vm0, %v7116_v28 }
 0x22e   :  { %10959 = vst [vmem:[#allocation78_spill] sm:$0xff] %v7423_v26  ;;  %1735 = vmatmul.bf16.gmra.mxu2 %v6722_v33  ;;  %2215 = vmatpush.bf16.msra.mxu0 %v6459_v14  ;;  %v6461_v26 = vld [vmem:[#allocation2 + $0x140] sm:$0xff] }
 0x22f   :  { %v1386_v34 = vpop.f32.mrf.mxu3 }
 0x230   :  { %v7433_v56 = vadd.f32 %v1386_v34, %v7229_v12 }
 0x231   :  { %v7435_v39 = vpop.f32.mrf.mxu2  ;;  %v1437_v2 = vpop.f32.mrf.mxu0 }
 0x232   :  { %v1438_v42 = vadd.f32 %v1437_v2, %v7331_v43  ;;  %v1506_v15 = vpop.f32.mrf.mxu1  ;;  %2216 = vmatpush.bf16.msra.mxu0 %v6460_v38  ;;  %v7448_v2 = vld [vmem:[#allocation2 + $0xf8] sm:$0xff] }
 0x233   :  { %10963 = vst [vmem:[#allocation65_spill] sm:$0xff] %v7448_v2 }
 0x234   :  { %v7438_v28 = vadd.f32 %v1506_v15, %v1438_v42  ;;  %v10965_v15 = vld [vmem:[#allocation73_spill] sm:$0xff] }
 0x235   :  { %v10966_v42 = vld [vmem:[#allocation25_spill] sm:$0xff] }
 0x236   :  { %2217 = vmatpush.bf16.msra.mxu0 %v6461_v26  ;;  %v7460_v26 = vld [vmem:[#allocation2 + $0xf0] sm:$0xff] }
 0x237   :  { %v1388_v20 = vpop.f32.mrf.mxu3  ;;  %10967 = vst [vmem:[#allocation67_spill] sm:$0xff] %v7460_v26 }
 0x238   :  { %v7443_v14 = vadd.f32 %v1388_v20, %v7237_v41 }
 0x239   :  { %v7445_v12 = vpop.f32.mrf.mxu2  ;;  %v1440_v34 = vpop.f32.mrf.mxu0 }
 0x23a   :  { %v1441_v55 = vadd.f32 %v1440_v34, %v7344_v16  ;;  %v1509_v43 = vpop.f32.mrf.mxu1  ;;  %2218 = vmatpush.bf16.msra.mxu0 %v7448_v2 }
 0x23c   :  { %v7451_v38 = vadd.f32 %v1509_v43, %v1441_v55  ;;  %1479 = vmatmul.bf16.gmra.mxu0 %v10965_v15  ;;  %1769 = vmatmul.bf16.gmra.mxu3 %v10966_v42  ;;  %v7469_v42 = vld [vmem:[#allocation2 + $0xe8] sm:$0xff] }
 0x23d   :  { %5811 = vmatmul.msk.bf16.gmra.mxu1 %vm728_vm0, %v7139_v18 }
 0x23e   :  { %10964 = vst [vmem:[#allocation66_spill] sm:$0xff] %v7451_v38  ;;  %1740 = vmatmul.bf16.gmra.mxu2 %v6746_v45  ;;  %2219 = vmatpush.bf16.msra.mxu0 %v7460_v26 }
 0x23f   :  { %v1391_v16 = vpop.f32.mrf.mxu3 }
 0x240   :  { %v7464_v55 = vadd.f32 %v1391_v16, %v7250_v8 }
 0x241   :  { %v7466_v20 = vpop.f32.mrf.mxu2  ;;  %v1442_v34 = vpop.f32.mrf.mxu0 }
 0x242   :  { %v1443_v43 = vadd.f32 %v1442_v34, %v7352_v22  ;;  %v1511_v33 = vpop.f32.mrf.mxu1  ;;  %2220 = vmatpush.bf16.msra.mxu0 %v7469_v42 }
 0x244   :  { %v7472_v45 = vadd.f32 %v1511_v33, %v1443_v43  ;;  %v10969_v33 = vld [vmem:[#allocation30_spill] sm:$0xff] }
 0x245   :  { %v10970_v43 = vld [vmem:[#allocation14_spill] sm:$0xff] }
 0x246   :  { %2221 = vmatpush.bf16.msra.mxu0 %v7476_v47 }
 0x247   :  { %v1393_v38 = vpop.f32.mrf.mxu3 }
 0x248   :  { %v7480_v8 = vadd.f32 %v1393_v38, %v7258_v27  ;;  %v6466_v38 = vld [vmem:[#allocation2 + $0x178] sm:$0xff]  ;;  %v10972_v27 = vld [vmem:[#allocation18_spill] sm:$0xff] }
 0x249   :  { %v7482_v16 = vpop.f32.mrf.mxu2  ;;  %v1445_v22 = vpop.f32.mrf.mxu0 }
 0x24a   :  { %v1446_v34 = vadd.f32 %v1445_v22, %v7370_v51  ;;  %v1514_v18 = vpop.f32.mrf.mxu1 }
 0x24c   :  { %v7485_v15 = vadd.f32 %v1514_v18, %v1446_v34  ;;  %1774 = vmatmul.bf16.gmra.mxu3 %v10969_v33  ;;  %1823 = vmatmul.bf16.vlgmr.msrb.gmra.mxu0 %v10970_v43 }
 0x24d   :  { %1892 = vmatmul.bf16.vlgmr.msrb.gmra.mxu1 %v10907_v50  ;;  %2547 = vmatpush.bf16.msrb.mxu0 %v7448_v2 }
 0x24e   :  { %5860 = vmatmul.msk.bf16.vlgmr.msrb.gmra.mxu2 %vm728_vm0, %v6914_v60  ;;  %2616 = vmatpush.bf16.msrb.mxu1 %v6466_v38  ;;  %v6467_v60 = vld [vmem:[#allocation2 + $0x170] sm:$0xff]  ;;  %v6468_v38 = vld [vmem:[#allocation2 + $0x168] sm:$0xff] }
 0x24f   :  { %v1396_v51 = vpop.f32.mrf.mxu3 }
 0x250   :  { %v7496_v18 = vadd.f32 %v1396_v51, %v7271_v7 }
 0x251   :  { %v7498_v22 = vpop.f32.mrf.mxu2  ;;  %v1447_v34 = vpop.f32.mrf.mxu0  ;;  %2548 = vmatpush.bf16.msrb.mxu0 %v7460_v26 }
 0x252   :  { %v1448_v41 = vadd.f32 %v1447_v34, %v7386_v29  ;;  %v1516_v33 = vpop.f32.mrf.mxu1  ;;  %2617 = vmatpush.bf16.msrb.mxu1 %v6467_v60  ;;  %v6469_v60 = vld [vmem:[#allocation2 + $0x160] sm:$0xff] }
 0x254   :  { %v7502_v50 = vadd.f32 %v1516_v33, %v1448_v41  ;;  %v10971_v33 = vld [vmem:[#allocation36_spill] sm:$0xff] }
 0x255   :  { %2549 = vmatpush.bf16.msrb.mxu0 %v7469_v42 }
 0x256   :  { %2618 = vmatpush.bf16.msrb.mxu1 %v6468_v38 }
 0x257   :  { %v1398_v7 = vpop.f32.mrf.mxu3 }
 0x258   :  { %v7508_v51 = vadd.f32 %v1398_v7, %v7279_v9  ;;  %v10976_v9 = vld [vmem:[#allocation22_spill] sm:$0xff] }
 0x259   :  { %v7510_v2 = vpop.f32.mrf.mxu2  ;;  %v1450_v29 = vpop.f32.mrf.mxu0  ;;  %2550 = vmatpush.bf16.msrb.mxu0 %v7476_v47 }
 0x25a   :  { %v1451_v34 = vadd.f32 %v1450_v29, %v7405_v30  ;;  %v1519_v26 = vpop.f32.mrf.mxu1  ;;  %2619 = vmatpush.bf16.msrb.mxu1 %v6469_v60  ;;  %v7524_v30 = vld [vmem:[#allocation2 + $0x118] sm:$0xff] }
 0x25c   :  { %v7514_v41 = vadd.f32 %v1519_v26, %v1451_v34  ;;  %1779 = vmatmul.bf16.gmra.mxu3 %v10971_v33  ;;  %1828 = vmatmul.bf16.gmra.mxu0 %v10972_v27 }
 0x25d   :  { %1897 = vmatmul.bf16.gmra.mxu1 %v10909_v61  ;;  %2551 = vmatpush.bf16.msrb.mxu0 %v7305_v44 }
 0x25e   :  { %5861 = vmatmul.msk.bf16.gmra.mxu2 %vm728_vm0, %v6929_v23  ;;  %2620 = vmatpush.bf16.msrb.mxu1 %v7524_v30  ;;  %v7534_v23 = vld [vmem:[#allocation2 + $0x110] sm:$0xff] }
 0x25f   :  { %v1401_v26 = vpop.f32.mrf.mxu3 }
 0x260   :  { %v7528_v38 = vadd.f32 %v1401_v26, %v7292_v54  ;;  %v7542_v54 = vld [vmem:[#allocation2 + $0x108] sm:$0xff] }
 0x261   :  { %v7530_v7 = vpop.f32.mrf.mxu2  ;;  %v1452_v29 = vpop.f32.mrf.mxu0  ;;  %2552 = vmatpush.bf16.msrb.mxu0 %v7313_v46 }
 0x262   :  { %v1453_v34 = vadd.f32 %v1452_v29, %v7417_v58  ;;  %v1521_v60 = vpop.f32.mrf.mxu1  ;;  %2621 = vmatpush.bf16.msrb.mxu1 %v7534_v23 }
 0x264   :  { %v7537_v44 = vadd.f32 %v1521_v60, %v1453_v34 }
 0x265   :  { %2553 = vmatpush.bf16.msrb.mxu0 %v7324_v3  ;;  %v10975_v3 = vld [vmem:[#allocation40_spill] sm:$0xff] }
 0x266   :  { %10973 = vst [vmem:[#allocation97_spill] sm:$0xff] %v7537_v44  ;;  %2622 = vmatpush.bf16.msrb.mxu1 %v7542_v54  ;;  %v10977_v44 = vld [vmem:[#allocation48_spill] sm:$0xff] }
 0x267   :  { %v1403_v26 = vpop.f32.mrf.mxu3 }
 0x268   :  { %v7546_v58 = vadd.f32 %v1403_v26, %v7300_v52  ;;  %v10978_v52 = vld [vmem:[#allocation60_spill] sm:$0xff] }
 0x269   :  { %v7548_v46 = vpop.f32.mrf.mxu2  ;;  %v1455_v29 = vpop.f32.mrf.mxu0  ;;  %2554 = vmatpush.bf16.msrb.mxu0 %v7327_v6 }
 0x26a   :  { %v1456_v33 = vadd.f32 %v1455_v29, %v7433_v56  ;;  %v1524_v34 = vpop.f32.mrf.mxu1  ;;  %2623 = vmatpush.bf16.msrb.mxu1 %v10958_v40 }
 0x26c   :  { %v7553_v60 = vadd.f32 %v1524_v34, %v1456_v33  ;;  %1784 = vmatmul.bf16.gmra.mxu3 %v10975_v3  ;;  %1833 = vmatmul.bf16.gmra.mxu0 %v10976_v9 }
 0x26d   :  { %1902 = vmatmul.bf16.gmra.mxu1 %v10977_v44  ;;  %v10982_v44 = vld [vmem:[#allocation32_spill] sm:$0xff] }
 0x26e   :  { %10974 = vst [vmem:[#allocation98_spill] sm:$0xff] %v7553_v60  ;;  %5862 = vmatmul.msk.bf16.gmra.mxu2 %vm728_vm0, %v10978_v52 }
 0x26f   :  { %v1406_v56 = vpop.f32.mrf.mxu3 }
 0x270   :  { %v7563_v29 = vadd.f32 %v1406_v56, %v7319_v53 }
 0x271   :  { %v7565_v6 = vpop.f32.mrf.mxu2  ;;  %v1457_v40 = vpop.f32.mrf.mxu0 }
 0x272   :  { %10980 = vst [vmem:[#allocation99_spill] sm:$0xff] %v7565_v6  ;;  %v1458_v33 = vadd.f32 %v1457_v40, %v7443_v14  ;;  %v1526_v34 = vpop.f32.mrf.mxu1  ;;  %v10984_v6 = vld [vmem:[#allocation44_spill] sm:$0xff]  ;;  %v10985_v14 = vld [vmem:[#allocation26_spill] sm:$0xff] }
 0x273   :  { %v10986_v40 = vld [vmem:[#allocation52_spill] sm:$0xff] }
 0x274   :  { %v7568_v3 = vadd.f32 %v1526_v34, %v1458_v33  ;;  %v10987_v33 = vld [vmem:[#allocation62_spill] sm:$0xff] }
 0x276   :  { %10981 = vst [vmem:[#allocation100_spill] sm:$0xff] %v7568_v3  ;;  %v10991_v3 = vld [vmem:[#allocation49_spill] sm:$0xff] }
 0x277   :  { %v1408_v47 = vpop.f32.mrf.mxu3 }
 0x278   :  { %v7573_v52 = vadd.f32 %v1408_v47, %v7333_v35 }
 0x279   :  { %v7575_v36 = vpop.f32.mrf.mxu2  ;;  %v1460_v60 = vpop.f32.mrf.mxu0 }
 0x27a   :  { %v1461_v53 = vadd.f32 %v1460_v60, %v7464_v55  ;;  %v1529_v56 = vpop.f32.mrf.mxu1 }
 0x27c   :  { %v7578_v26 = vadd.f32 %v1529_v56, %v1461_v53  ;;  %1789 = vmatmul.bf16.gmra.mxu3 %v10984_v6  ;;  %1838 = vmatmul.bf16.gmra.mxu0 %v10985_v14 }
 0x27d   :  { %1907 = vmatmul.bf16.gmra.mxu1 %v10986_v40 }
 0x27e   :  { %10983 = vst [vmem:[#allocation32_spill] sm:$0xff] %v7578_v26  ;;  %5863 = vmatmul.msk.bf16.gmra.mxu2 %vm728_vm0, %v10987_v33 }
 0x27f   :  { %v1411_v34 = vpop.f32.mrf.mxu3 }
 0x280   :  { %v7588_v9 = vadd.f32 %v1411_v34, %v7346_v31 }
 0x281   :  { %v7590_v55 = vpop.f32.mrf.mxu2  ;;  %v1462_v60 = vpop.f32.mrf.mxu0 }
 0x282   :  { %v1463_v53 = vadd.f32 %v1462_v60, %v7480_v8  ;;  %v1531_v56 = vpop.f32.mrf.mxu1  ;;  %v10992_v8 = vld [vmem:[#allocation31_spill] sm:$0xff] }
 0x283   :  { %v10993_v60 = vld [vmem:[#allocation55_spill] sm:$0xff] }
 0x284   :  { %v7593_v6 = vadd.f32 %v1531_v56, %v1463_v53  ;;  %v10994_v53 = vld [vmem:[#allocation64_spill] sm:$0xff] }
 0x286   :  { %10989 = vst [vmem:[#allocation101_spill] sm:$0xff] %v7593_v6 }
 0x287   :  { %v1413_v14 = vpop.f32.mrf.mxu3 }
 0x288   :  { %v7598_v33 = vadd.f32 %v1413_v14, %v7354_v17  ;;  %v11000_v17 = vld [vmem:[#allocation53_spill] sm:$0xff] }
 0x289   :  { %v7600_v35 = vpop.f32.mrf.mxu2  ;;  %v1465_v26 = vpop.f32.mrf.mxu0 }
 0x28a   :  { %v1466_v31 = vadd.f32 %v1465_v26, %v7496_v18  ;;  %v1534_v34 = vpop.f32.mrf.mxu1 }
 0x28c   :  { %v7603_v47 = vadd.f32 %v1534_v34, %v1466_v31  ;;  %1794 = vmatmul.bf16.gmra.mxu3 %v10991_v3  ;;  %1843 = vmatmul.bf16.gmra.mxu0 %v10992_v8  ;;  %v11009_v34 = vld [vmem:[#allocation20_spill] sm:$0xff] }
 0x28d   :  { %1912 = vmatmul.bf16.gmra.mxu1 %v10993_v60 }
 0x28e   :  { %10990 = vst [vmem:[#allocation102_spill] sm:$0xff] %v7603_v47  ;;  %5864 = vmatmul.msk.bf16.gmra.mxu2 %vm728_vm0, %v10994_v53 }
 0x28f   :  { %v1755_v56 = vpop.f32.mrf.mxu3 }
 0x291   :  { %v7612_v40 = vpop.f32.mrf.mxu2  ;;  %v1467_v6 = vpop.f32.mrf.mxu0 }
 0x292   :  { %10996 = vst [vmem:[#allocation103_spill] sm:$0xff] %v7612_v40  ;;  %v1468_v18 = vadd.f32 %v1467_v6, %v7508_v51  ;;  %v1536_v26 = vpop.f32.mrf.mxu1  ;;  %v11001_v40 = vld [vmem:[#allocation37_spill] sm:$0xff] }
 0x293   :  { %v11002_v51 = vld [vmem:[#allocation57_spill] sm:$0xff] }
 0x294   :  { %v7615_v31 = vadd.f32 %v1536_v26, %v1468_v18  ;;  %v11003_v6 = vld [vmem:[#allocation69_spill] sm:$0xff] }
 0x296   :  { %10997 = vst [vmem:[#allocation104_spill] sm:$0xff] %v7615_v31 }
 0x297   :  { %v7619_v8 = vpop.f32.mrf.mxu3 }
 0x299   :  { %v7621_v60 = vpop.f32.mrf.mxu2  ;;  %v1470_v53 = vpop.f32.mrf.mxu0 }
 0x29a   :  { %v1471_v63 = vadd.f32 %v1470_v53, %v7528_v38  ;;  %v1539_v14 = vpop.f32.mrf.mxu1 }
 0x29c   :  { %v7624_v47 = vadd.f32 %v1539_v14, %v1471_v63  ;;  %1799 = vmatmul.bf16.gmra.mxu3 %v11000_v17  ;;  %1848 = vmatmul.bf16.gmra.mxu0 %v11001_v40 }
 0x29d   :  { %1917 = vmatmul.bf16.gmra.mxu1 %v11002_v51 }
 0x29e   :  { %10999 = vst [vmem:[#allocation105_spill] sm:$0xff] %v7624_v47  ;;  %5865 = vmatmul.msk.bf16.gmra.mxu2 %vm728_vm0, %v11003_v6 }
 0x29f   :  { %v7633_v3 = vpop.f32.mrf.mxu3 }
 0x2a1   :  { %v7635_v31 = vpop.f32.mrf.mxu2  ;;  %v1472_v38 = vpop.f32.mrf.mxu0 }
 0x2a2   :  { %11005 = vst [vmem:[#allocation106_spill] sm:$0xff] %v7635_v31  ;;  %v1473_v63 = vadd.f32 %v1472_v38, %v7546_v58  ;;  %v1541_v53 = vpop.f32.mrf.mxu1  ;;  %v11010_v31 = vld [vmem:[#allocation41_spill] sm:$0xff]  ;;  %v11011_v58 = vld [vmem:[#allocation59_spill] sm:$0xff]  ;;  %v11012_v38 = vld [vmem:[#allocation72_spill] sm:$0xff] }
 0x2a4   :  { %v7638_v14 = vadd.f32 %v1541_v53, %v1473_v63 }
 0x2a6   :  { %11006 = vst [vmem:[#allocation107_spill] sm:$0xff] %v7638_v14 }
 0x2a7   :  { %v7642_v51 = vpop.f32.mrf.mxu3 }
 0x2a9   :  { %v7644_v40 = vpop.f32.mrf.mxu2  ;;  %v1475_v6 = vpop.f32.mrf.mxu0 }
 0x2aa   :  { %11007 = vst [vmem:[#allocation108_spill] sm:$0xff] %v7644_v40  ;;  %v1476_v26 = vadd.f32 %v1475_v6, %v7563_v29  ;;  %v1544_v47 = vpop.f32.mrf.mxu1  ;;  %v11020_v40 = vld [vmem:[#allocation45_spill] sm:$0xff] }
 0x2ac   :  { %v7647_v18 = vadd.f32 %v1544_v47, %v1476_v26  ;;  %1804 = vmatmul.bf16.gmra.mxu3 %v11009_v34  ;;  %1853 = vmatmul.bf16.gmra.mxu0 %v11010_v31 }
 0x2ad   :  { %1922 = vmatmul.bf16.gmra.mxu1 %v11011_v58 }
 0x2ae   :  { %11008 = vst [vmem:[#allocation109_spill] sm:$0xff] %v7647_v18  ;;  %5866 = vmatmul.msk.bf16.gmra.mxu2 %vm728_vm0, %v11012_v38 }
 0x2af   :  { %v7656_v17 = vpop.f32.mrf.mxu3 }
 0x2b1   :  { %v7658_v14 = vpop.f32.mrf.mxu2  ;;  %v1477_v29 = vpop.f32.mrf.mxu0 }
 0x2b2   :  { %11014 = vst [vmem:[#allocation110_spill] sm:$0xff] %v7658_v14  ;;  %v1478_v47 = vadd.f32 %v1477_v29, %v7573_v52  ;;  %v1546_v6 = vpop.f32.mrf.mxu1  ;;  %v11019_v14 = vld [vmem:[#allocation24_spill] sm:$0xff]  ;;  %v11021_v52 = vld [vmem:[#allocation61_spill] sm:$0xff]  ;;  %v11022_v29 = vld [vmem:[#allocation74_spill] sm:$0xff] }
 0x2b4   :  { %v7661_v26 = vadd.f32 %v1546_v6, %v1478_v47 }
 0x2b6   :  { %11015 = vst [vmem:[#allocation111_spill] sm:$0xff] %v7661_v26 }
 0x2b7   :  { %v7665_v58 = vpop.f32.mrf.mxu3 }
 0x2b9   :  { %v7667_v48 = vpop.f32.mrf.mxu2  ;;  %v1480_v38 = vpop.f32.mrf.mxu0 }
 0x2ba   :  { %11017 = vst [vmem:[#allocation112_spill] sm:$0xff] %v7667_v48  ;;  %v1481_v53 = vadd.f32 %v1480_v38, %v7588_v9  ;;  %v1549_v18 = vpop.f32.mrf.mxu1  ;;  %v11027_v48 = vld [vmem:[#allocation11_spill] sm:$0xff] }
 0x2bc   :  { %v7670_v63 = vadd.f32 %v1549_v18, %v1481_v53  ;;  %1809 = vmatmul.bf16.gmra.mxu3 %v11019_v14  ;;  %1858 = vmatmul.bf16.gmra.mxu0 %v11020_v40 }
 0x2bd   :  { %1927 = vmatmul.bf16.gmra.mxu1 %v11021_v52 }
 0x2be   :  { %11018 = vst [vmem:[#allocation113_spill] sm:$0xff] %v7670_v63  ;;  %5867 = vmatmul.msk.bf16.gmra.mxu2 %vm728_vm0, %v11022_v29  ;;  %v1756_v29 = vadd.f32 %v1755_v56, %v7372_v13  ;;  %v1758_v56 = vadd.f32 %v7619_v8, %v7388_v10  ;;  %v1761_v8 = vadd.f32 %v7633_v3, %v7407_v57  ;;  %v6344_v57 = vld [vmem:[#allocation2 + $0x1f8] sm:$0xff] }
 0x2bf   :  { %v7679_v31 = vpop.f32.mrf.mxu3  ;;  %v11036_v3 = vld [vmem:[#allocation68_spill] sm:$0xff] }
 0x2c1   :  { %v7681_v26 = vpop.f32.mrf.mxu2  ;;  %v1482_v9 = vpop.f32.mrf.mxu0 }
 0x2c2   :  { %11024 = vst [vmem:[#allocation114_spill] sm:$0xff] %v7681_v26  ;;  %v1483_v18 = vadd.f32 %v1482_v9, %v7598_v33  ;;  %v1551_v38 = vpop.f32.mrf.mxu1  ;;  %v11026_v26 = vld [vmem:[#allocation50_spill] sm:$0xff]  ;;  %v7695_v33 = vld [vmem:[#allocation2 + $0x218] sm:$0xff] }
 0x2c3   :  { %2352 = vmatpush.bf16.msra.mxu2 %v7695_v33 }
 0x2c4   :  { %v7684_v53 = vadd.f32 %v1551_v38, %v1483_v18  ;;  %v11028_v38 = vmax.f32 %v7075_v4, %v7357_v21  ;;  %v11030_v4 = vld [vmem:[#allocation76_spill] sm:$0xff]  ;;  %v11031_v21 = vld [vmem:[#allocation93_spill] sm:$0xff] }
 0x2c6   :  { %11025 = vst [vmem:[#allocation115_spill] sm:$0xff] %v7684_v53  ;;  %v11037_v53 = vld [vmem:[#allocation77_spill] sm:$0xff] }
 0x2c7   :  { %v7688_v52 = vpop.f32.mrf.mxu3 }
 0x2c9   :  { %v7691_v40 = vpop.f32.mrf.mxu2  ;;  %v1824_v6 = vpop.f32.mrf.mxu0 }
 0x2ca   :  { %v1825_v63 = vadd.f32 %v1824_v6, %v1756_v29  ;;  %v1893_v47 = vpop.f32.mrf.mxu1 }
 0x2cc   :  { %v1894_v34 = vadd.f32 %v1893_v47, %v1825_v63  ;;  %1863 = vmatmul.bf16.gmra.mxu0 %v11026_v26  ;;  %2153 = vmatmul.bf16.vlgmr.msra.gmra.mxu3 %v11027_v48  ;;  %v7705_v63 = vld [vmem:[#allocation2 + $0x210] sm:$0xff]  ;;  %v7713_v48 = vld [vmem:[#allocation2 + $0x208] sm:$0xff] }
 0x2cd   :  { %1932 = vmatmul.bf16.gmra.mxu1 %v10943_v49  ;;  %2353 = vmatpush.bf16.msra.mxu2 %v7705_v63 }
 0x2ce   :  { %5868 = vmatmul.msk.bf16.gmra.mxu2 %vm728_vm0, %v7070_v37 }
 0x2cf   :  { %v7701_v13 = vpop.f32.mrf.mxu3 }
 0x2d1   :  { %v1962_v29 = vpop.f32.mrf.mxu2  ;;  %v1826_v6 = vpop.f32.mrf.mxu0  ;;  %2354 = vmatpush.bf16.msra.mxu2 %v7713_v48 }
 0x2d2   :  { %v1963_v47 = vadd.f32 %v1962_v29, %v1894_v34  ;;  %v1827_v9 = vadd.f32 %v1826_v6, %v1758_v56  ;;  %v1895_v18 = vpop.f32.mrf.mxu1  ;;  %v7720_v56 = vld [vmem:[#allocation2 + $0x200] sm:$0xff] }
 0x2d4   :  { %v7711_v14 = vmax.f32 %v11028_v38, %v1963_v47  ;;  %v1896_v37 = vadd.f32 %v1895_v18, %v1827_v9  ;;  %v11032_v47 = vmax.f32 %v11030_v4, %v11031_v21  ;;  %v11034_v38 = vld [vmem:[#allocation54_spill] sm:$0xff]  ;;  %v11038_v21 = vld [vmem:[#allocation96_spill] sm:$0xff] }
 0x2d5   :  { %2355 = vmatpush.bf16.msra.mxu2 %v7720_v56 }
 0x2d6   :  { %11029 = vst [vmem:[#allocation116_spill] sm:$0xff] %v7711_v14  ;;  %v11035_v14 = vld [vmem:[#allocation15_spill] sm:$0xff] }
 0x2d7   :  { %v7716_v10 = vpop.f32.mrf.mxu3 }
 0x2d9   :  { %v1964_v34 = vpop.f32.mrf.mxu2  ;;  %v1829_v6 = vpop.f32.mrf.mxu0  ;;  %2356 = vmatpush.bf16.msra.mxu2 %v6344_v57 }
 0x2da   :  { %v1965_v29 = vadd.f32 %v1964_v34, %v1896_v37  ;;  %v1830_v49 = vadd.f32 %v1829_v6, %v1761_v8  ;;  %v1898_v26 = vpop.f32.mrf.mxu1  ;;  %v1763_v8 = vadd.f32 %v7642_v51, %v7419_v11  ;;  %v1766_v11 = vadd.f32 %v7656_v17, %v7435_v39  ;;  %v11044_v39 = vld [vmem:[#allocation19_spill] sm:$0xff] }
 0x2db   :  { %v11045_v17 = vld [vmem:[#allocation71_spill] sm:$0xff] }
 0x2dc   :  { %v7726_v9 = vmax.f32 %v11032_v47, %v1965_v29  ;;  %v1899_v18 = vadd.f32 %v1898_v26, %v1830_v49  ;;  %1868 = vmatmul.bf16.gmra.mxu0 %v11034_v38  ;;  %2158 = vmatmul.bf16.gmra.mxu3 %v11035_v14  ;;  %v6343_v29 = vld [vmem:[#allocation2 + $0x1f0] sm:$0xff]  ;;  %v11039_v47 = vmax.f32 %v10954_v25, %v11038_v21 }
 0x2dd   :  { %1937 = vmatmul.bf16.gmra.mxu1 %v11036_v3  ;;  %2357 = vmatpush.bf16.msra.mxu2 %v6343_v29  ;;  %v6341_v3 = vld [vmem:[#allocation2 + $0x1e0] sm:$0xff]  ;;  %v11041_v25 = vmax.f32 %v7111_v0, %v7411_v62  ;;  %v1768_v0 = vadd.f32 %v7665_v58, %v7445_v12  ;;  %v1771_v12 = vadd.f32 %v7679_v31, %v7466_v20 }
 0x2de   :  { %11033 = vst [vmem:[#allocation76_spill] sm:$0xff] %v7726_v9  ;;  %5869 = vmatmul.msk.bf16.gmra.mxu2 %vm728_vm0, %v11037_v53  ;;  %v6342_v53 = vld [vmem:[#allocation2 + $0x1e8] sm:$0xff]  ;;  %v11056_v20 = vld [vmem:[#allocation73_spill] sm:$0xff] }
 0x2df   :  { %v7733_v37 = vpop.f32.mrf.mxu3  ;;  %v11057_v31 = vld [vmem:[#allocation81_spill] sm:$0xff] }
 0x2e1   :  { %v1967_v34 = vpop.f32.mrf.mxu2  ;;  %v1831_v49 = vpop.f32.mrf.mxu0  ;;  %2358 = vmatpush.bf16.msra.mxu2 %v6342_v53 }
 0x2e2   :  { %v1968_v6 = vadd.f32 %v1967_v34, %v1899_v18  ;;  %v1832_v26 = vadd.f32 %v1831_v49, %v1763_v8  ;;  %v1900_v4 = vpop.f32.mrf.mxu1 }
 0x2e4   :  { %v7740_v9 = vmax.f32 %v11039_v47, %v1968_v6  ;;  %v1901_v14 = vadd.f32 %v1900_v4, %v1832_v26  ;;  %v7751_v6 = vld [vmem:[#allocation2 + $0x1b8] sm:$0xff]  ;;  %v11043_v26 = vld [vmem:[#allocation29_spill] sm:$0xff]  ;;  %v7761_v4 = vld [vmem:[#allocation2 + $0x1b0] sm:$0xff] }
 0x2e5   :  { %2359 = vmatpush.bf16.msra.mxu2 %v6341_v3 }
 0x2e6   :  { %11040 = vst [vmem:[#allocation93_spill] sm:$0xff] %v7740_v9  ;;  %v7776_v9 = vld [vmem:[#allocation2 + $0x1a0] sm:$0xff] }
 0x2e7   :  { %v7742_v57 = vpop.f32.mrf.mxu3 }
 0x2e9   :  { %v1969_v51 = vpop.f32.mrf.mxu2  ;;  %v1834_v34 = vpop.f32.mrf.mxu0  ;;  %2685 = vmatpush.bf16.msrb.mxu2 %v7751_v6 }
 0x2ea   :  { %v1970_v18 = vadd.f32 %v1969_v51, %v1901_v14  ;;  %v1835_v8 = vadd.f32 %v1834_v34, %v1766_v11  ;;  %v1903_v49 = vpop.f32.mrf.mxu1  ;;  %v11046_v14 = vld [vmem:[#allocation79_spill] sm:$0xff]  ;;  %v11048_v34 = vld [vmem:[#allocation78_spill] sm:$0xff] }
 0x2ec   :  { %v7749_v29 = vmax.f32 %v11041_v25, %v1970_v18  ;;  %v1904_v53 = vadd.f32 %v1903_v49, %v1835_v8  ;;  %1873 = vmatmul.bf16.gmra.mxu0 %v11043_v26  ;;  %2163 = vmatmul.bf16.gmra.mxu3 %v11044_v39  ;;  %v11047_v18 = vld [vmem:[#allocation80_spill] sm:$0xff]  ;;  %v7771_v25 = vld [vmem:[#allocation2 + $0x1a8] sm:$0xff] }
 0x2ed   :  { %1942 = vmatmul.bf16.gmra.mxu1 %v11045_v17  ;;  %2686 = vmatpush.bf16.msrb.mxu2 %v7761_v4  ;;  %v11049_v8 = vmax.f32 %v11047_v18, %v11048_v34  ;;  %v11054_v34 = vld [vmem:[#allocation35_spill] sm:$0xff] }
 0x2ee   :  { %11042 = vst [vmem:[#allocation96_spill] sm:$0xff] %v7749_v29  ;;  %5870 = vmatmul.msk.bf16.gmra.mxu2 %vm728_vm0, %v11046_v14 }
 0x2ef   :  { %v7759_v3 = vpop.f32.mrf.mxu3 }
 0x2f1   :  { %v1972_v62 = vpop.f32.mrf.mxu2  ;;  %v1836_v47 = vpop.f32.mrf.mxu0  ;;  %2687 = vmatpush.bf16.msrb.mxu2 %v7771_v25 }
 0x2f2   :  { %v1973_v21 = vadd.f32 %v1972_v62, %v1904_v53  ;;  %v1837_v11 = vadd.f32 %v1836_v47, %v1768_v0  ;;  %v1905_v51 = vpop.f32.mrf.mxu1  ;;  %v11051_v47 = vmax.f32 %v7134_v19, %v7438_v28  ;;  %v1773_v28 = vadd.f32 %v7688_v52, %v7482_v16 }
 0x2f3   :  { %v1776_v16 = vadd.f32 %v7701_v13, %v7498_v22 }
 0x2f4   :  { %v7769_v49 = vmax.f32 %v11049_v8, %v1973_v21  ;;  %v1906_v14 = vadd.f32 %v1905_v51, %v1837_v11  ;;  %v7786_v11 = vld [vmem:[#allocation2 + $0x198] sm:$0xff]  ;;  %v11055_v8 = vld [vmem:[#allocation23_spill] sm:$0xff] }
 0x2f5   :  { %2688 = vmatpush.bf16.msrb.mxu2 %v7776_v9  ;;  %11053 = vst [vmem:[#allocation117_spill] sm:$0xff] %v7786_v11 }
 0x2f6   :  { %11050 = vst [vmem:[#allocation80_spill] sm:$0xff] %v7769_v49 }
 0x2f7   :  { %v7774_v29 = vpop.f32.mrf.mxu3 }
 0x2f9   :  { %v1974_v58 = vpop.f32.mrf.mxu2  ;;  %v1839_v0 = vpop.f32.mrf.mxu0  ;;  %2689 = vmatpush.bf16.msrb.mxu2 %v7786_v11 }
 0x2fa   :  { %v1975_v53 = vadd.f32 %v1974_v58, %v1906_v14  ;;  %v1840_v62 = vadd.f32 %v1839_v0, %v1771_v12  ;;  %v1908_v21 = vpop.f32.mrf.mxu1  ;;  %v6478_v12 = vld [vmem:[#allocation2 + $0x190] sm:$0xff] }
 0x2fc   :  { %v7784_v18 = vmax.f32 %v11051_v47, %v1975_v53  ;;  %v1909_v51 = vadd.f32 %v1908_v21, %v1840_v62  ;;  %1878 = vmatmul.bf16.gmra.mxu0 %v11054_v34  ;;  %2168 = vmatmul.bf16.gmra.mxu3 %v11055_v8  ;;  %v11058_v21 = vld [vmem:[#allocation82_spill] sm:$0xff] }
 0x2fd   :  { %1947 = vmatmul.bf16.gmra.mxu1 %v11056_v20  ;;  %2690 = vmatpush.bf16.msrb.mxu2 %v6478_v12  ;;  %v11059_v47 = vld [vmem:[#allocation66_spill] sm:$0xff]  ;;  %v6480_v20 = vld [vmem:[#allocation2 + $0x180] sm:$0xff] }
 0x2fe   :  { %11052 = vst [vmem:[#allocation78_spill] sm:$0xff] %v7784_v18  ;;  %5871 = vmatmul.msk.bf16.gmra.mxu2 %vm728_vm0, %v11057_v31  ;;  %v11060_v18 = vmax.f32 %v11058_v21, %v11059_v47  ;;  %v7803_v8 = vld [vmem:[#allocation2 + $0x188] sm:$0xff]  ;;  %v11064_v47 = vld [vmem:[#allocation28_spill] sm:$0xff] }
 0x2ff   :  { %v7794_v14 = vpop.f32.mrf.mxu3  ;;  %11061 = vst [vmem:[#allocation82_spill] sm:$0xff] %v7803_v8 }
 0x301   :  { %v1977_v19 = vpop.f32.mrf.mxu2  ;;  %v1841_v53 = vpop.f32.mrf.mxu0  ;;  %2691 = vmatpush.bf16.msrb.mxu2 %v7803_v8 }
 0x302   :  { %v1978_v58 = vadd.f32 %v1977_v19, %v1909_v51  ;;  %v1842_v0 = vadd.f32 %v1841_v53, %v1773_v28  ;;  %v1910_v62 = vpop.f32.mrf.mxu1 }
 0x304   :  { %v7801_v49 = vmax.f32 %v11060_v18, %v1978_v58  ;;  %v1911_v31 = vadd.f32 %v1910_v62, %v1842_v0  ;;  %v11062_v18 = vmax.f32 %v7159_v1, %v7472_v45  ;;  %v11065_v0 = vld [vmem:[#allocation13_spill] sm:$0xff]  ;;  %v11066_v62 = vld [vmem:[#allocation39_spill] sm:$0xff]  ;;  %v1778_v45 = vadd.f32 %v7716_v10, %v7510_v2 }
 0x305   :  { %2692 = vmatpush.bf16.msrb.mxu2 %v6480_v20  ;;  %v1781_v2 = vadd.f32 %v7733_v37, %v7530_v7  ;;  %v11073_v7 = vld [vmem:[#allocation65_spill] sm:$0xff]  ;;  %v11074_v37 = vld [vmem:[#allocation91_spill] sm:$0xff] }
 0x307   :  { %v7806_v39 = vpop.f32.mrf.mxu3 }
 0x309   :  { %v1979_v52 = vpop.f32.mrf.mxu2  ;;  %v1844_v28 = vpop.f32.mrf.mxu0 }
 0x30a   :  { %v1980_v51 = vadd.f32 %v1979_v52, %v1911_v31  ;;  %v1845_v19 = vadd.f32 %v1844_v28, %v1776_v16  ;;  %v1913_v53 = vpop.f32.mrf.mxu1 }
 0x30c   :  { %v7813_v58 = vmax.f32 %v11062_v18, %v1980_v51  ;;  %v1914_v21 = vadd.f32 %v1913_v53, %v1845_v19  ;;  %2173 = vmatmul.bf16.gmra.mxu3 %v11064_v47  ;;  %2222 = vmatmul.bf16.vlgmr.msra.gmra.mxu0 %v11065_v0  ;;  %v11067_v51 = vmax.f32 %v7169_v5, %v7485_v15 }
 0x30d   :  { %2291 = vmatmul.bf16.vlgmr.msra.gmra.mxu1 %v10970_v43  ;;  %v11069_v5 = vmax.f32 %v7183_v24, %v7502_v50  ;;  %v1783_v50 = vadd.f32 %v7742_v57, %v7548_v46  ;;  %v11080_v57 = vld [vmem:[#allocation99_spill] sm:$0xff] }
 0x30e   :  { %11063 = vst [vmem:[#allocation66_spill] sm:$0xff] %v7813_v58  ;;  %2360 = vmatmul.bf16.vlgmr.msra.gmra.mxu2 %v11066_v62  ;;  %2949 = vmatpush.bf16.msra.mxu1 %v7524_v30 }
 0x30f   :  { %3018 = vmatpush.bf16.msra.mxu2 %v7786_v11  ;;  %v7821_v22 = vpop.f32.mrf.mxu3 }
 0x311   :  { %v1982_v1 = vpop.f32.mrf.mxu2  ;;  %v1846_v31 = vpop.f32.mrf.mxu0 }
 0x312   :  { %v1983_v13 = vadd.f32 %v1982_v1, %v1914_v21  ;;  %v1847_v16 = vadd.f32 %v1846_v31, %v1778_v45  ;;  %v1915_v52 = vpop.f32.mrf.mxu1  ;;  %2950 = vmatpush.bf16.msra.mxu1 %v7534_v23  ;;  %v6481_v21 = vld [vmem:[#allocation2 + $0x100] sm:$0xff]  ;;  %v11071_v45 = vld [vmem:[#allocation34_spill] sm:$0xff] }
 0x313   :  { %3019 = vmatpush.bf16.msra.mxu2 %v6478_v12  ;;  %v11072_v1 = vld [vmem:[#allocation17_spill] sm:$0xff] }
 0x314   :  { %v7829_v28 = vmax.f32 %v11067_v51, %v1983_v13  ;;  %v1916_v30 = vadd.f32 %v1915_v52, %v1847_v16  ;;  %v11075_v51 = vld [vmem:[#allocation67_spill] sm:$0xff] }
 0x316   :  { %11068 = vst [vmem:[#allocation118_spill] sm:$0xff] %v7829_v28  ;;  %2951 = vmatpush.bf16.msra.mxu1 %v7542_v54 }
 0x317   :  { %3020 = vmatpush.bf16.msra.mxu2 %v7803_v8  ;;  %v7833_v19 = vpop.f32.mrf.mxu3 }
 0x319   :  { %v1984_v10 = vpop.f32.mrf.mxu2  ;;  %v1849_v18 = vpop.f32.mrf.mxu0 }
 0x31a   :  { %v1985_v53 = vadd.f32 %v1984_v10, %v1916_v30  ;;  %v1850_v23 = vadd.f32 %v1849_v18, %v1781_v2  ;;  %v1918_v12 = vpop.f32.mrf.mxu1  ;;  %2952 = vmatpush.bf16.msra.mxu1 %v6481_v21  ;;  %v11076_v30 = vld [vmem:[#allocation92_spill] sm:$0xff]  ;;  %v11077_v2 = vmax.f32 %v7193_v59, %v7514_v41  ;;  %v11079_v18 = vld [vmem:[#allocation94_spill] sm:$0xff]  ;;  %v11082_v59 = vld [vmem:[#allocation95_spill] sm:$0xff] }
 0x31b   :  { %3021 = vmatpush.bf16.msra.mxu2 %v6480_v20  ;;  %v11083_v41 = vld [vmem:[#allocation46_spill] sm:$0xff] }
 0x31c   :  { %v7840_v15 = vmax.f32 %v11069_v5, %v1985_v53  ;;  %v1919_v54 = vadd.f32 %v1918_v12, %v1850_v23  ;;  %2178 = vmatmul.bf16.gmra.mxu3 %v11071_v45  ;;  %2227 = vmatmul.bf16.gmra.mxu0 %v11072_v1  ;;  %v1786_v23 = vadd.f32 %v7759_v3, %v11080_v57  ;;  %v11089_v3 = vld [vmem:[#allocation22_spill] sm:$0xff] }
 0x31d   :  { %2296 = vmatmul.bf16.gmra.mxu1 %v10972_v27 }
 0x31e   :  { %11070 = vst [vmem:[#allocation119_spill] sm:$0xff] %v7840_v15  ;;  %2365 = vmatmul.bf16.gmra.mxu2 %v10909_v61  ;;  %2953 = vmatpush.bf16.msra.mxu1 %v11073_v7  ;;  %v11153_v15 = vld [vmem:[#allocation111_spill] sm:$0xff] }
 0x31f   :  { %3022 = vmatpush.bf16.msra.mxu2 %v11074_v37  ;;  %v7848_v13 = vpop.f32.mrf.mxu3  ;;  %v11081_v37 = vld [vmem:[#allocation70_spill] sm:$0xff] }
 0x321   :  { %v1987_v24 = vpop.f32.mrf.mxu2  ;;  %v1851_v31 = vpop.f32.mrf.mxu0 }
 0x322   :  { %v1988_v20 = vadd.f32 %v1987_v24, %v1919_v54  ;;  %v1852_v16 = vadd.f32 %v1851_v31, %v1783_v50  ;;  %v1920_v52 = vpop.f32.mrf.mxu1  ;;  %2954 = vmatpush.bf16.msra.mxu1 %v11075_v51  ;;  %v11084_v50 = vld [vmem:[#allocation97_spill] sm:$0xff]  ;;  %v11087_v31 = vld [vmem:[#allocation38_spill] sm:$0xff] }
 0x323   :  { %3023 = vmatpush.bf16.msra.mxu2 %v11076_v30  ;;  %v11085_v24 = vmax.f32 %v11083_v41, %v11084_v50  ;;  %v1788_v30 = vadd.f32 %v7774_v29, %v7575_v36 }
 0x324   :  { %v7857_v10 = vmax.f32 %v11077_v2, %v1988_v20  ;;  %v1921_v53 = vadd.f32 %v1920_v52, %v1852_v16  ;;  %v11088_v16 = vld [vmem:[#allocation21_spill] sm:$0xff]  ;;  %v11090_v52 = vld [vmem:[#allocation48_spill] sm:$0xff] }
 0x326   :  { %11078 = vst [vmem:[#allocation65_spill] sm:$0xff] %v7857_v10  ;;  %2955 = vmatpush.bf16.msra.mxu1 %v7469_v42 }
 0x327   :  { %3024 = vmatpush.bf16.msra.mxu2 %v11079_v18  ;;  %v7861_v46 = vpop.f32.mrf.mxu3 }
 0x329   :  { %v1989_v12 = vpop.f32.mrf.mxu2  ;;  %v1854_v5 = vpop.f32.mrf.mxu0 }
 0x32a   :  { %v1990_v21 = vadd.f32 %v1989_v12, %v1921_v53  ;;  %v1855_v54 = vadd.f32 %v1854_v5, %v1786_v23  ;;  %v1923_v7 = vpop.f32.mrf.mxu1  ;;  %2956 = vmatpush.bf16.msra.mxu1 %v11081_v37  ;;  %v11091_v12 = vld [vmem:[#allocation27_spill] sm:$0xff] }
 0x32b   :  { %3025 = vmatpush.bf16.msra.mxu2 %v11082_v59  ;;  %v1791_v59 = vadd.f32 %v7794_v14, %v7590_v55  ;;  %v1793_v14 = vadd.f32 %v7806_v39, %v7600_v35 }
 0x32c   :  { %v7870_v42 = vmax.f32 %v11085_v24, %v1990_v21  ;;  %v1924_v20 = vadd.f32 %v1923_v7, %v1855_v54  ;;  %2183 = vmatmul.bf16.gmra.mxu3 %v11087_v31  ;;  %2232 = vmatmul.bf16.gmra.mxu0 %v11088_v16  ;;  %v11092_v21 = vld [vmem:[#allocation98_spill] sm:$0xff] }
 0x32d   :  { %2301 = vmatmul.bf16.gmra.mxu1 %v11089_v3  ;;  %v11093_v5 = vmax.f32 %v11091_v12, %v11092_v21  ;;  %v11098_v12 = vld [vmem:[#allocation42_spill] sm:$0xff] }
 0x32e   :  { %11086 = vst [vmem:[#allocation91_spill] sm:$0xff] %v7870_v42  ;;  %2370 = vmatmul.bf16.gmra.mxu2 %v11090_v52 }
 0x32f   :  { %v7876_v51 = vpop.f32.mrf.mxu3 }
 0x331   :  { %v1992_v2 = vpop.f32.mrf.mxu2  ;;  %v1856_v18 = vpop.f32.mrf.mxu0 }
 0x332   :  { %v1993_v53 = vadd.f32 %v1992_v2, %v1924_v20  ;;  %v1857_v57 = vadd.f32 %v1856_v18, %v1788_v30  ;;  %v1925_v23 = vpop.f32.mrf.mxu1  ;;  %v11095_v20 = vld [vmem:[#allocation100_spill] sm:$0xff] }
 0x333   :  { %v11096_v30 = vmax.f32 %v10982_v44, %v11095_v20 }
 0x334   :  { %v7883_v54 = vmax.f32 %v11093_v5, %v1993_v53  ;;  %v1926_v7 = vadd.f32 %v1925_v23, %v1857_v57  ;;  %v11099_v53 = vld [vmem:[#allocation25_spill] sm:$0xff]  ;;  %v11100_v57 = vld [vmem:[#allocation26_spill] sm:$0xff]  ;;  %v11101_v23 = vld [vmem:[#allocation52_spill] sm:$0xff] }
 0x336   :  { %11094 = vst [vmem:[#allocation67_spill] sm:$0xff] %v7883_v54 }
 0x337   :  { %v7885_v37 = vpop.f32.mrf.mxu3 }
 0x339   :  { %v1994_v41 = vpop.f32.mrf.mxu2  ;;  %v1859_v24 = vpop.f32.mrf.mxu0 }
 0x33a   :  { %v1995_v50 = vadd.f32 %v1994_v41, %v1926_v7  ;;  %v1860_v36 = vadd.f32 %v1859_v24, %v1791_v59  ;;  %v1928_v29 = vpop.f32.mrf.mxu1  ;;  %v11102_v41 = vld [vmem:[#allocation33_spill] sm:$0xff] }
 0x33c   :  { %v7892_v2 = vmax.f32 %v11096_v30, %v1995_v50  ;;  %v1929_v18 = vadd.f32 %v1928_v29, %v1860_v36  ;;  %2188 = vmatmul.bf16.gmra.mxu3 %v11098_v12  ;;  %2237 = vmatmul.bf16.gmra.mxu0 %v11099_v53  ;;  %v11103_v50 = vld [vmem:[#allocation32_spill] sm:$0xff]  ;;  %v11106_v30 = vld [vmem:[#allocation103_spill] sm:$0xff] }
 0x33d   :  { %2306 = vmatmul.bf16.gmra.mxu1 %v11100_v57  ;;  %v11104_v24 = vmax.f32 %v11102_v41, %v11103_v50  ;;  %v11111_v41 = vld [vmem:[#allocation47_spill] sm:$0xff] }
 0x33e   :  { %11097 = vst [vmem:[#allocation92_spill] sm:$0xff] %v7892_v2  ;;  %2375 = vmatmul.bf16.gmra.mxu2 %v11101_v23  ;;  %v1796_v23 = vadd.f32 %v7821_v22, %v11106_v30  ;;  %v11116_v30 = vld [vmem:[#allocation102_spill] sm:$0xff] }
 0x33f   :  { %v7898_v55 = vpop.f32.mrf.mxu3 }
 0x341   :  { %v1997_v21 = vpop.f32.mrf.mxu2  ;;  %v1861_v7 = vpop.f32.mrf.mxu0 }
 0x342   :  { %v1998_v5 = vadd.f32 %v1997_v21, %v1929_v18  ;;  %v1862_v44 = vadd.f32 %v1861_v7, %v1793_v14  ;;  %v1930_v59 = vpop.f32.mrf.mxu1  ;;  %v11107_v18 = vld [vmem:[#allocation83_spill] sm:$0xff]  ;;  %v11108_v21 = vld [vmem:[#allocation101_spill] sm:$0xff] }
 0x343   :  { %v11109_v14 = vmax.f32 %v11107_v18, %v11108_v21 }
 0x344   :  { %v7905_v36 = vmax.f32 %v11104_v24, %v1998_v5  ;;  %v1931_v29 = vadd.f32 %v1930_v59, %v1862_v44  ;;  %v11112_v5 = vld [vmem:[#allocation30_spill] sm:$0xff]  ;;  %v11113_v44 = vld [vmem:[#allocation31_spill] sm:$0xff] }
 0x345   :  { %v11114_v59 = vld [vmem:[#allocation55_spill] sm:$0xff] }
 0x346   :  { %11105 = vst [vmem:[#allocation94_spill] sm:$0xff] %v7905_v36 }
 0x347   :  { %v7907_v20 = vpop.f32.mrf.mxu3 }
 0x349   :  { %v1999_v2 = vpop.f32.mrf.mxu2  ;;  %v1864_v52 = vpop.f32.mrf.mxu0 }
 0x34a   :  { %v2000_v54 = vadd.f32 %v1999_v2, %v1931_v29  ;;  %v1865_v35 = vadd.f32 %v1864_v52, %v1796_v23  ;;  %v1933_v39 = vpop.f32.mrf.mxu1  ;;  %v1798_v52 = vadd.f32 %v7833_v19, %v7621_v60  ;;  %v11115_v29 = vld [vmem:[#allocation84_spill] sm:$0xff] }
 0x34c   :  { %v7914_v7 = vmax.f32 %v11109_v14, %v2000_v54  ;;  %v1934_v42 = vadd.f32 %v1933_v39, %v1865_v35  ;;  %2193 = vmatmul.bf16.gmra.mxu3 %v11111_v41  ;;  %2242 = vmatmul.bf16.gmra.mxu0 %v11112_v5  ;;  %v11117_v35 = vmax.f32 %v11115_v29, %v11116_v30  ;;  %v11119_v14 = vld [vmem:[#allocation106_spill] sm:$0xff]  ;;  %v11124_v29 = vld [vmem:[#allocation51_spill] sm:$0xff] }
 0x34d   :  { %2311 = vmatmul.bf16.gmra.mxu1 %v11113_v44  ;;  %v7949_v30 = vld [vmem:[#allocation2 + $0x230] sm:$0xff] }
 0x34e   :  { %11110 = vst [vmem:[#allocation99_spill] sm:$0xff] %v7914_v7  ;;  %2380 = vmatmul.bf16.gmra.mxu2 %v11114_v59  ;;  %v1801_v59 = vadd.f32 %v7848_v13, %v11119_v14  ;;  %v11128_v13 = vld [vmem:[#allocation57_spill] sm:$0xff] }
 0x34f   :  { %v7920_v22 = vpop.f32.mrf.mxu3  ;;  %11130 = vst [vmem:[#allocation97_spill] sm:$0xff] %v7949_v30 }
 0x351   :  { %v2002_v2 = vpop.f32.mrf.mxu2  ;;  %v1866_v50 = vpop.f32.mrf.mxu0 }
 0x352   :  { %v2003_v23 = vadd.f32 %v2002_v2, %v1934_v42  ;;  %v1867_v24 = vadd.f32 %v1866_v50, %v1798_v52  ;;  %v1935_v54 = vpop.f32.mrf.mxu1  ;;  %v11120_v42 = vld [vmem:[#allocation85_spill] sm:$0xff]  ;;  %v11121_v2 = vld [vmem:[#allocation104_spill] sm:$0xff] }
 0x353   :  { %v11122_v52 = vmax.f32 %v11120_v42, %v11121_v2  ;;  %v11132_v42 = vld [vmem:[#allocation105_spill] sm:$0xff] }
 0x354   :  { %v7927_v39 = vmax.f32 %v11117_v35, %v2003_v23  ;;  %v1936_v18 = vadd.f32 %v1935_v54, %v1867_v24  ;;  %v11125_v23 = vld [vmem:[#allocation36_spill] sm:$0xff]  ;;  %v11127_v54 = vld [vmem:[#allocation37_spill] sm:$0xff] }
 0x355   :  { %v7940_v24 = vld [vmem:[#allocation2 + $0x238] sm:$0xff] }
 0x356   :  { %11118 = vst [vmem:[#allocation70_spill] sm:$0xff] %v7927_v39  ;;  %2425 = vmatpush.bf16.msrb.mxu3 %v7940_v24 }
 0x357   :  { %v7929_v21 = vpop.f32.mrf.mxu3  ;;  %11126 = vst [vmem:[#allocation46_spill] sm:$0xff] %v7940_v24 }
 0x359   :  { %v2004_v7 = vpop.f32.mrf.mxu2  ;;  %v1869_v8 = vpop.f32.mrf.mxu0 }
 0x35a   :  { %v2005_v36 = vadd.f32 %v2004_v7, %v1936_v18  ;;  %v1870_v60 = vadd.f32 %v1869_v8, %v1801_v59  ;;  %v1938_v19 = vpop.f32.mrf.mxu1  ;;  %v11129_v7 = vld [vmem:[#allocation108_spill] sm:$0xff]  ;;  %2426 = vmatpush.bf16.msrb.mxu3 %v7949_v30 }
 0x35b   :  { %v1803_v59 = vadd.f32 %v7861_v46, %v11129_v7  ;;  %v11136_v7 = vld [vmem:[#allocation110_spill] sm:$0xff] }
 0x35c   :  { %v7936_v50 = vmax.f32 %v11122_v52, %v2005_v36  ;;  %v1939_v10 = vadd.f32 %v1938_v19, %v1870_v60  ;;  %2198 = vmatmul.bf16.gmra.mxu3 %v11124_v29  ;;  %2247 = vmatmul.bf16.gmra.mxu0 %v11125_v23  ;;  %v11131_v19 = vld [vmem:[#allocation86_spill] sm:$0xff]  ;;  %v11152_v29 = vld [vmem:[#allocation89_spill] sm:$0xff] }
 0x35d   :  { %2316 = vmatmul.bf16.gmra.mxu1 %v11127_v54  ;;  %v11133_v2 = vmax.f32 %v11131_v19, %v11132_v42 }
 0x35e   :  { %11123 = vst [vmem:[#allocation95_spill] sm:$0xff] %v7936_v50  ;;  %2385 = vmatmul.bf16.gmra.mxu2 %v11128_v13  ;;  %v7957_v50 = vld [vmem:[#allocation2 + $0x228] sm:$0xff] }
 0x35f   :  { %v7945_v8 = vpop.f32.mrf.mxu3  ;;  %11135 = vst [vmem:[#allocation98_spill] sm:$0xff] %v7957_v50  ;;  %2427 = vmatpush.bf16.msrb.mxu3 %v7957_v50 }
 0x361   :  { %v2007_v36 = vpop.f32.mrf.mxu2  ;;  %v1871_v18 = vpop.f32.mrf.mxu0 }
 0x362   :  { %v2008_v35 = vadd.f32 %v2007_v36, %v1939_v10  ;;  %v1872_v14 = vadd.f32 %v1871_v18, %v1803_v59  ;;  %v1940_v60 = vpop.f32.mrf.mxu1  ;;  %v1806_v10 = vadd.f32 %v7876_v51, %v11136_v7  ;;  %v7964_v59 = vld [vmem:[#allocation2 + $0x220] sm:$0xff]  ;;  %v11143_v51 = vld [vmem:[#allocation40_spill] sm:$0xff] }
 0x363   :  { %11137 = vst [vmem:[#allocation100_spill] sm:$0xff] %v7964_v59  ;;  %2428 = vmatpush.bf16.msrb.mxu3 %v7964_v59  ;;  %v11144_v7 = vld [vmem:[#allocation41_spill] sm:$0xff] }
 0x364   :  { %v7955_v52 = vmax.f32 %v11133_v2, %v2008_v35  ;;  %v1941_v13 = vadd.f32 %v1940_v60, %v1872_v14  ;;  %v11138_v35 = vld [vmem:[#allocation87_spill] sm:$0xff]  ;;  %v11142_v2 = vld [vmem:[#allocation12_spill] sm:$0xff] }
 0x365   :  { %v11139_v14 = vld [vmem:[#allocation107_spill] sm:$0xff] }
 0x366   :  { %11134 = vst [vmem:[#allocation27_spill] sm:$0xff] %v7955_v52  ;;  %v11140_v60 = vmax.f32 %v11138_v35, %v11139_v14 }
 0x367   :  { %v7960_v46 = vpop.f32.mrf.mxu3  ;;  %2754 = vmatpush.bf16.msra.mxu3 %v7940_v24 }
 0x369   :  { %v2009_v36 = vpop.f32.mrf.mxu2  ;;  %v1874_v39 = vpop.f32.mrf.mxu0 }
 0x36a   :  { %v2010_v18 = vadd.f32 %v2009_v36, %v1941_v13  ;;  %v1875_v11 = vadd.f32 %v1874_v39, %v1806_v10  ;;  %v1943_v61 = vpop.f32.mrf.mxu1  ;;  %v11145_v13 = vld [vmem:[#allocation59_spill] sm:$0xff]  ;;  %v11146_v10 = vld [vmem:[#allocation112_spill] sm:$0xff] }
 0x36b   :  { %2755 = vmatpush.bf16.msra.mxu3 %v7949_v30  ;;  %v1808_v36 = vadd.f32 %v7885_v37, %v11146_v10  ;;  %v11151_v30 = vld [vmem:[#allocation114_spill] sm:$0xff] }
 0x36c   :  { %v7970_v19 = vmax.f32 %v11140_v60, %v2010_v18  ;;  %v1944_v42 = vadd.f32 %v1943_v61, %v1875_v11  ;;  %2203 = vmatmul.bf16.gmra.mxu3 %v11142_v2  ;;  %2252 = vmatmul.bf16.gmra.mxu0 %v11143_v51  ;;  %v11147_v11 = vld [vmem:[#allocation88_spill] sm:$0xff]  ;;  %v1811_v37 = vadd.f32 %v7898_v55, %v11151_v30  ;;  %v11159_v55 = vld [vmem:[#allocation61_spill] sm:$0xff] }
 0x36d   :  { %2321 = vmatmul.bf16.gmra.mxu1 %v11144_v7 }
 0x36e   :  { %11141 = vst [vmem:[#allocation33_spill] sm:$0xff] %v7970_v19  ;;  %2390 = vmatmul.bf16.gmra.mxu2 %v11145_v13  ;;  %v11148_v19 = vld [vmem:[#allocation109_spill] sm:$0xff] }
 0x36f   :  { %v7977_v39 = vpop.f32.mrf.mxu3  ;;  %v11149_v52 = vmax.f32 %v11147_v11, %v11148_v19  ;;  %2756 = vmatpush.bf16.msra.mxu3 %v7957_v50  ;;  %v11154_v19 = vmax.f32 %v11152_v29, %v11153_v15  ;;  %v11158_v11 = vld [vmem:[#allocation45_spill] sm:$0xff]  ;;  %v1813_v15 = vadd.f32 %v7907_v20, %v7691_v40  ;;  %v11187_v50 = vld [vmem:[#allocation72_spill] sm:$0xff] }
 0x371   :  { %v2012_v18 = vpop.f32.mrf.mxu2  ;;  %v1876_v14 = vpop.f32.mrf.mxu0 }
 0x372   :  { %v2013_v35 = vadd.f32 %v2012_v18, %v1944_v42  ;;  %v1877_v60 = vadd.f32 %v1876_v14, %v1808_v36  ;;  %v1945_v61 = vpop.f32.mrf.mxu1 }
 0x373   :  { %2757 = vmatpush.bf16.msra.mxu3 %v7964_v59  ;;  %v11179_v59 = vld [vmem:[#allocation64_spill] sm:$0xff] }
 0x374   :  { %v7985_v24 = vmax.f32 %v11149_v52, %v2013_v35  ;;  %v1946_v13 = vadd.f32 %v1945_v61, %v1877_v60  ;;  %v11156_v60 = vld [vmem:[#allocation16_spill] sm:$0xff] }
 0x375   :  { %v11157_v61 = vld [vmem:[#allocation44_spill] sm:$0xff] }
 0x376   :  { %11150 = vst [vmem:[#allocation32_spill] sm:$0xff] %v7985_v24 }
 0x377   :  { %v7988_v2 = vpop.f32.mrf.mxu3  ;;  %2758 = vmatpush.bf16.msra.mxu3 %v7695_v33 }
 0x379   :  { %v2014_v10 = vpop.f32.mrf.mxu2  ;;  %v1879_v18 = vpop.f32.mrf.mxu0 }
 0x37a   :  { %v2015_v42 = vadd.f32 %v2014_v10, %v1946_v13  ;;  %v1880_v36 = vadd.f32 %v1879_v18, %v1811_v37  ;;  %v1948_v14 = vpop.f32.mrf.mxu1  ;;  %v11161_v18 = vld [vmem:[#allocation113_spill] sm:$0xff] }
 0x37b   :  { %2759 = vmatpush.bf16.msra.mxu3 %v7705_v63 }
 0x37c   :  { %v7996_v52 = vmax.f32 %v11154_v19, %v2015_v42  ;;  %v1949_v35 = vadd.f32 %v1948_v14, %v1880_v36  ;;  %2208 = vmatmul.bf16.gmra.mxu3 %v11156_v60  ;;  %2257 = vmatmul.bf16.gmra.mxu0 %v11157_v61  ;;  %v11160_v42 = vld [vmem:[#allocation90_spill] sm:$0xff] }
 0x37d   :  { %2326 = vmatmul.bf16.gmra.mxu1 %v11158_v11  ;;  %v11162_v36 = vmax.f32 %v11160_v42, %v11161_v18  ;;  %v11167_v42 = vld [vmem:[#allocation49_spill] sm:$0xff] }
 0x37e   :  { %11155 = vst [vmem:[#allocation103_spill] sm:$0xff] %v7996_v52  ;;  %2395 = vmatmul.bf16.gmra.mxu2 %v11159_v55 }
 0x37f   :  { %v8003_v30 = vpop.f32.mrf.mxu3  ;;  %2760 = vmatpush.bf16.msra.mxu3 %v7713_v48  ;;  %v11168_v48 = vld [vmem:[#allocation56_spill] sm:$0xff] }
 0x381   :  { %v2017_v29 = vpop.f32.mrf.mxu2  ;;  %v1881_v37 = vpop.f32.mrf.mxu0 }
 0x382   :  { %v2018_v13 = vadd.f32 %v2017_v29, %v1949_v35  ;;  %v1882_v33 = vadd.f32 %v1881_v37, %v1813_v15  ;;  %v1950_v10 = vpop.f32.mrf.mxu1  ;;  %v11164_v15 = vld [vmem:[#allocation115_spill] sm:$0xff] }
 0x383   :  { %2761 = vmatpush.bf16.msra.mxu3 %v7720_v56  ;;  %v11165_v29 = vmax.f32 %v7349_v32, %v11164_v15  ;;  %v11170_v56 = vld [vmem:[#allocation63_spill] sm:$0xff] }
 0x384   :  { %v8011_v14 = vmax.f32 %v11162_v36, %v2018_v13  ;;  %v1951_v19 = vadd.f32 %v1950_v10, %v1882_v33  ;;  %v11169_v33 = vld [vmem:[#allocation50_spill] sm:$0xff]  ;;  %v6482_v10 = vld [vmem:[#allocation2 + $0x1d8] sm:$0xff] }
 0x386   :  { %11163 = vst [vmem:[#allocation83_spill] sm:$0xff] %v8011_v14  ;;  %v11171_v14 = vld [vmem:[#allocation53_spill] sm:$0xff] }
 0x387   :  { %v8014_v55 = vpop.f32.mrf.mxu3 }
 0x389   :  { %v2019_v63 = vpop.f32.mrf.mxu2  ;;  %v2223_v40 = vpop.f32.mrf.mxu0 }
 0x38a   :  { %v2020_v52 = vadd.f32 %v2019_v63, %v1951_v19  ;;  %v2224_v20 = vadd.f32 %v2223_v40, %v7920_v22  ;;  %v2292_v35 = vpop.f32.mrf.mxu1  ;;  %v6483_v63 = vld [vmem:[#allocation2 + $0x1d0] sm:$0xff] }
 0x38c   :  { %v8021_v37 = vmax.f32 %v11165_v29, %v2020_v52  ;;  %v2293_v13 = vadd.f32 %v2292_v35, %v2224_v20  ;;  %2262 = vmatmul.bf16.gmra.mxu0 %v11167_v42  ;;  %5920 = vmatmul.msk.bf16.vlgmr.msrb.gmra.mxu3 %vm728_vm0, %v11168_v48  ;;  %v6484_v20 = vld [vmem:[#allocation2 + $0x1c8] sm:$0xff] }
 0x38d   :  { %2331 = vmatmul.bf16.gmra.mxu1 %v11169_v33  ;;  %3087 = vmatpush.bf16.msrb.mxu3 %v6482_v10 }
 0x38e   :  { %11166 = vst [vmem:[#allocation101_spill] sm:$0xff] %v8021_v37  ;;  %2400 = vmatmul.bf16.gmra.mxu2 %v11170_v56 }
 0x38f   :  { %v8028_v18 = vpop.f32.mrf.mxu3 }
 0x391   :  { %v2361_v22 = vpop.f32.mrf.mxu2  ;;  %v2225_v32 = vpop.f32.mrf.mxu0  ;;  %3088 = vmatpush.bf16.msrb.mxu3 %v6483_v63 }
 0x392   :  { %v8030_v36 = vadd.f32 %v2361_v22, %v2293_v13  ;;  %v2226_v52 = vadd.f32 %v2225_v32, %v7929_v21  ;;  %v2294_v19 = vpop.f32.mrf.mxu1  ;;  %v6485_v13 = vld [vmem:[#allocation2 + $0x1c0] sm:$0xff]  ;;  %v11172_v21 = vld [vmem:[#allocation58_spill] sm:$0xff]  ;;  %v11173_v32 = vld [vmem:[#allocation68_spill] sm:$0xff] }
 0x394   :  { %v2295_v40 = vadd.f32 %v2294_v19, %v2226_v52 }
 0x395   :  { %3089 = vmatpush.bf16.msrb.mxu3 %v6484_v20 }
 0x397   :  { %v8033_v35 = vpop.f32.mrf.mxu3 }
 0x399   :  { %v2363_v15 = vpop.f32.mrf.mxu2  ;;  %v2228_v10 = vpop.f32.mrf.mxu0  ;;  %3090 = vmatpush.bf16.msrb.mxu3 %v6485_v13 }
 0x39a   :  { %v8035_v29 = vadd.f32 %v2363_v15, %v2295_v40  ;;  %v2229_v56 = vadd.f32 %v2228_v10, %v7945_v8  ;;  %v2297_v37 = vpop.f32.mrf.mxu1 }
 0x39c   :  { %v2298_v22 = vadd.f32 %v2297_v37, %v2229_v56  ;;  %2267 = vmatmul.bf16.gmra.mxu0 %v11171_v14  ;;  %5921 = vmatmul.msk.bf16.gmra.mxu3 %vm728_vm0, %v11172_v21  ;;  %v11177_v21 = vld [vmem:[#allocation62_spill] sm:$0xff] }
 0x39d   :  { %2336 = vmatmul.bf16.gmra.mxu1 %v11034_v38  ;;  %3091 = vmatpush.bf16.msrb.mxu3 %v7751_v6 }
 0x39e   :  { %2405 = vmatmul.bf16.gmra.mxu2 %v11173_v32 }
 0x39f   :  { %v8044_v52 = vpop.f32.mrf.mxu3 }
 0x3a1   :  { %v2366_v19 = vpop.f32.mrf.mxu2  ;;  %v2230_v8 = vpop.f32.mrf.mxu0  ;;  %3092 = vmatpush.bf16.msrb.mxu3 %v7761_v4 }
 0x3a2   :  { %v8046_v63 = vadd.f32 %v2366_v19, %v2298_v22  ;;  %v2231_v40 = vadd.f32 %v2230_v8, %v7960_v46  ;;  %v2299_v37 = vpop.f32.mrf.mxu1  ;;  %v11174_v19 = vld [vmem:[#allocation20_spill] sm:$0xff] }
 0x3a3   :  { %v11175_v46 = vld [vmem:[#allocation60_spill] sm:$0xff] }
 0x3a4   :  { %v2300_v56 = vadd.f32 %v2299_v37, %v2231_v40 }
 0x3a5   :  { %3093 = vmatpush.bf16.msrb.mxu3 %v7771_v25 }
 0x3a7   :  { %v8051_v20 = vpop.f32.mrf.mxu3 }
 0x3a9   :  { %v2368_v15 = vpop.f32.mrf.mxu2  ;;  %v2233_v6 = vpop.f32.mrf.mxu0  ;;  %3094 = vmatpush.bf16.msrb.mxu3 %v7776_v9 }
 0x3aa   :  { %v8053_v10 = vadd.f32 %v2368_v15, %v2300_v56  ;;  %v2234_v13 = vadd.f32 %v2233_v6, %v7977_v39  ;;  %v2302_v32 = vpop.f32.mrf.mxu1 }
 0x3ac   :  { %v2303_v22 = vadd.f32 %v2302_v32, %v2234_v13  ;;  %2272 = vmatmul.bf16.gmra.mxu0 %v11174_v19  ;;  %5922 = vmatmul.msk.bf16.gmra.mxu3 %vm728_vm0, %v11175_v46  ;;  %v11176_v46 = vld [vmem:[#allocation24_spill] sm:$0xff] }
 0x3ad   :  { %2341 = vmatmul.bf16.gmra.mxu1 %v11043_v26 }
 0x3ae   :  { %2410 = vmatmul.bf16.gmra.mxu2 %v11045_v17 }
 0x3af   :  { %v8062_v4 = vpop.f32.mrf.mxu3 }
 0x3b1   :  { %v2371_v25 = vpop.f32.mrf.mxu2  ;;  %v2235_v40 = vpop.f32.mrf.mxu0 }
 0x3b2   :  { %v8064_v8 = vadd.f32 %v2371_v25, %v2303_v22  ;;  %v2236_v39 = vadd.f32 %v2235_v40, %v7988_v2  ;;  %v2304_v37 = vpop.f32.mrf.mxu1  ;;  %v11178_v2 = vld [vmem:[#allocation73_spill] sm:$0xff] }
 0x3b4   :  { %v2305_v9 = vadd.f32 %v2304_v37, %v2236_v39 }
 0x3b7   :  { %v8067_v32 = vpop.f32.mrf.mxu3 }
 0x3b9   :  { %v2373_v56 = vpop.f32.mrf.mxu2  ;;  %v2238_v6 = vpop.f32.mrf.mxu0 }
 0x3ba   :  { %v8069_v15 = vadd.f32 %v2373_v56, %v2305_v9  ;;  %v2239_v13 = vadd.f32 %v2238_v6, %v8003_v30  ;;  %v2307_v24 = vpop.f32.mrf.mxu1 }
 0x3bc   :  { %v2308_v17 = vadd.f32 %v2307_v24, %v2239_v13  ;;  %2277 = vmatmul.bf16.gmra.mxu0 %v11176_v46  ;;  %5923 = vmatmul.msk.bf16.gmra.mxu3 %vm728_vm0, %v11177_v21 }
 0x3bd   :  { %2346 = vmatmul.bf16.gmra.mxu1 %v11054_v34 }
 0x3be   :  { %2415 = vmatmul.bf16.gmra.mxu2 %v11178_v2 }
 0x3bf   :  { %v8077_v22 = vpop.f32.mrf.mxu3 }
 0x3c1   :  { %v2376_v25 = vpop.f32.mrf.mxu2  ;;  %v2240_v39 = vpop.f32.mrf.mxu0 }
 0x3c2   :  { %v8079_v40 = vadd.f32 %v2376_v25, %v2308_v17  ;;  %v2241_v37 = vadd.f32 %v2240_v39, %v8014_v55  ;;  %v2309_v30 = vpop.f32.mrf.mxu1  ;;  %v11180_v17 = vld [vmem:[#allocation11_spill] sm:$0xff]  ;;  %v8092_v55 = vld [vmem:[#allocation2 + $0x178] sm:$0xff] }
 0x3c3   :  { %11181 = vst [vmem:[#allocation84_spill] sm:$0xff] %v8092_v55 }
 0x3c4   :  { %v2310_v9 = vadd.f32 %v2309_v30, %v2241_v37  ;;  %v8100_v30 = vld [vmem:[#allocation2 + $0x170] sm:$0xff] }
 0x3c5   :  { %11182 = vst [vmem:[#allocation102_spill] sm:$0xff] %v8100_v30 }
 0x3c7   :  { %v8082_v24 = vpop.f32.mrf.mxu3 }
 0x3c9   :  { %v2378_v56 = vpop.f32.mrf.mxu2  ;;  %v2243_v13 = vpop.f32.mrf.mxu0 }
 0x3ca   :  { %v8084_v6 = vadd.f32 %v2378_v56, %v2310_v9  ;;  %v2244_v21 = vadd.f32 %v2243_v13, %v8028_v18  ;;  %v2312_v48 = vpop.f32.mrf.mxu1  ;;  %v8103_v56 = vld [vmem:[#allocation2 + $0x168] sm:$0xff] }
 0x3cb   :  { %11183 = vst [vmem:[#allocation106_spill] sm:$0xff] %v8103_v56 }
 0x3cc   :  { %v2313_v2 = vadd.f32 %v2312_v48, %v2244_v21  ;;  %5924 = vmatmul.msk.bf16.gmra.mxu3 %vm728_vm0, %v11179_v59  ;;  %2555 = vmatmul.bf16.vlgmr.msrb.gmra.mxu0 %v11180_v17 }
 0x3cd   :  { %2624 = vmatmul.bf16.vlgmr.msrb.gmra.mxu1 %v11065_v0 }
 0x3ce   :  { %2693 = vmatmul.bf16.vlgmr.msrb.gmra.mxu2 %v10970_v43 }
 0x3cf   :  { %3417 = vmatpush.bf16.msrb.mxu2 %v8092_v55  ;;  %v8095_v25 = vpop.f32.mrf.mxu3 }
 0x3d1   :  { %v2381_v39 = vpop.f32.mrf.mxu2  ;;  %v2245_v18 = vpop.f32.mrf.mxu0 }
 0x3d2   :  { %v8097_v37 = vadd.f32 %v2381_v39, %v2313_v2  ;;  %v2246_v48 = vadd.f32 %v2245_v18, %v8033_v35  ;;  %v2314_v21 = vpop.f32.mrf.mxu1  ;;  %v8111_v35 = vld [vmem:[#allocation2 + $0x160] sm:$0xff] }
 0x3d3   :  { %3418 = vmatpush.bf16.msrb.mxu2 %v8100_v30  ;;  %11184 = vst [vmem:[#allocation85_spill] sm:$0xff] %v8111_v35  ;;  %v11185_v30 = vld [vmem:[#allocation69_spill] sm:$0xff] }
 0x3d4   :  { %v2315_v9 = vadd.f32 %v2314_v21, %v2246_v48  ;;  %v11186_v48 = vld [vmem:[#allocation15_spill] sm:$0xff] }
 0x3d7   :  { %3419 = vmatpush.bf16.msrb.mxu2 %v8103_v56  ;;  %v8106_v13 = vpop.f32.mrf.mxu3 }
 0x3d9   :  { %v2383_v55 = vpop.f32.mrf.mxu2  ;;  %v2248_v2 = vpop.f32.mrf.mxu0 }
 0x3da   :  { %v8108_v43 = vadd.f32 %v2383_v55, %v2315_v9  ;;  %v2249_v39 = vadd.f32 %v2248_v2, %v8044_v52  ;;  %v2317_v59 = vpop.f32.mrf.mxu1  ;;  %v6490_v55 = vld [vmem:[#allocation2 + $0x158] sm:$0xff] }
 0x3db   :  { %3420 = vmatpush.bf16.msrb.mxu2 %v8111_v35 }
 0x3dc   :  { %v2318_v18 = vadd.f32 %v2317_v59, %v2249_v39  ;;  %5925 = vmatmul.msk.bf16.gmra.mxu3 %vm728_vm0, %v11185_v30  ;;  %2560 = vmatmul.bf16.gmra.mxu0 %v11186_v48  ;;  %v6491_v39 = vld [vmem:[#allocation2 + $0x150] sm:$0xff]  ;;  %v6492_v30 = vld [vmem:[#allocation2 + $0x148] sm:$0xff] }
 0x3dd   :  { %2629 = vmatmul.bf16.gmra.mxu1 %v11072_v1 }
 0x3de   :  { %2698 = vmatmul.bf16.gmra.mxu2 %v10972_v27 }
 0x3df   :  { %3421 = vmatpush.bf16.msrb.mxu2 %v6490_v55  ;;  %v8119_v21 = vpop.f32.mrf.mxu3 }
 0x3e1   :  { %v2386_v52 = vpop.f32.mrf.mxu2  ;;  %v2250_v2 = vpop.f32.mrf.mxu0 }
 0x3e2   :  { %v8121_v9 = vadd.f32 %v2386_v52, %v2318_v18  ;;  %v2251_v35 = vadd.f32 %v2250_v2, %v8051_v20  ;;  %v2319_v59 = vpop.f32.mrf.mxu1  ;;  %v6493_v18 = vld [vmem:[#allocation2 + $0x140] sm:$0xff]  ;;  %v11188_v20 = vld [vmem:[#allocation19_spill] sm:$0xff] }
 0x3e3   :  { %3422 = vmatpush.bf16.msrb.mxu2 %v6491_v39 }
 0x3e4   :  { %v2320_v56 = vadd.f32 %v2319_v59, %v2251_v35 }
 0x3e7   :  { %3423 = vmatpush.bf16.msrb.mxu2 %v6492_v30  ;;  %v8124_v48 = vpop.f32.mrf.mxu3 }
 0x3e9   :  { %v2388_v1 = vpop.f32.mrf.mxu2  ;;  %v2253_v55 = vpop.f32.mrf.mxu0 }
 0x3ea   :  { %v8126_v27 = vadd.f32 %v2388_v1, %v2320_v56  ;;  %v2254_v0 = vadd.f32 %v2253_v55, %v8062_v4  ;;  %v2322_v17 = vpop.f32.mrf.mxu1 }
 0x3eb   :  { %3424 = vmatpush.bf16.msrb.mxu2 %v6493_v18 }
 0x3ec   :  { %v2323_v52 = vadd.f32 %v2322_v17, %v2254_v0  ;;  %5926 = vmatmul.msk.bf16.gmra.mxu3 %vm728_vm0, %v11187_v50  ;;  %2565 = vmatmul.bf16.gmra.mxu0 %v11188_v20 }
 0x3ed   :  { %2634 = vmatmul.bf16.gmra.mxu1 %v11088_v16  ;;  %v11189_v16 = vld [vmem:[#allocation74_spill] sm:$0xff] }
 0x3ee   :  { %2703 = vmatmul.bf16.gmra.mxu2 %v11089_v3 }
 0x3ef   :  { %v8134_v30 = vpop.f32.mrf.mxu3 }
 0x3f1   :  { %v2391_v1 = vpop.f32.mrf.mxu2  ;;  %v2255_v35 = vpop.f32.mrf.mxu0 }
 0x3f2   :  { %v8136_v56 = vadd.f32 %v2391_v1, %v2323_v52  ;;  %v2256_v4 = vadd.f32 %v2255_v35, %v8067_v32  ;;  %v2324_v2 = vpop.f32.mrf.mxu1  ;;  %v11190_v52 = vld [vmem:[#allocation23_spill] sm:$0xff] }
 0x3f4   :  { %v2325_v59 = vadd.f32 %v2324_v2, %v2256_v4 }
 0x3f7   :  { %v8139_v0 = vpop.f32.mrf.mxu3 }
 0x3f9   :  { %v2393_v17 = vpop.f32.mrf.mxu2  ;;  %v2258_v55 = vpop.f32.mrf.mxu0 }
 0x3fa   :  { %v8141_v39 = vadd.f32 %v2393_v17, %v2325_v59  ;;  %v2259_v18 = vadd.f32 %v2258_v55, %v8077_v22  ;;  %v2327_v50 = vpop.f32.mrf.mxu1 }
 0x3fc   :  { %v2328_v3 = vadd.f32 %v2327_v50, %v2259_v18  ;;  %5927 = vmatmul.msk.bf16.gmra.mxu3 %vm728_vm0, %v11189_v16  ;;  %2570 = vmatmul.bf16.gmra.mxu0 %v11190_v52  ;;  %v11191_v52 = vld [vmem:[#allocation75_spill] sm:$0xff] }
 0x3fd   :  { %2639 = vmatmul.bf16.gmra.mxu1 %v11099_v53 }
 0x3fe   :  { %2708 = vmatmul.bf16.gmra.mxu2 %v11100_v57 }
 0x3ff   :  { %v8149_v32 = vpop.f32.mrf.mxu3 }
 0x401   :  { %v2396_v1 = vpop.f32.mrf.mxu2  ;;  %v2260_v4 = vpop.f32.mrf.mxu0 }
 0x402   :  { %v8151_v35 = vadd.f32 %v2396_v1, %v2328_v3  ;;  %v2261_v2 = vadd.f32 %v2260_v4, %v8082_v24  ;;  %v2329_v22 = vpop.f32.mrf.mxu1 }
 0x404   :  { %v2330_v59 = vadd.f32 %v2329_v22, %v2261_v2 }
 0x407   :  { %v8154_v50 = vpop.f32.mrf.mxu3 }
 0x409   :  { %v2398_v17 = vpop.f32.mrf.mxu2  ;;  %v2263_v18 = vpop.f32.mrf.mxu0 }
 0x40a   :  { %v8156_v55 = vadd.f32 %v2398_v17, %v2330_v59  ;;  %v2264_v16 = vadd.f32 %v2263_v18, %v8095_v25  ;;  %v2332_v53 = vpop.f32.mrf.mxu1  ;;  %v11192_v25 = vld [vmem:[#allocation116_spill] sm:$0xff] }
 0x40c   :  { %v2333_v57 = vadd.f32 %v2332_v53, %v2264_v16  ;;  %5928 = vmatmul.msk.bf16.gmra.mxu3 %vm728_vm0, %v11191_v52  ;;  %2575 = vmatmul.bf16.gmra.mxu0 %v11064_v47  ;;  %v11195_v16 = vld [vmem:[#allocation77_spill] sm:$0xff] }
 0x40d   :  { %2644 = vmatmul.bf16.gmra.mxu1 %v11112_v5 }
 0x40e   :  { %2713 = vmatmul.bf16.gmra.mxu2 %v11113_v44 }
 0x40f   :  { %v2430_v3 = vpop.f32.mrf.mxu3 }
 0x410   :  { %v8165_v1 = vadd.f32 %v2430_v3, %v8030_v36  ;;  %v11194_v36 = vld [vmem:[#allocation76_spill] sm:$0xff] }
 0x411   :  { %v2401_v24 = vpop.f32.mrf.mxu2  ;;  %v2265_v2 = vpop.f32.mrf.mxu0 }
 0x412   :  { %v8167_v4 = vadd.f32 %v2401_v24, %v2333_v57  ;;  %v2266_v53 = vadd.f32 %v2265_v2, %v8106_v13  ;;  %v2334_v22 = vpop.f32.mrf.mxu1 }
 0x414   :  { %v2335_v59 = vadd.f32 %v2334_v22, %v2266_v53 }
 0x417   :  { %v2432_v17 = vpop.f32.mrf.mxu3 }
 0x418   :  { %v8173_v52 = vadd.f32 %v2432_v17, %v8035_v29 }
 0x419   :  { %v2403_v18 = vpop.f32.mrf.mxu2  ;;  %v2268_v5 = vpop.f32.mrf.mxu0 }
 0x41a   :  { %11193 = vst [vmem:[#allocation104_spill] sm:$0xff] %v8173_v52  ;;  %v8175_v44 = vadd.f32 %v2403_v18, %v2335_v59  ;;  %v2269_v3 = vadd.f32 %v2268_v5, %v8119_v21  ;;  %v2337_v24 = vpop.f32.mrf.mxu1  ;;  %v11196_v5 = vld [vmem:[#allocation93_spill] sm:$0xff]  ;;  %v11199_v21 = vld [vmem:[#allocation79_spill] sm:$0xff] }
 0x41c   :  { %v2338_v47 = vadd.f32 %v2337_v24, %v2269_v3  ;;  %5929 = vmatmul.msk.bf16.gmra.mxu3 %vm728_vm0, %v11195_v16  ;;  %2580 = vmatmul.bf16.gmra.mxu0 %v11071_v45 }
 0x41d   :  { %2649 = vmatmul.bf16.gmra.mxu1 %v11125_v23 }
 0x41e   :  { %2718 = vmatmul.bf16.gmra.mxu2 %v11127_v54 }
 0x41f   :  { %v2435_v29 = vpop.f32.mrf.mxu3 }
 0x420   :  { %v8186_v2 = vadd.f32 %v2435_v29, %v8046_v63  ;;  %v11198_v63 = vld [vmem:[#allocation96_spill] sm:$0xff] }
 0x421   :  { %v2406_v13 = vpop.f32.mrf.mxu2  ;;  %v2270_v22 = vpop.f32.mrf.mxu0 }
 0x422   :  { %v8188_v53 = vadd.f32 %v2406_v13, %v2338_v47  ;;  %v2271_v59 = vadd.f32 %v2270_v22, %v8124_v48  ;;  %v2339_v17 = vpop.f32.mrf.mxu1 }
 0x424   :  { %v2340_v18 = vadd.f32 %v2339_v17, %v2271_v59 }
 0x427   :  { %v2437_v3 = vpop.f32.mrf.mxu3 }
 0x428   :  { %v8194_v57 = vadd.f32 %v2437_v3, %v8053_v10 }
 0x429   :  { %v2408_v24 = vpop.f32.mrf.mxu2  ;;  %v2273_v16 = vpop.f32.mrf.mxu0 }
 0x42a   :  { %11197 = vst [vmem:[#allocation108_spill] sm:$0xff] %v8194_v57  ;;  %v8196_v54 = vadd.f32 %v2408_v24, %v2340_v18  ;;  %v2274_v29 = vadd.f32 %v2273_v16, %v8134_v30  ;;  %v2342_v13 = vpop.f32.mrf.mxu1  ;;  %v11200_v30 = vld [vmem:[#allocation80_spill] sm:$0xff]  ;;  %v11202_v16 = vld [vmem:[#allocation81_spill] sm:$0xff] }
 0x42c   :  { %v2343_v52 = vadd.f32 %v2342_v13, %v2274_v29  ;;  %5930 = vmatmul.msk.bf16.gmra.mxu3 %vm728_vm0, %v11199_v21  ;;  %2585 = vmatmul.bf16.gmra.mxu0 %v11087_v31 }
 0x42d   :  { %2654 = vmatmul.bf16.gmra.mxu1 %v11143_v51 }
 0x42e   :  { %2723 = vmatmul.bf16.gmra.mxu2 %v11144_v7 }
 0x42f   :  { %v2440_v10 = vpop.f32.mrf.mxu3 }
 0x430   :  { %v8207_v22 = vadd.f32 %v2440_v10, %v8064_v8  ;;  %v11201_v8 = vld [vmem:[#allocation78_spill] sm:$0xff] }
 0x431   :  { %v2411_v48 = vpop.f32.mrf.mxu2  ;;  %v2275_v17 = vpop.f32.mrf.mxu0 }
 0x432   :  { %v8209_v59 = vadd.f32 %v2411_v48, %v2343_v52  ;;  %v2276_v18 = vadd.f32 %v2275_v17, %v8139_v0  ;;  %v2344_v3 = vpop.f32.mrf.mxu1 }
 0x434   :  { %v2345_v24 = vadd.f32 %v2344_v3, %v2276_v18 }
 0x437   :  { %v2442_v29 = vpop.f32.mrf.mxu3 }
 0x438   :  { %v8215_v47 = vadd.f32 %v2442_v29, %v8069_v15 }
 0x439   :  { %v2413_v13 = vpop.f32.mrf.mxu2  ;;  %v2278_v21 = vpop.f32.mrf.mxu0 }
 0x43a   :  { %v8217_v7 = vadd.f32 %v2413_v13, %v2345_v24  ;;  %v2279_v10 = vadd.f32 %v2278_v21, %v8149_v32  ;;  %v2347_v48 = vpop.f32.mrf.mxu1 }
 0x43c   :  { %v2348_v57 = vadd.f32 %v2347_v48, %v2279_v10  ;;  %5931 = vmatmul.msk.bf16.gmra.mxu3 %vm728_vm0, %v11202_v16  ;;  %2590 = vmatmul.bf16.gmra.mxu0 %v11098_v12  ;;  %v11221_v16 = vld [vmem:[#allocation46_spill] sm:$0xff] }
 0x43d   :  { %2659 = vmatmul.bf16.gmra.mxu1 %v11157_v61 }
 0x43e   :  { %2728 = vmatmul.bf16.gmra.mxu2 %v11158_v11 }
 0x43f   :  { %v2445_v15 = vpop.f32.mrf.mxu3 }
 0x440   :  { %v8228_v17 = vadd.f32 %v2445_v15, %v8079_v40 }
 0x441   :  { %v2416_v0 = vpop.f32.mrf.mxu2  ;;  %v2280_v3 = vpop.f32.mrf.mxu0 }
 0x442   :  { %v8230_v18 = vadd.f32 %v2416_v0, %v2348_v57  ;;  %v2281_v21 = vadd.f32 %v2280_v3, %v8154_v50  ;;  %v2349_v24 = vpop.f32.mrf.mxu1  ;;  %v6494_v50 = vld [vmem:[#allocation2 + $0x1f8] sm:$0xff] }
 0x444   :  { %v2350_v29 = vadd.f32 %v2349_v24, %v2281_v21 }
 0x447   :  { %v2447_v13 = vpop.f32.mrf.mxu3 }
 0x448   :  { %v8236_v48 = vadd.f32 %v2447_v13, %v8084_v6  ;;  %v6495_v13 = vld [vmem:[#allocation2 + $0x1f0] sm:$0xff] }
 0x449   :  { %v2418_v10 = vpop.f32.mrf.mxu2  ;;  %v2556_v11 = vpop.f32.mrf.mxu0 }
 0x44a   :  { %11203 = vst [vmem:[#allocation86_spill] sm:$0xff] %v8236_v48  ;;  %v8238_v52 = vadd.f32 %v2418_v10, %v2350_v29  ;;  %v2625_v57 = vpop.f32.mrf.mxu1  ;;  %v8283_v48 = vld [vmem:[#allocation2 + $0x180] sm:$0xff] }
 0x44b   :  { %v2626_v15 = vadd.f32 %v2625_v57, %v2556_v11  ;;  %v6496_v57 = vld [vmem:[#allocation2 + $0x1e8] sm:$0xff] }
 0x44c   :  { %2595 = vmatmul.bf16.gmra.mxu0 %v11111_v41  ;;  %2762 = vmatmul.bf16.vlgmr.msra.gmra.mxu3 %v11066_v62  ;;  %v6497_v62 = vld [vmem:[#allocation2 + $0x1e0] sm:$0xff] }
 0x44d   :  { %2664 = vmatmul.bf16.gmra.mxu1 %v11167_v42  ;;  %3486 = vmatpush.bf16.msra.mxu3 %v6494_v50 }
 0x44e   :  { %2733 = vmatmul.bf16.gmra.mxu2 %v11169_v33 }
 0x44f   :  { %v2450_v6 = vpop.f32.mrf.mxu3 }
 0x450   :  { %v8247_v0 = vadd.f32 %v2450_v6, %v8097_v37 }
 0x451   :  { %v2694_v3 = vpop.f32.mrf.mxu2  ;;  %v2558_v24 = vpop.f32.mrf.mxu0  ;;  %3487 = vmatpush.bf16.msra.mxu3 %v6495_v13 }
 0x452   :  { %11204 = vst [vmem:[#allocation105_spill] sm:$0xff] %v8247_v0  ;;  %v8249_v21 = vadd.f32 %v2694_v3, %v2626_v15  ;;  %v2627_v29 = vpop.f32.mrf.mxu1  ;;  %v11207_v0 = vld [vmem:[#allocation51_spill] sm:$0xff] }
 0x453   :  { %v2628_v10 = vadd.f32 %v2627_v29, %v2558_v24  ;;  %v11208_v24 = vld [vmem:[#allocation43_spill] sm:$0xff]  ;;  %v6356_v29 = vld [vmem:[#allocation2 + $0x258] sm:$0xff] }
 0x454   :  { %2827 = vmatpush.bf16.msra.mxu0 %v6356_v29 }
 0x455   :  { %3488 = vmatpush.bf16.msra.mxu3 %v6496_v57 }
 0x457   :  { %v2452_v40 = vpop.f32.mrf.mxu3 }
 0x458   :  { %v8254_v50 = vadd.f32 %v2452_v40, %v8108_v43  ;;  %v11209_v43 = vld [vmem:[#allocation117_spill] sm:$0xff] }
 0x459   :  { %v2696_v32 = vpop.f32.mrf.mxu2  ;;  %v2561_v6 = vpop.f32.mrf.mxu0  ;;  %3489 = vmatpush.bf16.msra.mxu3 %v6497_v62 }
 0x45a   :  { %11205 = vst [vmem:[#allocation110_spill] sm:$0xff] %v8254_v50  ;;  %v8256_v37 = vadd.f32 %v2696_v32, %v2628_v10  ;;  %v2630_v33 = vpop.f32.mrf.mxu1  ;;  %v6355_v10 = vld [vmem:[#allocation2 + $0x250] sm:$0xff]  ;;  %v11212_v50 = vld [vmem:[#allocation82_spill] sm:$0xff] }
 0x45b   :  { %v2631_v11 = vadd.f32 %v2630_v33, %v2561_v6  ;;  %2828 = vmatpush.bf16.msra.mxu0 %v6355_v10 }
 0x45c   :  { %2600 = vmatmul.bf16.gmra.mxu0 %v11207_v0  ;;  %2767 = vmatmul.bf16.gmra.mxu3 %v11208_v24  ;;  %v8272_v24 = vld [vmem:[#allocation2 + $0x190] sm:$0xff] }
 0x45d   :  { %2669 = vmatmul.bf16.gmra.mxu1 %v11171_v14  ;;  %3490 = vmatpush.bf16.msra.mxu3 %v11209_v43  ;;  %v6354_v43 = vld [vmem:[#allocation2 + $0x248] sm:$0xff] }
 0x45e   :  { %2738 = vmatmul.bf16.gmra.mxu2 %v11034_v38 }
 0x45f   :  { %v2455_v32 = vpop.f32.mrf.mxu3  ;;  %2829 = vmatpush.bf16.msra.mxu0 %v6354_v43 }
 0x460   :  { %v8266_v40 = vadd.f32 %v2455_v32, %v8121_v9 }
 0x461   :  { %v2699_v13 = vpop.f32.mrf.mxu2  ;;  %v2563_v33 = vpop.f32.mrf.mxu0  ;;  %3491 = vmatpush.bf16.msra.mxu3 %v8272_v24 }
 0x462   :  { %11210 = vst [vmem:[#allocation87_spill] sm:$0xff] %v8266_v40  ;;  %v8268_v62 = vadd.f32 %v2699_v13, %v2631_v11  ;;  %v2632_v3 = vpop.f32.mrf.mxu1  ;;  %v6353_v13 = vld [vmem:[#allocation2 + $0x240] sm:$0xff] }
 0x463   :  { %v2633_v38 = vadd.f32 %v2632_v3, %v2563_v33  ;;  %2830 = vmatpush.bf16.msra.mxu0 %v6353_v13 }
 0x465   :  { %3492 = vmatpush.bf16.msra.mxu3 %v11212_v50  ;;  %v11215_v50 = vld [vmem:[#allocation12_spill] sm:$0xff] }
 0x467   :  { %v2457_v9 = vpop.f32.mrf.mxu3  ;;  %3156 = vmatpush.bf16.msrb.mxu0 %v6356_v29  ;;  %v11226_v29 = vld [vmem:[#allocation98_spill] sm:$0xff] }
 0x468   :  { %v8277_v32 = vadd.f32 %v2457_v9, %v8126_v27  ;;  %v11216_v27 = vld [vmem:[#allocation48_spill] sm:$0xff] }
 0x469   :  { %v2701_v11 = vpop.f32.mrf.mxu2  ;;  %v2566_v6 = vpop.f32.mrf.mxu0  ;;  %3493 = vmatpush.bf16.msra.mxu3 %v8283_v48 }
 0x46a   :  { %11213 = vst [vmem:[#allocation107_spill] sm:$0xff] %v8277_v32  ;;  %v8279_v15 = vadd.f32 %v2701_v11, %v2633_v38  ;;  %v2635_v28 = vpop.f32.mrf.mxu1 }
 0x46b   :  { %v2636_v3 = vadd.f32 %v2635_v28, %v2566_v6  ;;  %3157 = vmatpush.bf16.msrb.mxu0 %v6355_v10 }
 0x46c   :  { %2605 = vmatmul.bf16.gmra.mxu0 %v11215_v50  ;;  %2772 = vmatmul.bf16.gmra.mxu3 %v11216_v27 }
 0x46d   :  { %2674 = vmatmul.bf16.gmra.mxu1 %v11174_v19 }
 0x46e   :  { %2743 = vmatmul.bf16.gmra.mxu2 %v11043_v26 }
 0x46f   :  { %v2460_v38 = vpop.f32.mrf.mxu3  ;;  %3158 = vmatpush.bf16.msrb.mxu0 %v6354_v43  ;;  %v11223_v43 = vld [vmem:[#allocation97_spill] sm:$0xff] }
 0x470   :  { %v8291_v33 = vadd.f32 %v2460_v38, %v8136_v56 }
 0x471   :  { %v2704_v9 = vpop.f32.mrf.mxu2  ;;  %v2568_v57 = vpop.f32.mrf.mxu0 }
 0x472   :  { %11217 = vst [vmem:[#allocation112_spill] sm:$0xff] %v8291_v33  ;;  %v8293_v11 = vadd.f32 %v2704_v9, %v2636_v3  ;;  %v2637_v6 = vpop.f32.mrf.mxu1 }
 0x473   :  { %v2638_v32 = vadd.f32 %v2637_v6, %v2568_v57  ;;  %3159 = vmatpush.bf16.msrb.mxu0 %v6353_v13  ;;  %v11222_v57 = vld [vmem:[#allocation52_spill] sm:$0xff] }
 0x477   :  { %v2462_v27 = vpop.f32.mrf.mxu3  ;;  %3160 = vmatpush.bf16.msrb.mxu0 %v11221_v16 }
 0x478   :  { %v8298_v40 = vadd.f32 %v2462_v27, %v8141_v39 }
 0x479   :  { %v2706_v26 = vpop.f32.mrf.mxu2  ;;  %v2571_v56 = vpop.f32.mrf.mxu0 }
 0x47a   :  { %11219 = vst [vmem:[#allocation88_spill] sm:$0xff] %v8298_v40  ;;  %v8300_v10 = vadd.f32 %v2706_v26, %v2638_v32  ;;  %v2640_v9 = vpop.f32.mrf.mxu1  ;;  %v11227_v40 = vld [vmem:[#allocation100_spill] sm:$0xff] }
 0x47b   :  { %v2641_v58 = vadd.f32 %v2640_v9, %v2571_v56  ;;  %3161 = vmatpush.bf16.msrb.mxu0 %v11223_v43  ;;  %v11230_v56 = vld [vmem:[#allocation55_spill] sm:$0xff] }
 0x47c   :  { %2610 = vmatmul.bf16.gmra.mxu0 %v11156_v60  ;;  %2777 = vmatmul.bf16.gmra.mxu3 %v11222_v57 }
 0x47d   :  { %2679 = vmatmul.bf16.gmra.mxu1 %v11176_v46 }
 0x47e   :  { %2748 = vmatmul.bf16.gmra.mxu2 %v11054_v34 }
 0x47f   :  { %v2465_v39 = vpop.f32.mrf.mxu3  ;;  %3162 = vmatpush.bf16.msrb.mxu0 %v11226_v29 }
 0x480   :  { %v8311_v26 = vadd.f32 %v2465_v39, %v8151_v35 }
 0x481   :  { %v2709_v32 = vpop.f32.mrf.mxu2  ;;  %v2573_v27 = vpop.f32.mrf.mxu0 }
 0x482   :  { %11224 = vst [vmem:[#allocation109_spill] sm:$0xff] %v8311_v26  ;;  %v8313_v13 = vadd.f32 %v2709_v32, %v2641_v58  ;;  %v2642_v9 = vpop.f32.mrf.mxu1  ;;  %v11233_v26 = vld [vmem:[#allocation13_spill] sm:$0xff] }
 0x483   :  { %v2643_v3 = vadd.f32 %v2642_v9, %v2573_v27  ;;  %3163 = vmatpush.bf16.msrb.mxu0 %v11227_v40  ;;  %v11231_v27 = vld [vmem:[#allocation56_spill] sm:$0xff]  ;;  %v11232_v9 = vld [vmem:[#allocation11_spill] sm:$0xff] }
 0x487   :  { %v2467_v57 = vpop.f32.mrf.mxu3 }
 0x488   :  { %v8320_v34 = vadd.f32 %v2467_v57, %v8156_v55 }
 0x489   :  { %v2711_v38 = vpop.f32.mrf.mxu2  ;;  %v2576_v39 = vpop.f32.mrf.mxu0 }
 0x48a   :  { %11228 = vst [vmem:[#allocation114_spill] sm:$0xff] %v8320_v34  ;;  %v8322_v35 = vadd.f32 %v2711_v38, %v2643_v3  ;;  %v2645_v33 = vpop.f32.mrf.mxu1 }
 0x48b   :  { %v2646_v28 = vadd.f32 %v2645_v33, %v2576_v39  ;;  %v8377_v33 = vld [vmem:[#allocation2 + $0x200] sm:$0xff] }
 0x48c   :  { %2782 = vmatmul.bf16.gmra.mxu3 %v11230_v56  ;;  %5948 = vmatmul.msk.bf16.vlgmr.msra.gmra.mxu0 %vm728_vm0, %v11231_v27  ;;  %11248 = vst [vmem:[#allocation76_spill] sm:$0xff] %v8377_v33 }
 0x48d   :  { %2957 = vmatmul.bf16.vlgmr.msra.gmra.mxu1 %v11232_v9  ;;  %3555 = vmatpush.bf16.msra.mxu0 %v11221_v16 }
 0x48e   :  { %3026 = vmatmul.bf16.vlgmr.msra.gmra.mxu2 %v11233_v26 }
 0x48f   :  { %v2470_v55 = vpop.f32.mrf.mxu3 }
 0x490   :  { %v8333_v38 = vadd.f32 %v2470_v55, %v8167_v4 }
 0x491   :  { %v2714_v3 = vpop.f32.mrf.mxu2  ;;  %v2578_v32 = vpop.f32.mrf.mxu0  ;;  %3556 = vmatpush.bf16.msra.mxu0 %v11223_v43  ;;  %v11239_v43 = vld [vmem:[#allocation58_spill] sm:$0xff] }
 0x492   :  { %11234 = vst [vmem:[#allocation89_spill] sm:$0xff] %v8333_v38  ;;  %v8335_v57 = vadd.f32 %v2714_v3, %v2646_v28  ;;  %v2647_v56 = vpop.f32.mrf.mxu1  ;;  %v11238_v38 = vld [vmem:[#allocation57_spill] sm:$0xff] }
 0x493   :  { %v2648_v34 = vadd.f32 %v2647_v56, %v2578_v32 }
 0x495   :  { %3557 = vmatpush.bf16.msra.mxu0 %v11226_v29  ;;  %v11240_v29 = vld [vmem:[#allocation15_spill] sm:$0xff] }
 0x497   :  { %v2472_v26 = vpop.f32.mrf.mxu3 }
 0x498   :  { %v8342_v16 = vadd.f32 %v2472_v26, %v8175_v44  ;;  %v11241_v44 = vld [vmem:[#allocation17_spill] sm:$0xff]  ;;  %v8354_v26 = vld [vmem:[#allocation2 + $0x218] sm:$0xff] }
 0x499   :  { %v2716_v58 = vpop.f32.mrf.mxu2  ;;  %v2581_v55 = vpop.f32.mrf.mxu0  ;;  %3558 = vmatpush.bf16.msra.mxu0 %v11227_v40 }
 0x49a   :  { %11236 = vst [vmem:[#allocation111_spill] sm:$0xff] %v8342_v16  ;;  %v8344_v4 = vadd.f32 %v2716_v58, %v2648_v34  ;;  %v2650_v6 = vpop.f32.mrf.mxu1  ;;  %v8367_v16 = vld [vmem:[#allocation2 + $0x208] sm:$0xff] }
 0x49b   :  { %v2651_v39 = vadd.f32 %v2650_v6, %v2581_v55  ;;  %11245 = vst [vmem:[#allocation115_spill] sm:$0xff] %v8367_v16 }
 0x49c   :  { %2787 = vmatmul.bf16.gmra.mxu3 %v11238_v38  ;;  %5949 = vmatmul.msk.bf16.gmra.mxu0 %vm728_vm0, %v11239_v43  ;;  %v8364_v38 = vld [vmem:[#allocation2 + $0x210] sm:$0xff] }
 0x49d   :  { %2962 = vmatmul.bf16.gmra.mxu1 %v11240_v29  ;;  %3559 = vmatpush.bf16.msra.mxu0 %v8354_v26  ;;  %11244 = vst [vmem:[#allocation113_spill] sm:$0xff] %v8364_v38  ;;  %v11250_v29 = vld [vmem:[#allocation60_spill] sm:$0xff] }
 0x49e   :  { %3031 = vmatmul.bf16.gmra.mxu2 %v11241_v44 }
 0x49f   :  { %v2475_v34 = vpop.f32.mrf.mxu3 }
 0x4a0   :  { %v8358_v56 = vadd.f32 %v2475_v34, %v8188_v53 }
 0x4a1   :  { %v2719_v58 = vpop.f32.mrf.mxu2  ;;  %v2583_v6 = vpop.f32.mrf.mxu0  ;;  %3560 = vmatpush.bf16.msra.mxu0 %v8364_v38  ;;  %v11257_v38 = vld [vmem:[#allocation62_spill] sm:$0xff] }
 0x4a2   :  { %11242 = vst [vmem:[#allocation90_spill] sm:$0xff] %v8358_v56  ;;  %v8360_v40 = vadd.f32 %v2719_v58, %v2651_v39  ;;  %v2652_v3 = vpop.f32.mrf.mxu1 }
 0x4a3   :  { %v2653_v44 = vadd.f32 %v2652_v3, %v2583_v6  ;;  %v11249_v6 = vld [vmem:[#allocation59_spill] sm:$0xff] }
 0x4a5   :  { %3561 = vmatpush.bf16.msra.mxu0 %v8367_v16 }
 0x4a7   :  { %v2477_v28 = vpop.f32.mrf.mxu3 }
 0x4a8   :  { %v8371_v53 = vadd.f32 %v2477_v28, %v8196_v54  ;;  %v11251_v54 = vld [vmem:[#allocation21_spill] sm:$0xff] }
 0x4a9   :  { %v2721_v39 = vpop.f32.mrf.mxu2  ;;  %v2586_v58 = vpop.f32.mrf.mxu0  ;;  %3562 = vmatpush.bf16.msra.mxu0 %v8377_v33 }
 0x4aa   :  { %11246 = vst [vmem:[#allocation116_spill] sm:$0xff] %v8371_v53  ;;  %v8373_v34 = vadd.f32 %v2721_v39, %v2653_v44  ;;  %v2655_v32 = vpop.f32.mrf.mxu1 }
 0x4ab   :  { %v2656_v3 = vadd.f32 %v2655_v32, %v2586_v58  ;;  %v11258_v32 = vld [vmem:[#allocation23_spill] sm:$0xff] }
 0x4ac   :  { %2792 = vmatmul.bf16.gmra.mxu3 %v11249_v6  ;;  %5950 = vmatmul.msk.bf16.gmra.mxu0 %vm728_vm0, %v11250_v29 }
 0x4ad   :  { %2967 = vmatmul.bf16.gmra.mxu1 %v11188_v20 }
 0x4ae   :  { %3036 = vmatmul.bf16.gmra.mxu2 %v11251_v54 }
 0x4af   :  { %v2480_v28 = vpop.f32.mrf.mxu3 }
 0x4b0   :  { %v8386_v44 = vadd.f32 %v2480_v28, %v8209_v59 }
 0x4b1   :  { %v2724_v39 = vpop.f32.mrf.mxu2  ;;  %v2588_v53 = vpop.f32.mrf.mxu0 }
 0x4b2   :  { %11252 = vst [vmem:[#allocation93_spill] sm:$0xff] %v8386_v44  ;;  %v8388_v56 = vadd.f32 %v2724_v39, %v2656_v3  ;;  %v2657_v58 = vpop.f32.mrf.mxu1  ;;  %v11256_v39 = vld [vmem:[#allocation61_spill] sm:$0xff] }
 0x4b3   :  { %v2658_v6 = vadd.f32 %v2657_v58, %v2588_v53  ;;  %v11259_v53 = vld [vmem:[#allocation25_spill] sm:$0xff] }
 0x4b7   :  { %v2482_v43 = vpop.f32.mrf.mxu3 }
 0x4b8   :  { %v8393_v29 = vadd.f32 %v2482_v43, %v8217_v7 }
 0x4b9   :  { %v2726_v20 = vpop.f32.mrf.mxu2  ;;  %v2591_v54 = vpop.f32.mrf.mxu0 }
 0x4ba   :  { %11254 = vst [vmem:[#allocation96_spill] sm:$0xff] %v8393_v29  ;;  %v8395_v33 = vadd.f32 %v2726_v20, %v2658_v6  ;;  %v2660_v16 = vpop.f32.mrf.mxu1 }
 0x4bb   :  { %v2661_v3 = vadd.f32 %v2660_v16, %v2591_v54  ;;  %v11266_v16 = vld [vmem:[#allocation28_spill] sm:$0xff] }
 0x4bc   :  { %2797 = vmatmul.bf16.gmra.mxu3 %v11256_v39  ;;  %5951 = vmatmul.msk.bf16.gmra.mxu0 %vm728_vm0, %v11257_v38  ;;  %v11265_v38 = vld [vmem:[#allocation64_spill] sm:$0xff] }
 0x4bd   :  { %2972 = vmatmul.bf16.gmra.mxu1 %v11258_v32 }
 0x4be   :  { %3041 = vmatmul.bf16.gmra.mxu2 %v11259_v53 }
 0x4bf   :  { %v2485_v7 = vpop.f32.mrf.mxu3 }
 0x4c0   :  { %v8405_v43 = vadd.f32 %v2485_v7, %v8230_v18 }
 0x4c1   :  { %v2729_v20 = vpop.f32.mrf.mxu2  ;;  %v2593_v58 = vpop.f32.mrf.mxu0 }
 0x4c2   :  { %11260 = vst [vmem:[#allocation80_spill] sm:$0xff] %v8405_v43  ;;  %v8407_v6 = vadd.f32 %v2729_v20, %v2661_v3  ;;  %v2662_v54 = vpop.f32.mrf.mxu1  ;;  %v11264_v20 = vld [vmem:[#allocation63_spill] sm:$0xff] }
 0x4c3   :  { %v2663_v39 = vadd.f32 %v2662_v54, %v2593_v58  ;;  %v11267_v58 = vld [vmem:[#allocation30_spill] sm:$0xff] }
 0x4c7   :  { %v2487_v29 = vpop.f32.mrf.mxu3 }
 0x4c8   :  { %v8412_v59 = vadd.f32 %v2487_v29, %v8238_v52 }
 0x4c9   :  { %v2731_v44 = vpop.f32.mrf.mxu2  ;;  %v2596_v53 = vpop.f32.mrf.mxu0 }
 0x4ca   :  { %11262 = vst [vmem:[#allocation78_spill] sm:$0xff] %v8412_v59  ;;  %v8414_v55 = vadd.f32 %v2731_v44, %v2663_v39  ;;  %v2665_v32 = vpop.f32.mrf.mxu1 }
 0x4cb   :  { %v2666_v3 = vadd.f32 %v2665_v32, %v2596_v53 }
 0x4cc   :  { %2802 = vmatmul.bf16.gmra.mxu3 %v11264_v20  ;;  %5952 = vmatmul.msk.bf16.gmra.mxu0 %vm728_vm0, %v11265_v38  ;;  %v11269_v38 = vld [vmem:[#allocation69_spill] sm:$0xff] }
 0x4cd   :  { %2977 = vmatmul.bf16.gmra.mxu1 %v11266_v16  ;;  %v11268_v16 = vld [vmem:[#allocation68_spill] sm:$0xff] }
 0x4ce   :  { %3046 = vmatmul.bf16.gmra.mxu2 %v11267_v58 }
 0x4cf   :  { %v2763_v52 = vpop.f32.mrf.mxu3 }
 0x4d0   :  { %v8424_v44 = vadd.f32 %v2763_v52, %v8249_v21 }
 0x4d1   :  { %v2734_v29 = vpop.f32.mrf.mxu2  ;;  %v2598_v54 = vpop.f32.mrf.mxu0 }
 0x4d2   :  { %v8426_v39 = vadd.f32 %v2734_v29, %v2666_v3  ;;  %v2667_v7 = vpop.f32.mrf.mxu1 }
 0x4d3   :  { %v2668_v59 = vadd.f32 %v2667_v7, %v2598_v54 }
 0x4d7   :  { %v2765_v32 = vpop.f32.mrf.mxu3 }
 0x4d8   :  { %v8429_v20 = vadd.f32 %v2765_v32, %v8256_v37 }
 0x4d9   :  { %v2736_v53 = vpop.f32.mrf.mxu2  ;;  %v2601_v43 = vpop.f32.mrf.mxu0 }
 0x4da   :  { %v8431_v18 = vadd.f32 %v2736_v53, %v2668_v59  ;;  %v2670_v28 = vpop.f32.mrf.mxu1 }
 0x4db   :  { %v2671_v58 = vadd.f32 %v2670_v28, %v2601_v43 }
 0x4dc   :  { %2807 = vmatmul.bf16.gmra.mxu3 %v11268_v16  ;;  %5953 = vmatmul.msk.bf16.gmra.mxu0 %vm728_vm0, %v11269_v38  ;;  %v11271_v38 = vld [vmem:[#allocation72_spill] sm:$0xff] }
 0x4dd   :  { %2982 = vmatmul.bf16.gmra.mxu1 %v11071_v45  ;;  %v11270_v45 = vld [vmem:[#allocation71_spill] sm:$0xff] }
 0x4de   :  { %3051 = vmatmul.bf16.gmra.mxu2 %v11125_v23 }
 0x4df   :  { %v2768_v21 = vpop.f32.mrf.mxu3 }
 0x4e0   :  { %v8439_v3 = vadd.f32 %v2768_v21, %v8268_v62 }
 0x4e1   :  { %v2739_v7 = vpop.f32.mrf.mxu2  ;;  %v2603_v59 = vpop.f32.mrf.mxu0 }
 0x4e2   :  { %v8441_v37 = vadd.f32 %v2739_v7, %v2671_v58  ;;  %v2672_v52 = vpop.f32.mrf.mxu1 }
 0x4e3   :  { %v2673_v29 = vadd.f32 %v2672_v52, %v2603_v59 }
 0x4e7   :  { %v2770_v28 = vpop.f32.mrf.mxu3 }
 0x4e8   :  { %v8444_v54 = vadd.f32 %v2770_v28, %v8279_v15 }
 0x4e9   :  { %v2741_v43 = vpop.f32.mrf.mxu2  ;;  %v2606_v53 = vpop.f32.mrf.mxu0 }
 0x4ea   :  { %v8446_v32 = vadd.f32 %v2741_v43, %v2673_v29  ;;  %v2675_v16 = vpop.f32.mrf.mxu1 }
 0x4eb   :  { %v2676_v23 = vadd.f32 %v2675_v16, %v2606_v53 }
 0x4ec   :  { %2812 = vmatmul.bf16.gmra.mxu3 %v11270_v45  ;;  %5954 = vmatmul.msk.bf16.gmra.mxu0 %vm728_vm0, %v11271_v38  ;;  %v11273_v38 = vld [vmem:[#allocation74_spill] sm:$0xff] }
 0x4ed   :  { %2987 = vmatmul.bf16.gmra.mxu1 %v11087_v31  ;;  %v11272_v31 = vld [vmem:[#allocation73_spill] sm:$0xff] }
 0x4ee   :  { %3056 = vmatmul.bf16.gmra.mxu2 %v11143_v51 }
 0x4ef   :  { %v2773_v62 = vpop.f32.mrf.mxu3 }
 0x4f0   :  { %v8454_v21 = vadd.f32 %v2773_v62, %v8293_v11 }
 0x4f1   :  { %v2744_v58 = vpop.f32.mrf.mxu2  ;;  %v2608_v7 = vpop.f32.mrf.mxu0 }
 0x4f2   :  { %v8456_v15 = vadd.f32 %v2744_v58, %v2676_v23  ;;  %v2677_v59 = vpop.f32.mrf.mxu1 }
 0x4f3   :  { %v2678_v52 = vadd.f32 %v2677_v59, %v2608_v7 }
 0x4f7   :  { %v2775_v16 = vpop.f32.mrf.mxu3 }
 0x4f8   :  { %v8459_v28 = vadd.f32 %v2775_v16, %v8300_v10 }
 0x4f9   :  { %v2746_v29 = vpop.f32.mrf.mxu2  ;;  %v2611_v53 = vpop.f32.mrf.mxu0 }
 0x4fa   :  { %v8461_v43 = vadd.f32 %v2746_v29, %v2678_v52  ;;  %v2680_v45 = vpop.f32.mrf.mxu1 }
 0x4fb   :  { %v2681_v51 = vadd.f32 %v2680_v45, %v2611_v53 }
 0x4fc   :  { %2817 = vmatmul.bf16.gmra.mxu3 %v11272_v31  ;;  %5955 = vmatmul.msk.bf16.gmra.mxu0 %vm728_vm0, %v11273_v38 }
 0x4fd   :  { %2992 = vmatmul.bf16.gmra.mxu1 %v11098_v12 }
 0x4fe   :  { %3061 = vmatmul.bf16.gmra.mxu2 %v11157_v61 }
 0x4ff   :  { %v2778_v23 = vpop.f32.mrf.mxu3 }
 0x500   :  { %v8469_v62 = vadd.f32 %v2778_v23, %v8313_v13  ;;  %v11274_v13 = vmax.f32 %v11192_v25, %v8165_v1 }
 0x501   :  { %v2749_v11 = vpop.f32.mrf.mxu2  ;;  %v2613_v58 = vpop.f32.mrf.mxu0 }
 0x502   :  { %v8471_v10 = vadd.f32 %v2749_v11, %v2681_v51  ;;  %v2682_v7 = vpop.f32.mrf.mxu1  ;;  %v11275_v51 = vld [vmem:[#allocation75_spill] sm:$0xff]  ;;  %v11276_v11 = vld [vmem:[#allocation14_spill] sm:$0xff] }
 0x503   :  { %v2683_v59 = vadd.f32 %v2682_v7, %v2613_v58 }
 0x507   :  { %v2780_v45 = vpop.f32.mrf.mxu3 }
 0x508   :  { %v8474_v16 = vadd.f32 %v2780_v45, %v8322_v35  ;;  %v8489_v35 = vld [vmem:[#allocation2 + $0x198] sm:$0xff] }
 0x509   :  { %v2751_v52 = vpop.f32.mrf.mxu2  ;;  %v2832_v53 = vpop.f32.mrf.mxu0  ;;  %11277 = vst [vmem:[#allocation117_spill] sm:$0xff] %v8489_v35  ;;  %v11278_v45 = vld [vmem:[#allocation104_spill] sm:$0xff] }
 0x50a   :  { %v8476_v29 = vadd.f32 %v2751_v52, %v2683_v59  ;;  %v2833_v61 = vadd.f32 %v2832_v53, %v8424_v44  ;;  %v2958_v31 = vpop.f32.mrf.mxu1  ;;  %v11279_v52 = vmax.f32 %v11194_v36, %v11278_v45  ;;  %v11282_v36 = vmax.f32 %v11196_v5, %v8186_v2  ;;  %v11284_v45 = vld [vmem:[#allocation77_spill] sm:$0xff] }
 0x50c   :  { %v8482_v23 = vmax.f32 %v11274_v13, %v2833_v61  ;;  %5956 = vmatmul.msk.bf16.gmra.mxu0 %vm728_vm0, %v11275_v51  ;;  %3095 = vmatmul.bf16.vlgmr.msrb.gmra.mxu3 %v11276_v11  ;;  %v8504_v13 = vld [vmem:[#allocation2 + $0x188] sm:$0xff] }
 0x50d   :  { %2997 = vmatmul.bf16.gmra.mxu1 %v11111_v41  ;;  %3819 = vmatpush.bf16.msrb.mxu3 %v8489_v35  ;;  %11281 = vst [vmem:[#allocation46_spill] sm:$0xff] %v8504_v13 }
 0x50e   :  { %3066 = vmatmul.bf16.gmra.mxu2 %v11167_v42 }
 0x50f   :  { %v2783_v44 = vpop.f32.mrf.mxu3 }
 0x510   :  { %v8493_v58 = vadd.f32 %v2783_v44, %v8335_v57 }
 0x511   :  { %v3027_v1 = vpop.f32.mrf.mxu2  ;;  %v2834_v25 = vpop.f32.mrf.mxu0  ;;  %3820 = vmatpush.bf16.msrb.mxu3 %v8272_v24 }
 0x512   :  { %v8495_v61 = vadd.f32 %v3027_v1, %v2958_v31  ;;  %v2835_v7 = vadd.f32 %v2834_v25, %v8429_v20  ;;  %v2960_v59 = vpop.f32.mrf.mxu1 }
 0x514   :  { %v8502_v53 = vmax.f32 %v11279_v52, %v2835_v7  ;;  %v11285_v52 = vld [vmem:[#allocation18_spill] sm:$0xff] }
 0x515   :  { %3821 = vmatpush.bf16.msrb.mxu3 %v8504_v13 }
 0x516   :  { %11280 = vst [vmem:[#allocation82_spill] sm:$0xff] %v8502_v53  ;;  %v6372_v53 = vld [vmem:[#allocation2 + $0x2d8] sm:$0xff] }
 0x517   :  { %v2785_v57 = vpop.f32.mrf.mxu3  ;;  %3697 = vmatpush.bf16.msra.mxu2 %v6372_v53 }
 0x518   :  { %v8508_v44 = vadd.f32 %v2785_v57, %v8344_v4  ;;  %v8522_v4 = vld [vmem:[#allocation2 + $0x278] sm:$0xff] }
 0x519   :  { %v3029_v31 = vpop.f32.mrf.mxu2  ;;  %v2837_v20 = vpop.f32.mrf.mxu0  ;;  %3822 = vmatpush.bf16.msrb.mxu3 %v8283_v48  ;;  %11286 = vst [vmem:[#allocation98_spill] sm:$0xff] %v8522_v4  ;;  %3229 = vmatpush.bf16.msrb.mxu1 %v8522_v4  ;;  %v11350_v4 = vld [vmem:[#allocation45_spill] sm:$0xff] }
 0x51a   :  { %v8510_v1 = vadd.f32 %v3029_v31, %v2960_v59  ;;  %v2838_v25 = vadd.f32 %v2837_v20, %v8439_v3  ;;  %v2963_v24 = vpop.f32.mrf.mxu1  ;;  %v11287_v3 = vld [vmem:[#allocation84_spill] sm:$0xff]  ;;  %v8531_v59 = vld [vmem:[#allocation2 + $0x270] sm:$0xff] }
 0x51b   :  { %11288 = vst [vmem:[#allocation100_spill] sm:$0xff] %v8531_v59 }
 0x51c   :  { %v8517_v7 = vmax.f32 %v11282_v36, %v2838_v25  ;;  %5957 = vmatmul.msk.bf16.gmra.mxu0 %vm728_vm0, %v11284_v45  ;;  %3100 = vmatmul.bf16.gmra.mxu3 %v11285_v52  ;;  %v11289_v36 = vld [vmem:[#allocation102_spill] sm:$0xff] }
 0x51d   :  { %3002 = vmatmul.bf16.gmra.mxu1 %v11207_v0  ;;  %3823 = vmatpush.bf16.msrb.mxu3 %v11287_v3 }
 0x51e   :  { %11283 = vst [vmem:[#allocation97_spill] sm:$0xff] %v8517_v7  ;;  %3071 = vmatmul.bf16.gmra.mxu2 %v11171_v14  ;;  %3230 = vmatpush.bf16.msrb.mxu1 %v8531_v59  ;;  %v11290_v14 = vld [vmem:[#allocation108_spill] sm:$0xff]  ;;  %v6361_v7 = vld [vmem:[#allocation2 + $0x280] sm:$0xff] }
 0x51f   :  { %v2788_v48 = vpop.f32.mrf.mxu3  ;;  %v11291_v3 = vmax.f32 %v11198_v63, %v11290_v14 }
 0x520   :  { %v8529_v2 = vadd.f32 %v2788_v48, %v8360_v40  ;;  %v8543_v40 = vld [vmem:[#allocation2 + $0x268] sm:$0xff] }
 0x521   :  { %v3032_v5 = vpop.f32.mrf.mxu2  ;;  %v2839_v31 = vpop.f32.mrf.mxu0  ;;  %3824 = vmatpush.bf16.msrb.mxu3 %v11289_v36  ;;  %11292 = vst [vmem:[#allocation14_spill] sm:$0xff] %v8543_v40  ;;  %v11293_v48 = vld [vmem:[#allocation106_spill] sm:$0xff] }
 0x522   :  { %v8533_v57 = vadd.f32 %v3032_v5, %v2963_v24  ;;  %v2840_v20 = vadd.f32 %v2839_v31, %v8444_v54  ;;  %v2965_v25 = vpop.f32.mrf.mxu1  ;;  %3231 = vmatpush.bf16.msrb.mxu1 %v8543_v40  ;;  %v8550_v31 = vld [vmem:[#allocation2 + $0x260] sm:$0xff]  ;;  %v11310_v40 = vld [vmem:[#allocation31_spill] sm:$0xff] }
 0x523   :  { %11294 = vst [vmem:[#allocation104_spill] sm:$0xff] %v8550_v31 }
 0x524   :  { %v8541_v42 = vmax.f32 %v11291_v3, %v2840_v20  ;;  %v11295_v20 = vld [vmem:[#allocation85_spill] sm:$0xff]  ;;  %v11296_v3 = vmax.f32 %v11200_v30, %v8207_v22 }
 0x525   :  { %3825 = vmatpush.bf16.msrb.mxu3 %v11293_v48 }
 0x526   :  { %3232 = vmatpush.bf16.msrb.mxu1 %v8550_v31  ;;  %v11308_v31 = vld [vmem:[#allocation105_spill] sm:$0xff] }
 0x527   :  { %v2790_v24 = vpop.f32.mrf.mxu3 }
 0x528   :  { %v8548_v5 = vadd.f32 %v2790_v24, %v8373_v34  ;;  %v11297_v34 = vld [vmem:[#allocation79_spill] sm:$0xff]  ;;  %v11298_v24 = vld [vmem:[#allocation22_spill] sm:$0xff] }
 0x529   :  { %v3034_v54 = vpop.f32.mrf.mxu2  ;;  %v2842_v36 = vpop.f32.mrf.mxu0  ;;  %3826 = vmatpush.bf16.msrb.mxu3 %v11295_v20 }
 0x52a   :  { %v8552_v13 = vadd.f32 %v3034_v54, %v2965_v25  ;;  %v2843_v14 = vadd.f32 %v2842_v36, %v8454_v21  ;;  %v2968_v63 = vpop.f32.mrf.mxu1 }
 0x52c   :  { %v8560_v48 = vmax.f32 %v11296_v3, %v2843_v14  ;;  %5958 = vmatmul.msk.bf16.gmra.mxu0 %vm728_vm0, %v11297_v34  ;;  %3105 = vmatmul.bf16.gmra.mxu3 %v11298_v24  ;;  %v11299_v14 = vmax.f32 %v11201_v8, %v8215_v47  ;;  %v11303_v47 = vld [vmem:[#allocation26_spill] sm:$0xff] }
 0x52d   :  { %3007 = vmatmul.bf16.gmra.mxu1 %v11215_v50 }
 0x52e   :  { %3076 = vmatmul.bf16.gmra.mxu2 %v11174_v19 }
 0x52f   :  { %v2793_v21 = vpop.f32.mrf.mxu3 }
 0x530   :  { %v8568_v25 = vadd.f32 %v2793_v21, %v8388_v56 }
 0x531   :  { %v3037_v54 = vpop.f32.mrf.mxu2  ;;  %v2844_v20 = vpop.f32.mrf.mxu0 }
 0x532   :  { %v8570_v36 = vadd.f32 %v3037_v54, %v2968_v63  ;;  %v2845_v22 = vadd.f32 %v2844_v20, %v8459_v28  ;;  %v2970_v30 = vpop.f32.mrf.mxu1  ;;  %v11300_v28 = vmax.f32 %v7801_v49, %v8228_v17  ;;  %v11302_v20 = vld [vmem:[#allocation81_spill] sm:$0xff] }
 0x534   :  { %v8576_v3 = vmax.f32 %v11299_v14, %v2845_v22  ;;  %v11304_v22 = vld [vmem:[#allocation66_spill] sm:$0xff] }
 0x537   :  { %v2795_v24 = vpop.f32.mrf.mxu3 }
 0x538   :  { %v8579_v35 = vadd.f32 %v2795_v24, %v8395_v33 }
 0x539   :  { %v3039_v19 = vpop.f32.mrf.mxu2  ;;  %v2847_v56 = vpop.f32.mrf.mxu0 }
 0x53a   :  { %v8581_v52 = vadd.f32 %v3039_v19, %v2970_v30  ;;  %v2848_v63 = vadd.f32 %v2847_v56, %v8469_v62  ;;  %v2973_v21 = vpop.f32.mrf.mxu1  ;;  %v11305_v30 = vld [vmem:[#allocation86_spill] sm:$0xff] }
 0x53b   :  { %v11306_v14 = vmax.f32 %v11304_v22, %v11305_v30 }
 0x53c   :  { %v8587_v54 = vmax.f32 %v11300_v28, %v2848_v63  ;;  %5959 = vmatmul.msk.bf16.gmra.mxu0 %vm728_vm0, %v11302_v20  ;;  %3110 = vmatmul.bf16.gmra.mxu3 %v11303_v47 }
 0x53d   :  { %3012 = vmatmul.bf16.gmra.mxu1 %v11156_v60 }
 0x53e   :  { %11301 = vst [vmem:[#allocation84_spill] sm:$0xff] %v8587_v54  ;;  %3081 = vmatmul.bf16.gmra.mxu2 %v11176_v46 }
 0x53f   :  { %v2798_v19 = vpop.f32.mrf.mxu3 }
 0x540   :  { %v8595_v8 = vadd.f32 %v2798_v19, %v8407_v6 }
 0x541   :  { %v3042_v33 = vpop.f32.mrf.mxu2  ;;  %v2849_v24 = vpop.f32.mrf.mxu0 }
 0x542   :  { %v8597_v62 = vadd.f32 %v3042_v33, %v2973_v21  ;;  %v2850_v49 = vadd.f32 %v2849_v24, %v8474_v16  ;;  %v2975_v17 = vpop.f32.mrf.mxu1  ;;  %v11307_v33 = vld [vmem:[#allocation118_spill] sm:$0xff] }
 0x543   :  { %v11309_v16 = vmax.f32 %v11307_v33, %v11308_v31 }
 0x544   :  { %v8603_v56 = vmax.f32 %v11306_v14, %v2850_v49  ;;  %v11311_v49 = vld [vmem:[#allocation39_spill] sm:$0xff]  ;;  %v11312_v14 = vld [vmem:[#allocation113_spill] sm:$0xff] }
 0x547   :  { %v2800_v63 = vpop.f32.mrf.mxu3 }
 0x548   :  { %v8606_v28 = vadd.f32 %v2800_v63, %v8414_v55  ;;  %v11313_v63 = vld [vmem:[#allocation119_spill] sm:$0xff] }
 0x549   :  { %v3044_v46 = vpop.f32.mrf.mxu2  ;;  %v2852_v6 = vpop.f32.mrf.mxu0 }
 0x54a   :  { %v8608_v47 = vadd.f32 %v3044_v46, %v2975_v17  ;;  %v2853_v21 = vadd.f32 %v2852_v6, %v8493_v58  ;;  %v2978_v19 = vpop.f32.mrf.mxu1  ;;  %v11314_v6 = vld [vmem:[#allocation110_spill] sm:$0xff] }
 0x54c   :  { %v8614_v24 = vmax.f32 %v11309_v16, %v2853_v21  ;;  %3115 = vmatmul.bf16.gmra.mxu3 %v11310_v40  ;;  %3164 = vmatmul.bf16.vlgmr.msrb.gmra.mxu0 %v11311_v49  ;;  %v11315_v21 = vmax.f32 %v11313_v63, %v11314_v6  ;;  %v11317_v16 = vld [vmem:[#allocation115_spill] sm:$0xff]  ;;  %v11323_v6 = vld [vmem:[#allocation37_spill] sm:$0xff] }
 0x54d   :  { %5976 = vmatmul.msk.bf16.vlgmr.msrb.gmra.mxu1 %vm728_vm0, %v11231_v27  ;;  %3888 = vmatpush.bf16.msrb.mxu0 %v8354_v26  ;;  %v11320_v40 = vld [vmem:[#allocation87_spill] sm:$0xff] }
 0x54e   :  { %3425 = vmatmul.bf16.vlgmr.msrb.gmra.mxu2 %v11232_v9  ;;  %v11318_v9 = vld [vmem:[#allocation76_spill] sm:$0xff] }
 0x54f   :  { %v2803_v46 = vpop.f32.mrf.mxu3 }
 0x550   :  { %v8623_v55 = vadd.f32 %v2803_v46, %v8426_v39 }
 0x551   :  { %v3047_v58 = vpop.f32.mrf.mxu2  ;;  %v2854_v31 = vpop.f32.mrf.mxu0  ;;  %3889 = vmatpush.bf16.msrb.mxu0 %v11312_v14  ;;  %v11319_v14 = vld [vmem:[#allocation65_spill] sm:$0xff] }
 0x552   :  { %v8625_v17 = vadd.f32 %v3047_v58, %v2978_v19  ;;  %v2855_v22 = vadd.f32 %v2854_v31, %v8508_v44  ;;  %v2980_v30 = vpop.f32.mrf.mxu1  ;;  %v11321_v63 = vmax.f32 %v11319_v14, %v11320_v40  ;;  %v8661_v14 = vld [vmem:[#allocation2 + $0x1b0] sm:$0xff] }
 0x553   :  { %11327 = vst [vmem:[#allocation106_spill] sm:$0xff] %v8661_v14 }
 0x554   :  { %v8632_v33 = vmax.f32 %v11315_v21, %v2855_v22  ;;  %v11324_v21 = vld [vmem:[#allocation43_spill] sm:$0xff] }
 0x555   :  { %3890 = vmatpush.bf16.msrb.mxu0 %v11317_v16  ;;  %v8652_v16 = vld [vmem:[#allocation2 + $0x1b8] sm:$0xff] }
 0x556   :  { %11316 = vst [vmem:[#allocation102_spill] sm:$0xff] %v8632_v33  ;;  %v8678_v33 = vld [vmem:[#allocation2 + $0x1a0] sm:$0xff] }
 0x557   :  { %v2805_v26 = vpop.f32.mrf.mxu3  ;;  %11333 = vst [vmem:[#allocation86_spill] sm:$0xff] %v8678_v33 }
 0x558   :  { %v8636_v39 = vadd.f32 %v2805_v26, %v8431_v18  ;;  %v11325_v18 = vld [vmem:[#allocation58_spill] sm:$0xff] }
 0x559   :  { %v3049_v46 = vpop.f32.mrf.mxu2  ;;  %v2857_v58 = vpop.f32.mrf.mxu0  ;;  %3891 = vmatpush.bf16.msrb.mxu0 %v11318_v9 }
 0x55a   :  { %v8638_v19 = vadd.f32 %v3049_v46, %v2980_v30  ;;  %v2858_v44 = vadd.f32 %v2857_v58, %v8529_v2  ;;  %v2983_v31 = vpop.f32.mrf.mxu1  ;;  %v11326_v30 = vld [vmem:[#allocation15_spill] sm:$0xff] }
 0x55c   :  { %v8645_v22 = vmax.f32 %v11321_v63, %v2858_v44  ;;  %3120 = vmatmul.bf16.gmra.mxu3 %v11323_v6  ;;  %3169 = vmatmul.bf16.gmra.mxu0 %v11324_v21  ;;  %v11328_v63 = vld [vmem:[#allocation91_spill] sm:$0xff] }
 0x55d   :  { %5977 = vmatmul.msk.bf16.gmra.mxu1 %vm728_vm0, %v11325_v18  ;;  %3892 = vmatpush.bf16.msrb.mxu0 %v8652_v16  ;;  %v8669_v18 = vld [vmem:[#allocation2 + $0x1a8] sm:$0xff] }
 0x55e   :  { %11322 = vst [vmem:[#allocation108_spill] sm:$0xff] %v8645_v22  ;;  %3430 = vmatmul.bf16.gmra.mxu2 %v11326_v30  ;;  %v11329_v30 = vld [vmem:[#allocation107_spill] sm:$0xff] }
 0x55f   :  { %v2808_v2 = vpop.f32.mrf.mxu3  ;;  %v11330_v6 = vmax.f32 %v11328_v63, %v11329_v30  ;;  %11332 = vst [vmem:[#allocation66_spill] sm:$0xff] %v8669_v18  ;;  %v11335_v30 = vld [vmem:[#allocation112_spill] sm:$0xff] }
 0x560   :  { %v8656_v9 = vadd.f32 %v2808_v2, %v8441_v37 }
 0x561   :  { %v3052_v40 = vpop.f32.mrf.mxu2  ;;  %v2859_v46 = vpop.f32.mrf.mxu0  ;;  %3893 = vmatpush.bf16.msrb.mxu0 %v8661_v14  ;;  %v11347_v14 = vld [vmem:[#allocation109_spill] sm:$0xff] }
 0x562   :  { %v8658_v26 = vadd.f32 %v3052_v40, %v2983_v31  ;;  %v2860_v58 = vadd.f32 %v2859_v46, %v8548_v5  ;;  %v2985_v44 = vpop.f32.mrf.mxu1 }
 0x564   :  { %v8667_v22 = vmax.f32 %v11330_v6, %v2860_v58  ;;  %v11334_v6 = vld [vmem:[#allocation67_spill] sm:$0xff] }
 0x565   :  { %3894 = vmatpush.bf16.msrb.mxu0 %v8669_v18  ;;  %v11336_v58 = vmax.f32 %v11334_v6, %v11335_v30  ;;  %v11342_v30 = vld [vmem:[#allocation92_spill] sm:$0xff] }
 0x566   :  { %11331 = vst [vmem:[#allocation85_spill] sm:$0xff] %v8667_v22  ;;  %v11338_v22 = vld [vmem:[#allocation41_spill] sm:$0xff] }
 0x567   :  { %v2810_v37 = vpop.f32.mrf.mxu3 }
 0x568   :  { %v8673_v31 = vadd.f32 %v2810_v37, %v8446_v32  ;;  %v11339_v32 = vld [vmem:[#allocation48_spill] sm:$0xff] }
 0x569   :  { %v3054_v2 = vpop.f32.mrf.mxu2  ;;  %v2862_v40 = vpop.f32.mrf.mxu0  ;;  %3895 = vmatpush.bf16.msrb.mxu0 %v8678_v33  ;;  %v11340_v37 = vld [vmem:[#allocation60_spill] sm:$0xff] }
 0x56a   :  { %v8675_v5 = vadd.f32 %v3054_v2, %v2985_v44  ;;  %v2863_v46 = vadd.f32 %v2862_v40, %v8568_v25  ;;  %v2988_v21 = vpop.f32.mrf.mxu1  ;;  %v11341_v44 = vld [vmem:[#allocation19_spill] sm:$0xff] }
 0x56c   :  { %v8684_v63 = vmax.f32 %v11336_v58, %v2863_v46  ;;  %3125 = vmatmul.bf16.gmra.mxu3 %v11338_v22  ;;  %3174 = vmatmul.bf16.gmra.mxu0 %v11339_v32  ;;  %v11343_v58 = vld [vmem:[#allocation88_spill] sm:$0xff] }
 0x56d   :  { %5978 = vmatmul.msk.bf16.gmra.mxu1 %vm728_vm0, %v11340_v37  ;;  %v11344_v22 = vmax.f32 %v11342_v30, %v11343_v58 }
 0x56e   :  { %11337 = vst [vmem:[#allocation118_spill] sm:$0xff] %v8684_v63  ;;  %3435 = vmatmul.bf16.gmra.mxu2 %v11341_v44 }
 0x56f   :  { %v2813_v25 = vpop.f32.mrf.mxu3 }
 0x570   :  { %v8692_v2 = vadd.f32 %v2813_v25, %v8456_v15 }
 0x571   :  { %v3057_v40 = vpop.f32.mrf.mxu2  ;;  %v2864_v18 = vpop.f32.mrf.mxu0 }
 0x572   :  { %v8694_v33 = vadd.f32 %v3057_v40, %v2988_v21  ;;  %v2865_v46 = vadd.f32 %v2864_v18, %v8579_v35  ;;  %v2990_v6 = vpop.f32.mrf.mxu1  ;;  %v11346_v40 = vld [vmem:[#allocation94_spill] sm:$0xff] }
 0x573   :  { %v11348_v35 = vmax.f32 %v11346_v40, %v11347_v14 }
 0x574   :  { %v8700_v63 = vmax.f32 %v11344_v22, %v2865_v46  ;;  %v11351_v22 = vld [vmem:[#allocation52_spill] sm:$0xff]  ;;  %v11352_v46 = vld [vmem:[#allocation62_spill] sm:$0xff] }
 0x576   :  { %11345 = vst [vmem:[#allocation105_spill] sm:$0xff] %v8700_v63  ;;  %v11362_v63 = vld [vmem:[#allocation50_spill] sm:$0xff] }
 0x577   :  { %v2815_v32 = vpop.f32.mrf.mxu3 }
 0x578   :  { %v8703_v37 = vadd.f32 %v2815_v32, %v8461_v43  ;;  %v11353_v43 = vld [vmem:[#allocation23_spill] sm:$0xff] }
 0x579   :  { %v3059_v44 = vpop.f32.mrf.mxu2  ;;  %v2867_v15 = vpop.f32.mrf.mxu0 }
 0x57a   :  { %v8705_v59 = vadd.f32 %v3059_v44, %v2990_v6  ;;  %v2868_v21 = vadd.f32 %v2867_v15, %v8595_v8  ;;  %v2993_v25 = vpop.f32.mrf.mxu1  ;;  %v11354_v15 = vld [vmem:[#allocation99_spill] sm:$0xff] }
 0x57c   :  { %v8711_v18 = vmax.f32 %v11348_v35, %v2868_v21  ;;  %3130 = vmatmul.bf16.gmra.mxu3 %v11350_v4  ;;  %3179 = vmatmul.bf16.gmra.mxu0 %v11351_v22  ;;  %v11355_v21 = vld [vmem:[#allocation114_spill] sm:$0xff]  ;;  %v11359_v22 = vld [vmem:[#allocation89_spill] sm:$0xff] }
 0x57d   :  { %5979 = vmatmul.msk.bf16.gmra.mxu1 %vm728_vm0, %v11352_v46  ;;  %v11356_v40 = vmax.f32 %v11354_v15, %v11355_v21  ;;  %v11364_v15 = vld [vmem:[#allocation64_spill] sm:$0xff] }
 0x57e   :  { %11349 = vst [vmem:[#allocation113_spill] sm:$0xff] %v8711_v18  ;;  %3440 = vmatmul.bf16.gmra.mxu2 %v11353_v43 }
 0x57f   :  { %v2818_v32 = vpop.f32.mrf.mxu3 }
 0x580   :  { %v8719_v44 = vadd.f32 %v2818_v32, %v8471_v10 }
 0x581   :  { %v3062_v8 = vpop.f32.mrf.mxu2  ;;  %v2869_v30 = vpop.f32.mrf.mxu0 }
 0x582   :  { %v8721_v6 = vadd.f32 %v3062_v8, %v2993_v25  ;;  %v2870_v14 = vadd.f32 %v2869_v30, %v8606_v28  ;;  %v2995_v58 = vpop.f32.mrf.mxu1  ;;  %v11358_v8 = vld [vmem:[#allocation70_spill] sm:$0xff] }
 0x583   :  { %v11360_v28 = vmax.f32 %v11358_v8, %v11359_v22 }
 0x584   :  { %v8727_v35 = vmax.f32 %v11356_v40, %v2870_v14  ;;  %v11363_v14 = vld [vmem:[#allocation55_spill] sm:$0xff] }
 0x586   :  { %11357 = vst [vmem:[#allocation119_spill] sm:$0xff] %v8727_v35  ;;  %v11374_v35 = vld [vmem:[#allocation54_spill] sm:$0xff] }
 0x587   :  { %v2820_v4 = vpop.f32.mrf.mxu3 }
 0x588   :  { %v8730_v18 = vadd.f32 %v2820_v4, %v8476_v29  ;;  %v11365_v29 = vld [vmem:[#allocation28_spill] sm:$0xff] }
 0x589   :  { %v3064_v43 = vpop.f32.mrf.mxu2  ;;  %v2872_v10 = vpop.f32.mrf.mxu0 }
 0x58a   :  { %v8732_v46 = vadd.f32 %v3064_v43, %v2995_v58  ;;  %v2873_v25 = vadd.f32 %v2872_v10, %v8623_v55  ;;  %v2998_v32 = vpop.f32.mrf.mxu1  ;;  %v11366_v10 = vld [vmem:[#allocation95_spill] sm:$0xff] }
 0x58c   :  { %v8738_v30 = vmax.f32 %v11360_v28, %v2873_v25  ;;  %3135 = vmatmul.bf16.gmra.mxu3 %v11362_v63  ;;  %3184 = vmatmul.bf16.gmra.mxu0 %v11363_v14  ;;  %v11367_v25 = vld [vmem:[#allocation111_spill] sm:$0xff]  ;;  %v11371_v14 = vld [vmem:[#allocation90_spill] sm:$0xff] }
 0x58d   :  { %5980 = vmatmul.msk.bf16.gmra.mxu1 %vm728_vm0, %v11364_v15  ;;  %v11368_v8 = vmax.f32 %v11366_v10, %v11367_v25  ;;  %v11376_v10 = vld [vmem:[#allocation69_spill] sm:$0xff] }
 0x58e   :  { %11361 = vst [vmem:[#allocation110_spill] sm:$0xff] %v8738_v30  ;;  %3445 = vmatmul.bf16.gmra.mxu2 %v11365_v29 }
 0x58f   :  { %v3096_v4 = vpop.f32.mrf.mxu3 }
 0x590   :  { %v8746_v58 = vadd.f32 %v3096_v4, %v8495_v61 }
 0x591   :  { %v3067_v43 = vpop.f32.mrf.mxu2  ;;  %v2874_v21 = vpop.f32.mrf.mxu0 }
 0x592   :  { %v8748_v55 = vadd.f32 %v3067_v43, %v2998_v32  ;;  %v2875_v22 = vadd.f32 %v2874_v21, %v8636_v39  ;;  %v3000_v40 = vpop.f32.mrf.mxu1  ;;  %v11370_v43 = vld [vmem:[#allocation27_spill] sm:$0xff] }
 0x593   :  { %v11372_v39 = vmax.f32 %v11370_v43, %v11371_v14 }
 0x594   :  { %v8754_v28 = vmax.f32 %v11368_v8, %v2875_v22  ;;  %v11375_v22 = vld [vmem:[#allocation57_spill] sm:$0xff] }
 0x596   :  { %11369 = vst [vmem:[#allocation115_spill] sm:$0xff] %v8754_v28  ;;  %v11386_v28 = vld [vmem:[#allocation29_spill] sm:$0xff] }
 0x597   :  { %v3098_v63 = vpop.f32.mrf.mxu3 }
 0x598   :  { %v8757_v29 = vadd.f32 %v3098_v63, %v8510_v1  ;;  %v11377_v1 = vld [vmem:[#allocation34_spill] sm:$0xff] }
 0x599   :  { %v3069_v30 = vpop.f32.mrf.mxu2  ;;  %v2877_v61 = vpop.f32.mrf.mxu0 }
 0x59a   :  { %v8759_v15 = vadd.f32 %v3069_v30, %v3000_v40  ;;  %v2878_v32 = vadd.f32 %v2877_v61, %v8656_v9  ;;  %v3003_v4 = vpop.f32.mrf.mxu1  ;;  %v11378_v61 = vld [vmem:[#allocation33_spill] sm:$0xff] }
 0x59c   :  { %v8765_v21 = vmax.f32 %v11372_v39, %v2878_v32  ;;  %3140 = vmatmul.bf16.gmra.mxu3 %v11374_v35  ;;  %3189 = vmatmul.bf16.gmra.mxu0 %v11375_v22  ;;  %v11379_v32 = vld [vmem:[#allocation116_spill] sm:$0xff]  ;;  %v11383_v22 = vld [vmem:[#allocation93_spill] sm:$0xff] }
 0x59d   :  { %5981 = vmatmul.msk.bf16.gmra.mxu1 %vm728_vm0, %v11376_v10  ;;  %v11380_v43 = vmax.f32 %v11378_v61, %v11379_v32  ;;  %v11388_v61 = vld [vmem:[#allocation72_spill] sm:$0xff] }
 0x59e   :  { %11373 = vst [vmem:[#allocation76_spill] sm:$0xff] %v8765_v21  ;;  %3450 = vmatmul.bf16.gmra.mxu2 %v11377_v1 }
 0x59f   :  { %v3101_v63 = vpop.f32.mrf.mxu3 }
 0x5a0   :  { %v8773_v40 = vadd.f32 %v3101_v63, %v8533_v57 }
 0x5a1   :  { %v3072_v30 = vpop.f32.mrf.mxu2  ;;  %v2879_v25 = vpop.f32.mrf.mxu0 }
 0x5a2   :  { %v8775_v9 = vadd.f32 %v3072_v30, %v3003_v4  ;;  %v2880_v14 = vadd.f32 %v2879_v25, %v8673_v31  ;;  %v3005_v8 = vpop.f32.mrf.mxu1  ;;  %v11382_v30 = vld [vmem:[#allocation32_spill] sm:$0xff] }
 0x5a3   :  { %v11384_v31 = vmax.f32 %v11382_v30, %v11383_v22 }
 0x5a4   :  { %v8781_v39 = vmax.f32 %v11380_v43, %v2880_v14  ;;  %v11387_v14 = vld [vmem:[#allocation59_spill] sm:$0xff] }
 0x5a6   :  { %11381 = vst [vmem:[#allocation65_spill] sm:$0xff] %v8781_v39  ;;  %v11397_v39 = vld [vmem:[#allocation35_spill] sm:$0xff] }
 0x5a7   :  { %v3103_v35 = vpop.f32.mrf.mxu3 }
 0x5a8   :  { %v8784_v1 = vadd.f32 %v3103_v35, %v8552_v13  ;;  %v11389_v13 = vld [vmem:[#allocation38_spill] sm:$0xff] }
 0x5a9   :  { %v3074_v21 = vpop.f32.mrf.mxu2  ;;  %v2882_v57 = vpop.f32.mrf.mxu0 }
 0x5aa   :  { %v8786_v10 = vadd.f32 %v3074_v21, %v3005_v8  ;;  %v2883_v4 = vadd.f32 %v2882_v57, %v8692_v2  ;;  %v3008_v63 = vpop.f32.mrf.mxu1  ;;  %v11390_v57 = vld [vmem:[#allocation103_spill] sm:$0xff] }
 0x5ac   :  { %v8792_v25 = vmax.f32 %v11384_v31, %v2883_v4  ;;  %3145 = vmatmul.bf16.gmra.mxu3 %v11386_v28  ;;  %3194 = vmatmul.bf16.gmra.mxu0 %v11387_v14  ;;  %v11391_v4 = vld [vmem:[#allocation96_spill] sm:$0xff] }
 0x5ad   :  { %5982 = vmatmul.msk.bf16.gmra.mxu1 %vm728_vm0, %v11388_v61  ;;  %v11392_v30 = vmax.f32 %v11390_v57, %v11391_v4  ;;  %v11394_v14 = vld [vmem:[#allocation80_spill] sm:$0xff]  ;;  %v11399_v4 = vld [vmem:[#allocation101_spill] sm:$0xff] }
 0x5ae   :  { %11385 = vst [vmem:[#allocation87_spill] sm:$0xff] %v8792_v25  ;;  %3455 = vmatmul.bf16.gmra.mxu2 %v11389_v13 }
 0x5af   :  { %v3106_v35 = vpop.f32.mrf.mxu3 }
 0x5b0   :  { %v8800_v8 = vadd.f32 %v3106_v35, %v8570_v36 }
 0x5b1   :  { %v3077_v21 = vpop.f32.mrf.mxu2  ;;  %v2884_v32 = vpop.f32.mrf.mxu0 }
 0x5b2   :  { %v8802_v2 = vadd.f32 %v3077_v21, %v3008_v63  ;;  %v2885_v22 = vadd.f32 %v2884_v32, %v8703_v37  ;;  %v3010_v43 = vpop.f32.mrf.mxu1  ;;  %v11393_v21 = vld [vmem:[#allocation83_spill] sm:$0xff] }
 0x5b3   :  { %v11395_v37 = vmax.f32 %v11393_v21, %v11394_v14 }
 0x5b4   :  { %v8808_v31 = vmax.f32 %v11392_v30, %v2885_v22  ;;  %v11398_v22 = vld [vmem:[#allocation61_spill] sm:$0xff]  ;;  %v11400_v30 = vld [vmem:[#allocation78_spill] sm:$0xff] }
 0x5b7   :  { %v3108_v28 = vpop.f32.mrf.mxu3 }
 0x5b8   :  { %v8811_v13 = vadd.f32 %v3108_v28, %v8581_v52 }
 0x5b9   :  { %v3079_v25 = vpop.f32.mrf.mxu2  ;;  %v2887_v36 = vpop.f32.mrf.mxu0 }
 0x5ba   :  { %v8813_v61 = vadd.f32 %v3079_v25, %v3010_v43  ;;  %v2888_v63 = vadd.f32 %v2887_v36, %v8719_v44  ;;  %v3013_v35 = vpop.f32.mrf.mxu1  ;;  %v11401_v36 = vmax.f32 %v11399_v4, %v11400_v30  ;;  %v8847_v4 = vld [vmem:[#allocation2 + $0x2b8] sm:$0xff]  ;;  %v8860_v30 = vld [vmem:[#allocation2 + $0x2b0] sm:$0xff] }
 0x5bb   :  { %3624 = vmatpush.bf16.msra.mxu1 %v8847_v4 }
 0x5bc   :  { %v8819_v32 = vmax.f32 %v11395_v37, %v2888_v63  ;;  %3150 = vmatmul.bf16.gmra.mxu3 %v11397_v39  ;;  %3199 = vmatmul.bf16.gmra.mxu0 %v11398_v22 }
 0x5bd   :  { %5983 = vmatmul.msk.bf16.gmra.mxu1 %vm728_vm0, %v11273_v38 }
 0x5be   :  { %11396 = vst [vmem:[#allocation91_spill] sm:$0xff] %v8819_v32  ;;  %3460 = vmatmul.bf16.gmra.mxu2 %v11098_v12 }
 0x5bf   :  { %v3111_v52 = vpop.f32.mrf.mxu3  ;;  %3625 = vmatpush.bf16.msra.mxu1 %v8860_v30 }
 0x5c0   :  { %v8827_v25 = vadd.f32 %v3111_v52, %v8597_v62 }
 0x5c1   :  { %v3082_v28 = vpop.f32.mrf.mxu2  ;;  %v2889_v43 = vpop.f32.mrf.mxu0 }
 0x5c2   :  { %v8829_v44 = vadd.f32 %v3082_v28, %v3013_v35  ;;  %v2890_v14 = vadd.f32 %v2889_v43, %v8730_v18  ;;  %v3015_v57 = vpop.f32.mrf.mxu1  ;;  %v11404_v18 = vld [vmem:[#allocation63_spill] sm:$0xff]  ;;  %v11405_v43 = vld [vmem:[#allocation13_spill] sm:$0xff] }
 0x5c4   :  { %v8835_v63 = vmax.f32 %v11401_v36, %v2890_v14 }
 0x5c6   :  { %11402 = vst [vmem:[#allocation107_spill] sm:$0xff] %v8835_v63 }
 0x5c7   :  { %v3113_v21 = vpop.f32.mrf.mxu3 }
 0x5c8   :  { %v8838_v12 = vadd.f32 %v3113_v21, %v8608_v47 }
 0x5c9   :  { %v3084_v37 = vpop.f32.mrf.mxu2  ;;  %v3165_v62 = vpop.f32.mrf.mxu0 }
 0x5ca   :  { %v8840_v39 = vadd.f32 %v3084_v37, %v3015_v57  ;;  %v3166_v35 = vadd.f32 %v3165_v62, %v8746_v58  ;;  %v3234_v52 = vpop.f32.mrf.mxu1 }
 0x5cc   :  { %v8843_v28 = vadd.f32 %v3234_v52, %v3166_v35  ;;  %3204 = vmatmul.bf16.gmra.mxu0 %v11404_v18  ;;  %3494 = vmatmul.bf16.vlgmr.msra.gmra.mxu3 %v11405_v43  ;;  %v8866_v35 = vld [vmem:[#allocation2 + $0x2a8] sm:$0xff]  ;;  %v11408_v43 = vld [vmem:[#allocation68_spill] sm:$0xff]  ;;  %v11409_v52 = vld [vmem:[#allocation17_spill] sm:$0xff] }
 0x5cd   :  { %5984 = vmatmul.msk.bf16.gmra.mxu1 %vm728_vm0, %v11275_v51 }
 0x5ce   :  { %11403 = vst [vmem:[#allocation67_spill] sm:$0xff] %v8843_v28  ;;  %3465 = vmatmul.bf16.gmra.mxu2 %v11111_v41  ;;  %3626 = vmatpush.bf16.msra.mxu1 %v8866_v35  ;;  %v8876_v41 = vld [vmem:[#allocation2 + $0x2a0] sm:$0xff] }
 0x5cf   :  { %v3116_v58 = vpop.f32.mrf.mxu3 }
 0x5d0   :  { %v8856_v14 = vadd.f32 %v3116_v58, %v8625_v17 }
 0x5d1   :  { %v8858_v57 = vpop.f32.mrf.mxu2  ;;  %v3167_v36 = vpop.f32.mrf.mxu0 }
 0x5d2   :  { %v3168_v21 = vadd.f32 %v3167_v36, %v8757_v29  ;;  %v3236_v37 = vpop.f32.mrf.mxu1  ;;  %3627 = vmatpush.bf16.msra.mxu1 %v8876_v41 }
 0x5d4   :  { %v8864_v62 = vadd.f32 %v3236_v37, %v3168_v21 }
 0x5d6   :  { %11406 = vst [vmem:[#allocation112_spill] sm:$0xff] %v8864_v62  ;;  %v6364_v62 = vld [vmem:[#allocation2 + $0x298] sm:$0xff] }
 0x5d7   :  { %v3118_v17 = vpop.f32.mrf.mxu3  ;;  %3628 = vmatpush.bf16.msra.mxu1 %v6364_v62 }
 0x5d8   :  { %v8872_v58 = vadd.f32 %v3118_v17, %v8638_v19  ;;  %v6370_v19 = vld [vmem:[#allocation2 + $0x2c8] sm:$0xff] }
 0x5d9   :  { %v8874_v47 = vpop.f32.mrf.mxu2  ;;  %v3170_v29 = vpop.f32.mrf.mxu0 }
 0x5da   :  { %v3171_v36 = vadd.f32 %v3170_v29, %v8773_v40  ;;  %v3239_v21 = vpop.f32.mrf.mxu1 }
 0x5dc   :  { %v8880_v37 = vadd.f32 %v3239_v21, %v3171_v36  ;;  %3209 = vmatmul.bf16.gmra.mxu0 %v11408_v43  ;;  %3499 = vmatmul.bf16.gmra.mxu3 %v11409_v52  ;;  %v6363_v36 = vld [vmem:[#allocation2 + $0x290] sm:$0xff] }
 0x5dd   :  { %5985 = vmatmul.msk.bf16.gmra.mxu1 %vm728_vm0, %v11284_v45  ;;  %v6371_v21 = vld [vmem:[#allocation2 + $0x2d0] sm:$0xff]  ;;  %v6362_v45 = vld [vmem:[#allocation2 + $0x288] sm:$0xff] }
 0x5de   :  { %11407 = vst [vmem:[#allocation92_spill] sm:$0xff] %v8880_v37  ;;  %3470 = vmatmul.bf16.gmra.mxu2 %v11207_v0  ;;  %3629 = vmatpush.bf16.msra.mxu1 %v6363_v36  ;;  %v8908_v36 = vld [vmem:[#allocation2 + $0x258] sm:$0xff] }
 0x5df   :  { %v3121_v40 = vpop.f32.mrf.mxu3  ;;  %3698 = vmatpush.bf16.msra.mxu2 %v6371_v21 }
 0x5e0   :  { %v8890_v17 = vadd.f32 %v3121_v40, %v8658_v26 }
 0x5e1   :  { %v8892_v29 = vpop.f32.mrf.mxu2  ;;  %v3172_v52 = vpop.f32.mrf.mxu0 }
 0x5e2   :  { %v3173_v43 = vadd.f32 %v3172_v52, %v8784_v1  ;;  %v3241_v28 = vpop.f32.mrf.mxu1  ;;  %3630 = vmatpush.bf16.msra.mxu1 %v6362_v45  ;;  %v8904_v1 = vld [vmem:[#allocation2 + $0x2c0] sm:$0xff] }
 0x5e3   :  { %3699 = vmatpush.bf16.msra.mxu2 %v6370_v19  ;;  %11410 = vst [vmem:[#allocation88_spill] sm:$0xff] %v8904_v1 }
 0x5e4   :  { %v8895_v0 = vadd.f32 %v3241_v28, %v3173_v43 }
 0x5e6   :  { %3631 = vmatpush.bf16.msra.mxu1 %v6361_v7 }
 0x5e7   :  { %v3123_v26 = vpop.f32.mrf.mxu3  ;;  %3700 = vmatpush.bf16.msra.mxu2 %v8904_v1 }
 0x5e8   :  { %v8900_v40 = vadd.f32 %v3123_v26, %v8675_v5  ;;  %v11412_v5 = vld [vmem:[#allocation71_spill] sm:$0xff]  ;;  %v11413_v26 = vld [vmem:[#allocation21_spill] sm:$0xff] }
 0x5e9   :  { %v8902_v37 = vpop.f32.mrf.mxu2  ;;  %v3175_v52 = vpop.f32.mrf.mxu0 }
 0x5ea   :  { %v3176_v28 = vadd.f32 %v3175_v52, %v8800_v8  ;;  %v3244_v43 = vpop.f32.mrf.mxu1  ;;  %3957 = vmatpush.bf16.msrb.mxu1 %v8908_v36  ;;  %v8920_v52 = vld [vmem:[#allocation2 + $0x250] sm:$0xff] }
 0x5eb   :  { %4026 = vmatpush.bf16.msrb.mxu2 %v6372_v53 }
 0x5ec   :  { %v8911_v45 = vadd.f32 %v3244_v43, %v3176_v28  ;;  %3214 = vmatmul.bf16.gmra.mxu0 %v11412_v5  ;;  %3504 = vmatmul.bf16.gmra.mxu3 %v11413_v26 }
 0x5ed   :  { %5986 = vmatmul.msk.bf16.gmra.mxu1 %vm728_vm0, %v11297_v34  ;;  %v8929_v34 = vld [vmem:[#allocation2 + $0x248] sm:$0xff] }
 0x5ee   :  { %11411 = vst [vmem:[#allocation94_spill] sm:$0xff] %v8911_v45  ;;  %3475 = vmatmul.bf16.gmra.mxu2 %v11215_v50  ;;  %3958 = vmatpush.bf16.msrb.mxu1 %v8920_v52  ;;  %v8936_v45 = vld [vmem:[#allocation2 + $0x240] sm:$0xff] }
 0x5ef   :  { %v3126_v8 = vpop.f32.mrf.mxu3  ;;  %4027 = vmatpush.bf16.msrb.mxu2 %v6371_v21  ;;  %v11416_v50 = vld [vmem:[#allocation73_spill] sm:$0xff] }
 0x5f0   :  { %v8924_v53 = vadd.f32 %v3126_v8, %v8694_v33 }
 0x5f1   :  { %v8926_v28 = vpop.f32.mrf.mxu2  ;;  %v3177_v43 = vpop.f32.mrf.mxu0 }
 0x5f2   :  { %v3178_v62 = vadd.f32 %v3177_v43, %v8811_v13  ;;  %v3246_v26 = vpop.f32.mrf.mxu1  ;;  %3959 = vmatpush.bf16.msrb.mxu1 %v8929_v34 }
 0x5f3   :  { %4028 = vmatpush.bf16.msrb.mxu2 %v6370_v19 }
 0x5f4   :  { %v8932_v7 = vadd.f32 %v3246_v26, %v3178_v62  ;;  %v6514_v26 = vld [vmem:[#allocation2 + $0x238] sm:$0xff] }
 0x5f6   :  { %11414 = vst [vmem:[#allocation109_spill] sm:$0xff] %v8932_v7  ;;  %3960 = vmatpush.bf16.msrb.mxu1 %v8936_v45  ;;  %v11417_v7 = vld [vmem:[#allocation25_spill] sm:$0xff] }
 0x5f7   :  { %v3128_v21 = vpop.f32.mrf.mxu3  ;;  %4029 = vmatpush.bf16.msrb.mxu2 %v8904_v1 }
 0x5f8   :  { %v8941_v33 = vadd.f32 %v3128_v21, %v8705_v59  ;;  %v6515_v21 = vld [vmem:[#allocation2 + $0x230] sm:$0xff]  ;;  %v11420_v59 = vld [vmem:[#allocation106_spill] sm:$0xff] }
 0x5f9   :  { %v8943_v13 = vpop.f32.mrf.mxu2  ;;  %v3180_v8 = vpop.f32.mrf.mxu0 }
 0x5fa   :  { %v3181_v19 = vadd.f32 %v3180_v8, %v8827_v25  ;;  %v3249_v62 = vpop.f32.mrf.mxu1  ;;  %3961 = vmatpush.bf16.msrb.mxu1 %v6514_v26 }
 0x5fb   :  { %4030 = vmatpush.bf16.msrb.mxu2 %v8847_v4 }
 0x5fc   :  { %v8947_v43 = vadd.f32 %v3249_v62, %v3181_v19  ;;  %3219 = vmatmul.bf16.gmra.mxu0 %v11416_v50  ;;  %3509 = vmatmul.bf16.gmra.mxu3 %v11417_v7  ;;  %v6516_v7 = vld [vmem:[#allocation2 + $0x228] sm:$0xff] }
 0x5fd   :  { %5987 = vmatmul.msk.bf16.gmra.mxu1 %vm728_vm0, %v11302_v20 }
 0x5fe   :  { %11415 = vst [vmem:[#allocation99_spill] sm:$0xff] %v8947_v43  ;;  %3480 = vmatmul.bf16.gmra.mxu2 %v11156_v60  ;;  %3962 = vmatpush.bf16.msrb.mxu1 %v6515_v21 }
 0x5ff   :  { %v3131_v25 = vpop.f32.mrf.mxu3  ;;  %4031 = vmatpush.bf16.msrb.mxu2 %v8860_v30  ;;  %v6517_v30 = vld [vmem:[#allocation2 + $0x220] sm:$0xff] }
 0x600   :  { %v8958_v4 = vadd.f32 %v3131_v25, %v8721_v6 }
 0x601   :  { %v8960_v8 = vpop.f32.mrf.mxu2  ;;  %v3182_v19 = vpop.f32.mrf.mxu0 }
 0x602   :  { %v3183_v62 = vadd.f32 %v3182_v19, %v8838_v12  ;;  %v3251_v1 = vpop.f32.mrf.mxu1  ;;  %3963 = vmatpush.bf16.msrb.mxu1 %v6516_v7 }
 0x603   :  { %4032 = vmatpush.bf16.msrb.mxu2 %v8866_v35 }
 0x604   :  { %v8964_v60 = vadd.f32 %v3251_v1, %v3183_v62  ;;  %v11418_v1 = vld [vmem:[#allocation30_spill] sm:$0xff] }
 0x606   :  { %3964 = vmatpush.bf16.msrb.mxu1 %v6517_v30 }
 0x607   :  { %v3133_v43 = vpop.f32.mrf.mxu3  ;;  %4033 = vmatpush.bf16.msrb.mxu2 %v8876_v41 }
 0x608   :  { %v8970_v6 = vadd.f32 %v3133_v43, %v8732_v46 }
 0x609   :  { %v8972_v25 = vpop.f32.mrf.mxu2  ;;  %v3185_v12 = vpop.f32.mrf.mxu0 }
 0x60a   :  { %v3186_v19 = vadd.f32 %v3185_v12, %v8856_v14  ;;  %v3254_v54 = vpop.f32.mrf.mxu1  ;;  %v11419_v14 = vld [vmem:[#allocation98_spill] sm:$0xff] }
 0x60c   :  { %v8975_v35 = vadd.f32 %v3254_v54, %v3186_v19  ;;  %3514 = vmatmul.bf16.gmra.mxu3 %v11418_v1  ;;  %3563 = vmatmul.bf16.vlgmr.msra.gmra.mxu0 %v11276_v11 }
 0x60d   :  { %3632 = vmatmul.bf16.vlgmr.msra.gmra.mxu1 %v11311_v49  ;;  %4221 = vmatpush.bf16.msra.mxu0 %v8652_v16  ;;  %v11422_v16 = vld [vmem:[#allocation102_spill] sm:$0xff] }
 0x60e   :  { %6036 = vmatmul.msk.bf16.vlgmr.msra.gmra.mxu2 %vm728_vm0, %v11231_v27  ;;  %4290 = vmatpush.bf16.msra.mxu1 %v6514_v26  ;;  %v11421_v27 = vld [vmem:[#allocation100_spill] sm:$0xff] }
 0x60f   :  { %v3136_v46 = vpop.f32.mrf.mxu3  ;;  %4359 = vmatpush.bf16.msra.mxu2 %v11419_v14  ;;  %v11423_v14 = vld [vmem:[#allocation66_spill] sm:$0xff] }
 0x610   :  { %v8987_v54 = vadd.f32 %v3136_v46, %v8748_v55  ;;  %v11424_v46 = vld [vmem:[#allocation14_spill] sm:$0xff] }
 0x611   :  { %v8989_v43 = vpop.f32.mrf.mxu2  ;;  %v3187_v62 = vpop.f32.mrf.mxu0  ;;  %4222 = vmatpush.bf16.msra.mxu0 %v11420_v59 }
 0x612   :  { %v3188_v12 = vadd.f32 %v3187_v62, %v8872_v58  ;;  %v3256_v19 = vpop.f32.mrf.mxu1  ;;  %4291 = vmatpush.bf16.msra.mxu1 %v6515_v21  ;;  %v11425_v62 = vld [vmem:[#allocation86_spill] sm:$0xff] }
 0x613   :  { %4360 = vmatpush.bf16.msra.mxu2 %v11421_v27 }
 0x614   :  { %v8994_v41 = vadd.f32 %v3256_v19, %v3188_v12  ;;  %v11426_v12 = vld [vmem:[#allocation104_spill] sm:$0xff] }
 0x615   :  { %4223 = vmatpush.bf16.msra.mxu0 %v11423_v14  ;;  %v11428_v14 = vld [vmem:[#allocation18_spill] sm:$0xff] }
 0x616   :  { %4292 = vmatpush.bf16.msra.mxu1 %v6516_v7  ;;  %v11427_v7 = vld [vmem:[#allocation36_spill] sm:$0xff] }
 0x617   :  { %v3138_v55 = vpop.f32.mrf.mxu3  ;;  %4361 = vmatpush.bf16.msra.mxu2 %v11424_v46  ;;  %v11429_v46 = vld [vmem:[#allocation43_spill] sm:$0xff] }
 0x618   :  { %v9001_v1 = vadd.f32 %v3138_v55, %v8759_v15  ;;  %v11430_v15 = vld [vmem:[#allocation58_spill] sm:$0xff]  ;;  %v11431_v55 = vld [vmem:[#allocation108_spill] sm:$0xff] }
 0x619   :  { %v9003_v58 = vpop.f32.mrf.mxu2  ;;  %v3190_v59 = vpop.f32.mrf.mxu0  ;;  %4224 = vmatpush.bf16.msra.mxu0 %v11425_v62  ;;  %v6518_v62 = vld [vmem:[#allocation2 + $0x1d8] sm:$0xff] }
 0x61a   :  { %v3191_v21 = vadd.f32 %v3190_v59, %v8890_v17  ;;  %v3259_v27 = vpop.f32.mrf.mxu1  ;;  %4293 = vmatpush.bf16.msra.mxu1 %v6517_v30  ;;  %v11432_v59 = vld [vmem:[#allocation117_spill] sm:$0xff]  ;;  %v11435_v17 = vld [vmem:[#allocation46_spill] sm:$0xff] }
 0x61b   :  { %4362 = vmatpush.bf16.msra.mxu2 %v11426_v12 }
 0x61c   :  { %v9008_v19 = vadd.f32 %v3259_v27, %v3191_v21  ;;  %3519 = vmatmul.bf16.gmra.mxu3 %v11427_v7  ;;  %3568 = vmatmul.bf16.gmra.mxu0 %v11428_v14 }
 0x61d   :  { %3637 = vmatmul.bf16.gmra.mxu1 %v11429_v46  ;;  %4225 = vmatpush.bf16.msra.mxu0 %v11432_v59  ;;  %v6520_v46 = vld [vmem:[#allocation2 + $0x1d0] sm:$0xff] }
 0x61e   :  { %6037 = vmatmul.msk.bf16.gmra.mxu2 %vm728_vm0, %v11430_v15  ;;  %4294 = vmatpush.bf16.msra.mxu1 %v6518_v62  ;;  %v6519_v15 = vld [vmem:[#allocation2 + $0x190] sm:$0xff]  ;;  %v11445_v62 = vld [vmem:[#allocation44_spill] sm:$0xff] }
 0x61f   :  { %v3141_v30 = vpop.f32.mrf.mxu3  ;;  %4363 = vmatpush.bf16.msra.mxu2 %v8908_v36 }
 0x620   :  { %v9020_v21 = vadd.f32 %v3141_v30, %v8775_v9  ;;  %v6521_v9 = vld [vmem:[#allocation2 + $0x1c8] sm:$0xff] }
 0x621   :  { %v9022_v27 = vpop.f32.mrf.mxu2  ;;  %v3192_v12 = vpop.f32.mrf.mxu0  ;;  %4226 = vmatpush.bf16.msra.mxu0 %v6519_v15 }
 0x622   :  { %v3193_v26 = vadd.f32 %v3192_v12, %v8900_v40  ;;  %v3261_v7 = vpop.f32.mrf.mxu1  ;;  %4295 = vmatpush.bf16.msra.mxu1 %v6520_v46  ;;  %v6523_v12 = vld [vmem:[#allocation2 + $0x1c0] sm:$0xff] }
 0x623   :  { %4364 = vmatpush.bf16.msra.mxu2 %v8920_v52 }
 0x624   :  { %v9026_v59 = vadd.f32 %v3261_v7, %v3193_v26  ;;  %v6522_v7 = vld [vmem:[#allocation2 + $0x180] sm:$0xff] }
 0x625   :  { %4227 = vmatpush.bf16.msra.mxu0 %v11435_v17 }
 0x626   :  { %11433 = vst [vmem:[#allocation114_spill] sm:$0xff] %v9026_v59  ;;  %4296 = vmatpush.bf16.msra.mxu1 %v6521_v9  ;;  %v11437_v9 = vld [vmem:[#allocation40_spill] sm:$0xff] }
 0x627   :  { %v3143_v30 = vpop.f32.mrf.mxu3  ;;  %4365 = vmatpush.bf16.msra.mxu2 %v8929_v34  ;;  %v11438_v34 = vld [vmem:[#allocation22_spill] sm:$0xff] }
 0x628   :  { %v9033_v40 = vadd.f32 %v3143_v30, %v8786_v10  ;;  %v11439_v10 = vld [vmem:[#allocation48_spill] sm:$0xff] }
 0x629   :  { %v9035_v15 = vpop.f32.mrf.mxu2  ;;  %v3195_v46 = vpop.f32.mrf.mxu0  ;;  %4228 = vmatpush.bf16.msra.mxu0 %v6522_v7  ;;  %v11440_v30 = vld [vmem:[#allocation60_spill] sm:$0xff] }
 0x62a   :  { %v3196_v52 = vadd.f32 %v3195_v46, %v8924_v53  ;;  %v3264_v26 = vpop.f32.mrf.mxu1  ;;  %4297 = vmatpush.bf16.msra.mxu1 %v6523_v12 }
 0x62b   :  { %4366 = vmatpush.bf16.msra.mxu2 %v8936_v45 }
 0x62c   :  { %v9039_v17 = vadd.f32 %v3264_v26, %v3196_v52  ;;  %3524 = vmatmul.bf16.gmra.mxu3 %v11437_v9  ;;  %3573 = vmatmul.bf16.gmra.mxu0 %v11438_v34 }
 0x62d   :  { %3642 = vmatmul.bf16.gmra.mxu1 %v11439_v10  ;;  %v11453_v10 = vld [vmem:[#allocation49_spill] sm:$0xff] }
 0x62e   :  { %11436 = vst [vmem:[#allocation70_spill] sm:$0xff] %v9039_v17  ;;  %6038 = vmatmul.msk.bf16.gmra.mxu2 %vm728_vm0, %v11440_v30 }
 0x62f   :  { %v3146_v36 = vpop.f32.mrf.mxu3 }
 0x630   :  { %v9049_v7 = vadd.f32 %v3146_v36, %v8802_v2 }
 0x631   :  { %v9051_v12 = vpop.f32.mrf.mxu2  ;;  %v3197_v45 = vpop.f32.mrf.mxu0 }
 0x632   :  { %v3198_v52 = vadd.f32 %v3197_v45, %v8941_v33  ;;  %v3266_v26 = vpop.f32.mrf.mxu1  ;;  %v11446_v33 = vld [vmem:[#allocation26_spill] sm:$0xff]  ;;  %v11447_v45 = vld [vmem:[#allocation52_spill] sm:$0xff] }
 0x634   :  { %v9054_v9 = vadd.f32 %v3266_v26, %v3198_v52  ;;  %v11448_v52 = vld [vmem:[#allocation62_spill] sm:$0xff] }
 0x636   :  { %11442 = vst [vmem:[#allocation89_spill] sm:$0xff] %v9054_v9 }
 0x637   :  { %v3148_v59 = vpop.f32.mrf.mxu3 }
 0x638   :  { %v9059_v30 = vadd.f32 %v3148_v59, %v8813_v61 }
 0x639   :  { %v9061_v46 = vpop.f32.mrf.mxu2  ;;  %v3200_v17 = vpop.f32.mrf.mxu0 }
 0x63a   :  { %v3201_v2 = vadd.f32 %v3200_v17, %v8958_v4  ;;  %v3269_v36 = vpop.f32.mrf.mxu1 }
 0x63c   :  { %v9064_v53 = vadd.f32 %v3269_v36, %v3201_v2  ;;  %3529 = vmatmul.bf16.gmra.mxu3 %v11445_v62  ;;  %3578 = vmatmul.bf16.gmra.mxu0 %v11446_v33 }
 0x63d   :  { %3647 = vmatmul.bf16.gmra.mxu1 %v11447_v45 }
 0x63e   :  { %11444 = vst [vmem:[#allocation95_spill] sm:$0xff] %v9064_v53  ;;  %6039 = vmatmul.msk.bf16.gmra.mxu2 %vm728_vm0, %v11448_v52 }
 0x63f   :  { %v3151_v26 = vpop.f32.mrf.mxu3 }
 0x640   :  { %v9074_v34 = vadd.f32 %v3151_v26, %v8829_v44 }
 0x641   :  { %v9076_v4 = vpop.f32.mrf.mxu2  ;;  %v3202_v17 = vpop.f32.mrf.mxu0 }
 0x642   :  { %v3203_v2 = vadd.f32 %v3202_v17, %v8970_v6  ;;  %v3271_v36 = vpop.f32.mrf.mxu1  ;;  %v11454_v6 = vld [vmem:[#allocation31_spill] sm:$0xff] }
 0x643   :  { %v11455_v17 = vld [vmem:[#allocation55_spill] sm:$0xff] }
 0x644   :  { %v9079_v62 = vadd.f32 %v3271_v36, %v3203_v2  ;;  %v11456_v2 = vld [vmem:[#allocation64_spill] sm:$0xff] }
 0x646   :  { %11450 = vst [vmem:[#allocation111_spill] sm:$0xff] %v9079_v62 }
 0x647   :  { %v3153_v9 = vpop.f32.mrf.mxu3 }
 0x648   :  { %v9084_v52 = vadd.f32 %v3153_v9, %v8840_v39  ;;  %v11463_v39 = vld [vmem:[#allocation53_spill] sm:$0xff] }
 0x649   :  { %v9086_v59 = vpop.f32.mrf.mxu2  ;;  %v3205_v53 = vpop.f32.mrf.mxu0 }
 0x64a   :  { %v3206_v44 = vadd.f32 %v3205_v53, %v8987_v54  ;;  %v3274_v26 = vpop.f32.mrf.mxu1 }
 0x64c   :  { %v9089_v61 = vadd.f32 %v3274_v26, %v3206_v44  ;;  %3534 = vmatmul.bf16.gmra.mxu3 %v11453_v10  ;;  %3583 = vmatmul.bf16.gmra.mxu0 %v11454_v6 }
 0x64d   :  { %3652 = vmatmul.bf16.gmra.mxu1 %v11455_v17 }
 0x64e   :  { %11452 = vst [vmem:[#allocation27_spill] sm:$0xff] %v9089_v61  ;;  %6040 = vmatmul.msk.bf16.gmra.mxu2 %vm728_vm0, %v11456_v2 }
 0x64f   :  { %v3495_v36 = vpop.f32.mrf.mxu3 }
 0x651   :  { %v9098_v33 = vpop.f32.mrf.mxu2  ;;  %v3207_v62 = vpop.f32.mrf.mxu0 }
 0x652   :  { %11458 = vst [vmem:[#allocation90_spill] sm:$0xff] %v9098_v33  ;;  %v3208_v54 = vadd.f32 %v3207_v62, %v9001_v1  ;;  %v3276_v53 = vpop.f32.mrf.mxu1  ;;  %v11464_v33 = vld [vmem:[#allocation37_spill] sm:$0xff] }
 0x653   :  { %v11465_v1 = vld [vmem:[#allocation57_spill] sm:$0xff] }
 0x654   :  { %v9101_v44 = vadd.f32 %v3276_v53, %v3208_v54  ;;  %v11466_v62 = vld [vmem:[#allocation69_spill] sm:$0xff] }
 0x656   :  { %11459 = vst [vmem:[#allocation33_spill] sm:$0xff] %v9101_v44 }
 0x657   :  { %v9105_v6 = vpop.f32.mrf.mxu3 }
 0x659   :  { %v9107_v17 = vpop.f32.mrf.mxu2  ;;  %v3210_v2 = vpop.f32.mrf.mxu0 }
 0x65a   :  { %11461 = vst [vmem:[#allocation116_spill] sm:$0xff] %v9107_v17  ;;  %v3211_v45 = vadd.f32 %v3210_v2, %v9020_v21  ;;  %v3279_v9 = vpop.f32.mrf.mxu1  ;;  %v11473_v17 = vld [vmem:[#allocation41_spill] sm:$0xff] }
 0x65c   :  { %v9110_v61 = vadd.f32 %v3279_v9, %v3211_v45  ;;  %3539 = vmatmul.bf16.gmra.mxu3 %v11463_v39  ;;  %3588 = vmatmul.bf16.gmra.mxu0 %v11464_v33  ;;  %v11480_v39 = vld [vmem:[#allocation24_spill] sm:$0xff] }
 0x65d   :  { %3657 = vmatmul.bf16.gmra.mxu1 %v11465_v1 }
 0x65e   :  { %11462 = vst [vmem:[#allocation32_spill] sm:$0xff] %v9110_v61  ;;  %6041 = vmatmul.msk.bf16.gmra.mxu2 %vm728_vm0, %v11466_v62 }
 0x65f   :  { %v9119_v10 = vpop.f32.mrf.mxu3 }
 0x661   :  { %v9121_v44 = vpop.f32.mrf.mxu2  ;;  %v3212_v21 = vpop.f32.mrf.mxu0 }
 0x662   :  { %11468 = vst [vmem:[#allocation93_spill] sm:$0xff] %v9121_v44  ;;  %v3213_v45 = vadd.f32 %v3212_v21, %v9033_v40  ;;  %v3281_v2 = vpop.f32.mrf.mxu1  ;;  %v11472_v44 = vld [vmem:[#allocation20_spill] sm:$0xff]  ;;  %v11474_v40 = vld [vmem:[#allocation59_spill] sm:$0xff] }
 0x663   :  { %v11475_v21 = vld [vmem:[#allocation72_spill] sm:$0xff] }
 0x664   :  { %v9124_v9 = vadd.f32 %v3281_v2, %v3213_v45 }
 0x666   :  { %11469 = vst [vmem:[#allocation103_spill] sm:$0xff] %v9124_v9 }
 0x667   :  { %v9128_v1 = vpop.f32.mrf.mxu3 }
 0x669   :  { %v9130_v26 = vpop.f32.mrf.mxu2  ;;  %v3215_v62 = vpop.f32.mrf.mxu0 }
 0x66a   :  { %v3216_v53 = vadd.f32 %v3215_v62, %v9049_v7  ;;  %v3284_v61 = vpop.f32.mrf.mxu1 }
 0x66c   :  { %v9133_v54 = vadd.f32 %v3284_v61, %v3216_v53  ;;  %3544 = vmatmul.bf16.gmra.mxu3 %v11472_v44  ;;  %3593 = vmatmul.bf16.gmra.mxu0 %v11473_v17 }
 0x66d   :  { %3662 = vmatmul.bf16.gmra.mxu1 %v11474_v40 }
 0x66e   :  { %11471 = vst [vmem:[#allocation96_spill] sm:$0xff] %v9133_v54  ;;  %6042 = vmatmul.msk.bf16.gmra.mxu2 %vm728_vm0, %v11475_v21 }
 0x66f   :  { %v9142_v33 = vpop.f32.mrf.mxu3 }
 0x671   :  { %v9144_v9 = vpop.f32.mrf.mxu2  ;;  %v3217_v7 = vpop.f32.mrf.mxu0 }
 0x672   :  { %11477 = vst [vmem:[#allocation83_spill] sm:$0xff] %v9144_v9  ;;  %v3218_v61 = vadd.f32 %v3217_v7, %v9059_v30  ;;  %v3286_v62 = vpop.f32.mrf.mxu1  ;;  %v11481_v9 = vld [vmem:[#allocation45_spill] sm:$0xff] }
 0x674   :  { %v9147_v53 = vadd.f32 %v3286_v62, %v3218_v61 }
 0x676   :  { %11478 = vst [vmem:[#allocation80_spill] sm:$0xff] %v9147_v53  ;;  %v11484_v53 = vld [vmem:[#allocation11_spill] sm:$0xff] }
 0x677   :  { %v9151_v40 = vpop.f32.mrf.mxu3 }
 0x679   :  { %v9153_v17 = vpop.f32.mrf.mxu2  ;;  %v3220_v21 = vpop.f32.mrf.mxu0 }
 0x67a   :  { %v3221_v2 = vadd.f32 %v3220_v21, %v9074_v34  ;;  %v3289_v54 = vpop.f32.mrf.mxu1 }
 0x67c   :  { %v9156_v45 = vadd.f32 %v3289_v54, %v3221_v2  ;;  %3549 = vmatmul.bf16.gmra.mxu3 %v11480_v39  ;;  %3598 = vmatmul.bf16.gmra.mxu0 %v11481_v9  ;;  %v11483_v9 = vld [vmem:[#allocation50_spill] sm:$0xff] }
 0x67d   :  { %3667 = vmatmul.bf16.gmra.mxu1 %v11398_v22 }
 0x67e   :  { %11479 = vst [vmem:[#allocation101_spill] sm:$0xff] %v9156_v45  ;;  %6043 = vmatmul.msk.bf16.gmra.mxu2 %vm728_vm0, %v11273_v38  ;;  %v3496_v38 = vadd.f32 %v3495_v36, %v8858_v57  ;;  %v3498_v57 = vadd.f32 %v9105_v6, %v8874_v47 }
 0x67f   :  { %v9165_v7 = vpop.f32.mrf.mxu3 }
 0x681   :  { %v9167_v61 = vpop.f32.mrf.mxu2  ;;  %v3222_v34 = vpop.f32.mrf.mxu0 }
 0x682   :  { %v3223_v54 = vadd.f32 %v3222_v34, %v9084_v52  ;;  %v3291_v21 = vpop.f32.mrf.mxu1 }
 0x684   :  { %v9170_v2 = vadd.f32 %v3291_v21, %v3223_v54 }
 0x686   :  { %11482 = vst [vmem:[#allocation78_spill] sm:$0xff] %v9170_v2 }
 0x687   :  { %v9174_v44 = vpop.f32.mrf.mxu3 }
 0x689   :  { %v9177_v39 = vpop.f32.mrf.mxu2  ;;  %v3564_v30 = vpop.f32.mrf.mxu0 }
 0x68a   :  { %v3565_v45 = vadd.f32 %v3564_v30, %v3496_v38  ;;  %v3633_v32 = vpop.f32.mrf.mxu1 }
 0x68c   :  { %v3634_v22 = vadd.f32 %v3633_v32, %v3565_v45  ;;  %3603 = vmatmul.bf16.gmra.mxu0 %v11483_v9  ;;  %3827 = vmatmul.bf16.vlgmr.msrb.gmra.mxu3 %v11484_v53  ;;  %v11485_v32 = vld [vmem:[#allocation67_spill] sm:$0xff] }
 0x68d   :  { %3672 = vmatmul.bf16.gmra.mxu1 %v11404_v18  ;;  %v11486_v45 = vmax.f32 %v8482_v23, %v11485_v32  ;;  %v11492_v23 = vld [vmem:[#allocation54_spill] sm:$0xff]  ;;  %v11496_v32 = vld [vmem:[#allocation97_spill] sm:$0xff] }
 0x68e   :  { %6044 = vmatmul.msk.bf16.gmra.mxu2 %vm728_vm0, %v11275_v51  ;;  %v3501_v51 = vadd.f32 %v9119_v10, %v8892_v29 }
 0x68f   :  { %v9184_v52 = vpop.f32.mrf.mxu3 }
 0x691   :  { %v3702_v36 = vpop.f32.mrf.mxu2  ;;  %v3566_v54 = vpop.f32.mrf.mxu0 }
 0x692   :  { %v3703_v34 = vadd.f32 %v3702_v36, %v3634_v22  ;;  %v3567_v38 = vadd.f32 %v3566_v54, %v3498_v57  ;;  %v3635_v30 = vpop.f32.mrf.mxu1  ;;  %v11488_v22 = vld [vmem:[#allocation82_spill] sm:$0xff]  ;;  %v11489_v36 = vld [vmem:[#allocation112_spill] sm:$0xff] }
 0x693   :  { %v11490_v57 = vmax.f32 %v11488_v22, %v11489_v36 }
 0x694   :  { %v9191_v21 = vmax.f32 %v11486_v45, %v3703_v34  ;;  %v3636_v62 = vadd.f32 %v3635_v30, %v3567_v38  ;;  %v11493_v34 = vld [vmem:[#allocation15_spill] sm:$0xff]  ;;  %v11494_v38 = vld [vmem:[#allocation68_spill] sm:$0xff]  ;;  %v11495_v30 = vld [vmem:[#allocation77_spill] sm:$0xff] }
 0x695   :  { %v11497_v45 = vld [vmem:[#allocation92_spill] sm:$0xff] }
 0x696   :  { %11487 = vst [vmem:[#allocation98_spill] sm:$0xff] %v9191_v21 }
 0x697   :  { %v9193_v53 = vpop.f32.mrf.mxu3 }
 0x699   :  { %v3704_v18 = vpop.f32.mrf.mxu2  ;;  %v3569_v2 = vpop.f32.mrf.mxu0 }
 0x69a   :  { %v3705_v9 = vadd.f32 %v3704_v18, %v3636_v62  ;;  %v3570_v47 = vadd.f32 %v3569_v2, %v3501_v51  ;;  %v3638_v6 = vpop.f32.mrf.mxu1  ;;  %v3503_v51 = vadd.f32 %v9128_v1, %v8902_v37 }
 0x69c   :  { %v9200_v54 = vmax.f32 %v11490_v57, %v3705_v9  ;;  %v3639_v63 = vadd.f32 %v3638_v6, %v3570_v47  ;;  %3608 = vmatmul.bf16.gmra.mxu0 %v11492_v23  ;;  %3832 = vmatmul.bf16.gmra.mxu3 %v11493_v34  ;;  %v11498_v47 = vmax.f32 %v11496_v32, %v11497_v45 }
 0x69d   :  { %3677 = vmatmul.bf16.gmra.mxu1 %v11494_v38  ;;  %v3506_v57 = vadd.f32 %v9142_v33, %v8926_v28  ;;  %v3508_v33 = vadd.f32 %v9151_v40, %v8943_v13 }
 0x69e   :  { %11491 = vst [vmem:[#allocation106_spill] sm:$0xff] %v9200_v54  ;;  %6045 = vmatmul.msk.bf16.gmra.mxu2 %vm728_vm0, %v11495_v30 }
 0x69f   :  { %v9207_v29 = vpop.f32.mrf.mxu3 }
 0x6a1   :  { %v3707_v18 = vpop.f32.mrf.mxu2  ;;  %v3571_v2 = vpop.f32.mrf.mxu0 }
 0x6a2   :  { %v3708_v10 = vadd.f32 %v3707_v18, %v3639_v63  ;;  %v3572_v9 = vadd.f32 %v3571_v2, %v3503_v51  ;;  %v3640_v62 = vpop.f32.mrf.mxu1  ;;  %v11499_v63 = vmax.f32 %v8541_v42, %v8895_v0  ;;  %v11500_v2 = vld [vmem:[#allocation29_spill] sm:$0xff] }
 0x6a4   :  { %v9214_v6 = vmax.f32 %v11498_v47, %v3708_v10  ;;  %v3641_v22 = vadd.f32 %v3640_v62, %v3572_v9  ;;  %v11501_v10 = vld [vmem:[#allocation19_spill] sm:$0xff]  ;;  %v11503_v62 = vld [vmem:[#allocation94_spill] sm:$0xff] }
 0x6a5   :  { %v11502_v9 = vld [vmem:[#allocation79_spill] sm:$0xff]  ;;  %v11504_v32 = vmax.f32 %v8560_v48, %v11503_v62 }
 0x6a6   :  { %v11507_v48 = vld [vmem:[#allocation35_spill] sm:$0xff] }
 0x6a7   :  { %v9216_v36 = vpop.f32.mrf.mxu3 }
 0x6a9   :  { %v3709_v30 = vpop.f32.mrf.mxu2  ;;  %v3574_v21 = vpop.f32.mrf.mxu0 }
 0x6aa   :  { %v3710_v54 = vadd.f32 %v3709_v30, %v3641_v22  ;;  %v3575_v37 = vadd.f32 %v3574_v21, %v3506_v57  ;;  %v3643_v1 = vpop.f32.mrf.mxu1  ;;  %v3511_v57 = vadd.f32 %v9165_v7, %v8960_v8  ;;  %v3513_v7 = vadd.f32 %v9174_v44, %v8972_v25 }
 0x6ac   :  { %v9223_v51 = vmax.f32 %v11499_v63, %v3710_v54  ;;  %v3644_v18 = vadd.f32 %v3643_v1, %v3575_v37  ;;  %3613 = vmatmul.bf16.gmra.mxu0 %v11500_v2  ;;  %3837 = vmatmul.bf16.gmra.mxu3 %v11501_v10 }
 0x6ad   :  { %3682 = vmatmul.bf16.gmra.mxu1 %v11412_v5 }
 0x6ae   :  { %6046 = vmatmul.msk.bf16.gmra.mxu2 %vm728_vm0, %v11502_v9 }
 0x6af   :  { %v9230_v28 = vpop.f32.mrf.mxu3 }
 0x6b1   :  { %v3712_v21 = vpop.f32.mrf.mxu2  ;;  %v3576_v42 = vpop.f32.mrf.mxu0 }
 0x6b2   :  { %v3713_v30 = vadd.f32 %v3712_v21, %v3644_v18  ;;  %v3577_v0 = vadd.f32 %v3576_v42, %v3508_v33  ;;  %v3645_v54 = vpop.f32.mrf.mxu1  ;;  %v11505_v18 = vld [vmem:[#allocation109_spill] sm:$0xff] }
 0x6b3   :  { %v11506_v33 = vmax.f32 %v8576_v3, %v11505_v18 }
 0x6b4   :  { %v9237_v45 = vmax.f32 %v11504_v32, %v3713_v30  ;;  %v3646_v47 = vadd.f32 %v3645_v54, %v3577_v0  ;;  %v11508_v30 = vld [vmem:[#allocation23_spill] sm:$0xff] }
 0x6b7   :  { %v9239_v22 = vpop.f32.mrf.mxu3 }
 0x6b9   :  { %v3714_v37 = vpop.f32.mrf.mxu2  ;;  %v3579_v63 = vpop.f32.mrf.mxu0 }
 0x6ba   :  { %v3715_v1 = vadd.f32 %v3714_v37, %v3646_v47  ;;  %v3580_v13 = vadd.f32 %v3579_v63, %v3511_v57  ;;  %v3648_v40 = vpop.f32.mrf.mxu1  ;;  %v11509_v47 = vld [vmem:[#allocation84_spill] sm:$0xff]  ;;  %v11510_v57 = vld [vmem:[#allocation99_spill] sm:$0xff] }
 0x6bb   :  { %v11511_v37 = vmax.f32 %v11509_v47, %v11510_v57  ;;  %v11516_v47 = vmax.f32 %v8614_v24, %v8975_v35  ;;  %v11520_v24 = vld [vmem:[#allocation34_spill] sm:$0xff]  ;;  %v11521_v35 = vld [vmem:[#allocation17_spill] sm:$0xff] }
 0x6bc   :  { %v9246_v21 = vmax.f32 %v11506_v33, %v3715_v1  ;;  %v3649_v42 = vadd.f32 %v3648_v40, %v3580_v13  ;;  %3618 = vmatmul.bf16.gmra.mxu0 %v11507_v48  ;;  %3842 = vmatmul.bf16.gmra.mxu3 %v11508_v30  ;;  %v3516_v40 = vadd.f32 %v9184_v52, %v8989_v43 }
 0x6bd   :  { %3687 = vmatmul.bf16.gmra.mxu1 %v11416_v50 }
 0x6be   :  { %6047 = vmatmul.msk.bf16.gmra.mxu2 %vm728_vm0, %v11302_v20 }
 0x6bf   :  { %v9253_v8 = vpop.f32.mrf.mxu3 }
 0x6c1   :  { %v3717_v0 = vpop.f32.mrf.mxu2  ;;  %v3581_v3 = vpop.f32.mrf.mxu0 }
 0x6c2   :  { %v3718_v54 = vadd.f32 %v3717_v0, %v3649_v42  ;;  %v3582_v62 = vadd.f32 %v3581_v3, %v3513_v7  ;;  %v3650_v32 = vpop.f32.mrf.mxu1  ;;  %v11512_v42 = vmax.f32 %v8603_v56, %v8964_v60  ;;  %v11514_v3 = vld [vmem:[#allocation28_spill] sm:$0xff] }
 0x6c4   :  { %v9260_v1 = vmax.f32 %v11511_v37, %v3718_v54  ;;  %v3651_v63 = vadd.f32 %v3650_v32, %v3582_v62  ;;  %v11515_v54 = vld [vmem:[#allocation13_spill] sm:$0xff] }
 0x6c7   :  { %v9262_v13 = vpop.f32.mrf.mxu3 }
 0x6c9   :  { %v3719_v18 = vpop.f32.mrf.mxu2  ;;  %v3584_v20 = vpop.f32.mrf.mxu0 }
 0x6ca   :  { %v3720_v33 = vadd.f32 %v3719_v18, %v3651_v63  ;;  %v3585_v25 = vadd.f32 %v3584_v20, %v3516_v40  ;;  %v3653_v44 = vpop.f32.mrf.mxu1  ;;  %v3518_v20 = vadd.f32 %v9193_v53, %v9003_v58  ;;  %v3521_v40 = vadd.f32 %v9207_v29, %v9022_v27 }
 0x6cb   :  { %v3523_v29 = vadd.f32 %v9216_v36, %v9035_v15 }
 0x6cc   :  { %v9269_v7 = vmax.f32 %v11512_v42, %v3720_v33  ;;  %v3654_v0 = vadd.f32 %v3653_v44, %v3585_v25  ;;  %3847 = vmatmul.bf16.gmra.mxu3 %v11514_v3  ;;  %3896 = vmatmul.bf16.vlgmr.msrb.gmra.mxu0 %v11515_v54  ;;  %v11518_v44 = vmax.f32 %v11422_v16, %v8994_v41 }
 0x6cd   :  { %3965 = vmatmul.bf16.vlgmr.msrb.gmra.mxu1 %v11276_v11 }
 0x6ce   :  { %11513 = vst [vmem:[#allocation100_spill] sm:$0xff] %v9269_v7  ;;  %4034 = vmatmul.bf16.vlgmr.msrb.gmra.mxu2 %v11311_v49  ;;  %v11578_v7 = vld [vmem:[#allocation103_spill] sm:$0xff] }
 0x6cf   :  { %v9275_v43 = vpop.f32.mrf.mxu3 }
 0x6d1   :  { %v3722_v52 = vpop.f32.mrf.mxu2  ;;  %v3586_v32 = vpop.f32.mrf.mxu0 }
 0x6d2   :  { %v3723_v62 = vadd.f32 %v3722_v52, %v3654_v0  ;;  %v3587_v60 = vadd.f32 %v3586_v32, %v3518_v20  ;;  %v3655_v56 = vpop.f32.mrf.mxu1  ;;  %v11522_v20 = vld [vmem:[#allocation43_spill] sm:$0xff] }
 0x6d4   :  { %v9282_v57 = vmax.f32 %v11516_v47, %v3723_v62  ;;  %v3656_v37 = vadd.f32 %v3655_v56, %v3587_v60  ;;  %v11523_v60 = vmax.f32 %v11431_v55, %v9008_v19  ;;  %v11529_v19 = vld [vmem:[#allocation38_spill] sm:$0xff]  ;;  %v11530_v55 = vld [vmem:[#allocation21_spill] sm:$0xff] }
 0x6d6   :  { %11517 = vst [vmem:[#allocation102_spill] sm:$0xff] %v9282_v57 }
 0x6d7   :  { %v9284_v63 = vpop.f32.mrf.mxu3 }
 0x6d9   :  { %v3724_v18 = vpop.f32.mrf.mxu2  ;;  %v3589_v25 = vpop.f32.mrf.mxu0 }
 0x6da   :  { %v3725_v33 = vadd.f32 %v3724_v18, %v3656_v37  ;;  %v3590_v58 = vadd.f32 %v3589_v25, %v3521_v40  ;;  %v3658_v53 = vpop.f32.mrf.mxu1  ;;  %v3526_v40 = vadd.f32 %v9230_v28, %v9051_v12  ;;  %v3528_v28 = vadd.f32 %v9239_v22, %v9061_v46 }
 0x6dc   :  { %v9291_v42 = vmax.f32 %v11518_v44, %v3725_v33  ;;  %v3659_v0 = vadd.f32 %v3658_v53, %v3590_v58  ;;  %3852 = vmatmul.bf16.gmra.mxu3 %v11520_v24  ;;  %3901 = vmatmul.bf16.gmra.mxu0 %v11521_v35  ;;  %v11525_v58 = vld [vmem:[#allocation85_spill] sm:$0xff]  ;;  %v11526_v53 = vld [vmem:[#allocation114_spill] sm:$0xff] }
 0x6dd   :  { %3970 = vmatmul.bf16.gmra.mxu1 %v11428_v14  ;;  %v11527_v44 = vmax.f32 %v11525_v58, %v11526_v53  ;;  %v3531_v58 = vadd.f32 %v9253_v8, %v9076_v4  ;;  %v3533_v8 = vadd.f32 %v9262_v13, %v9086_v59 }
 0x6de   :  { %11519 = vst [vmem:[#allocation66_spill] sm:$0xff] %v9291_v42  ;;  %4039 = vmatmul.bf16.gmra.mxu2 %v11522_v20 }
 0x6df   :  { %v9297_v27 = vpop.f32.mrf.mxu3 }
 0x6e1   :  { %v3727_v52 = vpop.f32.mrf.mxu2  ;;  %v3591_v32 = vpop.f32.mrf.mxu0 }
 0x6e2   :  { %v3728_v62 = vadd.f32 %v3727_v52, %v3659_v0  ;;  %v3592_v41 = vadd.f32 %v3591_v32, %v3523_v29  ;;  %v3660_v16 = vpop.f32.mrf.mxu1  ;;  %v11531_v52 = vld [vmem:[#allocation22_spill] sm:$0xff] }
 0x6e4   :  { %v9304_v56 = vmax.f32 %v11523_v60, %v3728_v62  ;;  %v3661_v47 = vadd.f32 %v3660_v16, %v3592_v41  ;;  %v11532_v62 = vld [vmem:[#allocation48_spill] sm:$0xff] }
 0x6e6   :  { %11524 = vst [vmem:[#allocation14_spill] sm:$0xff] %v9304_v56 }
 0x6e7   :  { %v9306_v37 = vpop.f32.mrf.mxu3 }
 0x6e9   :  { %v3729_v18 = vpop.f32.mrf.mxu2  ;;  %v3594_v25 = vpop.f32.mrf.mxu0 }
 0x6ea   :  { %v3730_v33 = vadd.f32 %v3729_v18, %v3661_v47  ;;  %v3595_v15 = vadd.f32 %v3594_v25, %v3526_v40  ;;  %v3663_v36 = vpop.f32.mrf.mxu1  ;;  %v11533_v40 = vld [vmem:[#allocation118_spill] sm:$0xff] }
 0x6eb   :  { %v11534_v18 = vld [vmem:[#allocation70_spill] sm:$0xff] }
 0x6ec   :  { %v9313_v0 = vmax.f32 %v11527_v44, %v3730_v33  ;;  %v3664_v29 = vadd.f32 %v3663_v36, %v3595_v15  ;;  %3857 = vmatmul.bf16.gmra.mxu3 %v11529_v19  ;;  %3906 = vmatmul.bf16.gmra.mxu0 %v11530_v55  ;;  %v11535_v33 = vmax.f32 %v11533_v40, %v11534_v18  ;;  %v11541_v40 = vld [vmem:[#allocation42_spill] sm:$0xff] }
 0x6ed   :  { %3975 = vmatmul.bf16.gmra.mxu1 %v11531_v52 }
 0x6ee   :  { %11528 = vst [vmem:[#allocation86_spill] sm:$0xff] %v9313_v0  ;;  %4044 = vmatmul.bf16.gmra.mxu2 %v11532_v62 }
 0x6ef   :  { %v9319_v12 = vpop.f32.mrf.mxu3 }
 0x6f1   :  { %v3732_v32 = vpop.f32.mrf.mxu2  ;;  %v3596_v16 = vpop.f32.mrf.mxu0 }
 0x6f2   :  { %v3733_v41 = vadd.f32 %v3732_v32, %v3664_v29  ;;  %v3597_v60 = vadd.f32 %v3596_v16, %v3528_v28  ;;  %v3665_v47 = vpop.f32.mrf.mxu1  ;;  %v11537_v29 = vld [vmem:[#allocation105_spill] sm:$0xff] }
 0x6f3   :  { %v11538_v32 = vld [vmem:[#allocation89_spill] sm:$0xff] }
 0x6f4   :  { %v9326_v25 = vmax.f32 %v11535_v33, %v3733_v41  ;;  %v3666_v15 = vadd.f32 %v3665_v47, %v3597_v60  ;;  %v11539_v28 = vmax.f32 %v11537_v29, %v11538_v32  ;;  %v11542_v41 = vld [vmem:[#allocation25_spill] sm:$0xff]  ;;  %v11543_v60 = vld [vmem:[#allocation26_spill] sm:$0xff]  ;;  %v11544_v47 = vld [vmem:[#allocation52_spill] sm:$0xff] }
 0x6f6   :  { %11536 = vst [vmem:[#allocation104_spill] sm:$0xff] %v9326_v25 }
 0x6f7   :  { %v9328_v36 = vpop.f32.mrf.mxu3 }
 0x6f9   :  { %v3734_v53 = vpop.f32.mrf.mxu2  ;;  %v3599_v62 = vpop.f32.mrf.mxu0 }
 0x6fa   :  { %v3735_v44 = vadd.f32 %v3734_v53, %v3666_v15  ;;  %v3600_v46 = vadd.f32 %v3599_v62, %v3531_v58  ;;  %v3668_v22 = vpop.f32.mrf.mxu1  ;;  %v11545_v53 = vld [vmem:[#allocation113_spill] sm:$0xff] }
 0x6fc   :  { %v9335_v16 = vmax.f32 %v11539_v28, %v3735_v44  ;;  %v3669_v0 = vadd.f32 %v3668_v22, %v3600_v46  ;;  %3862 = vmatmul.bf16.gmra.mxu3 %v11541_v40  ;;  %3911 = vmatmul.bf16.gmra.mxu0 %v11542_v41  ;;  %v11546_v44 = vld [vmem:[#allocation95_spill] sm:$0xff]  ;;  %v11549_v28 = vld [vmem:[#allocation90_spill] sm:$0xff] }
 0x6fd   :  { %3980 = vmatmul.bf16.gmra.mxu1 %v11543_v60  ;;  %v11547_v46 = vmax.f32 %v11545_v53, %v11546_v44  ;;  %v11554_v53 = vld [vmem:[#allocation47_spill] sm:$0xff] }
 0x6fe   :  { %11540 = vst [vmem:[#allocation18_spill] sm:$0xff] %v9335_v16  ;;  %4049 = vmatmul.bf16.gmra.mxu2 %v11544_v47  ;;  %v3536_v47 = vadd.f32 %v9275_v43, %v11549_v28  ;;  %v11559_v28 = vld [vmem:[#allocation110_spill] sm:$0xff] }
 0x6ff   :  { %v9341_v4 = vpop.f32.mrf.mxu3 }
 0x701   :  { %v3737_v62 = vpop.f32.mrf.mxu2  ;;  %v3601_v33 = vpop.f32.mrf.mxu0 }
 0x702   :  { %v3738_v18 = vadd.f32 %v3737_v62, %v3669_v0  ;;  %v3602_v15 = vadd.f32 %v3601_v33, %v3533_v8  ;;  %v3670_v58 = vpop.f32.mrf.mxu1  ;;  %v11550_v0 = vld [vmem:[#allocation119_spill] sm:$0xff] }
 0x703   :  { %v11551_v62 = vld [vmem:[#allocation111_spill] sm:$0xff] }
 0x704   :  { %v9348_v22 = vmax.f32 %v11547_v46, %v3738_v18  ;;  %v3671_v29 = vadd.f32 %v3670_v58, %v3602_v15  ;;  %v11552_v8 = vmax.f32 %v11550_v0, %v11551_v62  ;;  %v11555_v18 = vld [vmem:[#allocation30_spill] sm:$0xff]  ;;  %v11556_v15 = vld [vmem:[#allocation31_spill] sm:$0xff] }
 0x705   :  { %v11557_v58 = vld [vmem:[#allocation55_spill] sm:$0xff] }
 0x706   :  { %11548 = vst [vmem:[#allocation108_spill] sm:$0xff] %v9348_v22 }
 0x707   :  { %v9350_v32 = vpop.f32.mrf.mxu3 }
 0x709   :  { %v3739_v16 = vpop.f32.mrf.mxu2  ;;  %v3604_v56 = vpop.f32.mrf.mxu0 }
 0x70a   :  { %v3740_v25 = vadd.f32 %v3739_v16, %v3671_v29  ;;  %v3605_v59 = vadd.f32 %v3604_v56, %v3536_v47  ;;  %v3673_v13 = vpop.f32.mrf.mxu1  ;;  %v11558_v16 = vld [vmem:[#allocation116_spill] sm:$0xff] }
 0x70b   :  { %v3538_v56 = vadd.f32 %v9284_v63, %v11558_v16 }
 0x70c   :  { %v9357_v33 = vmax.f32 %v11552_v8, %v3740_v25  ;;  %v3674_v20 = vadd.f32 %v3673_v13, %v3605_v59  ;;  %3867 = vmatmul.bf16.gmra.mxu3 %v11554_v53  ;;  %3916 = vmatmul.bf16.gmra.mxu0 %v11555_v18  ;;  %v11560_v59 = vld [vmem:[#allocation27_spill] sm:$0xff]  ;;  %v11577_v53 = vld [vmem:[#allocation65_spill] sm:$0xff] }
 0x70d   :  { %3985 = vmatmul.bf16.gmra.mxu1 %v11556_v15  ;;  %v11561_v13 = vmax.f32 %v11559_v28, %v11560_v59  ;;  %v11568_v28 = vld [vmem:[#allocation51_spill] sm:$0xff]  ;;  %v11571_v59 = vld [vmem:[#allocation57_spill] sm:$0xff] }
 0x70e   :  { %11553 = vst [vmem:[#allocation117_spill] sm:$0xff] %v9357_v33  ;;  %4054 = vmatmul.bf16.gmra.mxu2 %v11557_v58  ;;  %v11563_v33 = vld [vmem:[#allocation93_spill] sm:$0xff] }
 0x70f   :  { %v9363_v43 = vpop.f32.mrf.mxu3  ;;  %v3541_v58 = vadd.f32 %v9297_v27, %v11563_v33  ;;  %v6375_v33 = vld [vmem:[#allocation2 + $0x2f0] sm:$0xff] }
 0x711   :  { %v3742_v47 = vpop.f32.mrf.mxu2  ;;  %v3606_v46 = vpop.f32.mrf.mxu0 }
 0x712   :  { %v3743_v44 = vadd.f32 %v3742_v47, %v3674_v20  ;;  %v3607_v29 = vadd.f32 %v3606_v46, %v3538_v56  ;;  %v3675_v25 = vpop.f32.mrf.mxu1  ;;  %v11564_v20 = vld [vmem:[#allocation115_spill] sm:$0xff]  ;;  %v11565_v47 = vld [vmem:[#allocation33_spill] sm:$0xff] }
 0x713   :  { %v11566_v56 = vmax.f32 %v11564_v20, %v11565_v47 }
 0x714   :  { %v9370_v0 = vmax.f32 %v11561_v13, %v3743_v44  ;;  %v3676_v62 = vadd.f32 %v3675_v25, %v3607_v29  ;;  %v11569_v44 = vld [vmem:[#allocation36_spill] sm:$0xff]  ;;  %v11570_v25 = vld [vmem:[#allocation37_spill] sm:$0xff] }
 0x715   :  { %v6376_v29 = vld [vmem:[#allocation2 + $0x2f8] sm:$0xff] }
 0x716   :  { %11562 = vst [vmem:[#allocation46_spill] sm:$0xff] %v9370_v0  ;;  %4099 = vmatpush.bf16.msra.mxu3 %v6376_v29  ;;  %v11576_v0 = vld [vmem:[#allocation83_spill] sm:$0xff] }
 0x717   :  { %v9372_v8 = vpop.f32.mrf.mxu3 }
 0x719   :  { %v3744_v22 = vpop.f32.mrf.mxu2  ;;  %v3609_v57 = vpop.f32.mrf.mxu0 }
 0x71a   :  { %v3745_v42 = vadd.f32 %v3744_v22, %v3676_v62  ;;  %v3610_v63 = vadd.f32 %v3609_v57, %v3541_v58  ;;  %v3678_v16 = vpop.f32.mrf.mxu1  ;;  %v3543_v57 = vadd.f32 %v9306_v37, %v9130_v26  ;;  %4100 = vmatpush.bf16.msra.mxu3 %v6375_v33  ;;  %v3546_v26 = vadd.f32 %v9319_v12, %v11576_v0  ;;  %v11584_v12 = vld [vmem:[#allocation59_spill] sm:$0xff] }
 0x71c   :  { %v9379_v46 = vmax.f32 %v11566_v56, %v3745_v42  ;;  %v3679_v49 = vadd.f32 %v3678_v16, %v3610_v63  ;;  %3872 = vmatmul.bf16.gmra.mxu3 %v11568_v28  ;;  %3921 = vmatmul.bf16.gmra.mxu0 %v11569_v44  ;;  %v11572_v63 = vld [vmem:[#allocation76_spill] sm:$0xff]  ;;  %v6373_v28 = vld [vmem:[#allocation2 + $0x2e0] sm:$0xff] }
 0x71d   :  { %3990 = vmatmul.bf16.gmra.mxu1 %v11570_v25  ;;  %v11573_v16 = vld [vmem:[#allocation32_spill] sm:$0xff] }
 0x71e   :  { %11567 = vst [vmem:[#allocation67_spill] sm:$0xff] %v9379_v46  ;;  %4059 = vmatmul.bf16.gmra.mxu2 %v11571_v59  ;;  %v11574_v20 = vmax.f32 %v11572_v63, %v11573_v16  ;;  %v6374_v59 = vld [vmem:[#allocation2 + $0x2e8] sm:$0xff]  ;;  %v11579_v63 = vmax.f32 %v11577_v53, %v11578_v7  ;;  %v11582_v16 = vld [vmem:[#allocation40_spill] sm:$0xff] }
 0x71f   :  { %v9385_v27 = vpop.f32.mrf.mxu3  ;;  %4101 = vmatpush.bf16.msra.mxu3 %v6374_v59 }
 0x721   :  { %v3747_v22 = vpop.f32.mrf.mxu2  ;;  %v3611_v58 = vpop.f32.mrf.mxu0 }
 0x722   :  { %v3748_v42 = vadd.f32 %v3747_v22, %v3679_v49  ;;  %v3612_v13 = vadd.f32 %v3611_v58, %v3543_v57  ;;  %v3680_v62 = vpop.f32.mrf.mxu1 }
 0x723   :  { %4102 = vmatpush.bf16.msra.mxu3 %v6373_v28 }
 0x724   :  { %v9392_v47 = vmax.f32 %v11574_v20, %v3748_v42  ;;  %v3681_v56 = vadd.f32 %v3680_v62, %v3612_v13  ;;  %v11581_v62 = vld [vmem:[#allocation12_spill] sm:$0xff]  ;;  %v11583_v20 = vld [vmem:[#allocation41_spill] sm:$0xff] }
 0x726   :  { %11575 = vst [vmem:[#allocation82_spill] sm:$0xff] %v9392_v47 }
 0x727   :  { %v9394_v46 = vpop.f32.mrf.mxu3  ;;  %4428 = vmatpush.bf16.msrb.mxu3 %v6376_v29 }
 0x729   :  { %v3749_v37 = vpop.f32.mrf.mxu2  ;;  %v3614_v22 = vpop.f32.mrf.mxu0 }
 0x72a   :  { %v3750_v49 = vadd.f32 %v3749_v37, %v3681_v56  ;;  %v3615_v57 = vadd.f32 %v3614_v22, %v3546_v26  ;;  %v3683_v58 = vpop.f32.mrf.mxu1  ;;  %v3548_v56 = vadd.f32 %v9328_v36, %v9153_v17  ;;  %v11586_v22 = vld [vmem:[#allocation96_spill] sm:$0xff] }
 0x72b   :  { %4429 = vmatpush.bf16.msrb.mxu3 %v6375_v33  ;;  %v3551_v33 = vadd.f32 %v9341_v4, %v9167_v61  ;;  %v11595_v61 = vld [vmem:[#allocation61_spill] sm:$0xff] }
 0x72c   :  { %v9401_v42 = vmax.f32 %v11579_v63, %v3750_v49  ;;  %v3684_v13 = vadd.f32 %v3683_v58, %v3615_v57  ;;  %3877 = vmatmul.bf16.gmra.mxu3 %v11581_v62  ;;  %3926 = vmatmul.bf16.gmra.mxu0 %v11582_v16  ;;  %v11585_v49 = vld [vmem:[#allocation87_spill] sm:$0xff] }
 0x72d   :  { %3995 = vmatmul.bf16.gmra.mxu1 %v11583_v20  ;;  %v11587_v57 = vmax.f32 %v11585_v49, %v11586_v22 }
 0x72e   :  { %11580 = vst [vmem:[#allocation112_spill] sm:$0xff] %v9401_v42  ;;  %4064 = vmatmul.bf16.gmra.mxu2 %v11584_v12 }
 0x72f   :  { %v9407_v0 = vpop.f32.mrf.mxu3  ;;  %4430 = vmatpush.bf16.msrb.mxu3 %v6374_v59 }
 0x731   :  { %v3752_v26 = vpop.f32.mrf.mxu2  ;;  %v3616_v53 = vpop.f32.mrf.mxu0 }
 0x732   :  { %v3753_v7 = vadd.f32 %v3752_v26, %v3684_v13  ;;  %v3617_v37 = vadd.f32 %v3616_v53, %v3548_v56  ;;  %v3685_v29 = vpop.f32.mrf.mxu1  ;;  %v11589_v56 = vld [vmem:[#allocation80_spill] sm:$0xff] }
 0x733   :  { %4431 = vmatpush.bf16.msrb.mxu3 %v6373_v28  ;;  %v11590_v53 = vmax.f32 %v8808_v31, %v11589_v56  ;;  %v11594_v28 = vld [vmem:[#allocation45_spill] sm:$0xff]  ;;  %v3553_v31 = vadd.f32 %v9350_v32, %v9177_v39  ;;  %v6526_v56 = vld [vmem:[#allocation2 + $0x2c8] sm:$0xff] }
 0x734   :  { %v9414_v58 = vmax.f32 %v11587_v57, %v3753_v7  ;;  %v3686_v63 = vadd.f32 %v3685_v29, %v3617_v37  ;;  %v6524_v7 = vld [vmem:[#allocation2 + $0x2d8] sm:$0xff] }
 0x735   :  { %v11592_v37 = vld [vmem:[#allocation16_spill] sm:$0xff] }
 0x736   :  { %11588 = vst [vmem:[#allocation54_spill] sm:$0xff] %v9414_v58  ;;  %v11593_v29 = vld [vmem:[#allocation44_spill] sm:$0xff] }
 0x737   :  { %v9416_v42 = vpop.f32.mrf.mxu3  ;;  %4432 = vmatpush.bf16.msrb.mxu3 %v6524_v7 }
 0x739   :  { %v3754_v12 = vpop.f32.mrf.mxu2  ;;  %v3619_v36 = vpop.f32.mrf.mxu0 }
 0x73a   :  { %v3755_v17 = vadd.f32 %v3754_v12, %v3686_v63  ;;  %v3620_v13 = vadd.f32 %v3619_v36, %v3551_v33  ;;  %v3688_v26 = vpop.f32.mrf.mxu1  ;;  %v6525_v12 = vld [vmem:[#allocation2 + $0x2d0] sm:$0xff]  ;;  %v11597_v36 = vld [vmem:[#allocation101_spill] sm:$0xff] }
 0x73b   :  { %4433 = vmatpush.bf16.msrb.mxu3 %v6525_v12 }
 0x73c   :  { %v9423_v47 = vmax.f32 %v11590_v53, %v3755_v17  ;;  %v3689_v59 = vadd.f32 %v3688_v26, %v3620_v13  ;;  %3882 = vmatmul.bf16.gmra.mxu3 %v11592_v37  ;;  %3931 = vmatmul.bf16.gmra.mxu0 %v11593_v29  ;;  %v11596_v17 = vld [vmem:[#allocation91_spill] sm:$0xff]  ;;  %v11612_v37 = vld [vmem:[#allocation60_spill] sm:$0xff] }
 0x73d   :  { %4000 = vmatmul.bf16.gmra.mxu1 %v11594_v28  ;;  %v11598_v13 = vmax.f32 %v11596_v17, %v11597_v36  ;;  %v11605_v17 = vld [vmem:[#allocation49_spill] sm:$0xff]  ;;  %v11606_v36 = vld [vmem:[#allocation56_spill] sm:$0xff] }
 0x73e   :  { %11591 = vst [vmem:[#allocation15_spill] sm:$0xff] %v9423_v47  ;;  %4069 = vmatmul.bf16.gmra.mxu2 %v11595_v61  ;;  %v11600_v61 = vld [vmem:[#allocation88_spill] sm:$0xff] }
 0x73f   :  { %v9429_v4 = vpop.f32.mrf.mxu3  ;;  %4434 = vmatpush.bf16.msrb.mxu3 %v6526_v56 }
 0x741   :  { %v3757_v49 = vpop.f32.mrf.mxu2  ;;  %v3621_v57 = vpop.f32.mrf.mxu0 }
 0x742   :  { %v3758_v22 = vadd.f32 %v3757_v49, %v3689_v59  ;;  %v3622_v63 = vadd.f32 %v3621_v57, %v3553_v31  ;;  %v3690_v33 = vpop.f32.mrf.mxu1  ;;  %v11601_v31 = vld [vmem:[#allocation107_spill] sm:$0xff]  ;;  %v11602_v49 = vld [vmem:[#allocation78_spill] sm:$0xff] }
 0x743   :  { %4435 = vmatpush.bf16.msrb.mxu3 %v11600_v61  ;;  %v11603_v57 = vmax.f32 %v11601_v31, %v11602_v49  ;;  %v11608_v61 = vld [vmem:[#allocation63_spill] sm:$0xff] }
 0x744   :  { %v9436_v26 = vmax.f32 %v11598_v13, %v3758_v22  ;;  %v3691_v53 = vadd.f32 %v3690_v33, %v3622_v63  ;;  %v11607_v63 = vld [vmem:[#allocation50_spill] sm:$0xff] }
 0x746   :  { %11599 = vst [vmem:[#allocation97_spill] sm:$0xff] %v9436_v26  ;;  %v11610_v26 = vld [vmem:[#allocation58_spill] sm:$0xff] }
 0x747   :  { %v9438_v7 = vpop.f32.mrf.mxu3 }
 0x749   :  { %v3759_v12 = vpop.f32.mrf.mxu2  ;;  %v3897_v39 = vpop.f32.mrf.mxu0 }
 0x74a   :  { %v3760_v47 = vadd.f32 %v3759_v12, %v3691_v53  ;;  %v3898_v32 = vadd.f32 %v3897_v39, %v9363_v43  ;;  %v3966_v59 = vpop.f32.mrf.mxu1 }
 0x74c   :  { %v9445_v58 = vmax.f32 %v11603_v57, %v3760_v47  ;;  %v3967_v22 = vadd.f32 %v3966_v59, %v3898_v32  ;;  %3936 = vmatmul.bf16.gmra.mxu0 %v11605_v17  ;;  %6064 = vmatmul.msk.bf16.vlgmr.msra.gmra.mxu3 %vm728_vm0, %v11606_v36  ;;  %v11611_v36 = vld [vmem:[#allocation20_spill] sm:$0xff] }
 0x74d   :  { %4005 = vmatmul.bf16.gmra.mxu1 %v11607_v63 }
 0x74e   :  { %11604 = vst [vmem:[#allocation92_spill] sm:$0xff] %v9445_v58  ;;  %4074 = vmatmul.bf16.gmra.mxu2 %v11608_v61  ;;  %v11609_v58 = vld [vmem:[#allocation53_spill] sm:$0xff] }
 0x74f   :  { %v9452_v33 = vpop.f32.mrf.mxu3 }
 0x751   :  { %v4035_v13 = vpop.f32.mrf.mxu2  ;;  %v3899_v56 = vpop.f32.mrf.mxu0 }
 0x752   :  { %v9454_v43 = vadd.f32 %v4035_v13, %v3967_v22  ;;  %v3900_v53 = vadd.f32 %v3899_v56, %v9372_v8  ;;  %v3968_v47 = vpop.f32.mrf.mxu1 }
 0x754   :  { %v3969_v12 = vadd.f32 %v3968_v47, %v3900_v53 }
 0x757   :  { %v9457_v39 = vpop.f32.mrf.mxu3 }
 0x759   :  { %v4037_v32 = vpop.f32.mrf.mxu2  ;;  %v3902_v31 = vpop.f32.mrf.mxu0 }
 0x75a   :  { %v9459_v59 = vadd.f32 %v4037_v32, %v3969_v12  ;;  %v3903_v49 = vadd.f32 %v3902_v31, %v9385_v27  ;;  %v3971_v57 = vpop.f32.mrf.mxu1 }
 0x75c   :  { %v3972_v61 = vadd.f32 %v3971_v57, %v3903_v49  ;;  %3941 = vmatmul.bf16.gmra.mxu0 %v11609_v58  ;;  %6065 = vmatmul.msk.bf16.gmra.mxu3 %vm728_vm0, %v11610_v26 }
 0x75d   :  { %4010 = vmatmul.bf16.gmra.mxu1 %v11492_v23 }
 0x75e   :  { %4079 = vmatmul.bf16.gmra.mxu2 %v11494_v38 }
 0x75f   :  { %v9467_v8 = vpop.f32.mrf.mxu3 }
 0x761   :  { %v4040_v22 = vpop.f32.mrf.mxu2  ;;  %v3904_v56 = vpop.f32.mrf.mxu0 }
 0x762   :  { %v9469_v13 = vadd.f32 %v4040_v22, %v3972_v61  ;;  %v3905_v53 = vadd.f32 %v3904_v56, %v9394_v46  ;;  %v3973_v27 = vpop.f32.mrf.mxu1 }
 0x764   :  { %v3974_v47 = vadd.f32 %v3973_v27, %v3905_v53 }
 0x767   :  { %v9472_v12 = vpop.f32.mrf.mxu3 }
 0x769   :  { %v4042_v32 = vpop.f32.mrf.mxu2  ;;  %v3907_v49 = vpop.f32.mrf.mxu0 }
 0x76a   :  { %v9474_v31 = vadd.f32 %v4042_v32, %v3974_v47  ;;  %v3908_v57 = vadd.f32 %v3907_v49, %v9407_v0  ;;  %v3976_v26 = vpop.f32.mrf.mxu1 }
 0x76c   :  { %v3977_v38 = vadd.f32 %v3976_v26, %v3908_v57  ;;  %3946 = vmatmul.bf16.gmra.mxu0 %v11611_v36  ;;  %6066 = vmatmul.msk.bf16.gmra.mxu3 %vm728_vm0, %v11612_v37  ;;  %v11614_v36 = vld [vmem:[#allocation62_spill] sm:$0xff] }
 0x76d   :  { %4015 = vmatmul.bf16.gmra.mxu1 %v11500_v2  ;;  %v11613_v2 = vld [vmem:[#allocation24_spill] sm:$0xff] }
 0x76e   :  { %4084 = vmatmul.bf16.gmra.mxu2 %v11412_v5 }
 0x76f   :  { %v9482_v46 = vpop.f32.mrf.mxu3 }
 0x771   :  { %v4045_v61 = vpop.f32.mrf.mxu2  ;;  %v3909_v56 = vpop.f32.mrf.mxu0 }
 0x772   :  { %v9484_v22 = vadd.f32 %v4045_v61, %v3977_v38  ;;  %v3910_v53 = vadd.f32 %v3909_v56, %v9416_v42  ;;  %v3978_v0 = vpop.f32.mrf.mxu1 }
 0x774   :  { %v3979_v27 = vadd.f32 %v3978_v0, %v3910_v53 }
 0x777   :  { %v9487_v26 = vpop.f32.mrf.mxu3 }
 0x779   :  { %v4047_v47 = vpop.f32.mrf.mxu2  ;;  %v3912_v49 = vpop.f32.mrf.mxu0 }
 0x77a   :  { %v9489_v32 = vadd.f32 %v4047_v47, %v3979_v27  ;;  %v3913_v57 = vadd.f32 %v3912_v49, %v9429_v4  ;;  %v3981_v37 = vpop.f32.mrf.mxu1 }
 0x77c   :  { %v3982_v5 = vadd.f32 %v3981_v37, %v3913_v57  ;;  %3951 = vmatmul.bf16.gmra.mxu0 %v11613_v2  ;;  %6067 = vmatmul.msk.bf16.gmra.mxu3 %vm728_vm0, %v11614_v36 }
 0x77d   :  { %4020 = vmatmul.bf16.gmra.mxu1 %v11507_v48  ;;  %v11615_v48 = vld [vmem:[#allocation64_spill] sm:$0xff] }
 0x77e   :  { %4089 = vmatmul.bf16.gmra.mxu2 %v11416_v50 }
 0x77f   :  { %v9497_v38 = vpop.f32.mrf.mxu3 }
 0x781   :  { %v4050_v42 = vpop.f32.mrf.mxu2  ;;  %v3914_v56 = vpop.f32.mrf.mxu0 }
 0x782   :  { %v9499_v61 = vadd.f32 %v4050_v42, %v3982_v5  ;;  %v3915_v53 = vadd.f32 %v3914_v56, %v9438_v7  ;;  %v3983_v4 = vpop.f32.mrf.mxu1  ;;  %v11616_v5 = vld [vmem:[#allocation11_spill] sm:$0xff] }
 0x784   :  { %v3984_v0 = vadd.f32 %v3983_v4, %v3915_v53 }
 0x787   :  { %v9502_v37 = vpop.f32.mrf.mxu3 }
 0x789   :  { %v4052_v27 = vpop.f32.mrf.mxu2  ;;  %v3917_v49 = vpop.f32.mrf.mxu0 }
 0x78a   :  { %v9504_v47 = vadd.f32 %v4052_v27, %v3984_v0  ;;  %v3918_v57 = vadd.f32 %v3917_v49, %v9452_v33  ;;  %v3986_v36 = vpop.f32.mrf.mxu1 }
 0x78c   :  { %v3987_v50 = vadd.f32 %v3986_v36, %v3918_v57  ;;  %6068 = vmatmul.msk.bf16.gmra.mxu3 %vm728_vm0, %v11615_v48  ;;  %4229 = vmatmul.bf16.vlgmr.msra.gmra.mxu0 %v11616_v5  ;;  %v11617_v48 = vld [vmem:[#allocation69_spill] sm:$0xff] }
 0x78d   :  { %4298 = vmatmul.bf16.vlgmr.msra.gmra.mxu1 %v11515_v54 }
 0x78e   :  { %4367 = vmatmul.bf16.vlgmr.msra.gmra.mxu2 %v11276_v11 }
 0x78f   :  { %v9512_v7 = vpop.f32.mrf.mxu3 }
 0x791   :  { %v4055_v42 = vpop.f32.mrf.mxu2  ;;  %v3919_v53 = vpop.f32.mrf.mxu0 }
 0x792   :  { %v9514_v56 = vadd.f32 %v4055_v42, %v3987_v50  ;;  %v3920_v4 = vadd.f32 %v3919_v53, %v9457_v39  ;;  %v3988_v33 = vpop.f32.mrf.mxu1 }
 0x794   :  { %v3989_v0 = vadd.f32 %v3988_v33, %v3920_v4 }
 0x797   :  { %v9517_v36 = vpop.f32.mrf.mxu3 }
 0x799   :  { %v4057_v27 = vpop.f32.mrf.mxu2  ;;  %v3922_v57 = vpop.f32.mrf.mxu0 }
 0x79a   :  { %v9519_v49 = vadd.f32 %v4057_v27, %v3989_v0  ;;  %v3923_v54 = vadd.f32 %v3922_v57, %v9467_v8  ;;  %v3991_v5 = vpop.f32.mrf.mxu1 }
 0x79c   :  { %v3992_v11 = vadd.f32 %v3991_v5, %v3923_v54  ;;  %6069 = vmatmul.msk.bf16.gmra.mxu3 %vm728_vm0, %v11617_v48  ;;  %4234 = vmatmul.bf16.gmra.mxu0 %v11493_v34  ;;  %v11618_v5 = vld [vmem:[#allocation72_spill] sm:$0xff] }
 0x79d   :  { %4303 = vmatmul.bf16.gmra.mxu1 %v11521_v35 }
 0x79e   :  { %4372 = vmatmul.bf16.gmra.mxu2 %v11428_v14 }
 0x79f   :  { %v9527_v50 = vpop.f32.mrf.mxu3 }
 0x7a1   :  { %v4060_v39 = vpop.f32.mrf.mxu2  ;;  %v3924_v53 = vpop.f32.mrf.mxu0 }
 0x7a2   :  { %v9529_v42 = vadd.f32 %v4060_v39, %v3992_v11  ;;  %v3925_v4 = vadd.f32 %v3924_v53, %v9472_v12  ;;  %v3993_v8 = vpop.f32.mrf.mxu1 }
 0x7a4   :  { %v3994_v33 = vadd.f32 %v3993_v8, %v3925_v4 }
 0x7a7   :  { %v9532_v0 = vpop.f32.mrf.mxu3 }
 0x7a9   :  { %v4062_v27 = vpop.f32.mrf.mxu2  ;;  %v3927_v34 = vpop.f32.mrf.mxu0 }
 0x7aa   :  { %v9534_v57 = vadd.f32 %v4062_v27, %v3994_v33  ;;  %v3928_v35 = vadd.f32 %v3927_v34, %v9482_v46  ;;  %v3996_v54 = vpop.f32.mrf.mxu1 }
 0x7ac   :  { %v3997_v14 = vadd.f32 %v3996_v54, %v3928_v35  ;;  %6070 = vmatmul.msk.bf16.gmra.mxu3 %vm728_vm0, %v11618_v5  ;;  %4239 = vmatmul.bf16.gmra.mxu0 %v11501_v10  ;;  %v11619_v54 = vld [vmem:[#allocation74_spill] sm:$0xff] }
 0x7ad   :  { %4308 = vmatmul.bf16.gmra.mxu1 %v11530_v55 }
 0x7ae   :  { %4377 = vmatmul.bf16.gmra.mxu2 %v11531_v52 }
 0x7af   :  { %v9542_v12 = vpop.f32.mrf.mxu3 }
 0x7b1   :  { %v4065_v11 = vpop.f32.mrf.mxu2  ;;  %v3929_v53 = vpop.f32.mrf.mxu0 }
 0x7b2   :  { %v9544_v39 = vadd.f32 %v4065_v11, %v3997_v14  ;;  %v3930_v4 = vadd.f32 %v3929_v53, %v9487_v26  ;;  %v3998_v46 = vpop.f32.mrf.mxu1 }
 0x7b4   :  { %v3999_v8 = vadd.f32 %v3998_v46, %v3930_v4 }
 0x7b7   :  { %v9547_v33 = vpop.f32.mrf.mxu3 }
 0x7b9   :  { %v4067_v27 = vpop.f32.mrf.mxu2  ;;  %v3932_v10 = vpop.f32.mrf.mxu0 }
 0x7ba   :  { %v9549_v34 = vadd.f32 %v4067_v27, %v3999_v8  ;;  %v3933_v55 = vadd.f32 %v3932_v10, %v9497_v38  ;;  %v4001_v35 = vpop.f32.mrf.mxu1 }
 0x7bc   :  { %v4002_v52 = vadd.f32 %v4001_v35, %v3933_v55  ;;  %6071 = vmatmul.msk.bf16.gmra.mxu3 %vm728_vm0, %v11619_v54  ;;  %4244 = vmatmul.bf16.gmra.mxu0 %v11508_v30  ;;  %v11620_v35 = vld [vmem:[#allocation75_spill] sm:$0xff] }
 0x7bd   :  { %4313 = vmatmul.bf16.gmra.mxu1 %v11542_v41 }
 0x7be   :  { %4382 = vmatmul.bf16.gmra.mxu2 %v11543_v60 }
 0x7bf   :  { %v9557_v26 = vpop.f32.mrf.mxu3 }
 0x7c1   :  { %v4070_v14 = vpop.f32.mrf.mxu2  ;;  %v3934_v53 = vpop.f32.mrf.mxu0 }
 0x7c2   :  { %v9559_v11 = vadd.f32 %v4070_v14, %v4002_v52  ;;  %v3935_v4 = vadd.f32 %v3934_v53, %v9502_v37  ;;  %v4003_v38 = vpop.f32.mrf.mxu1 }
 0x7c4   :  { %v4004_v46 = vadd.f32 %v4003_v38, %v3935_v4  ;;  %v11623_v38 = vld [vmem:[#allocation77_spill] sm:$0xff] }
 0x7c7   :  { %v9562_v8 = vpop.f32.mrf.mxu3 }
 0x7c9   :  { %v4072_v27 = vpop.f32.mrf.mxu2  ;;  %v3937_v30 = vpop.f32.mrf.mxu0 }
 0x7ca   :  { %v9564_v10 = vadd.f32 %v4072_v27, %v4004_v46  ;;  %v3938_v41 = vadd.f32 %v3937_v30, %v9512_v7  ;;  %v4006_v55 = vpop.f32.mrf.mxu1  ;;  %v11621_v7 = vld [vmem:[#allocation98_spill] sm:$0xff] }
 0x7cc   :  { %v4007_v60 = vadd.f32 %v4006_v55, %v3938_v41  ;;  %6072 = vmatmul.msk.bf16.gmra.mxu3 %vm728_vm0, %v11620_v35  ;;  %4249 = vmatmul.bf16.gmra.mxu0 %v11514_v3 }
 0x7cd   :  { %4318 = vmatmul.bf16.gmra.mxu1 %v11555_v18 }
 0x7ce   :  { %4387 = vmatmul.bf16.gmra.mxu2 %v11556_v15 }
 0x7cf   :  { %v4104_v37 = vpop.f32.mrf.mxu3 }
 0x7d0   :  { %v9573_v14 = vadd.f32 %v4104_v37, %v9454_v43  ;;  %v11622_v43 = vld [vmem:[#allocation106_spill] sm:$0xff] }
 0x7d1   :  { %v4075_v52 = vpop.f32.mrf.mxu2  ;;  %v3939_v4 = vpop.f32.mrf.mxu0 }
 0x7d2   :  { %v9575_v53 = vadd.f32 %v4075_v52, %v4007_v60  ;;  %v3940_v46 = vadd.f32 %v3939_v4, %v9517_v36  ;;  %v4008_v27 = vpop.f32.mrf.mxu1 }
 0x7d4   :  { %v4009_v30 = vadd.f32 %v4008_v27, %v3940_v46 }
 0x7d7   :  { %v4106_v3 = vpop.f32.mrf.mxu3 }
 0x7d8   :  { %v9581_v18 = vadd.f32 %v4106_v3, %v9459_v59 }
 0x7d9   :  { %v4077_v41 = vpop.f32.mrf.mxu2  ;;  %v3942_v55 = vpop.f32.mrf.mxu0 }
 0x7da   :  { %v9583_v15 = vadd.f32 %v4077_v41, %v4009_v30  ;;  %v3943_v37 = vadd.f32 %v3942_v55, %v9527_v50  ;;  %v4011_v52 = vpop.f32.mrf.mxu1 }
 0x7dc   :  { %v4012_v35 = vadd.f32 %v4011_v52, %v3943_v37  ;;  %6073 = vmatmul.msk.bf16.gmra.mxu3 %vm728_vm0, %v11623_v38  ;;  %4254 = vmatmul.bf16.gmra.mxu0 %v11520_v24 }
 0x7dd   :  { %4323 = vmatmul.bf16.gmra.mxu1 %v11569_v44 }
 0x7de   :  { %4392 = vmatmul.bf16.gmra.mxu2 %v11570_v25 }
 0x7df   :  { %v4109_v59 = vpop.f32.mrf.mxu3 }
 0x7e0   :  { %v9594_v4 = vadd.f32 %v4109_v59, %v9469_v13 }
 0x7e1   :  { %v4080_v36 = vpop.f32.mrf.mxu2  ;;  %v3944_v27 = vpop.f32.mrf.mxu0 }
 0x7e2   :  { %v9596_v46 = vadd.f32 %v4080_v36, %v4012_v35  ;;  %v3945_v30 = vadd.f32 %v3944_v27, %v9532_v0  ;;  %v4013_v3 = vpop.f32.mrf.mxu1 }
 0x7e4   :  { %v4014_v41 = vadd.f32 %v4013_v3, %v3945_v30 }
 0x7e7   :  { %v4111_v24 = vpop.f32.mrf.mxu3 }
 0x7e8   :  { %v9602_v44 = vadd.f32 %v4111_v24, %v9474_v31 }
 0x7e9   :  { %v4082_v55 = vpop.f32.mrf.mxu2  ;;  %v3947_v37 = vpop.f32.mrf.mxu0 }
 0x7ea   :  { %v9604_v25 = vadd.f32 %v4082_v55, %v4014_v41  ;;  %v3948_v35 = vadd.f32 %v3947_v37, %v9542_v12  ;;  %v4016_v52 = vpop.f32.mrf.mxu1 }
 0x7ec   :  { %v4017_v59 = vadd.f32 %v4016_v52, %v3948_v35  ;;  %6074 = vmatmul.msk.bf16.gmra.mxu3 %vm728_vm0, %v11502_v9  ;;  %4259 = vmatmul.bf16.gmra.mxu0 %v11529_v19 }
 0x7ed   :  { %4328 = vmatmul.bf16.gmra.mxu1 %v11582_v16 }
 0x7ee   :  { %4397 = vmatmul.bf16.gmra.mxu2 %v11583_v20 }
 0x7ef   :  { %v4114_v31 = vpop.f32.mrf.mxu3 }
 0x7f0   :  { %v9615_v36 = vadd.f32 %v4114_v31, %v9484_v22  ;;  %v11624_v31 = vld [vmem:[#allocation81_spill] sm:$0xff] }
 0x7f1   :  { %v4085_v0 = vpop.f32.mrf.mxu2  ;;  %v3949_v30 = vpop.f32.mrf.mxu0 }
 0x7f2   :  { %v9617_v27 = vadd.f32 %v4085_v0, %v4017_v59  ;;  %v3950_v3 = vadd.f32 %v3949_v30, %v9547_v33  ;;  %v4018_v41 = vpop.f32.mrf.mxu1 }
 0x7f4   :  { %v4019_v24 = vadd.f32 %v4018_v41, %v3950_v3 }
 0x7f7   :  { %v4116_v19 = vpop.f32.mrf.mxu3 }
 0x7f8   :  { %v9623_v16 = vadd.f32 %v4116_v19, %v9489_v32  ;;  %v6611_v19 = vmov 0  }
 0x7f9   :  { %v4087_v55 = vpop.f32.mrf.mxu2  ;;  %v3952_v37 = vpop.f32.mrf.mxu0  ;;  %6442 = vset.pattern.permute.xlu1 %v6611_v19  ;;  %6441 = vset.pattern.permute.xlu0 %v6611_v19 }
 0x7fa   :  { %v9625_v20 = vadd.f32 %v4087_v55, %v4019_v24  ;;  %v3953_v35 = vadd.f32 %v3952_v37, %v9557_v26  ;;  %v4021_v52 = vpop.f32.mrf.mxu1  ;;  %6443 = vset.pattern.permute.xlu2 %v6611_v19 }
 0x7fc   :  { %v4022_v59 = vadd.f32 %v4021_v52, %v3953_v35  ;;  %6075 = vmatmul.msk.bf16.gmra.mxu3 %vm728_vm0, %v11624_v31  ;;  %4264 = vmatmul.bf16.gmra.mxu0 %v11541_v40  ;;  %v4602_v40 = vld [vmem:[%s10465_s2 + $0x60] sm:$0xff]  ;;  %v6379_v52 = vld [vmem:[#allocation2 + $0x310] sm:$0xff] }
 0x7fd   :  { %4333 = vmatmul.bf16.gmra.mxu1 %v11593_v29  ;;  %4676 = vperm.xlu1 %6442, %v4602_v40  }
 0x7fe   :  { %4402 = vmatmul.bf16.gmra.mxu2 %v11594_v28 }
 0x7ff   :  { %v4119_v32 = vpop.f32.mrf.mxu3 }
 0x800   :  { %v9636_v0 = vadd.f32 %v4119_v32, %v9499_v61 }
 0x801   :  { %v4090_v33 = vpop.f32.mrf.mxu2  ;;  %v3954_v3 = vpop.f32.mrf.mxu0 }
 0x802   :  { %v9638_v30 = vadd.f32 %v4090_v33, %v4022_v59  ;;  %v3955_v41 = vadd.f32 %v3954_v3, %v9562_v8  ;;  %v4023_v24 = vpop.f32.mrf.mxu1  ;;  %v11625_v8 = vld [vmem:[#allocation100_spill] sm:$0xff]  ;;  %v4603_v33 = vld [vmem:[%s10465_s2 + $0x68] sm:$0xff]  ;;  %v11626_v3 = vld [vmem:[#allocation47_spill] sm:$0xff] }
 0x804   :  { %v4024_v29 = vadd.f32 %v4023_v24, %v3955_v41  ;;  %v11627_v41 = vld [vmem:[#allocation39_spill] sm:$0xff] }
 0x805   :  { %4681 = vperm.xlu1 %6442, %v4603_v33  }
 0x807   :  { %v4121_v28 = vpop.f32.mrf.mxu3 }
 0x808   :  { %v9647_v55 = vadd.f32 %v4121_v28, %v9504_v47  ;;  %v11628_v28 = vld [vmem:[#allocation102_spill] sm:$0xff] }
 0x809   :  { %v4092_v61 = vpop.f32.mrf.mxu2  ;;  %v4230_v35 = vpop.f32.mrf.mxu0 }
 0x80a   :  { %v9649_v37 = vadd.f32 %v4092_v61, %v4024_v29  ;;  %v4299_v59 = vpop.f32.mrf.mxu1  ;;  %v11631_v61 = vld [vmem:[#allocation51_spill] sm:$0xff] }
 0x80b   :  { %v4300_v32 = vadd.f32 %v4299_v59, %v4230_v35 }
 0x80c   :  { %4269 = vmatmul.bf16.gmra.mxu0 %v11626_v3  ;;  %4436 = vmatmul.bf16.vlgmr.msrb.gmra.mxu3 %v11627_v41 }
 0x80d   :  { %4338 = vmatmul.bf16.gmra.mxu1 %v11605_v17  ;;  %v4599_v17 = vld [vmem:[%s10465_s2 + $0x48] sm:$0xff] }
 0x80e   :  { %4407 = vmatmul.bf16.gmra.mxu2 %v11607_v63  ;;  %4661 = vperm.xlu1 %6442, %v4599_v17   ;;  %v4596_v17 = vld [vmem:[%s10465_s2 + $0x30] sm:$0xff] }
 0x80f   :  { %v4124_v47 = vpop.f32.mrf.mxu3 }
 0x810   :  { %v9661_v24 = vadd.f32 %v4124_v47, %v9514_v56 }
 0x811   :  { %v4368_v19 = vpop.f32.mrf.mxu2  ;;  %v9665_v29 = vpop.f32.mrf.mxu0 }
 0x812   :  { %v9663_v40 = vadd.f32 %v4368_v19, %v4300_v32  ;;  %v9669_v35 = vpop.f32.mrf.mxu1  ;;  %v4604_v19 = vld [vmem:[%s10465_s2 + $0x70] sm:$0xff] }
 0x813   :  { %4686 = vperm.xlu0 %6441, %v4604_v19  }
 0x816   :  { %4646 = vperm.xlu1 %6442, %v4596_v17   ;;  %v6377_v17 = vld [vmem:[#allocation2 + $0x300] sm:$0xff] }
 0x817   :  { %v4126_v63 = vpop.f32.mrf.mxu3 }
 0x818   :  { %v9675_v59 = vadd.f32 %v4126_v63, %v9519_v49  ;;  %v11632_v49 = vld [vmem:[#allocation43_spill] sm:$0xff]  ;;  %v6380_v63 = vld [vmem:[#allocation2 + $0x318] sm:$0xff] }
 0x819   :  { %v9677_v56 = vpop.f32.mrf.mxu2  ;;  %v4235_v32 = vpop.f32.mrf.mxu0  ;;  %4501 = vmatpush.bf16.msrb.mxu0 %v6380_v63 }
 0x81a   :  { %11629 = vst [vmem:[#allocation19_spill] sm:$0xff] %v9675_v59  ;;  %v4304_v41 = vpop.f32.mrf.mxu1 }
 0x81b   :  { %v4305_v47 = vadd.f32 %v4304_v41, %v4235_v32 }
 0x81c   :  { %4274 = vmatmul.bf16.gmra.mxu0 %v11631_v61  ;;  %4441 = vmatmul.bf16.gmra.mxu3 %v11632_v49 }
 0x81d   :  { %4343 = vmatmul.bf16.gmra.mxu1 %v11609_v58  ;;  %4502 = vmatpush.bf16.msrb.mxu0 %v6379_v52  ;;  %v4600_v58 = vld [vmem:[%s10465_s2 + $0x50] sm:$0xff] }
 0x81e   :  { %4412 = vmatmul.bf16.gmra.mxu2 %v11492_v23  ;;  %v4605_v23 = vld [vmem:[%s10465_s2 + $0x78] sm:$0xff]  ;;  %4666 = vperm.xlu2 %6443, %v4600_v58   ;;  %v4598_v58 = vld [vmem:[%s10465_s2 + $0x40] sm:$0xff] }
 0x81f   :  { %v4129_v32 = vpop.f32.mrf.mxu3  ;;  %4691 = vperm.xlu0 %6441, %v4605_v23   ;;  %v4601_v23 = vld [vmem:[%s10465_s2 + $0x58] sm:$0xff] }
 0x820   :  { %v9692_v41 = vadd.f32 %v4129_v32, %v9529_v42  ;;  %v4611_v42 = vld [vmem:[%s10465_s2 + $0xa8] sm:$0xff] }
 0x821   :  { %v4373_v3 = vpop.f32.mrf.mxu2  ;;  %v9696_v22 = vpop.f32.mrf.mxu0  ;;  %4721 = vperm.xlu1 %6442, %v4611_v42   ;;  %v4608_v42 = vld [vmem:[%s10465_s2 + $0x90] sm:$0xff] }
 0x822   :  { %11633 = vst [vmem:[#allocation79_spill] sm:$0xff] %v9692_v41  ;;  %v9694_v26 = vadd.f32 %v4373_v3, %v4305_v47  ;;  %v9700_v12 = vpop.f32.mrf.mxu1  ;;  %v6378_v3 = vld [vmem:[#allocation2 + $0x308] sm:$0xff] }
 0x823   :  { %4503 = vmatpush.bf16.msrb.mxu0 %v6378_v3  ;;  %v11638_v3 = vld [vmem:[#allocation20_spill] sm:$0xff] }
 0x826   :  { %4671 = vperm.xlu2 %6443, %v4601_v23   ;;  %v4612_v23 = vld [vmem:[%s10465_s2 + $0xb0] sm:$0xff] }
 0x827   :  { %v4131_v47 = vpop.f32.mrf.mxu3  ;;  %4504 = vmatpush.bf16.msrb.mxu0 %v6377_v17  ;;  %4656 = vperm.xlu0 %6441, %v4598_v58   ;;  %v4613_v58 = vld [vmem:[%s10465_s2 + $0xb8] sm:$0xff] }
 0x828   :  { %v9712_v52 = vadd.f32 %v4131_v47, %v9534_v57  ;;  %v11637_v57 = vld [vmem:[#allocation48_spill] sm:$0xff] }
 0x829   :  { %v9714_v19 = vpop.f32.mrf.mxu2  ;;  %v4240_v63 = vpop.f32.mrf.mxu0  ;;  %4706 = vperm.xlu1 %6442, %v4608_v42  }
 0x82a   :  { %11635 = vst [vmem:[#allocation94_spill] sm:$0xff] %v9712_v52  ;;  %v4309_v13 = vpop.f32.mrf.mxu1 }
 0x82b   :  { %v4310_v50 = vadd.f32 %v4309_v13, %v4240_v63  ;;  %v11639_v13 = vld [vmem:[#allocation29_spill] sm:$0xff] }
 0x82c   :  { %4279 = vmatmul.bf16.gmra.mxu0 %v11581_v62  ;;  %4446 = vmatmul.bf16.gmra.mxu3 %v11637_v57  ;;  %v4610_v57 = vld [vmem:[%s10465_s2 + $0xa0] sm:$0xff] }
 0x82d   :  { %4348 = vmatmul.bf16.gmra.mxu1 %v11638_v3 }
 0x82e   :  { %4417 = vmatmul.bf16.gmra.mxu2 %v11639_v13  ;;  %4726 = vperm.xlu2 %6443, %v4612_v23   ;;  %v4597_v23 = vld [vmem:[%s10465_s2 + $0x38] sm:$0xff] }
 0x82f   :  { %v4134_v47 = vpop.f32.mrf.mxu3  ;;  %4731 = vperm.xlu0 %6441, %v4613_v58   ;;  %v11644_v58 = vld [vmem:[#allocation16_spill] sm:$0xff] }
 0x830   :  { %v9732_v17 = vadd.f32 %v4134_v47, %v9544_v39  ;;  %v4593_v39 = vld [vmem:[%s10465_s2 + $0x18] sm:$0xff] }
 0x831   :  { %v4378_v63 = vpop.f32.mrf.mxu2  ;;  %v9736_v62 = vpop.f32.mrf.mxu0  ;;  %4631 = vperm.xlu1 %6442, %v4593_v39   ;;  %v4590_v39 = vld [vmem:[%s10465_s2] sm:$0xff] }
 0x832   :  { %11640 = vst [vmem:[#allocation109_spill] sm:$0xff] %v9732_v17  ;;  %v9734_v49 = vadd.f32 %v4378_v63, %v4310_v50  ;;  %v9740_v52 = vpop.f32.mrf.mxu1 }
 0x836   :  { %4651 = vperm.xlu2 %6443, %v4597_v23  }
 0x837   :  { %v4136_v50 = vpop.f32.mrf.mxu3  ;;  %4716 = vperm.xlu0 %6441, %v4610_v57   ;;  %v4594_v57 = vld [vmem:[%s10465_s2 + $0x20] sm:$0xff] }
 0x838   :  { %v9752_v42 = vadd.f32 %v4136_v50, %v9549_v34  ;;  %v11645_v34 = vld [vmem:[#allocation52_spill] sm:$0xff]  ;;  %v11646_v50 = vld [vmem:[#allocation35_spill] sm:$0xff] }
 0x839   :  { %v9754_v3 = vpop.f32.mrf.mxu2  ;;  %v4245_v13 = vpop.f32.mrf.mxu0  ;;  %4616 = vperm.xlu1 %6442, %v4590_v39  }
 0x83a   :  { %11642 = vst [vmem:[#allocation23_spill] sm:$0xff] %v9752_v42  ;;  %v4314_v60 = vpop.f32.mrf.mxu1 }
 0x83b   :  { %v4315_v17 = vadd.f32 %v4314_v60, %v4245_v13 }
 0x83c   :  { %4284 = vmatmul.bf16.gmra.mxu0 %v11644_v58  ;;  %4451 = vmatmul.bf16.gmra.mxu3 %v11645_v34  ;;  %v4591_v34 = vld [vmem:[%s10465_s2 + $0x8] sm:$0xff] }
 0x83d   :  { %4353 = vmatmul.bf16.gmra.mxu1 %v11613_v2  ;;  %v4595_v2 = vld [vmem:[%s10465_s2 + $0x28] sm:$0xff] }
 0x83e   :  { %4422 = vmatmul.bf16.gmra.mxu2 %v11646_v50  ;;  %4636 = vperm.xlu2 %6443, %v4594_v57   ;;  %v11651_v57 = vld [vmem:[#allocation55_spill] sm:$0xff] }
 0x83f   :  { %v4139_v60 = vpop.f32.mrf.mxu3  ;;  %4641 = vperm.xlu0 %6441, %v4595_v2   ;;  %v4592_v2 = vld [vmem:[%s10465_s2 + $0x10] sm:$0xff] }
 0x840   :  { %v9772_v13 = vadd.f32 %v4139_v60, %v9559_v11 }
 0x841   :  { %v4383_v63 = vpop.f32.mrf.mxu2  ;;  %v9776_v58 = vpop.f32.mrf.mxu0 }
 0x842   :  { %11647 = vst [vmem:[#allocation84_spill] sm:$0xff] %v9772_v13  ;;  %v9774_v42 = vadd.f32 %v4383_v63, %v4315_v17  ;;  %v9780_v32 = vpop.f32.mrf.mxu1  ;;  %v4609_v13 = vld [vmem:[%s10465_s2 + $0x98] sm:$0xff] }
 0x846   :  { %4711 = vperm.xlu2 %6443, %v4609_v13  }
 0x847   :  { %v4141_v11 = vpop.f32.mrf.mxu3  ;;  %4626 = vperm.xlu0 %6441, %v4592_v2  }
 0x848   :  { %v9789_v17 = vadd.f32 %v4141_v11, %v9564_v10  ;;  %v11652_v10 = vld [vmem:[#allocation56_spill] sm:$0xff] }
 0x849   :  { %v9791_v63 = vpop.f32.mrf.mxu2  ;;  %v4250_v23 = vpop.f32.mrf.mxu0 }
 0x84a   :  { %11649 = vst [vmem:[#allocation99_spill] sm:$0xff] %v9789_v17  ;;  %v4319_v60 = vpop.f32.mrf.mxu1 }
 0x84b   :  { %v4320_v47 = vadd.f32 %v4319_v60, %v4250_v23 }
 0x84c   :  { %4456 = vmatmul.bf16.gmra.mxu3 %v11651_v57  ;;  %6092 = vmatmul.msk.bf16.vlgmr.msrb.gmra.mxu0 %vm728_vm0, %v11652_v10  ;;  %v4606_v57 = vld [vmem:[%s10465_s2 + $0x80] sm:$0xff] }
 0x84e   :  { %4696 = vperm.xlu2 %6443, %v4606_v57   ;;  %v11658_v57 = vld [vmem:[#allocation58_spill] sm:$0xff] }
 0x84f   :  { %v4144_v11 = vpop.f32.mrf.mxu3 }
 0x850   :  { %v9805_v50 = vadd.f32 %v4144_v11, %v9575_v53 }
 0x851   :  { %v4388_v23 = vpop.f32.mrf.mxu2  ;;  %v9809_v17 = vpop.f32.mrf.mxu0 }
 0x852   :  { %11653 = vst [vmem:[#allocation28_spill] sm:$0xff] %v9805_v50  ;;  %v9807_v60 = vadd.f32 %v4388_v23, %v4320_v47  ;;  %v9813_v41 = vpop.f32.mrf.mxu1  ;;  %v11657_v50 = vld [vmem:[#allocation57_spill] sm:$0xff] }
 0x856   :  { %4621 = vperm.xlu2 %6443, %v4591_v34  }
 0x857   :  { %v4146_v13 = vpop.f32.mrf.mxu3 }
 0x858   :  { %v9819_v2 = vadd.f32 %v4146_v13, %v9583_v15 }
 0x859   :  { %v9821_v53 = vpop.f32.mrf.mxu2  ;;  %v9823_v47 = vpop.f32.mrf.mxu0 }
 0x85a   :  { %11655 = vst [vmem:[#allocation13_spill] sm:$0xff] %v9819_v2  ;;  %v9827_v23 = vpop.f32.mrf.mxu1 }
 0x85c   :  { %4461 = vmatmul.bf16.gmra.mxu3 %v11657_v50  ;;  %6093 = vmatmul.msk.bf16.gmra.mxu0 %vm728_vm0, %v11658_v57 }
 0x85f   :  { %v4149_v15 = vpop.f32.mrf.mxu3 }
 0x860   :  { %v9836_v13 = vadd.f32 %v4149_v15, %v9596_v46 }
 0x861   :  { %v9838_v39 = vpop.f32.mrf.mxu2  ;;  %v9840_v61 = vpop.f32.mrf.mxu0 }
 0x862   :  { %11659 = vst [vmem:[#allocation34_spill] sm:$0xff] %v9836_v13  ;;  %v9844_v10 = vpop.f32.mrf.mxu1 }
 0x863   :  { %11660 = vst [vmem:[#allocation17_spill] sm:$0xff] %v9838_v39  ;;  %v11667_v39 = vld [vmem:[#allocation59_spill] sm:$0xff] }
 0x864   :  { %11661 = vst [vmem:[#allocation85_spill] sm:$0xff] %v9840_v61  ;;  %v11668_v61 = vld [vmem:[#allocation60_spill] sm:$0xff] }
 0x867   :  { %v4151_v59 = vpop.f32.mrf.mxu3 }
 0x868   :  { %v9847_v50 = vadd.f32 %v4151_v59, %v9604_v25 }
 0x869   :  { %v9849_v33 = vpop.f32.mrf.mxu2  ;;  %v9851_v34 = vpop.f32.mrf.mxu0 }
 0x86a   :  { %11663 = vst [vmem:[#allocation114_spill] sm:$0xff] %v9847_v50  ;;  %v9855_v15 = vpop.f32.mrf.mxu1 }
 0x86b   :  { %11664 = vst [vmem:[#allocation38_spill] sm:$0xff] %v9849_v33 }
 0x86c   :  { %11665 = vst [vmem:[#allocation21_spill] sm:$0xff] %v9851_v34  ;;  %4466 = vmatmul.bf16.gmra.mxu3 %v11667_v39  ;;  %6094 = vmatmul.msk.bf16.gmra.mxu0 %vm728_vm0, %v11668_v61 }
 0x86f   :  { %v4154_v2 = vpop.f32.mrf.mxu3 }
 0x870   :  { %v9861_v13 = vadd.f32 %v4154_v2, %v9617_v27  ;;  %v11690_v2 = vld [vmem:[#allocation63_spill] sm:$0xff] }
 0x871   :  { %v9863_v25 = vpop.f32.mrf.mxu2  ;;  %v9865_v59 = vpop.f32.mrf.mxu0 }
 0x872   :  { %11669 = vst [vmem:[#allocation22_spill] sm:$0xff] %v9861_v13  ;;  %v9869_v33 = vpop.f32.mrf.mxu1 }
 0x873   :  { %11670 = vst [vmem:[#allocation118_spill] sm:$0xff] %v9863_v25  ;;  %v11679_v25 = vld [vmem:[#allocation61_spill] sm:$0xff] }
 0x874   :  { %11671 = vst [vmem:[#allocation70_spill] sm:$0xff] %v9865_v59  ;;  %v11680_v59 = vld [vmem:[#allocation62_spill] sm:$0xff] }
 0x875   :  { %11673 = vst [vmem:[#allocation105_spill] sm:$0xff] %v9869_v33 }
 0x877   :  { %v4156_v57 = vpop.f32.mrf.mxu3 }
 0x878   :  { %v9872_v50 = vadd.f32 %v4156_v57, %v9625_v20  ;;  %v4607_v20 = vld [vmem:[%s10465_s2 + $0x88] sm:$0xff] }
 0x879   :  { %v9874_v39 = vpop.f32.mrf.mxu2  ;;  %v9876_v61 = vpop.f32.mrf.mxu0  ;;  %4701 = vperm.xlu0 %6441, %v4607_v20  }
 0x87a   :  { %11674 = vst [vmem:[#allocation89_spill] sm:$0xff] %v9872_v50  ;;  %v9880_v46 = vpop.f32.mrf.mxu1  ;;  %v9909_v50 = vpop.permute.xlu1 %4676 }
 0x87b   :  { %11675 = vst [vmem:[#allocation42_spill] sm:$0xff] %v9874_v39 }
 0x87c   :  { %11676 = vst [vmem:[#allocation25_spill] sm:$0xff] %v9876_v61  ;;  %4471 = vmatmul.bf16.gmra.mxu3 %v11679_v25  ;;  %6095 = vmatmul.msk.bf16.gmra.mxu0 %vm728_vm0, %v11680_v59  ;;  %v4832_v59 = vld [vmem:[%s10467_s4 + $0x70] sm:$0xff] }
 0x87d   :  { %11678 = vst [vmem:[#allocation26_spill] sm:$0xff] %v9880_v46 }
 0x87e   :  { %11689 = vst [vmem:[#allocation31_spill] sm:$0xff] %v9909_v50 }
 0x87f   :  { %v4159_v34 = vpop.f32.mrf.mxu3 }
 0x880   :  { %v9889_v57 = vadd.f32 %v4159_v34, %v9638_v30 }
 0x881   :  { %v9891_v13 = vpop.f32.mrf.mxu2  ;;  %v9893_v11 = vpop.f32.mrf.mxu0  ;;  %4914 = vperm.xlu0 %6441, %v4832_v59   ;;  %v4831_v59 = vld [vmem:[%s10467_s4 + $0x68] sm:$0xff] }
 0x882   :  { %11681 = vst [vmem:[#allocation113_spill] sm:$0xff] %v9889_v57  ;;  %v9897_v25 = vpop.f32.mrf.mxu1  ;;  %v4833_v57 = vld [vmem:[%s10467_s4 + $0x78] sm:$0xff] }
 0x883   :  { %11682 = vst [vmem:[#allocation95_spill] sm:$0xff] %v9891_v13  ;;  %4919 = vperm.xlu1 %6442, %v4833_v57  }
 0x884   :  { %11683 = vst [vmem:[#allocation90_spill] sm:$0xff] %v9893_v11 }
 0x885   :  { %11685 = vst [vmem:[#allocation119_spill] sm:$0xff] %v9897_v25  ;;  %v11691_v25 = vld [vmem:[#allocation64_spill] sm:$0xff] }
 0x887   :  { %v4161_v27 = vpop.f32.mrf.mxu3 }
 0x888   :  { %v9903_v46 = vadd.f32 %v4161_v27, %v9649_v37  ;;  %v9917_v37 = vpop.permute.xlu2 %4666 }
 0x889   :  { %v9905_v30 = vpop.f32.mrf.mxu2  ;;  %v4270_v34 = vpop.f32.mrf.mxu0  ;;  %4909 = vperm.xlu0 %6441, %v4831_v59   ;;  %v11695_v59 = vld [vmem:[#allocation68_spill] sm:$0xff] }
 0x88a   :  { %11686 = vst [vmem:[#allocation111_spill] sm:$0xff] %v9903_v46  ;;  %v4339_v13 = vpop.f32.mrf.mxu1 }
 0x88b   :  { %11687 = vst [vmem:[#allocation30_spill] sm:$0xff] %v9905_v30  ;;  %v4340_v61 = vadd.f32 %v4339_v13, %v4270_v34 }
 0x88c   :  { %4476 = vmatmul.bf16.gmra.mxu3 %v11690_v2  ;;  %6096 = vmatmul.msk.bf16.gmra.mxu0 %vm728_vm0, %v11691_v25  ;;  %v4828_v2 = vld [vmem:[%s10467_s4 + $0x50] sm:$0xff]  ;;  %v9932_v25 = vpop.permute.xlu1 %4681 }
 0x88d   :  { %11693 = vst [vmem:[#allocation110_spill] sm:$0xff] %v9932_v25  ;;  %4894 = vperm.xlu1 %6442, %v4828_v2   ;;  %v4820_v25 = vld [vmem:[%s10467_s4 + $0x10] sm:$0xff] }
 0x88f   :  { %v4437_v27 = vpop.f32.mrf.mxu3 }
 0x890   :  { %v9923_v34 = vadd.f32 %v4437_v27, %v9663_v40  ;;  %v9936_v20 = vpop.permute.xlu2 %4671  ;;  %v4826_v40 = vld [vmem:[%s10467_s4 + $0x40] sm:$0xff]  ;;  %v4827_v27 = vld [vmem:[%s10467_s4 + $0x48] sm:$0xff] }
 0x891   :  { %v4408_v13 = vpop.f32.mrf.mxu2  ;;  %v9927_v46 = vpop.f32.mrf.mxu0  ;;  %4884 = vperm.xlu0 %6441, %v4826_v40  }
 0x892   :  { %v9925_v11 = vadd.f32 %v4408_v13, %v4340_v61  ;;  %11692 = vst [vmem:[#allocation116_spill] sm:$0xff] %v9927_v46  ;;  %v4825_v46 = vld [vmem:[%s10467_s4 + $0x38] sm:$0xff] }
 0x894   :  { %v9949_v2 = vpop.permute.xlu1 %4661 }
 0x895   :  { %4889 = vperm.xlu1 %6442, %v4827_v27   ;;  %v9964_v27 = vpop.permute.xlu0 %4686 }
 0x896   :  { %11698 = vst [vmem:[#allocation33_spill] sm:$0xff] %v9964_v27  ;;  %v4819_v27 = vld [vmem:[%s10467_s4 + $0x8] sm:$0xff] }
 0x897   :  { %v9934_v57 = vpop.f32.mrf.mxu3 }
 0x898   :  { %v9959_v30 = vpop.permute.xlu2 %4726 }
 0x899   :  { %v9941_v61 = vpop.f32.mrf.mxu0  ;;  %4879 = vperm.xlu0 %6441, %v4825_v46   ;;  %11697 = vst [vmem:[#allocation115_spill] sm:$0xff] %v9959_v30  ;;  %v4830_v30 = vld [vmem:[%s10467_s4 + $0x60] sm:$0xff] }
 0x89a   :  { %11694 = vst [vmem:[#allocation27_spill] sm:$0xff] %v9941_v61  ;;  %4904 = vperm.xlu2 %6443, %v4830_v30   ;;  %v4840_v30 = vld [vmem:[%s10467_s4 + $0xb0] sm:$0xff] }
 0x89c   :  { %4481 = vmatmul.bf16.gmra.mxu3 %v11695_v59  ;;  %6097 = vmatmul.msk.bf16.gmra.mxu0 %vm728_vm0, %v11617_v48  ;;  %v4822_v48 = vld [vmem:[%s10467_s4 + $0x20] sm:$0xff]  ;;  %v9973_v46 = vpop.permute.xlu1 %4646 }
 0x89d   :  { %4864 = vperm.xlu1 %6442, %v4822_v48   ;;  %v4821_v48 = vld [vmem:[%s10467_s4 + $0x18] sm:$0xff] }
 0x89f   :  { %v4442_v13 = vpop.f32.mrf.mxu3 }
 0x8a0   :  { %v9955_v40 = vadd.f32 %v4442_v13, %v9694_v26  ;;  %v9975_v13 = vpop.permute.xlu2 %4651 }
 0x8a1   :  { %v9957_v61 = vpop.f32.mrf.mxu0  ;;  %4854 = vperm.xlu0 %6441, %v4820_v25  }
 0x8a2   :  { %11696 = vst [vmem:[#allocation93_spill] sm:$0xff] %v9957_v61  ;;  %v11700_v61 = vld [vmem:[#allocation71_spill] sm:$0xff] }
 0x8a4   :  { %v9996_v33 = vpop.permute.xlu1 %4721 }
 0x8a5   :  { %4859 = vperm.xlu1 %6442, %v4821_v48   ;;  %11703 = vst [vmem:[#allocation32_spill] sm:$0xff] %v9996_v33 }
 0x8a7   :  { %v9966_v59 = vpop.f32.mrf.mxu3 }
 0x8a8   :  { %v10006_v48 = vpop.permute.xlu2 %4636 }
 0x8a9   :  { %v9971_v26 = vpop.f32.mrf.mxu0  ;;  %4849 = vperm.xlu0 %6441, %v4819_v27  }
 0x8aa   :  { %11699 = vst [vmem:[#allocation36_spill] sm:$0xff] %v9971_v26  ;;  %v9986_v26 = vpop.permute.xlu0 %4691 }
 0x8ab   :  { %11701 = vst [vmem:[#allocation37_spill] sm:$0xff] %v9986_v26 }
 0x8ac   :  { %4486 = vmatmul.bf16.gmra.mxu3 %v11700_v61  ;;  %6098 = vmatmul.msk.bf16.gmra.mxu0 %vm728_vm0, %v11618_v5  ;;  %v4829_v5 = vld [vmem:[%s10467_s4 + $0x58] sm:$0xff]  ;;  %v4312_v61 = vadd.f32 %v9740_v52, %v9736_v62  ;;  %v4824_v52 = vld [vmem:[%s10467_s4 + $0x30] sm:$0xff]  ;;  %v4839_v62 = vld [vmem:[%s10467_s4 + $0xa8] sm:$0xff] }
 0x8ad   :  { %4899 = vperm.xlu2 %6443, %v4829_v5   ;;  %4954 = vperm.xlu1 %6442, %v4840_v30   ;;  %v10027_v5 = vpop.permute.xlu1 %4706 }
 0x8ae   :  { %11706 = vst [vmem:[#allocation65_spill] sm:$0xff] %v10027_v5 }
 0x8af   :  { %v4447_v25 = vpop.f32.mrf.mxu3 }
 0x8b0   :  { %v9992_v50 = vadd.f32 %v4447_v25, %v9734_v49  ;;  %v4381_v49 = vadd.f32 %v9754_v3, %v4312_v61  ;;  %v4838_v25 = vld [vmem:[%s10467_s4 + $0xa0] sm:$0xff]  ;;  %v10029_v61 = vpop.permute.xlu2 %4711 }
 0x8b1   :  { %v9994_v39 = vpop.f32.mrf.mxu0  ;;  %4944 = vperm.xlu0 %6441, %v4838_v25   ;;  %v11705_v3 = vld [vmem:[#allocation73_spill] sm:$0xff]  ;;  %11707 = vst [vmem:[#allocation103_spill] sm:$0xff] %v10029_v61 }
 0x8b2   :  { %11702 = vst [vmem:[#allocation76_spill] sm:$0xff] %v9994_v39  ;;  %v10016_v26 = vpop.permute.xlu0 %4656 }
 0x8b5   :  { %4874 = vperm.xlu2 %6443, %v4824_v52   ;;  %4949 = vperm.xlu1 %6442, %v4839_v62   ;;  %v4834_v52 = vld [vmem:[%s10467_s4 + $0x80] sm:$0xff]  ;;  %v4317_v62 = vadd.f32 %v9780_v32, %v9776_v58  ;;  %v5259_v58 = vld [vmem:[%s10469_s6 + $0x8] sm:$0xff] }
 0x8b6   :  { %v4818_v32 = vld [vmem:[%s10467_s4] sm:$0xff] }
 0x8b7   :  { %v4449_v27 = vpop.f32.mrf.mxu3 }
 0x8b8   :  { %v10012_v33 = vadd.f32 %v4449_v27, %v4381_v49  ;;  %v4837_v49 = vld [vmem:[%s10467_s4 + $0x98] sm:$0xff]  ;;  %v10055_v61 = vpop.permute.xlu2 %4696 }
 0x8b9   :  { %v10014_v39 = vpop.f32.mrf.mxu0  ;;  %4939 = vperm.xlu0 %6441, %v4837_v49   ;;  %11710 = vst [vmem:[#allocation41_spill] sm:$0xff] %v10055_v61 }
 0x8ba   :  { %11704 = vst [vmem:[#allocation83_spill] sm:$0xff] %v10014_v39 }
 0x8bc   :  { %4491 = vmatmul.bf16.gmra.mxu3 %v11705_v3  ;;  %6099 = vmatmul.msk.bf16.gmra.mxu0 %vm728_vm0, %v11619_v54  ;;  %v10039_v3 = vpop.permute.xlu0 %4731  ;;  %v4823_v54 = vld [vmem:[%s10467_s4 + $0x28] sm:$0xff] }
 0x8bd   :  { %11709 = vst [vmem:[#allocation40_spill] sm:$0xff] %v10039_v3  ;;  %4869 = vperm.xlu2 %6443, %v4823_v54   ;;  %4924 = vperm.xlu1 %6442, %v4834_v52   ;;  %v5258_v3 = vld [vmem:[%s10469_s6] sm:$0xff]  ;;  %v11711_v54 = vmax.f32 %v11621_v7, %v9573_v14  ;;  %v11712_v52 = vld [vmem:[#allocation75_spill] sm:$0xff]  ;;  %v4841_v7 = vld [vmem:[%s10467_s4 + $0xb8] sm:$0xff]  ;;  %s5342_s6 = sshll.u32 %s10470_s7, 4  ;;  %s5343_s6 = int_to_ptr.hbm [resolvable:$true] %s5342_s6 }
 0x8bf   :  { %v4452_v30 = vpop.f32.mrf.mxu3 }
 0x8c0   :  { %v10035_v27 = vadd.f32 %v4452_v30, %v9774_v42  ;;  %v4386_v42 = vadd.f32 %v9791_v63, %v4317_v62  ;;  %v4632_v30 = vpop.permute.xlu1 %4631  ;;  %v4302_v63 = vadd.f32 %v9669_v35, %v9665_v29  ;;  %v4622_v14 = vpop.permute.xlu2 %4621 }
 0x8c1   :  { %v10037_v25 = vpop.f32.mrf.mxu0  ;;  %5262 = vperm.xlu0 %6441, %v5258_v3  }
 0x8c2   :  { %11708 = vst [vmem:[#allocation12_spill] sm:$0xff] %v10037_v25 }
 0x8c4   :  { %v10071_v62 = vpop.permute.xlu0 %4716 }
 0x8c5   :  { %4844 = vperm.xlu2 %6443, %v4818_v32   ;;  %5267 = vperm.xlu1 %6442, %v5259_v58   ;;  %v11713_v32 = vmax.f32 %v11622_v43, %v9581_v18  ;;  %v11714_v18 = vmax.f32 %v9214_v6, %v9594_v4  ;;  %v11715_v6 = vmax.f32 %v9223_v51, %v9602_v44 }
 0x8c7   :  { %v4454_v49 = vpop.f32.mrf.mxu3 }
 0x8c8   :  { %v10053_v25 = vadd.f32 %v4454_v49, %v4386_v42  ;;  %v4617_v29 = vpop.permute.xlu1 %4616 }
 0x8c9   :  { %v4506_v39 = vpop.f32.mrf.mxu0 }
 0x8ca   :  { %v4507_v5 = vadd.f32 %v4506_v39, %v9923_v34  ;;  %v4371_v39 = vadd.f32 %v9677_v56, %v4302_v63 }
 0x8cc   :  { %v4566_v3 = vmax.f32 %v11711_v54, %v4507_v5  ;;  %6100 = vmatmul.msk.bf16.gmra.mxu0 %vm728_vm0, %v11712_v52  ;;  %v4440_v42 = vadd.f32 %v9934_v57, %v4371_v39  ;;  %v4642_v63 = vpop.permute.xlu0 %4641 }
 0x8cd   :  { %4959 = vperm.xlu2 %6443, %v4841_v7  }
 0x8ce   :  { %v4734_v5 = vadd.f32 %v4617_v29, %v4566_v3  ;;  %v4307_v3 = vadd.f32 %v9700_v12, %v9696_v22  ;;  %v4835_v12 = vld [vmem:[%s10467_s4 + $0x88] sm:$0xff] }
 0x8cf   :  { %v4457_v34 = vpop.f32.mrf.mxu3 }
 0x8d0   :  { %v10076_v49 = vadd.f32 %v4457_v34, %v9807_v60  ;;  %v4758_v54 = vmax.f32 %v4734_v5, 0.0 }
 0x8d1   :  { %v4508_v35 = vpop.f32.mrf.mxu0 }
 0x8d2   :  { %v4509_v61 = vadd.f32 %v4508_v35, %v4440_v42  ;;  %v4836_v42 = vld [vmem:[%s10467_s4 + $0x90] sm:$0xff] }
 0x8d4   :  { %v4567_v58 = vmax.f32 %v11713_v32, %v4509_v61  ;;  %v4376_v61 = vadd.f32 %v9714_v19, %v4307_v3  ;;  %v4627_v35 = vpop.permute.xlu0 %4626 }
 0x8d5   :  { %4934 = vperm.xlu2 %6443, %v4836_v42  }
 0x8d6   :  { %v4735_v56 = vadd.f32 %v4622_v14, %v4567_v58 }
 0x8d7   :  { %v4459_v57 = vpop.f32.mrf.mxu3 }
 0x8d8   :  { %v4759_v60 = vmax.f32 %v4735_v56, 0.0 }
 0x8d9   :  { %v4511_v52 = vpop.f32.mrf.mxu0 }
 0x8da   :  { %v10084_v39 = vpack.c.bf16 %v4759_v60, %v4758_v54  ;;  %v4512_v34 = vadd.f32 %v4511_v52, %v9955_v40  ;;  %v4445_v40 = vadd.f32 %v9966_v59, %v4376_v61  ;;  %v11716_v54 = vmax.f32 %v9237_v45, %v9615_v36 }
 0x8dc   :  { %v4568_v43 = vmax.f32 %v11714_v18, %v4512_v34  ;;  %6101 = vmatmul.msk.bf16.gmra.mxu0 %vm728_vm0, %v11623_v38  ;;  %v11717_v34 = vmax.f32 %v9246_v21, %v9623_v16 }
 0x8dd   :  { %4929 = vperm.xlu2 %6443, %v4835_v12  }
 0x8de   :  { %v4736_v22 = vadd.f32 %v4627_v35, %v4568_v43 }
 0x8df   :  { %v4462_v29 = vpop.f32.mrf.mxu3 }
 0x8e0   :  { %v4760_v32 = vmax.f32 %v4736_v22, 0.0 }
 0x8e1   :  { %v4513_v14 = vpop.f32.mrf.mxu0 }
 0x8e2   :  { %v4514_v7 = vadd.f32 %v4513_v14, %v4445_v40 }
 0x8e4   :  { %v4569_v4 = vmax.f32 %v11715_v6, %v4514_v7 }
 0x8e6   :  { %v4737_v38 = vadd.f32 %v4632_v30, %v4569_v4 }
 0x8e7   :  { %v4464_v5 = vpop.f32.mrf.mxu3 }
 0x8e8   :  { %v4761_v19 = vmax.f32 %v4737_v38, 0.0 }
 0x8e9   :  { %v4516_v58 = vpop.f32.mrf.mxu0 }
 0x8ea   :  { %v4517_v59 = vadd.f32 %v4516_v58, %v9992_v50  ;;  %v10106_v56 = vpack.c.bf16 %v4761_v19, %v4760_v32  ;;  %v11721_v19 = vld [vmem:[#allocation66_spill] sm:$0xff] }
 0x8ec   :  { %v4570_v60 = vmax.f32 %v11716_v54, %v4517_v59  ;;  %6102 = vmatmul.msk.bf16.gmra.mxu0 %vm728_vm0, %v11502_v9  ;;  %v11718_v9 = vmax.f32 %v9260_v1, %v9636_v0 }
 0x8ee   :  { %v4738_v30 = vadd.f32 %v10006_v48, %v4570_v60 }
 0x8ef   :  { %v4467_v52 = vpop.f32.mrf.mxu3 }
 0x8f0   :  { %v4762_v18 = vmax.f32 %v4738_v30, 0.0 }
 0x8f1   :  { %v4518_v51 = vpop.f32.mrf.mxu0 }
 0x8f2   :  { %v4519_v44 = vadd.f32 %v4518_v51, %v10012_v33 }
 0x8f4   :  { %v4571_v42 = vmax.f32 %v11717_v34, %v4519_v44  ;;  %v11725_v44 = vld [vmem:[#allocation85_spill] sm:$0xff] }
 0x8f6   :  { %v4739_v50 = vadd.f32 %v4642_v63, %v4571_v42  ;;  %v11719_v63 = vmax.f32 %v11625_v8, %v9647_v55  ;;  %v11729_v42 = vld [vmem:[#allocation38_spill] sm:$0xff] }
 0x8f7   :  { %v4469_v3 = vpop.f32.mrf.mxu3 }
 0x8f8   :  { %v4763_v43 = vmax.f32 %v4739_v50, 0.0 }
 0x8f9   :  { %v4521_v61 = vpop.f32.mrf.mxu0 }
 0x8fa   :  { %v4522_v45 = vadd.f32 %v4521_v61, %v10035_v27  ;;  %v10119_v36 = vpack.c.bf16 %v4763_v43, %v4762_v18 }
 0x8fc   :  { %v4572_v40 = vmax.f32 %v11718_v9, %v4522_v45  ;;  %6103 = vmatmul.msk.bf16.gmra.mxu0 %vm728_vm0, %v11624_v31  ;;  %v11731_v9 = vld [vmem:[#allocation86_spill] sm:$0xff] }
 0x8fe   :  { %v4740_v16 = vadd.f32 %v9973_v46, %v4572_v40  ;;  %v11720_v46 = vmax.f32 %v11628_v28, %v9661_v24  ;;  %v11724_v24 = vld [vmem:[#allocation17_spill] sm:$0xff]  ;;  %v11732_v40 = vld [vmem:[#allocation94_spill] sm:$0xff] }
 0x8ff   :  { %v4472_v33 = vpop.f32.mrf.mxu3 }
 0x900   :  { %v4764_v7 = vmax.f32 %v4740_v16, 0.0  ;;  %v11734_v16 = vld [vmem:[#allocation118_spill] sm:$0xff] }
 0x901   :  { %v4523_v48 = vpop.f32.mrf.mxu0 }
 0x902   :  { %v4524_v21 = vadd.f32 %v4523_v48, %v10053_v25  ;;  %v4322_v25 = vadd.f32 %v9813_v41, %v9809_v17  ;;  %v11722_v41 = vld [vmem:[#allocation19_spill] sm:$0xff]  ;;  %v11733_v48 = vmax.f32 %v11731_v9, %v11732_v40 }
 0x903   :  { %v11723_v17 = vmax.f32 %v11721_v19, %v11722_v41  ;;  %v11743_v19 = vld [vmem:[#allocation31_spill] sm:$0xff] }
 0x904   :  { %v4573_v35 = vmax.f32 %v11719_v63, %v4524_v21  ;;  %v4391_v55 = vadd.f32 %v9821_v53, %v4322_v25  ;;  %v11736_v25 = vld [vmem:[#allocation105_spill] sm:$0xff] }
 0x906   :  { %v4741_v27 = vadd.f32 %v9975_v13, %v4573_v35  ;;  %v4460_v13 = vadd.f32 %v4459_v57, %v4391_v55 }
 0x907   :  { %v10132_v14 = vpop.f32.mrf.mxu3 }
 0x908   :  { %v4765_v1 = vmax.f32 %v4741_v27, 0.0 }
 0x909   :  { %v4526_v0 = vpop.f32.mrf.mxu0 }
 0x90a   :  { %v4527_v12 = vadd.f32 %v4526_v0, %v10076_v49  ;;  %v10135_v31 = vpack.c.bf16 %v4765_v1, %v4764_v7  ;;  %v4325_v49 = vadd.f32 %v9827_v23, %v9823_v47  ;;  %v4327_v47 = vadd.f32 %v9844_v10, %v11725_v44  ;;  %v11726_v23 = vld [vmem:[#allocation14_spill] sm:$0xff] }
 0x90c   :  { %v4574_v22 = vmax.f32 %v11720_v46, %v4527_v12  ;;  %v4394_v28 = vadd.f32 %v11724_v24, %v4325_v49  ;;  %v4396_v50 = vadd.f32 %v11729_v42, %v4327_v47  ;;  %v11735_v12 = vld [vmem:[#allocation70_spill] sm:$0xff]  ;;  %v11751_v42 = vld [vmem:[#allocation108_spill] sm:$0xff] }
 0x90d   :  { %v4332_v46 = vadd.f32 %v11736_v25, %v11735_v12 }
 0x90e   :  { %v4742_v32 = vadd.f32 %v10016_v26, %v4574_v22  ;;  %v4463_v59 = vadd.f32 %v4462_v29, %v4394_v28  ;;  %v11727_v26 = vld [vmem:[#allocation79_spill] sm:$0xff]  ;;  %v4465_v18 = vadd.f32 %v4464_v5, %v4396_v50  ;;  %v11738_v22 = vld [vmem:[#allocation109_spill] sm:$0xff]  ;;  %v11752_v50 = vld [vmem:[#allocation84_spill] sm:$0xff] }
 0x90f   :  { %v4477_v8 = vpop.f32.mrf.mxu3  ;;  %v11728_v30 = vmax.f32 %v11726_v23, %v11727_v26  ;;  %v11749_v26 = vld [vmem:[#allocation90_spill] sm:$0xff] }
 0x910   :  { %v10144_v6 = vadd.f32 %v4477_v8, %v9925_v11  ;;  %v4766_v57 = vmax.f32 %v4742_v32, 0.0  ;;  %v11740_v8 = vld [vmem:[#allocation42_spill] sm:$0xff]  ;;  %v11741_v32 = vld [vmem:[#allocation25_spill] sm:$0xff] }
 0x911   :  { %v4528_v4 = vpop.f32.mrf.mxu0 }
 0x912   :  { %v4529_v38 = vadd.f32 %v4528_v4, %v4460_v13  ;;  %v4401_v13 = vadd.f32 %v11740_v8, %v4332_v46 }
 0x914   :  { %v4575_v58 = vmax.f32 %v11723_v17, %v4529_v38  ;;  %v4470_v4 = vadd.f32 %v4469_v3, %v4401_v13  ;;  %v11744_v17 = vld [vmem:[#allocation18_spill] sm:$0xff] }
 0x915   :  { %v11761_v13 = vld [vmem:[#allocation46_spill] sm:$0xff] }
 0x916   :  { %v4743_v53 = vadd.f32 %v9949_v2, %v4575_v58  ;;  %v11730_v2 = vld [vmem:[#allocation21_spill] sm:$0xff]  ;;  %v11745_v58 = vld [vmem:[#allocation23_spill] sm:$0xff] }
 0x917   :  { %v4330_v29 = vadd.f32 %v9855_v15, %v11730_v2  ;;  %v11737_v15 = vld [vmem:[#allocation104_spill] sm:$0xff]  ;;  %v11746_v24 = vmax.f32 %v11744_v17, %v11745_v58  ;;  %v11754_v2 = vld [vmem:[#allocation30_spill] sm:$0xff]  ;;  %v4479_v40 = vpop.f32.mrf.mxu3  ;;  %v11764_v58 = vld [vmem:[#allocation27_spill] sm:$0xff] }
 0x918   :  { %v4767_v54 = vmax.f32 %v4743_v53, 0.0  ;;  %v11747_v53 = vld [vmem:[#allocation95_spill] sm:$0xff] }
 0x919   :  { %v4531_v11 = vpop.f32.mrf.mxu0  ;;  %v4399_v10 = vadd.f32 %v11734_v16, %v4330_v29 }
 0x91a   :  { %v4532_v60 = vadd.f32 %v4531_v11, %v4463_v59  ;;  %v10154_v51 = vpack.c.bf16 %v4767_v54, %v4766_v57  ;;  %v11748_v57 = vld [vmem:[#allocation110_spill] sm:$0xff] }
 0x91b   :  { %v4468_v35 = vadd.f32 %v4467_v52, %v4399_v10  ;;  %v11756_v10 = vld [vmem:[#allocation117_spill] sm:$0xff] }
 0x91c   :  { %v4576_v34 = vmax.f32 %v11728_v30, %v4532_v60  ;;  %v11750_v30 = vld [vmem:[#allocation119_spill] sm:$0xff] }
 0x91e   :  { %v4744_v45 = vadd.f32 %v9917_v37, %v4576_v34  ;;  %v11739_v37 = vmax.f32 %v11737_v15, %v11738_v22  ;;  %v4337_v34 = vadd.f32 %v11750_v30, %v11749_v26 }
 0x920   :  { %v4768_v27 = vmax.f32 %v4744_v45, 0.0  ;;  %v4406_v29 = vadd.f32 %v11754_v2, %v4337_v34  ;;  %v4410_v45 = vpop.f32.mrf.mxu2  ;;  %v11771_v2 = vld [vmem:[#allocation34_spill] sm:$0xff] }
 0x921   :  { %v4533_v43 = vpop.f32.mrf.mxu0 }
 0x922   :  { %v4534_v61 = vadd.f32 %v4533_v43, %v4465_v18  ;;  %v11753_v18 = vmax.f32 %v11751_v42, %v11752_v50  ;;  %v4475_v9 = vadd.f32 %v10132_v14, %v4406_v29  ;;  %v4482_v14 = vpop.f32.mrf.mxu3 }
 0x924   :  { %v4577_v21 = vmax.f32 %v11733_v48, %v4534_v61  ;;  %v4341_v61 = vpop.f32.mrf.mxu1 }
 0x926   :  { %v4745_v63 = vadd.f32 %v9936_v20, %v4577_v21  ;;  %v11742_v20 = vld [vmem:[#allocation26_spill] sm:$0xff]  ;;  %v11755_v21 = vld [vmem:[#allocation33_spill] sm:$0xff] }
 0x927   :  { %v4335_v52 = vadd.f32 %v11742_v20, %v11741_v32 }
 0x928   :  { %v4769_v7 = vmax.f32 %v4745_v63, 0.0  ;;  %v11757_v63 = vld [vmem:[#allocation99_spill] sm:$0xff]  ;;  %v4413_v46 = vpop.f32.mrf.mxu2 }
 0x929   :  { %v4536_v1 = vpop.f32.mrf.mxu0  ;;  %v4404_v59 = vadd.f32 %v11747_v53, %v4335_v52 }
 0x92a   :  { %v4537_v5 = vadd.f32 %v4536_v1, %v4468_v35  ;;  %v4811_v0 = vpack.c.bf16 %v4769_v7, %v4768_v27  ;;  %v11758_v35 = vmax.f32 %v11756_v10, %v11757_v63  ;;  %v11759_v7 = vld [vmem:[#allocation37_spill] sm:$0xff] }
 0x92b   :  { %v4473_v11 = vadd.f32 %v4472_v33, %v4404_v59  ;;  %v11767_v59 = vld [vmem:[#allocation13_spill] sm:$0xff] }
 0x92c   :  { %v4578_v55 = vmax.f32 %v11739_v37, %v4537_v5  ;;  %v4344_v5 = vpop.f32.mrf.mxu1  ;;  %v11774_v10 = vld [vmem:[#allocation65_spill] sm:$0xff] }
 0x92e   :  { %v4746_v41 = vadd.f32 %v11743_v19, %v4578_v55  ;;  %v11760_v55 = vld [vmem:[#allocation116_spill] sm:$0xff] }
 0x92f   :  { %v4342_v8 = vadd.f32 %v4341_v61, %v11760_v55  ;;  %v11770_v61 = vld [vmem:[#allocation82_spill] sm:$0xff] }
 0x930   :  { %v4770_v60 = vmax.f32 %v4746_v41, 0.0  ;;  %v4415_v17 = vpop.f32.mrf.mxu2  ;;  %v11772_v29 = vmax.f32 %v11770_v61, %v11771_v2 }
 0x931   :  { %v4538_v38 = vpop.f32.mrf.mxu0  ;;  %v4411_v32 = vadd.f32 %v4410_v45, %v4342_v8 }
 0x932   :  { %v4539_v49 = vadd.f32 %v4538_v38, %v4470_v4  ;;  %v11762_v4 = vld [vmem:[#allocation28_spill] sm:$0xff] }
 0x933   :  { %v11763_v38 = vmax.f32 %v11761_v13, %v11762_v4  ;;  %v4480_v20 = vadd.f32 %v4479_v40, %v4411_v32  ;;  %v11780_v32 = vld [vmem:[#allocation54_spill] sm:$0xff] }
 0x934   :  { %v4579_v28 = vmax.f32 %v11746_v24, %v4539_v49  ;;  %v4346_v52 = vpop.f32.mrf.mxu1  ;;  %v4345_v24 = vadd.f32 %v4344_v5, %v11764_v58 }
 0x936   :  { %v4747_v54 = vadd.f32 %v11748_v57, %v4579_v28  ;;  %v11765_v28 = vld [vmem:[#allocation41_spill] sm:$0xff] }
 0x938   :  { %v4771_v44 = vmax.f32 %v4747_v54, 0.0  ;;  %v4418_v45 = vpop.f32.mrf.mxu2 }
 0x939   :  { %v4541_v47 = vpop.f32.mrf.mxu0 }
 0x93a   :  { %v4542_v3 = vadd.f32 %v4541_v47, %v4473_v11  ;;  %v4812_v23 = vpack.c.bf16 %v4771_v44, %v4770_v60  ;;  %v4702_v11 = vpop.permute.xlu0 %4701  ;;  %v4484_v60 = vpop.f32.mrf.mxu3  ;;  %v4414_v44 = vadd.f32 %v4413_v46, %v4345_v24 }
 0x93c   :  { %v4580_v43 = vmax.f32 %v11753_v18, %v4542_v3  ;;  %v4483_v3 = vadd.f32 %v4482_v14, %v4414_v44  ;;  %v4349_v50 = vpop.f32.mrf.mxu1  ;;  %v11769_v18 = vld [vmem:[#allocation93_spill] sm:$0xff] }
 0x93e   :  { %v4748_v16 = vadd.f32 %v11755_v21, %v4580_v43  ;;  %v4347_v43 = vadd.f32 %v4346_v52, %v11769_v18  ;;  %v11773_v21 = vld [vmem:[#allocation36_spill] sm:$0xff] }
 0x940   :  { %v4772_v12 = vmax.f32 %v4748_v16, 0.0  ;;  %v4350_v16 = vadd.f32 %v4349_v50, %v11773_v21 }
 0x941   :  { %v4543_v33 = vpop.f32.mrf.mxu0 }
 0x942   :  { %v4544_v48 = vadd.f32 %v4543_v33, %v4475_v9  ;;  %v4416_v9 = vadd.f32 %v4415_v17, %v4347_v43  ;;  %v4487_v40 = vpop.f32.mrf.mxu3 }
 0x944   :  { %v4581_v27 = vmax.f32 %v11758_v35, %v4544_v48  ;;  %v4485_v33 = vadd.f32 %v4484_v60, %v4416_v9  ;;  %v11775_v35 = vld [vmem:[#allocation112_spill] sm:$0xff]  ;;  %v4351_v5 = vpop.f32.mrf.mxu1 }
 0x946   :  { %v4749_v1 = vadd.f32 %v11759_v7, %v4581_v27  ;;  %v11776_v27 = vld [vmem:[#allocation114_spill] sm:$0xff] }
 0x947   :  { %v11777_v7 = vmax.f32 %v11775_v35, %v11776_v27  ;;  %v11792_v27 = vld [vmem:[#allocation115_spill] sm:$0xff] }
 0x948   :  { %v4773_v25 = vmax.f32 %v4749_v1, 0.0 }
 0x949   :  { %v4546_v15 = vpop.f32.mrf.mxu0 }
 0x94a   :  { %v4813_v22 = vpack.c.bf16 %v4773_v25, %v4772_v12  ;;  %v4547_v37 = vadd.f32 %v4546_v15, %v10144_v6  ;;  %v11766_v6 = vld [vmem:[#allocation67_spill] sm:$0xff]  ;;  %v4419_v12 = vadd.f32 %v4418_v45, %v4350_v16  ;;  %v4420_v15 = vpop.f32.mrf.mxu2  ;;  %v11788_v45 = vld [vmem:[#allocation12_spill] sm:$0xff] }
 0x94b   :  { %v11768_v57 = vmax.f32 %v11766_v6, %v11767_v59  ;;  %v11778_v25 = vld [vmem:[#allocation103_spill] sm:$0xff] }
 0x94c   :  { %v4582_v49 = vmax.f32 %v11763_v38, %v4547_v37  ;;  %5106 = vmatpush.bf16.msrb.mxu1 %v4813_v22  ;;  %v4488_v37 = vadd.f32 %v4487_v40, %v4419_v12  ;;  %v11779_v38 = vld [vmem:[#allocation76_spill] sm:$0xff]  ;;  %v4354_v17 = vpop.f32.mrf.mxu1  ;;  %v11783_v59 = vld [vmem:[#allocation83_spill] sm:$0xff]  ;;  %v11789_v40 = vld [vmem:[#allocation97_spill] sm:$0xff] }
 0x94d   :  { %v6122_v12 = vld [vmem:[%s10466_s3 + $0x20] sm:$0xf] }
 0x94e   :  { %v4750_v53 = vadd.f32 %v11765_v28, %v4582_v49  ;;  %v4352_v49 = vadd.f32 %v4351_v5, %v11779_v38  ;;  %v6108_v38 = vld [vmem:[%s10466_s3 + $0x8] sm:$0xf0] }
 0x950   :  { %5107 = vmatpush.bf16.msrb.mxu1 %v4812_v23  ;;  %v4774_v26 = vmax.f32 %v4750_v53, 0.0 }
 0x951   :  { %v4548_v19 = vpop.f32.mrf.mxu0 }
 0x952   :  { %v4549_v41 = vadd.f32 %v4548_v19, %v4480_v20  ;;  %v11781_v20 = vld [vmem:[#allocation22_spill] sm:$0xff]  ;;  %v4423_v24 = vpop.f32.mrf.mxu2 }
 0x953   :  { %v11782_v52 = vmax.f32 %v11780_v32, %v11781_v20  ;;  %v6390_v20 = vld [vmem:[%s10466_s3 + $0x44] sm:$0xf0] }
 0x954   :  { %v4583_v54 = vmax.f32 %v11768_v57, %v4549_v41  ;;  %5108 = vmatpush.bf16.msrb.mxu1 %v4811_v0  ;;  %v4421_v41 = vadd.f32 %v4420_v15, %v4352_v49 }
 0x956   :  { %v4751_v47 = vadd.f32 %v4702_v11, %v4583_v54  ;;  %v11784_v54 = vld [vmem:[#allocation15_spill] sm:$0xff]  ;;  %v11785_v11 = vld [vmem:[#allocation89_spill] sm:$0xff] }
 0x957   :  { %v11786_v60 = vmax.f32 %v11784_v54, %v11785_v11  ;;  %v6132_v54 = vld [vmem:[%s10466_s3 + $0x38] sm:$0xf0] }
 0x958   :  { %v4775_v23 = vmax.f32 %v4751_v47, 0.0  ;;  %5109 = vmatpush.bf16.msrb.mxu1 %v10154_v51  ;;  %v6114_v47 = vld [vmem:[%s10466_s3 + $0x10] sm:$0xf] }
 0x959   :  { %v4551_v30 = vpop.f32.mrf.mxu0 }
 0x95a   :  { %v4552_v34 = vadd.f32 %v4551_v30, %v4483_v3  ;;  %v10207_v42 = vpack.c.bf16 %v4775_v23, %v4774_v26  ;;  %v6384_v3 = vld [vmem:[%s10466_s3 + $0x14] sm:$0xf0] }
 0x95b   :  { %v11787_v23 = vld [vmem:[#allocation32_spill] sm:$0xff] }
 0x95c   :  { %v4584_v0 = vmax.f32 %v11772_v29, %v4552_v34  ;;  %5110 = vmatpush.bf16.msrb.mxu1 %v10135_v31  ;;  %v6106_v31 = vld [vmem:[%s10466_s3] sm:$0xf]  ;;  %v6115_v34 = vor.u32 %v6384_v3, %v6114_v47  ;;  %v6396_v47 = vld [vmem:[%s10466_s3 + $0x74] sm:$0xf0]  ;;  %v6389_v3 = vld [vmem:[%s10466_s3 + $0x44] sm:$0xf] }
 0x95e   :  { %v4752_v63 = vadd.f32 %v11774_v10, %v4584_v0  ;;  %v4425_v0 = vpop.f32.mrf.mxu2 }
 0x960   :  { %5111 = vmatpush.bf16.msrb.mxu1 %v10119_v36  ;;  %v6382_v36 = vld [vmem:[%s10466_s3 + $0x4] sm:$0xf0]  ;;  %v4776_v14 = vmax.f32 %v4752_v63, 0.0 }
 0x961   :  { %v4553_v51 = vpop.f32.mrf.mxu0  ;;  %v6107_v22 = vor.u32 %v6382_v36, %v6106_v31  ;;  %v11794_v31 = vld [vmem:[#allocation111_spill] sm:$0xff] }
 0x962   :  { %v4554_v48 = vadd.f32 %v4553_v51, %v4485_v33  ;;  %v11790_v33 = vld [vmem:[#allocation113_spill] sm:$0xff] }
 0x963   :  { %v11791_v51 = vmax.f32 %v11789_v40, %v11790_v33  ;;  %v6393_v40 = vld [vmem:[%s10466_s3 + $0x64] sm:$0xf]  ;;  %v6156_v33 = vld [vmem:[%s10466_s3 + $0x68] sm:$0xf0] }
 0x964   :  { %v4585_v1 = vmax.f32 %v11777_v7, %v4554_v48  ;;  %5112 = vmatpush.bf16.msrb.mxu1 %v10106_v56  ;;  %v4489_v56 = vpop.f32.mrf.mxu3 }
 0x965   :  { %v4490_v58 = vadd.f32 %v4489_v56, %v4421_v41  ;;  %v6130_v56 = vld [vmem:[%s10466_s3 + $0x30] sm:$0xf] }
 0x966   :  { %v4753_v46 = vadd.f32 %v11778_v25, %v4585_v1  ;;  %v11793_v1 = vld [vmem:[#allocation92_spill] sm:$0xff]  ;;  %v6386_v25 = vld [vmem:[%s10466_s3 + $0x24] sm:$0xf0] }
 0x967   :  { %v11795_v36 = vmax.f32 %v11793_v1, %v11794_v31  ;;  %v6164_v1 = vld [vmem:[%s10466_s3 + $0x78] sm:$0xf0] }
 0x968   :  { %v4777_v55 = vmax.f32 %v4753_v46, 0.0  ;;  %5113 = vmatpush.bf16.msrb.mxu1 %v10084_v39  ;;  %v4355_v39 = vadd.f32 %v4354_v17, %v11783_v59  ;;  %v11796_v46 = vld [vmem:[#allocation40_spill] sm:$0xff]  ;;  %v6146_v17 = vld [vmem:[%s10466_s3 + $0x50] sm:$0xf]  ;;  %v6154_v59 = vld [vmem:[%s10466_s3 + $0x60] sm:$0xf] }
 0x969   :  { %v4556_v8 = vpop.f32.mrf.mxu0 }
 0x96a   :  { %v4557_v13 = vadd.f32 %v4556_v8, %v4488_v37  ;;  %v4815_v4 = vpack.c.bf16 %v4777_v55, %v4776_v14  ;;  %v4424_v26 = vadd.f32 %v4423_v24, %v4355_v39  ;;  %v6388_v8 = vld [vmem:[%s10466_s3 + $0x34] sm:$0xf0]  ;;  %v6385_v24 = vld [vmem:[%s10466_s3 + $0x24] sm:$0xf]  ;;  %v6394_v39 = vld [vmem:[%s10466_s3 + $0x64] sm:$0xf0] }
 0x96b   :  { %5114 = vmatmul.bf16.vlgmr.msrb.gmra.mxu1 %v6107_v22  ;;  %v6123_v22 = vor.u32 %v6386_v25, %v6122_v12  ;;  %v6131_v49 = vor.u32 %v6388_v8, %v6130_v56  ;;  %v6155_v11 = vor.u32 %v6394_v39, %v6154_v59  ;;  %v6397_v56 = vld [vmem:[%s10466_s3 + $0x84] sm:$0xf]  ;;  %v6172_v8 = vld [vmem:[%s10466_s3 + $0x88] sm:$0xf0] }
 0x96c   :  { %v4586_v19 = vmax.f32 %v11782_v52, %v4557_v13  ;;  %v4492_v6 = vpop.f32.mrf.mxu3  ;;  %v6381_v13 = vld [vmem:[%s10466_s3 + $0x4] sm:$0xf]  ;;  %v6383_v52 = vld [vmem:[%s10466_s3 + $0x14] sm:$0xf] }
 0x96d   :  { %v4493_v50 = vadd.f32 %v4492_v6, %v4424_v26  ;;  %v6111_v32 = vor.u32 %v6381_v13, %v6108_v38  ;;  %v6140_v26 = vld [vmem:[%s10466_s3 + $0x48] sm:$0xf0] }
 0x96e   :  { %v4754_v57 = vadd.f32 %v10071_v62, %v4586_v19  ;;  %v4356_v62 = vpop.f32.mrf.mxu1  ;;  %v6116_v19 = vld [vmem:[%s10466_s3 + $0x18] sm:$0xf0] }
 0x96f   :  { %v4357_v9 = vadd.f32 %v4356_v62, %v11788_v45  ;;  %v6119_v41 = vor.u32 %v6383_v52, %v6116_v19  ;;  %v10344_v45 = vpop.permute.xlu2 %4904 }
 0x970   :  { %v4778_v18 = vmax.f32 %v4754_v57, 0.0  ;;  %v6387_v57 = vld [vmem:[%s10466_s3 + $0x34] sm:$0xf] }
 0x971   :  { %v4558_v28 = vpop.f32.mrf.mxu0  ;;  %v4426_v16 = vadd.f32 %v4425_v0, %v4357_v9  ;;  %v6178_v0 = vld [vmem:[%s10466_s3 + $0x90] sm:$0xf]  ;;  %v6400_v9 = vld [vmem:[%s10466_s3 + $0x94] sm:$0xf0] }
 0x972   :  { %v4559_v53 = vadd.f32 %v4558_v28, %v4490_v58  ;;  %v6392_v58 = vld [vmem:[%s10466_s3 + $0x54] sm:$0xf0]  ;;  %v6124_v28 = vld [vmem:[%s10466_s3 + $0x28] sm:$0xf0] }
 0x973   :  { %v6127_v6 = vor.u32 %v6385_v24, %v6124_v28  ;;  %v6180_v24 = vld [vmem:[%s10466_s3 + $0x98] sm:$0xf0] }
 0x974   :  { %v4587_v44 = vmax.f32 %v11786_v60, %v4559_v53  ;;  %v4494_v21 = vpop.f32.mrf.mxu3  ;;  %v6147_v53 = vor.u32 %v6392_v58, %v6146_v17  ;;  %v6135_v60 = vor.u32 %v6387_v57, %v6132_v54  ;;  %v6399_v58 = vld [vmem:[%s10466_s3 + $0x94] sm:$0xf] }
 0x975   :  { %v4495_v10 = vadd.f32 %v4494_v21, %v4426_v16  ;;  %v6159_v21 = vor.u32 %v6393_v40, %v6156_v33  ;;  %v6183_v59 = vor.u32 %v6399_v58, %v6180_v24  ;;  %v6196_v40 = vld [vmem:[%s10466_s3 + $0xb8] sm:$0xf0] }
 0x976   :  { %v4755_v30 = vadd.f32 %v11787_v23, %v4587_v44  ;;  %v6162_v44 = vld [vmem:[%s10466_s3 + $0x70] sm:$0xf] }
 0x977   :  { %v6163_v23 = vor.u32 %v6396_v47, %v6162_v44 }
 0x978   :  { %v4779_v43 = vmax.f32 %v4755_v30, 0.0  ;;  %v6143_v30 = vor.u32 %v6389_v3, %v6140_v26  ;;  %v6401_v26 = vld [vmem:[%s10466_s3 + $0xa4] sm:$0xf] }
 0x979   :  { %v4561_v61 = vpop.f32.mrf.mxu0 }
 0x97a   :  { %v4562_v2 = vadd.f32 %v4561_v61, %v4493_v50  ;;  %v4816_v29 = vpack.c.bf16 %v4779_v43, %v4778_v18  ;;  %v6398_v50 = vld [vmem:[%s10466_s3 + $0x84] sm:$0xf0]  ;;  %v6391_v18 = vld [vmem:[%s10466_s3 + $0x54] sm:$0xf]  ;;  %v6148_v43 = vld [vmem:[%s10466_s3 + $0x58] sm:$0xf0] }
 0x97b   :  { %5119 = vmatmul.bf16.gmra.mxu1 %v6115_v34  ;;  %v6170_v34 = vld [vmem:[%s10466_s3 + $0x80] sm:$0xf]  ;;  %v6151_v61 = vor.u32 %v6391_v18, %v6148_v43 }
 0x97c   :  { %v4588_v48 = vmax.f32 %v11791_v51, %v4562_v2  ;;  %v6171_v62 = vor.u32 %v6398_v50, %v6170_v34 }
 0x97e   :  { %v4756_v7 = vadd.f32 %v11792_v27, %v4588_v48  ;;  %v6179_v48 = vor.u32 %v6400_v9, %v6178_v0  ;;  %v6402_v27 = vld [vmem:[%s10466_s3 + $0xa4] sm:$0xf0]  ;;  %v6403_v9 = vld [vmem:[%s10466_s3 + $0xb4] sm:$0xf] }
 0x980   :  { %v4780_v37 = vmax.f32 %v4756_v7, 0.0  ;;  %v6395_v7 = vld [vmem:[%s10466_s3 + $0x74] sm:$0xf] }
 0x981   :  { %v4563_v63 = vpop.f32.mrf.mxu0 }
 0x982   :  { %v4564_v35 = vadd.f32 %v4563_v63, %v4495_v10  ;;  %v10358_v10 = vpop.permute.xlu2 %4899 }
 0x984   :  { %v4589_v5 = vmax.f32 %v11795_v36, %v4564_v35  ;;  %v6186_v35 = vld [vmem:[%s10466_s3 + $0xa0] sm:$0xf] }
 0x985   :  { %v6187_v36 = vor.u32 %v6402_v27, %v6186_v35 }
 0x986   :  { %v4757_v15 = vadd.f32 %v11796_v46, %v4589_v5  ;;  %v6167_v5 = vor.u32 %v6395_v7, %v6164_v1  ;;  %v10375_v46 = vpop.permute.xlu1 %4919 }
 0x988   :  { %v4781_v14 = vmax.f32 %v4757_v15, 0.0 }
 0x98a   :  { %v4817_v55 = vpack.c.bf16 %v4781_v14, %v4780_v37  ;;  %v4875_v12 = vpop.permute.xlu2 %4874  ;;  %v6194_v37 = vld [vmem:[%s10466_s3 + $0xb0] sm:$0xf] }
 0x98b   :  { %5124 = vmatmul.bf16.gmra.mxu1 %v6123_v22 }
 0x98c   :  { %5179 = vmatpush.bf16.msrb.mxu2 %v4817_v55  ;;  %v6404_v55 = vld [vmem:[%s10466_s3 + $0xb4] sm:$0xf0] }
 0x98d   :  { %v6195_v38 = vor.u32 %v6404_v55, %v6194_v37 }
 0x98e   :  { %v10389_v13 = vpop.permute.xlu1 %4894 }
 0x990   :  { %5180 = vmatpush.bf16.msrb.mxu2 %v4816_v29  ;;  %v10339_v29 = vpop.permute.xlu0 %4914 }
 0x992   :  { %v4870_v22 = vpop.permute.xlu2 %4869 }
 0x994   :  { %5181 = vmatpush.bf16.msrb.mxu2 %v4815_v4  ;;  %v6138_v4 = vld [vmem:[%s10466_s3 + $0x40] sm:$0xf] }
 0x998   :  { %5182 = vmatpush.bf16.msrb.mxu2 %v10207_v42  ;;  %v6139_v42 = vor.u32 %v6390_v20, %v6138_v4  ;;  %v10356_v16 = vpop.permute.xlu0 %4909 }
 0x99a   :  { %v4845_v4 = vpop.permute.xlu2 %4844 }
 0x99b   :  { %5129 = vmatmul.bf16.gmra.mxu1 %v6131_v49  ;;  %6200 = vmatmul.msk.bf16.vlgmr.msrb.gmra.mxu2 %vm728_vm0, %v6111_v32  ;;  %v6175_v49 = vor.u32 %v6397_v56, %v6172_v8 }
 0x9a0   :  { %v10372_v31 = vpop.permute.xlu0 %4884 }
 0x9a8   :  { %v4880_v15 = vpop.permute.xlu0 %4879 }
 0x9ab   :  { %5134 = vmatmul.bf16.gmra.mxu1 %v6139_v42  ;;  %6201 = vmatmul.msk.bf16.gmra.mxu2 %vm728_vm0, %v6119_v41  ;;  %v10394_v41 = vpop.permute.xlu1 %4889 }
 0x9b0   :  { %v4855_v32 = vpop.permute.xlu0 %4854 }
 0x9b3   :  { %v4865_v54 = vpop.permute.xlu1 %4864 }
 0x9b8   :  { %v4850_v17 = vpop.permute.xlu0 %4849 }
 0x9bb   :  { %5139 = vmatmul.bf16.gmra.mxu1 %v6147_v53  ;;  %6202 = vmatmul.msk.bf16.gmra.mxu2 %vm728_vm0, %v6127_v6  ;;  %v4860_v3 = vpop.permute.xlu1 %4859 }
 0x9c3   :  { %v4955_v58 = vpop.permute.xlu1 %4954 }
 0x9cb   :  { %5144 = vmatmul.bf16.gmra.mxu1 %v6155_v11  ;;  %6203 = vmatmul.msk.bf16.gmra.mxu2 %vm728_vm0, %v6135_v60 }
 0x9db   :  { %5149 = vmatmul.bf16.gmra.mxu1 %v6163_v23  ;;  %6204 = vmatmul.msk.bf16.gmra.mxu2 %vm728_vm0, %v6143_v30  ;;  %v6188_v23 = vld [vmem:[%s10466_s3 + $0xa8] sm:$0xf0] }
 0x9dc   :  { %v6191_v18 = vor.u32 %v6401_v26, %v6188_v23 }
 0x9e8   :  { %v5115_v2 = vpop.f32.mrf.mxu1 }
 0x9e9   :  { %v5116_v20 = vadd.f32 %v5115_v2, %v4845_v4 }
 0x9eb   :  { %5154 = vmatmul.bf16.gmra.mxu1 %v6171_v62  ;;  %6205 = vmatmul.msk.bf16.gmra.mxu2 %vm728_vm0, %v6151_v61 }
 0x9f0   :  { %v5117_v51 = vpop.f32.mrf.mxu1 }
 0x9f1   :  { %v5118_v28 = vadd.f32 %v5117_v51, %v4850_v17 }
 0x9f8   :  { %v5120_v63 = vpop.f32.mrf.mxu1 }
 0x9f9   :  { %v5121_v11 = vadd.f32 %v5120_v63, %v4855_v32  ;;  %v6199_v63 = vor.u32 %v6403_v9, %v6196_v40 }
 0x9fb   :  { %5159 = vmatmul.bf16.gmra.mxu1 %v6179_v48  ;;  %6206 = vmatmul.msk.bf16.gmra.mxu2 %vm728_vm0, %v6159_v21 }
 0xa00   :  { %v5122_v25 = vpop.f32.mrf.mxu1 }
 0xa01   :  { %v5123_v30 = vadd.f32 %v5122_v25, %v4860_v3 }
 0xa08   :  { %v5125_v14 = vpop.f32.mrf.mxu1 }
 0xa09   :  { %v5126_v61 = vadd.f32 %v5125_v14, %v4865_v54 }
 0xa0b   :  { %5164 = vmatmul.bf16.gmra.mxu1 %v6187_v36  ;;  %6207 = vmatmul.msk.bf16.gmra.mxu2 %vm728_vm0, %v6167_v5 }
 0xa10   :  { %v5127_v52 = vpop.f32.mrf.mxu1 }
 0xa11   :  { %v5128_v33 = vadd.f32 %v5127_v52, %v4870_v22 }
 0xa18   :  { %v5130_v39 = vpop.f32.mrf.mxu1 }
 0xa19   :  { %v5131_v27 = vadd.f32 %v5130_v39, %v4875_v12 }
 0xa1b   :  { %5169 = vmatmul.bf16.gmra.mxu1 %v6195_v38  ;;  %6208 = vmatmul.msk.bf16.gmra.mxu2 %vm728_vm0, %v6175_v49 }
 0xa1e   :  { %v5184_v19 = vpop.f32.mrf.mxu2 }
 0xa1f   :  { %v10392_v42 = vadd.f32 %v5184_v19, %v5116_v20 }
 0xa20   :  { %v5132_v47 = vpop.f32.mrf.mxu1 }
 0xa21   :  { %v5133_v5 = vadd.f32 %v5132_v47, %v4880_v15 }
 0xa26   :  { %v5186_v53 = vpop.f32.mrf.mxu2 }
 0xa27   :  { %v10402_v6 = vadd.f32 %v5186_v53, %v5118_v28  ;;  %v4950_v28 = vpop.permute.xlu1 %4949 }
 0xa28   :  { %v5135_v62 = vpop.f32.mrf.mxu1 }
 0xa29   :  { %v5246_v57 = vpack.c.bf16 %v10402_v6, %v10392_v42  ;;  %v5136_v56 = vadd.f32 %v5135_v62, %v10372_v31 }
 0xa2b   :  { %6209 = vmatmul.msk.bf16.gmra.mxu2 %vm728_vm0, %v6183_v59 }
 0xa2e   :  { %v5189_v60 = vpop.f32.mrf.mxu2 }
 0xa2f   :  { %v10407_v44 = vadd.f32 %v5189_v60, %v5121_v11 }
 0xa30   :  { %v5137_v51 = vpop.f32.mrf.mxu1 }
 0xa36   :  { %v5191_v34 = vpop.f32.mrf.mxu2 }
 0xa37   :  { %v10415_v50 = vadd.f32 %v5191_v34, %v5123_v30  ;;  %v4925_v34 = vpop.permute.xlu1 %4924 }
 0xa38   :  { %v5140_v36 = vpop.f32.mrf.mxu1 }
 0xa39   :  { %v5247_v43 = vpack.c.bf16 %v10415_v50, %v10407_v44 }
 0xa3b   :  { %6210 = vmatmul.msk.bf16.gmra.mxu2 %vm728_vm0, %v6191_v18 }
 0xa3e   :  { %v5194_v2 = vpop.f32.mrf.mxu2 }
 0xa3f   :  { %v10420_v0 = vadd.f32 %v5194_v2, %v5126_v61  ;;  %v5138_v2 = vadd.f32 %v5137_v51, %v10394_v41  ;;  %v6406_v41 = vld [vmem:[%s10468_s5 + $0x4] sm:$0xf0] }
 0xa40   :  { %v5142_v55 = vpop.f32.mrf.mxu1 }
 0xa41   :  { %v5143_v23 = vadd.f32 %v5142_v55, %v10358_v10 }
 0xa46   :  { %v5196_v48 = vpop.f32.mrf.mxu2 }
 0xa47   :  { %v5197_v21 = vadd.f32 %v5196_v48, %v5128_v33 }
 0xa48   :  { %v5145_v38 = vpop.f32.mrf.mxu1 }
 0xa49   :  { %v5248_v35 = vpack.c.bf16 %v5197_v21, %v10420_v0  ;;  %v5146_v47 = vadd.f32 %v5145_v38, %v10344_v45 }
 0xa4b   :  { %6211 = vmatmul.msk.bf16.gmra.mxu2 %vm728_vm0, %v6199_v63 }
 0xa4e   :  { %v5199_v7 = vpop.f32.mrf.mxu2 }
 0xa4f   :  { %v5200_v1 = vadd.f32 %v5199_v7, %v5131_v27 }
 0xa50   :  { %v5147_v32 = vpop.f32.mrf.mxu1 }
 0xa51   :  { %v5148_v54 = vadd.f32 %v5147_v32, %v10356_v16 }
 0xa56   :  { %v5201_v25 = vpop.f32.mrf.mxu2 }
 0xa57   :  { %v5202_v37 = vadd.f32 %v5201_v25, %v5133_v5 }
 0xa58   :  { %v5150_v52 = vpop.f32.mrf.mxu1 }
 0xa59   :  { %v5249_v14 = vpack.c.bf16 %v5202_v37, %v5200_v1  ;;  %v5151_v53 = vadd.f32 %v5150_v52, %v10339_v29  ;;  %v5141_v29 = vadd.f32 %v5140_v36, %v10389_v13  ;;  %v6214_v13 = vld [vmem:[%s10468_s5] sm:$0xf]  ;;  %v4945_v36 = vpop.permute.xlu0 %4944 }
 0xa5a   :  { %v6215_v27 = vor.u32 %v6406_v41, %v6214_v13 }
 0xa5e   :  { %v5204_v22 = vpop.f32.mrf.mxu2 }
 0xa5f   :  { %v5205_v8 = vadd.f32 %v5204_v22, %v5136_v56 }
 0xa60   :  { %v5152_v12 = vpop.f32.mrf.mxu1 }
 0xa61   :  { %v5153_v59 = vadd.f32 %v5152_v12, %v10375_v46  ;;  %v4940_v6 = vpop.permute.xlu0 %4939 }
 0xa66   :  { %v5206_v49 = vpop.f32.mrf.mxu2 }
 0xa67   :  { %v5207_v45 = vadd.f32 %v5206_v49, %v5138_v2 }
 0xa68   :  { %v5155_v24 = vpop.f32.mrf.mxu1 }
 0xa69   :  { %v5156_v18 = vadd.f32 %v5155_v24, %v4925_v34  ;;  %v5250_v33 = vpack.c.bf16 %v5207_v45, %v5205_v8 }
 0xa6e   :  { %v5209_v4 = vpop.f32.mrf.mxu2 }
 0xa6f   :  { %v5210_v16 = vadd.f32 %v5209_v4, %v5141_v29 }
 0xa70   :  { %v10433_v31 = vpop.f32.mrf.mxu1 }
 0xa76   :  { %v5211_v20 = vpop.f32.mrf.mxu2 }
 0xa77   :  { %v5212_v46 = vadd.f32 %v5211_v20, %v5143_v23 }
 0xa78   :  { %v5160_v9 = vpop.f32.mrf.mxu1 }
 0xa79   :  { %v5251_v40 = vpack.c.bf16 %v5212_v46, %v5210_v16 }
 0xa7e   :  { %v5214_v19 = vpop.f32.mrf.mxu2 }
 0xa7f   :  { %v5215_v30 = vadd.f32 %v5214_v19, %v5146_v47 }
 0xa80   :  { %v5162_v48 = vpop.f32.mrf.mxu1 }
 0xa86   :  { %v5216_v17 = vpop.f32.mrf.mxu2 }
 0xa87   :  { %v5217_v3 = vadd.f32 %v5216_v17, %v5148_v54 }
 0xa88   :  { %v5165_v51 = vpop.f32.mrf.mxu1 }
 0xa89   :  { %v5252_v62 = vpack.c.bf16 %v5217_v3, %v5215_v30  ;;  %v5166_v38 = vadd.f32 %v5165_v51, %v4945_v36 }
 0xa8e   :  { %v5219_v15 = vpop.f32.mrf.mxu2 }
 0xa8f   :  { %v5220_v11 = vadd.f32 %v5219_v15, %v5151_v53  ;;  %v6405_v15 = vld [vmem:[%s10468_s5 + $0x4] sm:$0xf] }
 0xa96   :  { %v5221_v39 = vpop.f32.mrf.mxu2 }
 0xa97   :  { %v5222_v60 = vadd.f32 %v5221_v39, %v5153_v59 }
 0xa99   :  { %v5253_v26 = vpack.c.bf16 %v5222_v60, %v5220_v11  ;;  %v5263_v11 = vpop.permute.xlu0 %5262  ;;  %v5268_v60 = vpop.permute.xlu1 %5267 }
 0xa9b   :  { %5282 = vmatpush.bf16.msra.mxu3 %v5253_v26 }
 0xa9e   :  { %v5224_v61 = vpop.f32.mrf.mxu2 }
 0xa9f   :  { %v5225_v0 = vadd.f32 %v5224_v61, %v5156_v18  ;;  %5283 = vmatpush.bf16.msra.mxu3 %v5252_v62 }
 0xaa3   :  { %5284 = vmatpush.bf16.msra.mxu3 %v5251_v40 }
 0xaa6   :  { %v5226_v10 = vpop.f32.mrf.mxu2 }
 0xaa7   :  { %5285 = vmatpush.bf16.msra.mxu3 %v5250_v33 }
 0xaab   :  { %5286 = vmatpush.bf16.msra.mxu3 %v5249_v14 }
 0xaae   :  { %v5229_v21 = vpop.f32.mrf.mxu2 }
 0xaaf   :  { %5287 = vmatpush.bf16.msra.mxu3 %v5248_v35  ;;  %v5167_v35 = vpop.f32.mrf.mxu1 }
 0xab0   :  { %v5168_v56 = vadd.f32 %v5167_v35, %v4950_v28  ;;  %v6216_v28 = vld [vmem:[%s10468_s5 + $0x8] sm:$0xf0]  ;;  %s6612_s5 = smov [#allocation7]  }
 0xab1   :  { %v6219_v59 = vor.u32 %v6405_v15, %v6216_v28  ;;  %s5340_s27 = sshll.u32 %s6612_s5, 4  ;;  %s5341_s27 = int_to_ptr.vmem [resolvable:$true] %s5340_s27 }
 0xab3   :  { %5288 = vmatpush.bf16.msra.mxu3 %v5247_v43  ;;  %v4960_v43 = vpop.permute.xlu2 %4959 }
 0xab6   :  { %v5231_v63 = vpop.f32.mrf.mxu2 }
 0xab7   :  { %5289 = vmatpush.bf16.msra.mxu3 %v5246_v57  ;;  %v5170_v50 = vpop.f32.mrf.mxu1  ;;  %v5163_v57 = vadd.f32 %v5162_v48, %v4940_v6 }
 0xab8   :  { %v5171_v37 = vadd.f32 %v5170_v50, %v4955_v58 }
 0xab9   :  { %v5232_v20 = vadd.f32 %v5231_v63, %v5163_v57 }
 0xaba   :  { %5290 = vmatmul.bf16.vlgmr.msra.gmra.mxu3 %v6215_v27 }
 0xabb   :  { %v4935_v25 = vpop.permute.xlu2 %4934 }
 0xabc   :  { %v5161_v4 = vadd.f32 %v5160_v9, %v4935_v25 }
 0xabe   :  { %v5234_v7 = vpop.f32.mrf.mxu2  ;;  %v5230_v17 = vadd.f32 %v5229_v21, %v5161_v4 }
 0xabf   :  { %v5172_v5 = vpop.f32.mrf.mxu1  ;;  %v5235_v32 = vadd.f32 %v5234_v7, %v5166_v38 }
 0xac0   :  { %v5173_v14 = vadd.f32 %v5172_v5, %v4960_v43  ;;  %v5255_v24 = vpack.c.bf16 %v5232_v20, %v5230_v17 }
 0xac3   :  { %v4930_v19 = vpop.permute.xlu2 %4929 }
 0xac4   :  { %v5158_v12 = vadd.f32 %v10433_v31, %v4930_v19 }
 0xac6   :  { %v5236_v44 = vpop.f32.mrf.mxu2  ;;  %v5227_v58 = vadd.f32 %v5226_v10, %v5158_v12 }
 0xac7   :  { %v5237_v49 = vadd.f32 %v5236_v44, %v5168_v56 }
 0xac8   :  { %v5254_v53 = vpack.c.bf16 %v5227_v58, %v5225_v0 }
 0xac9   :  { %v5256_v52 = vpack.c.bf16 %v5237_v49, %v5235_v32 }
 0xace   :  { %v5239_v1 = vpop.f32.mrf.mxu2 }
 0xacf   :  { %v5240_v22 = vadd.f32 %v5239_v1, %v5171_v37 }
 0xad6   :  { %v5241_v55 = vpop.f32.mrf.mxu2 }
 0xad7   :  { %v5242_v8 = vadd.f32 %v5241_v55, %v5173_v14 }
 0xad9   :  { %v5257_v42 = vpack.c.bf16 %v5242_v8, %v5240_v22 }
 0xadb   :  { %5300 = vmatpush.bf16.msrb.mxu3 %v5257_v42 }
 0xadf   :  { %5301 = vmatpush.bf16.msrb.mxu3 %v5256_v52 }
 0xae3   :  { %5302 = vmatpush.bf16.msrb.mxu3 %v5255_v24 }
 0xae7   :  { %5303 = vmatpush.bf16.msrb.mxu3 %v5254_v53 }
 0xaea   :  { %6220 = vmatmul.msk.bf16.vlgmr.msrb.gmra.mxu3 %vm728_vm0, %v6219_v59 }
 0xb3d   :  { %v5291_v39 = vpop.f32.mrf.mxu3 }
 0xb3e   :  { %v5292_v47 = vadd.f32 %v5291_v39, %v5263_v11 }
 0xb45   :  { %v5293_v31 = vpop.f32.mrf.mxu3 }
 0xb46   :  { %v5294_v3 = vadd.f32 %v5293_v31, %v5268_v60 }
 0xb6d   :  { %v5305_v54 = vpop.f32.mrf.mxu3 }
 0xb6e   :  { %v5306_v23 = vadd.f32 %v5305_v54, %v5292_v47 }
 0xb75   :  { %v5307_v26 = vpop.f32.mrf.mxu3 }
 0xb76   :  { %v5308_v30 = vadd.f32 %v5307_v26, %v5294_v3 }
 0xb78   :  { %v5310_v34 = vmax.f32 %v5306_v23, %v5308_v30 }
 0xb7a   :  { %v5311_v29 = vrot.slane %v5310_v34, 4 }
 0xb7c   :  { %v5312_v18 = vmax.f32 %v5310_v34, %v5311_v29 }
 0xb7e   :  { %v5313_v46 = vrot.slane %v5312_v18, 2 }
 0xb80   :  { %v5314_v62 = vmax.f32 %v5312_v18, %v5313_v46 }
 0xb82   :  { %v5315_v61 = vrot.slane %v5314_v62, 1 }
 0xb84   :  { %v5316_v2 = vmax.f32 %v5314_v62, %v5315_v61 }
 0xb86   :  { %v5317_v16 = vsub.f32 %v5306_v23, %v5316_v2  ;;  %v5318_v0 = vsub.f32 %v5308_v30, %v5316_v2 }
 0xb88   :  { %v5319_v9 = vmul.f32 1.442695, %v5317_v16  ;;  %v5321_v45 = vmul.f32 1.442695, %v5318_v0 }
 0xb8a   :  { %6444 = vpow2.f32 %v5319_v9 }
 0xb8b   :  { %6446 = vpow2.f32 %v5321_v45 }
 0xb90   :  { %v6445_v40 = vpop.eup %6444 }
 0xb91   :  { %v6447_v33 = vpop.eup %6446 }
 0xb92   :  { %v5323_v10 = vadd.f32 %v6447_v33, %v6445_v40 }
 0xb94   :  { %v5324_v48 = vrot.slane %v5323_v10, 4 }
 0xb96   :  { %v5325_v21 = vadd.f32 %v5324_v48, %v5323_v10 }
 0xb98   :  { %v5326_v13 = vrot.slane %v5325_v21, 2 }
 0xb9a   :  { %v5327_v41 = vadd.f32 %v5326_v13, %v5325_v21 }
 0xb9c   :  { %v5328_v51 = vrot.slane %v5327_v41, 1 }
 0xb9e   :  { %v5329_v63 = vadd.f32 %v5328_v51, %v5327_v41 }
 0xba0   :  { %6448 = vlog2.f32 %v5329_v63 }
 0xba6   :  { %v6449_v27 = vpop.eup %6448 }
 0xba7   :  { %v5331_v35 = vmul.f32 0.6931472, %v6449_v27 }
 0xba9   :  { %v5332_v7 = vsub.f32 %v5317_v16, %v5331_v35  ;;  %v5333_v44 = vsub.f32 %v5318_v0, %v5331_v35 }
 0xbab   :  { %5334 = vst [vmem:[#allocation7] sm:$0xff] %v5332_v7 }
 0xbac   :  { %5335 = vst [vmem:[#allocation7 + $0x8] sm:$0xff] %v5333_v44 }
 0xbad   :  { %5348 = dma.vmem_to_hbm [thread:$0]  %s5341_s27, 256, %s5343_s6, [#allocation4], %s6613_s30, %s6613_s30, %s6614_s8  }
 0xbae   :  { %6603 = dma.done.wait [#allocation4], 256  }
 0xbaf   :  { %6604 = vsyncadd [#allocation4], 4294967040 }
 0xbb0   :  { %5353 = vsyncpa [#allocation3], 1 }
 0xbb1   :  { %5354 = vsyncpa [#allocation6], 1 }
 0xbb2   :  { %5355 = vsyncpa [#allocation4], 1 }

</bundles_post_ra>
